<compile_context>
chip_gen: v5e
topology: v5e:2x2
jax: 0.10.0
libtpu: 0.0.40
codegen_flags: <defaults>
</compile_context>

<pallas_src>
import functools

import jax
import jax.numpy as jnp
from jax.experimental import pallas as pl
from jax.experimental.pallas import tpu as pltpu


def _pick_row_tile(ho, wo):
    """Smallest row-tile th with th | Ho and (th*Wo) % 128 == 0 (falls back to Ho)."""
    for th in range(1, ho + 1):
        if ho % th == 0 and (th * wo) % 128 == 0 and th * wo <= 2048:
            return th
    return ho


def _mdcn_kernel(x_ref, off_ref, msk_ref, w_ref, b_ref, hb_ref, wb_ref,
                 o_ref, gbuf_ref, *, kh, kw, in_h, in_w, dil_h, dil_w, cin_pad):
    """One grid step = one (batch, output-row-tile).

    x_ref:   (1, Cin_pad, H*W)      full image, channel-major, lane = H*W (dense)
    off_ref: (1, 2*K, P)            per-tap (dy, dx) offsets for this row tile
    msk_ref: (1, K, P)              per-tap modulation mask
    w_ref:   (Cout, K*Cin_pad)      conv weight, im2col column order
    b_ref:   (Cout, 1)              bias
    hb_ref:  (1, P)                 base row coord  (= row*stride - pad), f32
    wb_ref:  (1, P)                 base col coord  (= col*stride - pad), f32
    o_ref:   (1, Cout, P)           output tile (lane-dense)
    gbuf_ref:(K*Cin_pad, P) VMEM    im2col scratch
    """
    kk = kh * kw
    hw = in_h * in_w

    x_cm = x_ref[0]                      # (Cin_pad, H*W)
    off = off_ref[0]                     # (2*K, P)
    msk = msk_ref[0]                     # (K, P)
    hb = hb_ref[...]                     # (1, P)
    wb = wb_ref[...]                     # (1, P)
    p = hb.shape[1]

    # flat-pixel iota used to build the one-hot bilinear gather matrices
    q = jax.lax.broadcasted_iota(jnp.int32, (hw, p), 0)

    for k in range(kk):                  # static, unrolled (K = kh*kw, small)
        i, j = k // kw, k % kw
        dy = off[2 * k:2 * k + 1, :]     # (1, P)
        dx = off[2 * k + 1:2 * k + 2, :]
        m = msk[k:k + 1, :]

        h_im = hb + float(i * dil_h) + dy
        w_im = wb + float(j * dil_w) + dx

        h0f = jnp.floor(h_im)
        w0f = jnp.floor(w_im)
        lh = h_im - h0f
        lw = w_im - w0f
        h0 = h0f.astype(jnp.int32)
        w0 = w0f.astype(jnp.int32)
        h1 = h0 + 1
        w1 = w0 + 1

        vh0 = (h0 >= 0) & (h0 < in_h)
        vh1 = (h1 >= 0) & (h1 < in_h)
        vw0 = (w0 >= 0) & (w0 < in_w)
        vw1 = (w1 >= 0) & (w1 < in_w)

        # bilinear corner weights, modulated by mask; OOB corners contribute 0
        wtl = jnp.where(vh0 & vw0, (1.0 - lh) * (1.0 - lw), 0.0) * m
        wtr = jnp.where(vh0 & vw1, (1.0 - lh) * lw, 0.0) * m
        wbl = jnp.where(vh1 & vw0, lh * (1.0 - lw), 0.0) * m
        wbr = jnp.where(vh1 & vw1, lh * lw, 0.0) * m

        ftl = h0 * in_w + w0
        ftr = h0 * in_w + w1
        fbl = h1 * in_w + w0
        fbr = h1 * in_w + w1

        # (H*W, P) sparse sampling matrix for this tap (<= 4 nonzeros per column)
        s = (jnp.where(q == ftl, wtl, 0.0) + jnp.where(q == ftr, wtr, 0.0) +
             jnp.where(q == fbl, wbl, 0.0) + jnp.where(q == fbr, wbr, 0.0))

        # gather + interpolate + modulate as one MXU matmul (K = H*W, lane-dense)
        g = jnp.dot(x_cm, s, preferred_element_type=jnp.float32)   # (Cin_pad, P)
        gbuf_ref[k * cin_pad:(k + 1) * cin_pad, :] = g

    # single fused im2col contraction: (Cout, K*Cin_pad) @ (K*Cin_pad, P)
    out = jnp.dot(w_ref[...], gbuf_ref[...], preferred_element_type=jnp.float32)
    out = out + b_ref[...]               # f32 epilogue (v5e-friendly)
    o_ref[0] = out.astype(o_ref.dtype)


def modulated_deform_conv_forward(x, offset, mask, weight, bias, *, stride=1,
                                  padding=0, dilation=1, groups=1,
                                  deformable_groups=1):
    """ModulatedDeformConv.forward.

    x:      (N, Cin, H, W)
    offset: (N, 2*dg*kh*kw, Ho, Wo)   channel order [dy_k0, dx_k0, dy_k1, ...]
    mask:   (N, dg*kh*kw, Ho, Wo)
    weight: (Cout, Cin//groups, kh, kw);  bias: (Cout,)
    """
    n, cin, h, w = x.shape
    cout, cin_g, kh, kw = weight.shape
    # TODO(synk): groups > 1 and deformable_groups > 1 are not implemented
    # (module defaults are 1); only the default configuration is supported.
    assert groups == 1 and cin_g == cin
    assert deformable_groups == 1

    kk = kh * kw
    ho = (h + 2 * padding - dilation * (kh - 1) - 1) // stride + 1
    wo = (w + 2 * padding - dilation * (kw - 1) - 1) // stride + 1
    assert offset.shape == (n, 2 * kk, ho, wo)
    assert mask.shape == (n, kk, ho, wo)

    hw = h * w
    cin_pad = ((cin + 7) // 8) * 8      # sublane-align the channel axis

    # channel-major, spatially-flattened layouts (lane axis = spatial -> dense)
    x_cm = x.reshape(n, cin, hw).astype(jnp.float32)
    if cin_pad != cin:
        x_cm = jnp.pad(x_cm, ((0, 0), (0, cin_pad - cin), (0, 0)))
    off_f = offset.reshape(n, 2 * kk, ho * wo).astype(jnp.float32)
    msk_f = mask.reshape(n, kk, ho * wo).astype(jnp.float32)

    # weight -> (Cout, K*Cin_pad); column (k*Cin_pad + c) <-> (tap k, channel c)
    wt = jnp.transpose(weight, (0, 2, 3, 1)).astype(jnp.float32)   # (Cout,kh,kw,Cin)
    if cin_pad != cin:
        wt = jnp.pad(wt, ((0, 0), (0, 0), (0, 0), (0, cin_pad - cin)))
    wmat = wt.reshape(cout, kk * cin_pad)
    b2 = bias.reshape(cout, 1).astype(jnp.float32)

    # base (undeformed) sampling coordinates per output pixel (row-major flat)
    pidx = jnp.arange(ho * wo)
    hb = ((pidx // wo) * stride - padding).astype(jnp.float32).reshape(1, ho * wo)
    wb = ((pidx % wo) * stride - padding).astype(jnp.float32).reshape(1, ho * wo)

    tile_h = _pick_row_tile(ho, wo)
    num_tiles = ho // tile_h
    p_tile = tile_h * wo

    kernel = functools.partial(_mdcn_kernel, kh=kh, kw=kw, in_h=h, in_w=w,
                               dil_h=dilation, dil_w=dilation, cin_pad=cin_pad)

    out = pl.pallas_call(
        kernel,
        out_shape=jax.ShapeDtypeStruct((n, cout, ho * wo), x.dtype),
        grid_spec=pltpu.PrefetchScalarGridSpec(
            num_scalar_prefetch=0,
            grid=(n, num_tiles),
            in_specs=[
                pl.BlockSpec((1, cin_pad, hw), lambda b, t: (b, 0, 0)),
                pl.BlockSpec((1, 2 * kk, p_tile), lambda b, t: (b, 0, t)),
                pl.BlockSpec((1, kk, p_tile), lambda b, t: (b, 0, t)),
                pl.BlockSpec((cout, kk * cin_pad), lambda b, t: (0, 0)),
                pl.BlockSpec((cout, 1), lambda b, t: (0, 0)),
                pl.BlockSpec((1, p_tile), lambda b, t: (0, t)),
                pl.BlockSpec((1, p_tile), lambda b, t: (0, t)),
            ],
            out_specs=pl.BlockSpec((1, cout, p_tile), lambda b, t: (b, 0, t)),
            scratch_shapes=[pltpu.VMEM((kk * cin_pad, p_tile), jnp.float32)],
        ),
        compiler_params=pltpu.CompilerParams(
            dimension_semantics=("parallel", "parallel")),
    )(x_cm, off_f, msk_f, wmat, b2, hb, wb)

    return out.reshape(n, cout, ho, wo)


def _reference(x, offset, mask, weight, bias, *, stride, padding, dilation):
    """Pure-JAX reference of the DCNv2 forward (per-corner OOB semantics)."""
    n, cin, h, w = x.shape
    cout, _, kh, kw = weight.shape
    kk = kh * kw
    ho = (h + 2 * padding - dilation * (kh - 1) - 1) // stride + 1
    wo = (w + 2 * padding - dilation * (kw - 1) - 1) // stride + 1
    off = offset.reshape(n, kk, 2, ho, wo)
    msk = mask.reshape(n, kk, ho, wo)
    ys = (jnp.arange(ho) * stride - padding).astype(jnp.float32)
    xs = (jnp.arange(wo) * stride - padding).astype(jnp.float32)
    bidx = jnp.arange(n)[:, None, None]
    out = jnp.zeros((n, cout, ho, wo), jnp.float32)
    for k in range(kk):
        i, j = k // kw, k % kw
        py = ys[None, :, None] + i * dilation + off[:, k, 0]   # (n, ho, wo)
        px = xs[None, None, :] + j * dilation + off[:, k, 1]
        y0f = jnp.floor(py)
        x0f = jnp.floor(px)
        ly = py - y0f
        lx = px - x0f
        y0 = y0f.astype(jnp.int32)
        x0 = x0f.astype(jnp.int32)
        val = jnp.zeros((n, ho, wo, cin), jnp.float32)
        corners = [(y0, x0, (1 - ly) * (1 - lx)), (y0, x0 + 1, (1 - ly) * lx),
                   (y0 + 1, x0, ly * (1 - lx)), (y0 + 1, x0 + 1, ly * lx)]
        for yc, xc, wgt in corners:
            valid = (yc >= 0) & (yc < h) & (xc >= 0) & (xc < w)
            v = x[bidx, :, jnp.clip(yc, 0, h - 1), jnp.clip(xc, 0, w - 1)]
            val = val + jnp.where(valid, wgt, 0.0)[..., None] * v
        val = val * msk[:, k][..., None]
        out = out + jnp.einsum('nhwc,oc->nohw', val, weight[:, :, i, j],
                               precision=jax.lax.Precision.HIGHEST)
    return out + bias.reshape(1, cout, 1, 1)


if __name__ == "__main__":
    # ModulatedDeformConv(in_channels=4, out_channels=8, kernel_size=3, stride=1,
    #                     padding=1, dilation=1, groups=1, deformable_groups=1)
    n, cin, h, w = 2, 4, 16, 16
    cout, ks, stride, padding, dilation = 8, 3, 1, 1, 1
    kk = ks * ks
    ho = (h + 2 * padding - dilation * (ks - 1) - 1) // stride + 1
    wo = (w + 2 * padding - dilation * (ks - 1) - 1) // stride + 1

    key = jax.random.PRNGKey(0)
    k_x, k_o, k_m, k_w, k_b = jax.random.split(key, 5)
    x = jax.random.normal(k_x, (n, cin, h, w), jnp.float32)
    offset = 2.0 * jax.random.normal(k_o, (n, 2 * kk, ho, wo), jnp.float32)
    mask = jax.nn.sigmoid(jax.random.normal(k_m, (n, kk, ho, wo), jnp.float32))
    fan_in = cin * ks * ks
    weight = jax.random.normal(k_w, (cout, cin, ks, ks), jnp.float32) / jnp.sqrt(fan_in)
    bias = 0.1 * jax.random.normal(k_b, (cout,), jnp.float32)

    out = modulated_deform_conv_forward(x, offset, mask, weight, bias,
                                        stride=stride, padding=padding,
                                        dilation=dilation)
    out = jax.block_until_ready(out)

    ref = _reference(x, offset, mask, weight, bias, stride=stride,
                     padding=padding, dilation=dilation)
    assert out.shape == (n, cout, ho, wo)
    # small tolerance headroom for MXU f32 pass rounding in the in-kernel matmuls
    assert jnp.allclose(out, ref, atol=2e-3, rtol=2e-3), \
        float(jnp.max(jnp.abs(out - ref)))
    print("KERNEL_OK")
</pallas_src>

<mosaic_0001>
module attributes {stable_mosaic.version = 11 : i64} {
  func.func @_mdcn_kernel(%arg0: i32, %arg1: i32, %arg2: memref<1x8x256xf32, #tpu.memory_space<vmem>>, %arg3: memref<1x18x128xf32, #tpu.memory_space<vmem>>, %arg4: memref<1x9x128xf32, #tpu.memory_space<vmem>>, %arg5: memref<8x72xf32, #tpu.memory_space<vmem>>, %arg6: memref<8x1xf32, #tpu.memory_space<vmem>>, %arg7: memref<1x128xf32, #tpu.memory_space<vmem>>, %arg8: memref<1x128xf32, #tpu.memory_space<vmem>>, %arg9: memref<1x8x128xf32, #tpu.memory_space<vmem>>, %arg10: memref<72x128xf32, #tpu.memory_space<vmem>>) attributes {dimension_semantics = [#tpu.dimension_semantics<parallel>, #tpu.dimension_semantics<parallel>], iteration_bounds = array<i64: 2, 2>, scalar_prefetch = 0 : i64, scratch_operands = 1 : i64, tpu.core_type = #tpu.core_type<tc>, window_params = [{transform_indices = @transform_0, window_bounds = array<i64: 1, 8, 256>}, {transform_indices = @transform_1, window_bounds = array<i64: 1, 18, 128>}, {transform_indices = @transform_2, window_bounds = array<i64: 1, 9, 128>}, {pipeline_mode = #tpu.pipeline_mode<synchronous>, transform_indices = @transform_3, window_bounds = array<i64: 8, 72>}, {pipeline_mode = #tpu.pipeline_mode<synchronous>, transform_indices = @transform_4, window_bounds = array<i64: 8, 1>}, {transform_indices = @transform_5, window_bounds = array<i64: 1, 128>}, {transform_indices = @transform_6, window_bounds = array<i64: 1, 128>}, {transform_indices = @transform_7, window_bounds = array<i64: 1, 8, 128>}]} {
    %c0 = arith.constant 0 : index
    %c0_0 = arith.constant 0 : index
    %c0_1 = arith.constant 0 : index
    %0 = vector.load %arg2[%c0, %c0_0, %c0_1] : memref<1x8x256xf32, #tpu.memory_space<vmem>>, vector<1x8x256xf32>
    %1 = vector.shape_cast %0 : vector<1x8x256xf32> to vector<8x256xf32>
    %c0_2 = arith.constant 0 : index
    %c0_3 = arith.constant 0 : index
    %c0_4 = arith.constant 0 : index
    %2 = vector.load %arg3[%c0_2, %c0_3, %c0_4] : memref<1x18x128xf32, #tpu.memory_space<vmem>>, vector<1x18x128xf32>
    %3 = vector.shape_cast %2 : vector<1x18x128xf32> to vector<18x128xf32>
    %c0_5 = arith.constant 0 : index
    %c0_6 = arith.constant 0 : index
    %c0_7 = arith.constant 0 : index
    %4 = vector.load %arg4[%c0_5, %c0_6, %c0_7] : memref<1x9x128xf32, #tpu.memory_space<vmem>>, vector<1x9x128xf32>
    %5 = vector.shape_cast %4 : vector<1x9x128xf32> to vector<9x128xf32>
    %c0_8 = arith.constant 0 : index
    %c0_9 = arith.constant 0 : index
    %6 = vector.load %arg7[%c0_8, %c0_9] : memref<1x128xf32, #tpu.memory_space<vmem>>, vector<1x128xf32>
    %c0_10 = arith.constant 0 : index
    %c0_11 = arith.constant 0 : index
    %7 = vector.load %arg8[%c0_10, %c0_11] : memref<1x128xf32, #tpu.memory_space<vmem>>, vector<1x128xf32>
    %8 = tpu.iota {dimensions = array<i32: 0>} : vector<256x128xi32>
    %9 = vector.extract_strided_slice %3 {offsets = [0, 0], sizes = [1, 128], strides = [1, 1]} : vector<18x128xf32> to vector<1x128xf32>
    %10 = vector.extract_strided_slice %3 {offsets = [1, 0], sizes = [1, 128], strides = [1, 1]} : vector<18x128xf32> to vector<1x128xf32>
    %11 = vector.extract_strided_slice %5 {offsets = [0, 0], sizes = [1, 128], strides = [1, 1]} : vector<9x128xf32> to vector<1x128xf32>
    %cst = arith.constant 0.000000e+00 : f32
    %12 = vector.broadcast %cst : f32 to vector<1x128xf32>
    %13 = arith.addf %6, %12 : vector<1x128xf32>
    %14 = arith.addf %13, %9 : vector<1x128xf32>
    %cst_12 = arith.constant 0.000000e+00 : f32
    %15 = vector.broadcast %cst_12 : f32 to vector<1x128xf32>
    %16 = arith.addf %7, %15 : vector<1x128xf32>
    %17 = arith.addf %16, %10 : vector<1x128xf32>
    %18 = math.floor %14 : vector<1x128xf32>
    %19 = math.floor %17 : vector<1x128xf32>
    %20 = arith.subf %14, %18 : vector<1x128xf32>
    %21 = arith.subf %17, %19 : vector<1x128xf32>
    %22 = arith.fptosi %18 : vector<1x128xf32> to vector<1x128xi32>
    %23 = arith.fptosi %19 : vector<1x128xf32> to vector<1x128xi32>
    %c1_i32 = arith.constant 1 : i32
    %24 = vector.broadcast %c1_i32 : i32 to vector<1x128xi32>
    %25 = arith.addi %22, %24 : vector<1x128xi32>
    %c1_i32_13 = arith.constant 1 : i32
    %26 = vector.broadcast %c1_i32_13 : i32 to vector<1x128xi32>
    %27 = arith.addi %23, %26 : vector<1x128xi32>
    %c0_i32 = arith.constant 0 : i32
    %28 = vector.broadcast %c0_i32 : i32 to vector<1x128xi32>
    %29 = arith.cmpi sge, %22, %28 : vector<1x128xi32>
    %c16_i32 = arith.constant 16 : i32
    %30 = vector.broadcast %c16_i32 : i32 to vector<1x128xi32>
    %31 = arith.cmpi slt, %22, %30 : vector<1x128xi32>
    %32 = arith.andi %29, %31 : vector<1x128xi1>
    %c0_i32_14 = arith.constant 0 : i32
    %33 = vector.broadcast %c0_i32_14 : i32 to vector<1x128xi32>
    %34 = arith.cmpi sge, %25, %33 : vector<1x128xi32>
    %c16_i32_15 = arith.constant 16 : i32
    %35 = vector.broadcast %c16_i32_15 : i32 to vector<1x128xi32>
    %36 = arith.cmpi slt, %25, %35 : vector<1x128xi32>
    %37 = arith.andi %34, %36 : vector<1x128xi1>
    %c0_i32_16 = arith.constant 0 : i32
    %38 = vector.broadcast %c0_i32_16 : i32 to vector<1x128xi32>
    %39 = arith.cmpi sge, %23, %38 : vector<1x128xi32>
    %c16_i32_17 = arith.constant 16 : i32
    %40 = vector.broadcast %c16_i32_17 : i32 to vector<1x128xi32>
    %41 = arith.cmpi slt, %23, %40 : vector<1x128xi32>
    %42 = arith.andi %39, %41 : vector<1x128xi1>
    %c0_i32_18 = arith.constant 0 : i32
    %43 = vector.broadcast %c0_i32_18 : i32 to vector<1x128xi32>
    %44 = arith.cmpi sge, %27, %43 : vector<1x128xi32>
    %c16_i32_19 = arith.constant 16 : i32
    %45 = vector.broadcast %c16_i32_19 : i32 to vector<1x128xi32>
    %46 = arith.cmpi slt, %27, %45 : vector<1x128xi32>
    %47 = arith.andi %44, %46 : vector<1x128xi1>
    %48 = arith.andi %32, %42 : vector<1x128xi1>
    %cst_20 = arith.constant 1.000000e+00 : f32
    %49 = vector.broadcast %cst_20 : f32 to vector<1x128xf32>
    %50 = arith.subf %49, %20 : vector<1x128xf32>
    %cst_21 = arith.constant 1.000000e+00 : f32
    %51 = vector.broadcast %cst_21 : f32 to vector<1x128xf32>
    %52 = arith.subf %51, %21 : vector<1x128xf32>
    %53 = arith.mulf %50, %52 : vector<1x128xf32>
    %cst_22 = arith.constant 0.000000e+00 : f32
    %54 = vector.broadcast %cst_22 : f32 to vector<1x128xf32>
    %55 = arith.select %48, %53, %54 : vector<1x128xi1>, vector<1x128xf32>
    %56 = arith.mulf %55, %11 : vector<1x128xf32>
    %57 = arith.andi %32, %47 : vector<1x128xi1>
    %cst_23 = arith.constant 1.000000e+00 : f32
    %58 = vector.broadcast %cst_23 : f32 to vector<1x128xf32>
    %59 = arith.subf %58, %20 : vector<1x128xf32>
    %60 = arith.mulf %59, %21 : vector<1x128xf32>
    %cst_24 = arith.constant 0.000000e+00 : f32
    %61 = vector.broadcast %cst_24 : f32 to vector<1x128xf32>
    %62 = arith.select %57, %60, %61 : vector<1x128xi1>, vector<1x128xf32>
    %63 = arith.mulf %62, %11 : vector<1x128xf32>
    %64 = arith.andi %37, %42 : vector<1x128xi1>
    %cst_25 = arith.constant 1.000000e+00 : f32
    %65 = vector.broadcast %cst_25 : f32 to vector<1x128xf32>
    %66 = arith.subf %65, %21 : vector<1x128xf32>
    %67 = arith.mulf %20, %66 : vector<1x128xf32>
    %cst_26 = arith.constant 0.000000e+00 : f32
    %68 = vector.broadcast %cst_26 : f32 to vector<1x128xf32>
    %69 = arith.select %64, %67, %68 : vector<1x128xi1>, vector<1x128xf32>
    %70 = arith.mulf %69, %11 : vector<1x128xf32>
    %71 = arith.andi %37, %47 : vector<1x128xi1>
    %72 = arith.mulf %20, %21 : vector<1x128xf32>
    %cst_27 = arith.constant 0.000000e+00 : f32
    %73 = vector.broadcast %cst_27 : f32 to vector<1x128xf32>
    %74 = arith.select %71, %72, %73 : vector<1x128xi1>, vector<1x128xf32>
    %75 = arith.mulf %74, %11 : vector<1x128xf32>
    %c16_i32_28 = arith.constant 16 : i32
    %76 = vector.broadcast %c16_i32_28 : i32 to vector<1x128xi32>
    %77 = arith.muli %22, %76 : vector<1x128xi32>
    %78 = arith.addi %77, %23 : vector<1x128xi32>
    %c16_i32_29 = arith.constant 16 : i32
    %79 = vector.broadcast %c16_i32_29 : i32 to vector<1x128xi32>
    %80 = arith.muli %22, %79 : vector<1x128xi32>
    %81 = arith.addi %80, %27 : vector<1x128xi32>
    %c16_i32_30 = arith.constant 16 : i32
    %82 = vector.broadcast %c16_i32_30 : i32 to vector<1x128xi32>
    %83 = arith.muli %25, %82 : vector<1x128xi32>
    %84 = arith.addi %83, %23 : vector<1x128xi32>
    %c16_i32_31 = arith.constant 16 : i32
    %85 = vector.broadcast %c16_i32_31 : i32 to vector<1x128xi32>
    %86 = arith.muli %25, %85 : vector<1x128xi32>
    %87 = arith.addi %86, %27 : vector<1x128xi32>
    %88 = vector.broadcast %78 : vector<1x128xi32> to vector<256x128xi32>
    %89 = arith.cmpi eq, %8, %88 : vector<256x128xi32>
    %cst_32 = arith.constant 0.000000e+00 : f32
    %90 = vector.shape_cast %56 : vector<1x128xf32> to vector<1x128xf32>
    %91 = vector.broadcast %90 : vector<1x128xf32> to vector<256x128xf32>
    %92 = vector.broadcast %cst_32 : f32 to vector<256x128xf32>
    %93 = arith.select %89, %91, %92 : vector<256x128xi1>, vector<256x128xf32>
    %94 = vector.broadcast %81 : vector<1x128xi32> to vector<256x128xi32>
    %95 = arith.cmpi eq, %8, %94 : vector<256x128xi32>
    %cst_33 = arith.constant 0.000000e+00 : f32
    %96 = vector.shape_cast %63 : vector<1x128xf32> to vector<1x128xf32>
    %97 = vector.broadcast %96 : vector<1x128xf32> to vector<256x128xf32>
    %98 = vector.broadcast %cst_33 : f32 to vector<256x128xf32>
    %99 = arith.select %95, %97, %98 : vector<256x128xi1>, vector<256x128xf32>
    %100 = arith.addf %93, %99 : vector<256x128xf32>
    %101 = vector.broadcast %84 : vector<1x128xi32> to vector<256x128xi32>
    %102 = arith.cmpi eq, %8, %101 : vector<256x128xi32>
    %cst_34 = arith.constant 0.000000e+00 : f32
    %103 = vector.shape_cast %70 : vector<1x128xf32> to vector<1x128xf32>
    %104 = vector.broadcast %103 : vector<1x128xf32> to vector<256x128xf32>
    %105 = vector.broadcast %cst_34 : f32 to vector<256x128xf32>
    %106 = arith.select %102, %104, %105 : vector<256x128xi1>, vector<256x128xf32>
    %107 = arith.addf %100, %106 : vector<256x128xf32>
    %108 = vector.broadcast %87 : vector<1x128xi32> to vector<256x128xi32>
    %109 = arith.cmpi eq, %8, %108 : vector<256x128xi32>
    %cst_35 = arith.constant 0.000000e+00 : f32
    %110 = vector.shape_cast %75 : vector<1x128xf32> to vector<1x128xf32>
    %111 = vector.broadcast %110 : vector<1x128xf32> to vector<256x128xf32>
    %112 = vector.broadcast %cst_35 : f32 to vector<256x128xf32>
    %113 = arith.select %109, %111, %112 : vector<256x128xi1>, vector<256x128xf32>
    %114 = arith.addf %107, %113 : vector<256x128xf32>
    %cst_36 = arith.constant dense<0.000000e+00> : vector<8x128xf32>
    %115 = tpu.matmul %1, %114, %cst_36 {dimension_numbers = #tpu.dot_dimension_numbers<[1], [0], [0], [1], [0, 0, 1, 1], [], []>} : vector<8x256xf32>, vector<256x128xf32>, vector<8x128xf32> -> vector<8x128xf32>
    %c0_37 = arith.constant 0 : index
    %c0_38 = arith.constant 0 : index
    %116 = vector.load %arg10[%c0_37, %c0_38] : memref<72x128xf32, #tpu.memory_space<vmem>>, vector<8x128xf32>
    tpu.vector_store %arg10[%c0_37, %c0_38], %115 {strides = array<i32>} : memref<72x128xf32, #tpu.memory_space<vmem>>, vector<8x128xf32>,
    %117 = vector.extract_strided_slice %3 {offsets = [2, 0], sizes = [1, 128], strides = [1, 1]} : vector<18x128xf32> to vector<1x128xf32>
    %118 = vector.extract_strided_slice %3 {offsets = [3, 0], sizes = [1, 128], strides = [1, 1]} : vector<18x128xf32> to vector<1x128xf32>
    %119 = vector.extract_strided_slice %5 {offsets = [1, 0], sizes = [1, 128], strides = [1, 1]} : vector<9x128xf32> to vector<1x128xf32>
    %cst_39 = arith.constant 0.000000e+00 : f32
    %120 = vector.broadcast %cst_39 : f32 to vector<1x128xf32>
    %121 = arith.addf %6, %120 : vector<1x128xf32>
    %122 = arith.addf %121, %117 : vector<1x128xf32>
    %cst_40 = arith.constant 1.000000e+00 : f32
    %123 = vector.broadcast %cst_40 : f32 to vector<1x128xf32>
    %124 = arith.addf %7, %123 : vector<1x128xf32>
    %125 = arith.addf %124, %118 : vector<1x128xf32>
    %126 = math.floor %122 : vector<1x128xf32>
    %127 = math.floor %125 : vector<1x128xf32>
    %128 = arith.subf %122, %126 : vector<1x128xf32>
    %129 = arith.subf %125, %127 : vector<1x128xf32>
    %130 = arith.fptosi %126 : vector<1x128xf32> to vector<1x128xi32>
    %131 = arith.fptosi %127 : vector<1x128xf32> to vector<1x128xi32>
    %c1_i32_41 = arith.constant 1 : i32
    %132 = vector.broadcast %c1_i32_41 : i32 to vector<1x128xi32>
    %133 = arith.addi %130, %132 : vector<1x128xi32>
    %c1_i32_42 = arith.constant 1 : i32
    %134 = vector.broadcast %c1_i32_42 : i32 to vector<1x128xi32>
    %135 = arith.addi %131, %134 : vector<1x128xi32>
    %c0_i32_43 = arith.constant 0 : i32
    %136 = vector.broadcast %c0_i32_43 : i32 to vector<1x128xi32>
    %137 = arith.cmpi sge, %130, %136 : vector<1x128xi32>
    %c16_i32_44 = arith.constant 16 : i32
    %138 = vector.broadcast %c16_i32_44 : i32 to vector<1x128xi32>
    %139 = arith.cmpi slt, %130, %138 : vector<1x128xi32>
    %140 = arith.andi %137, %139 : vector<1x128xi1>
    %c0_i32_45 = arith.constant 0 : i32
    %141 = vector.broadcast %c0_i32_45 : i32 to vector<1x128xi32>
    %142 = arith.cmpi sge, %133, %141 : vector<1x128xi32>
    %c16_i32_46 = arith.constant 16 : i32
    %143 = vector.broadcast %c16_i32_46 : i32 to vector<1x128xi32>
    %144 = arith.cmpi slt, %133, %143 : vector<1x128xi32>
    %145 = arith.andi %142, %144 : vector<1x128xi1>
    %c0_i32_47 = arith.constant 0 : i32
    %146 = vector.broadcast %c0_i32_47 : i32 to vector<1x128xi32>
    %147 = arith.cmpi sge, %131, %146 : vector<1x128xi32>
    %c16_i32_48 = arith.constant 16 : i32
    %148 = vector.broadcast %c16_i32_48 : i32 to vector<1x128xi32>
    %149 = arith.cmpi slt, %131, %148 : vector<1x128xi32>
    %150 = arith.andi %147, %149 : vector<1x128xi1>
    %c0_i32_49 = arith.constant 0 : i32
    %151 = vector.broadcast %c0_i32_49 : i32 to vector<1x128xi32>
    %152 = arith.cmpi sge, %135, %151 : vector<1x128xi32>
    %c16_i32_50 = arith.constant 16 : i32
    %153 = vector.broadcast %c16_i32_50 : i32 to vector<1x128xi32>
    %154 = arith.cmpi slt, %135, %153 : vector<1x128xi32>
    %155 = arith.andi %152, %154 : vector<1x128xi1>
    %156 = arith.andi %140, %150 : vector<1x128xi1>
    %cst_51 = arith.constant 1.000000e+00 : f32
    %157 = vector.broadcast %cst_51 : f32 to vector<1x128xf32>
    %158 = arith.subf %157, %128 : vector<1x128xf32>
    %cst_52 = arith.constant 1.000000e+00 : f32
    %159 = vector.broadcast %cst_52 : f32 to vector<1x128xf32>
    %160 = arith.subf %159, %129 : vector<1x128xf32>
    %161 = arith.mulf %158, %160 : vector<1x128xf32>
    %cst_53 = arith.constant 0.000000e+00 : f32
    %162 = vector.broadcast %cst_53 : f32 to vector<1x128xf32>
    %163 = arith.select %156, %161, %162 : vector<1x128xi1>, vector<1x128xf32>
    %164 = arith.mulf %163, %119 : vector<1x128xf32>
    %165 = arith.andi %140, %155 : vector<1x128xi1>
    %cst_54 = arith.constant 1.000000e+00 : f32
    %166 = vector.broadcast %cst_54 : f32 to vector<1x128xf32>
    %167 = arith.subf %166, %128 : vector<1x128xf32>
    %168 = arith.mulf %167, %129 : vector<1x128xf32>
    %cst_55 = arith.constant 0.000000e+00 : f32
    %169 = vector.broadcast %cst_55 : f32 to vector<1x128xf32>
    %170 = arith.select %165, %168, %169 : vector<1x128xi1>, vector<1x128xf32>
    %171 = arith.mulf %170, %119 : vector<1x128xf32>
    %172 = arith.andi %145, %150 : vector<1x128xi1>
    %cst_56 = arith.constant 1.000000e+00 : f32
    %173 = vector.broadcast %cst_56 : f32 to vector<1x128xf32>
    %174 = arith.subf %173, %129 : vector<1x128xf32>
    %175 = arith.mulf %128, %174 : vector<1x128xf32>
    %cst_57 = arith.constant 0.000000e+00 : f32
    %176 = vector.broadcast %cst_57 : f32 to vector<1x128xf32>
    %177 = arith.select %172, %175, %176 : vector<1x128xi1>, vector<1x128xf32>
    %178 = arith.mulf %177, %119 : vector<1x128xf32>
    %179 = arith.andi %145, %155 : vector<1x128xi1>
    %180 = arith.mulf %128, %129 : vector<1x128xf32>
    %cst_58 = arith.constant 0.000000e+00 : f32
    %181 = vector.broadcast %cst_58 : f32 to vector<1x128xf32>
    %182 = arith.select %179, %180, %181 : vector<1x128xi1>, vector<1x128xf32>
    %183 = arith.mulf %182, %119 : vector<1x128xf32>
    %c16_i32_59 = arith.constant 16 : i32
    %184 = vector.broadcast %c16_i32_59 : i32 to vector<1x128xi32>
    %185 = arith.muli %130, %184 : vector<1x128xi32>
    %186 = arith.addi %185, %131 : vector<1x128xi32>
    %c16_i32_60 = arith.constant 16 : i32
    %187 = vector.broadcast %c16_i32_60 : i32 to vector<1x128xi32>
    %188 = arith.muli %130, %187 : vector<1x128xi32>
    %189 = arith.addi %188, %135 : vector<1x128xi32>
    %c16_i32_61 = arith.constant 16 : i32
    %190 = vector.broadcast %c16_i32_61 : i32 to vector<1x128xi32>
    %191 = arith.muli %133, %190 : vector<1x128xi32>
    %192 = arith.addi %191, %131 : vector<1x128xi32>
    %c16_i32_62 = arith.constant 16 : i32
    %193 = vector.broadcast %c16_i32_62 : i32 to vector<1x128xi32>
    %194 = arith.muli %133, %193 : vector<1x128xi32>
    %195 = arith.addi %194, %135 : vector<1x128xi32>
    %196 = vector.broadcast %186 : vector<1x128xi32> to vector<256x128xi32>
    %197 = arith.cmpi eq, %8, %196 : vector<256x128xi32>
    %cst_63 = arith.constant 0.000000e+00 : f32
    %198 = vector.shape_cast %164 : vector<1x128xf32> to vector<1x128xf32>
    %199 = vector.broadcast %198 : vector<1x128xf32> to vector<256x128xf32>
    %200 = vector.broadcast %cst_63 : f32 to vector<256x128xf32>
    %201 = arith.select %197, %199, %200 : vector<256x128xi1>, vector<256x128xf32>
    %202 = vector.broadcast %189 : vector<1x128xi32> to vector<256x128xi32>
    %203 = arith.cmpi eq, %8, %202 : vector<256x128xi32>
    %cst_64 = arith.constant 0.000000e+00 : f32
    %204 = vector.shape_cast %171 : vector<1x128xf32> to vector<1x128xf32>
    %205 = vector.broadcast %204 : vector<1x128xf32> to vector<256x128xf32>
    %206 = vector.broadcast %cst_64 : f32 to vector<256x128xf32>
    %207 = arith.select %203, %205, %206 : vector<256x128xi1>, vector<256x128xf32>
    %208 = arith.addf %201, %207 : vector<256x128xf32>
    %209 = vector.broadcast %192 : vector<1x128xi32> to vector<256x128xi32>
    %210 = arith.cmpi eq, %8, %209 : vector<256x128xi32>
    %cst_65 = arith.constant 0.000000e+00 : f32
    %211 = vector.shape_cast %178 : vector<1x128xf32> to vector<1x128xf32>
    %212 = vector.broadcast %211 : vector<1x128xf32> to vector<256x128xf32>
    %213 = vector.broadcast %cst_65 : f32 to vector<256x128xf32>
    %214 = arith.select %210, %212, %213 : vector<256x128xi1>, vector<256x128xf32>
    %215 = arith.addf %208, %214 : vector<256x128xf32>
    %216 = vector.broadcast %195 : vector<1x128xi32> to vector<256x128xi32>
    %217 = arith.cmpi eq, %8, %216 : vector<256x128xi32>
    %cst_66 = arith.constant 0.000000e+00 : f32
    %218 = vector.shape_cast %183 : vector<1x128xf32> to vector<1x128xf32>
    %219 = vector.broadcast %218 : vector<1x128xf32> to vector<256x128xf32>
    %220 = vector.broadcast %cst_66 : f32 to vector<256x128xf32>
    %221 = arith.select %217, %219, %220 : vector<256x128xi1>, vector<256x128xf32>
    %222 = arith.addf %215, %221 : vector<256x128xf32>
    %cst_67 = arith.constant dense<0.000000e+00> : vector<8x128xf32>
    %223 = tpu.matmul %1, %222, %cst_67 {dimension_numbers = #tpu.dot_dimension_numbers<[1], [0], [0], [1], [0, 0, 1, 1], [], []>} : vector<8x256xf32>, vector<256x128xf32>, vector<8x128xf32> -> vector<8x128xf32>
    %c8 = arith.constant 8 : index
    %c0_68 = arith.constant 0 : index
    %224 = vector.load %arg10[%c8, %c0_68] : memref<72x128xf32, #tpu.memory_space<vmem>>, vector<8x128xf32>
    tpu.vector_store %arg10[%c8, %c0_68], %223 {strides = array<i32>} : memref<72x128xf32, #tpu.memory_space<vmem>>, vector<8x128xf32>,
    %225 = vector.extract_strided_slice %3 {offsets = [4, 0], sizes = [1, 128], strides = [1, 1]} : vector<18x128xf32> to vector<1x128xf32>
    %226 = vector.extract_strided_slice %3 {offsets = [5, 0], sizes = [1, 128], strides = [1, 1]} : vector<18x128xf32> to vector<1x128xf32>
    %227 = vector.extract_strided_slice %5 {offsets = [2, 0], sizes = [1, 128], strides = [1, 1]} : vector<9x128xf32> to vector<1x128xf32>
    %cst_69 = arith.constant 0.000000e+00 : f32
    %228 = vector.broadcast %cst_69 : f32 to vector<1x128xf32>
    %229 = arith.addf %6, %228 : vector<1x128xf32>
    %230 = arith.addf %229, %225 : vector<1x128xf32>
    %cst_70 = arith.constant 2.000000e+00 : f32
    %231 = vector.broadcast %cst_70 : f32 to vector<1x128xf32>
    %232 = arith.addf %7, %231 : vector<1x128xf32>
    %233 = arith.addf %232, %226 : vector<1x128xf32>
    %234 = math.floor %230 : vector<1x128xf32>
    %235 = math.floor %233 : vector<1x128xf32>
    %236 = arith.subf %230, %234 : vector<1x128xf32>
    %237 = arith.subf %233, %235 : vector<1x128xf32>
    %238 = arith.fptosi %234 : vector<1x128xf32> to vector<1x128xi32>
    %239 = arith.fptosi %235 : vector<1x128xf32> to vector<1x128xi32>
    %c1_i32_71 = arith.constant 1 : i32
    %240 = vector.broadcast %c1_i32_71 : i32 to vector<1x128xi32>
    %241 = arith.addi %238, %240 : vector<1x128xi32>
    %c1_i32_72 = arith.constant 1 : i32
    %242 = vector.broadcast %c1_i32_72 : i32 to vector<1x128xi32>
    %243 = arith.addi %239, %242 : vector<1x128xi32>
    %c0_i32_73 = arith.constant 0 : i32
    %244 = vector.broadcast %c0_i32_73 : i32 to vector<1x128xi32>
    %245 = arith.cmpi sge, %238, %244 : vector<1x128xi32>
    %c16_i32_74 = arith.constant 16 : i32
    %246 = vector.broadcast %c16_i32_74 : i32 to vector<1x128xi32>
    %247 = arith.cmpi slt, %238, %246 : vector<1x128xi32>
    %248 = arith.andi %245, %247 : vector<1x128xi1>
    %c0_i32_75 = arith.constant 0 : i32
    %249 = vector.broadcast %c0_i32_75 : i32 to vector<1x128xi32>
    %250 = arith.cmpi sge, %241, %249 : vector<1x128xi32>
    %c16_i32_76 = arith.constant 16 : i32
    %251 = vector.broadcast %c16_i32_76 : i32 to vector<1x128xi32>
    %252 = arith.cmpi slt, %241, %251 : vector<1x128xi32>
    %253 = arith.andi %250, %252 : vector<1x128xi1>
    %c0_i32_77 = arith.constant 0 : i32
    %254 = vector.broadcast %c0_i32_77 : i32 to vector<1x128xi32>
    %255 = arith.cmpi sge, %239, %254 : vector<1x128xi32>
    %c16_i32_78 = arith.constant 16 : i32
    %256 = vector.broadcast %c16_i32_78 : i32 to vector<1x128xi32>
    %257 = arith.cmpi slt, %239, %256 : vector<1x128xi32>
    %258 = arith.andi %255, %257 : vector<1x128xi1>
    %c0_i32_79 = arith.constant 0 : i32
    %259 = vector.broadcast %c0_i32_79 : i32 to vector<1x128xi32>
    %260 = arith.cmpi sge, %243, %259 : vector<1x128xi32>
    %c16_i32_80 = arith.constant 16 : i32
    %261 = vector.broadcast %c16_i32_80 : i32 to vector<1x128xi32>
    %262 = arith.cmpi slt, %243, %261 : vector<1x128xi32>
    %263 = arith.andi %260, %262 : vector<1x128xi1>
    %264 = arith.andi %248, %258 : vector<1x128xi1>
    %cst_81 = arith.constant 1.000000e+00 : f32
    %265 = vector.broadcast %cst_81 : f32 to vector<1x128xf32>
    %266 = arith.subf %265, %236 : vector<1x128xf32>
    %cst_82 = arith.constant 1.000000e+00 : f32
    %267 = vector.broadcast %cst_82 : f32 to vector<1x128xf32>
    %268 = arith.subf %267, %237 : vector<1x128xf32>
    %269 = arith.mulf %266, %268 : vector<1x128xf32>
    %cst_83 = arith.constant 0.000000e+00 : f32
    %270 = vector.broadcast %cst_83 : f32 to vector<1x128xf32>
    %271 = arith.select %264, %269, %270 : vector<1x128xi1>, vector<1x128xf32>
    %272 = arith.mulf %271, %227 : vector<1x128xf32>
    %273 = arith.andi %248, %263 : vector<1x128xi1>
    %cst_84 = arith.constant 1.000000e+00 : f32
    %274 = vector.broadcast %cst_84 : f32 to vector<1x128xf32>
    %275 = arith.subf %274, %236 : vector<1x128xf32>
    %276 = arith.mulf %275, %237 : vector<1x128xf32>
    %cst_85 = arith.constant 0.000000e+00 : f32
    %277 = vector.broadcast %cst_85 : f32 to vector<1x128xf32>
    %278 = arith.select %273, %276, %277 : vector<1x128xi1>, vector<1x128xf32>
    %279 = arith.mulf %278, %227 : vector<1x128xf32>
    %280 = arith.andi %253, %258 : vector<1x128xi1>
    %cst_86 = arith.constant 1.000000e+00 : f32
    %281 = vector.broadcast %cst_86 : f32 to vector<1x128xf32>
    %282 = arith.subf %281, %237 : vector<1x128xf32>
    %283 = arith.mulf %236, %282 : vector<1x128xf32>
    %cst_87 = arith.constant 0.000000e+00 : f32
    %284 = vector.broadcast %cst_87 : f32 to vector<1x128xf32>
    %285 = arith.select %280, %283, %284 : vector<1x128xi1>, vector<1x128xf32>
    %286 = arith.mulf %285, %227 : vector<1x128xf32>
    %287 = arith.andi %253, %263 : vector<1x128xi1>
    %288 = arith.mulf %236, %237 : vector<1x128xf32>
    %cst_88 = arith.constant 0.000000e+00 : f32
    %289 = vector.broadcast %cst_88 : f32 to vector<1x128xf32>
    %290 = arith.select %287, %288, %289 : vector<1x128xi1>, vector<1x128xf32>
    %291 = arith.mulf %290, %227 : vector<1x128xf32>
    %c16_i32_89 = arith.constant 16 : i32
    %292 = vector.broadcast %c16_i32_89 : i32 to vector<1x128xi32>
    %293 = arith.muli %238, %292 : vector<1x128xi32>
    %294 = arith.addi %293, %239 : vector<1x128xi32>
    %c16_i32_90 = arith.constant 16 : i32
    %295 = vector.broadcast %c16_i32_90 : i32 to vector<1x128xi32>
    %296 = arith.muli %238, %295 : vector<1x128xi32>
    %297 = arith.addi %296, %243 : vector<1x128xi32>
    %c16_i32_91 = arith.constant 16 : i32
    %298 = vector.broadcast %c16_i32_91 : i32 to vector<1x128xi32>
    %299 = arith.muli %241, %298 : vector<1x128xi32>
    %300 = arith.addi %299, %239 : vector<1x128xi32>
    %c16_i32_92 = arith.constant 16 : i32
    %301 = vector.broadcast %c16_i32_92 : i32 to vector<1x128xi32>
    %302 = arith.muli %241, %301 : vector<1x128xi32>
    %303 = arith.addi %302, %243 : vector<1x128xi32>
    %304 = vector.broadcast %294 : vector<1x128xi32> to vector<256x128xi32>
    %305 = arith.cmpi eq, %8, %304 : vector<256x128xi32>
    %cst_93 = arith.constant 0.000000e+00 : f32
    %306 = vector.shape_cast %272 : vector<1x128xf32> to vector<1x128xf32>
    %307 = vector.broadcast %306 : vector<1x128xf32> to vector<256x128xf32>
    %308 = vector.broadcast %cst_93 : f32 to vector<256x128xf32>
    %309 = arith.select %305, %307, %308 : vector<256x128xi1>, vector<256x128xf32>
    %310 = vector.broadcast %297 : vector<1x128xi32> to vector<256x128xi32>
    %311 = arith.cmpi eq, %8, %310 : vector<256x128xi32>
    %cst_94 = arith.constant 0.000000e+00 : f32
    %312 = vector.shape_cast %279 : vector<1x128xf32> to vector<1x128xf32>
    %313 = vector.broadcast %312 : vector<1x128xf32> to vector<256x128xf32>
    %314 = vector.broadcast %cst_94 : f32 to vector<256x128xf32>
    %315 = arith.select %311, %313, %314 : vector<256x128xi1>, vector<256x128xf32>
    %316 = arith.addf %309, %315 : vector<256x128xf32>
    %317 = vector.broadcast %300 : vector<1x128xi32> to vector<256x128xi32>
    %318 = arith.cmpi eq, %8, %317 : vector<256x128xi32>
    %cst_95 = arith.constant 0.000000e+00 : f32
    %319 = vector.shape_cast %286 : vector<1x128xf32> to vector<1x128xf32>
    %320 = vector.broadcast %319 : vector<1x128xf32> to vector<256x128xf32>
    %321 = vector.broadcast %cst_95 : f32 to vector<256x128xf32>
    %322 = arith.select %318, %320, %321 : vector<256x128xi1>, vector<256x128xf32>
    %323 = arith.addf %316, %322 : vector<256x128xf32>
    %324 = vector.broadcast %303 : vector<1x128xi32> to vector<256x128xi32>
    %325 = arith.cmpi eq, %8, %324 : vector<256x128xi32>
    %cst_96 = arith.constant 0.000000e+00 : f32
    %326 = vector.shape_cast %291 : vector<1x128xf32> to vector<1x128xf32>
    %327 = vector.broadcast %326 : vector<1x128xf32> to vector<256x128xf32>
    %328 = vector.broadcast %cst_96 : f32 to vector<256x128xf32>
    %329 = arith.select %325, %327, %328 : vector<256x128xi1>, vector<256x128xf32>
    %330 = arith.addf %323, %329 : vector<256x128xf32>
    %cst_97 = arith.constant dense<0.000000e+00> : vector<8x128xf32>
    %331 = tpu.matmul %1, %330, %cst_97 {dimension_numbers = #tpu.dot_dimension_numbers<[1], [0], [0], [1], [0, 0, 1, 1], [], []>} : vector<8x256xf32>, vector<256x128xf32>, vector<8x128xf32> -> vector<8x128xf32>
    %c16 = arith.constant 16 : index
    %c0_98 = arith.constant 0 : index
    %332 = vector.load %arg10[%c16, %c0_98] : memref<72x128xf32, #tpu.memory_space<vmem>>, vector<8x128xf32>
    tpu.vector_store %arg10[%c16, %c0_98], %331 {strides = array<i32>} : memref<72x128xf32, #tpu.memory_space<vmem>>, vector<8x128xf32>,
    %333 = vector.extract_strided_slice %3 {offsets = [6, 0], sizes = [1, 128], strides = [1, 1]} : vector<18x128xf32> to vector<1x128xf32>
    %334 = vector.extract_strided_slice %3 {offsets = [7, 0], sizes = [1, 128], strides = [1, 1]} : vector<18x128xf32> to vector<1x128xf32>
    %335 = vector.extract_strided_slice %5 {offsets = [3, 0], sizes = [1, 128], strides = [1, 1]} : vector<9x128xf32> to vector<1x128xf32>
    %cst_99 = arith.constant 1.000000e+00 : f32
    %336 = vector.broadcast %cst_99 : f32 to vector<1x128xf32>
    %337 = arith.addf %6, %336 : vector<1x128xf32>
    %338 = arith.addf %337, %333 : vector<1x128xf32>
    %cst_100 = arith.constant 0.000000e+00 : f32
    %339 = vector.broadcast %cst_100 : f32 to vector<1x128xf32>
    %340 = arith.addf %7, %339 : vector<1x128xf32>
    %341 = arith.addf %340, %334 : vector<1x128xf32>
    %342 = math.floor %338 : vector<1x128xf32>
    %343 = math.floor %341 : vector<1x128xf32>
    %344 = arith.subf %338, %342 : vector<1x128xf32>
    %345 = arith.subf %341, %343 : vector<1x128xf32>
    %346 = arith.fptosi %342 : vector<1x128xf32> to vector<1x128xi32>
    %347 = arith.fptosi %343 : vector<1x128xf32> to vector<1x128xi32>
    %c1_i32_101 = arith.constant 1 : i32
    %348 = vector.broadcast %c1_i32_101 : i32 to vector<1x128xi32>
    %349 = arith.addi %346, %348 : vector<1x128xi32>
    %c1_i32_102 = arith.constant 1 : i32
    %350 = vector.broadcast %c1_i32_102 : i32 to vector<1x128xi32>
    %351 = arith.addi %347, %350 : vector<1x128xi32>
    %c0_i32_103 = arith.constant 0 : i32
    %352 = vector.broadcast %c0_i32_103 : i32 to vector<1x128xi32>
    %353 = arith.cmpi sge, %346, %352 : vector<1x128xi32>
    %c16_i32_104 = arith.constant 16 : i32
    %354 = vector.broadcast %c16_i32_104 : i32 to vector<1x128xi32>
    %355 = arith.cmpi slt, %346, %354 : vector<1x128xi32>
    %356 = arith.andi %353, %355 : vector<1x128xi1>
    %c0_i32_105 = arith.constant 0 : i32
    %357 = vector.broadcast %c0_i32_105 : i32 to vector<1x128xi32>
    %358 = arith.cmpi sge, %349, %357 : vector<1x128xi32>
    %c16_i32_106 = arith.constant 16 : i32
    %359 = vector.broadcast %c16_i32_106 : i32 to vector<1x128xi32>
    %360 = arith.cmpi slt, %349, %359 : vector<1x128xi32>
    %361 = arith.andi %358, %360 : vector<1x128xi1>
    %c0_i32_107 = arith.constant 0 : i32
    %362 = vector.broadcast %c0_i32_107 : i32 to vector<1x128xi32>
    %363 = arith.cmpi sge, %347, %362 : vector<1x128xi32>
    %c16_i32_108 = arith.constant 16 : i32
    %364 = vector.broadcast %c16_i32_108 : i32 to vector<1x128xi32>
    %365 = arith.cmpi slt, %347, %364 : vector<1x128xi32>
    %366 = arith.andi %363, %365 : vector<1x128xi1>
    %c0_i32_109 = arith.constant 0 : i32
    %367 = vector.broadcast %c0_i32_109 : i32 to vector<1x128xi32>
    %368 = arith.cmpi sge, %351, %367 : vector<1x128xi32>
    %c16_i32_110 = arith.constant 16 : i32
    %369 = vector.broadcast %c16_i32_110 : i32 to vector<1x128xi32>
    %370 = arith.cmpi slt, %351, %369 : vector<1x128xi32>
    %371 = arith.andi %368, %370 : vector<1x128xi1>
    %372 = arith.andi %356, %366 : vector<1x128xi1>
    %cst_111 = arith.constant 1.000000e+00 : f32
    %373 = vector.broadcast %cst_111 : f32 to vector<1x128xf32>
    %374 = arith.subf %373, %344 : vector<1x128xf32>
    %cst_112 = arith.constant 1.000000e+00 : f32
    %375 = vector.broadcast %cst_112 : f32 to vector<1x128xf32>
    %376 = arith.subf %375, %345 : vector<1x128xf32>
    %377 = arith.mulf %374, %376 : vector<1x128xf32>
    %cst_113 = arith.constant 0.000000e+00 : f32
    %378 = vector.broadcast %cst_113 : f32 to vector<1x128xf32>
    %379 = arith.select %372, %377, %378 : vector<1x128xi1>, vector<1x128xf32>
    %380 = arith.mulf %379, %335 : vector<1x128xf32>
    %381 = arith.andi %356, %371 : vector<1x128xi1>
    %cst_114 = arith.constant 1.000000e+00 : f32
    %382 = vector.broadcast %cst_114 : f32 to vector<1x128xf32>
    %383 = arith.subf %382, %344 : vector<1x128xf32>
    %384 = arith.mulf %383, %345 : vector<1x128xf32>
    %cst_115 = arith.constant 0.000000e+00 : f32
    %385 = vector.broadcast %cst_115 : f32 to vector<1x128xf32>
    %386 = arith.select %381, %384, %385 : vector<1x128xi1>, vector<1x128xf32>
    %387 = arith.mulf %386, %335 : vector<1x128xf32>
    %388 = arith.andi %361, %366 : vector<1x128xi1>
    %cst_116 = arith.constant 1.000000e+00 : f32
    %389 = vector.broadcast %cst_116 : f32 to vector<1x128xf32>
    %390 = arith.subf %389, %345 : vector<1x128xf32>
    %391 = arith.mulf %344, %390 : vector<1x128xf32>
    %cst_117 = arith.constant 0.000000e+00 : f32
    %392 = vector.broadcast %cst_117 : f32 to vector<1x128xf32>
    %393 = arith.select %388, %391, %392 : vector<1x128xi1>, vector<1x128xf32>
    %394 = arith.mulf %393, %335 : vector<1x128xf32>
    %395 = arith.andi %361, %371 : vector<1x128xi1>
    %396 = arith.mulf %344, %345 : vector<1x128xf32>
    %cst_118 = arith.constant 0.000000e+00 : f32
    %397 = vector.broadcast %cst_118 : f32 to vector<1x128xf32>
    %398 = arith.select %395, %396, %397 : vector<1x128xi1>, vector<1x128xf32>
    %399 = arith.mulf %398, %335 : vector<1x128xf32>
    %c16_i32_119 = arith.constant 16 : i32
    %400 = vector.broadcast %c16_i32_119 : i32 to vector<1x128xi32>
    %401 = arith.muli %346, %400 : vector<1x128xi32>
    %402 = arith.addi %401, %347 : vector<1x128xi32>
    %c16_i32_120 = arith.constant 16 : i32
    %403 = vector.broadcast %c16_i32_120 : i32 to vector<1x128xi32>
    %404 = arith.muli %346, %403 : vector<1x128xi32>
    %405 = arith.addi %404, %351 : vector<1x128xi32>
    %c16_i32_121 = arith.constant 16 : i32
    %406 = vector.broadcast %c16_i32_121 : i32 to vector<1x128xi32>
    %407 = arith.muli %349, %406 : vector<1x128xi32>
    %408 = arith.addi %407, %347 : vector<1x128xi32>
    %c16_i32_122 = arith.constant 16 : i32
    %409 = vector.broadcast %c16_i32_122 : i32 to vector<1x128xi32>
    %410 = arith.muli %349, %409 : vector<1x128xi32>
    %411 = arith.addi %410, %351 : vector<1x128xi32>
    %412 = vector.broadcast %402 : vector<1x128xi32> to vector<256x128xi32>
    %413 = arith.cmpi eq, %8, %412 : vector<256x128xi32>
    %cst_123 = arith.constant 0.000000e+00 : f32
    %414 = vector.shape_cast %380 : vector<1x128xf32> to vector<1x128xf32>
    %415 = vector.broadcast %414 : vector<1x128xf32> to vector<256x128xf32>
    %416 = vector.broadcast %cst_123 : f32 to vector<256x128xf32>
    %417 = arith.select %413, %415, %416 : vector<256x128xi1>, vector<256x128xf32>
    %418 = vector.broadcast %405 : vector<1x128xi32> to vector<256x128xi32>
    %419 = arith.cmpi eq, %8, %418 : vector<256x128xi32>
    %cst_124 = arith.constant 0.000000e+00 : f32
    %420 = vector.shape_cast %387 : vector<1x128xf32> to vector<1x128xf32>
    %421 = vector.broadcast %420 : vector<1x128xf32> to vector<256x128xf32>
    %422 = vector.broadcast %cst_124 : f32 to vector<256x128xf32>
    %423 = arith.select %419, %421, %422 : vector<256x128xi1>, vector<256x128xf32>
    %424 = arith.addf %417, %423 : vector<256x128xf32>
    %425 = vector.broadcast %408 : vector<1x128xi32> to vector<256x128xi32>
    %426 = arith.cmpi eq, %8, %425 : vector<256x128xi32>
    %cst_125 = arith.constant 0.000000e+00 : f32
    %427 = vector.shape_cast %394 : vector<1x128xf32> to vector<1x128xf32>
    %428 = vector.broadcast %427 : vector<1x128xf32> to vector<256x128xf32>
    %429 = vector.broadcast %cst_125 : f32 to vector<256x128xf32>
    %430 = arith.select %426, %428, %429 : vector<256x128xi1>, vector<256x128xf32>
    %431 = arith.addf %424, %430 : vector<256x128xf32>
    %432 = vector.broadcast %411 : vector<1x128xi32> to vector<256x128xi32>
    %433 = arith.cmpi eq, %8, %432 : vector<256x128xi32>
    %cst_126 = arith.constant 0.000000e+00 : f32
    %434 = vector.shape_cast %399 : vector<1x128xf32> to vector<1x128xf32>
    %435 = vector.broadcast %434 : vector<1x128xf32> to vector<256x128xf32>
    %436 = vector.broadcast %cst_126 : f32 to vector<256x128xf32>
    %437 = arith.select %433, %435, %436 : vector<256x128xi1>, vector<256x128xf32>
    %438 = arith.addf %431, %437 : vector<256x128xf32>
    %cst_127 = arith.constant dense<0.000000e+00> : vector<8x128xf32>
    %439 = tpu.matmul %1, %438, %cst_127 {dimension_numbers = #tpu.dot_dimension_numbers<[1], [0], [0], [1], [0, 0, 1, 1], [], []>} : vector<8x256xf32>, vector<256x128xf32>, vector<8x128xf32> -> vector<8x128xf32>
    %c24 = arith.constant 24 : index
    %c0_128 = arith.constant 0 : index
    %440 = vector.load %arg10[%c24, %c0_128] : memref<72x128xf32, #tpu.memory_space<vmem>>, vector<8x128xf32>
    tpu.vector_store %arg10[%c24, %c0_128], %439 {strides = array<i32>} : memref<72x128xf32, #tpu.memory_space<vmem>>, vector<8x128xf32>,
    %441 = vector.extract_strided_slice %3 {offsets = [8, 0], sizes = [1, 128], strides = [1, 1]} : vector<18x128xf32> to vector<1x128xf32>
    %442 = vector.extract_strided_slice %3 {offsets = [9, 0], sizes = [1, 128], strides = [1, 1]} : vector<18x128xf32> to vector<1x128xf32>
    %443 = vector.extract_strided_slice %5 {offsets = [4, 0], sizes = [1, 128], strides = [1, 1]} : vector<9x128xf32> to vector<1x128xf32>
    %cst_129 = arith.constant 1.000000e+00 : f32
    %444 = vector.broadcast %cst_129 : f32 to vector<1x128xf32>
    %445 = arith.addf %6, %444 : vector<1x128xf32>
    %446 = arith.addf %445, %441 : vector<1x128xf32>
    %cst_130 = arith.constant 1.000000e+00 : f32
    %447 = vector.broadcast %cst_130 : f32 to vector<1x128xf32>
    %448 = arith.addf %7, %447 : vector<1x128xf32>
    %449 = arith.addf %448, %442 : vector<1x128xf32>
    %450 = math.floor %446 : vector<1x128xf32>
    %451 = math.floor %449 : vector<1x128xf32>
    %452 = arith.subf %446, %450 : vector<1x128xf32>
    %453 = arith.subf %449, %451 : vector<1x128xf32>
    %454 = arith.fptosi %450 : vector<1x128xf32> to vector<1x128xi32>
    %455 = arith.fptosi %451 : vector<1x128xf32> to vector<1x128xi32>
    %c1_i32_131 = arith.constant 1 : i32
    %456 = vector.broadcast %c1_i32_131 : i32 to vector<1x128xi32>
    %457 = arith.addi %454, %456 : vector<1x128xi32>
    %c1_i32_132 = arith.constant 1 : i32
    %458 = vector.broadcast %c1_i32_132 : i32 to vector<1x128xi32>
    %459 = arith.addi %455, %458 : vector<1x128xi32>
    %c0_i32_133 = arith.constant 0 : i32
    %460 = vector.broadcast %c0_i32_133 : i32 to vector<1x128xi32>
    %461 = arith.cmpi sge, %454, %460 : vector<1x128xi32>
    %c16_i32_134 = arith.constant 16 : i32
    %462 = vector.broadcast %c16_i32_134 : i32 to vector<1x128xi32>
    %463 = arith.cmpi slt, %454, %462 : vector<1x128xi32>
    %464 = arith.andi %461, %463 : vector<1x128xi1>
    %c0_i32_135 = arith.constant 0 : i32
    %465 = vector.broadcast %c0_i32_135 : i32 to vector<1x128xi32>
    %466 = arith.cmpi sge, %457, %465 : vector<1x128xi32>
    %c16_i32_136 = arith.constant 16 : i32
    %467 = vector.broadcast %c16_i32_136 : i32 to vector<1x128xi32>
    %468 = arith.cmpi slt, %457, %467 : vector<1x128xi32>
    %469 = arith.andi %466, %468 : vector<1x128xi1>
    %c0_i32_137 = arith.constant 0 : i32
    %470 = vector.broadcast %c0_i32_137 : i32 to vector<1x128xi32>
    %471 = arith.cmpi sge, %455, %470 : vector<1x128xi32>
    %c16_i32_138 = arith.constant 16 : i32
    %472 = vector.broadcast %c16_i32_138 : i32 to vector<1x128xi32>
    %473 = arith.cmpi slt, %455, %472 : vector<1x128xi32>
    %474 = arith.andi %471, %473 : vector<1x128xi1>
    %c0_i32_139 = arith.constant 0 : i32
    %475 = vector.broadcast %c0_i32_139 : i32 to vector<1x128xi32>
    %476 = arith.cmpi sge, %459, %475 : vector<1x128xi32>
    %c16_i32_140 = arith.constant 16 : i32
    %477 = vector.broadcast %c16_i32_140 : i32 to vector<1x128xi32>
    %478 = arith.cmpi slt, %459, %477 : vector<1x128xi32>
    %479 = arith.andi %476, %478 : vector<1x128xi1>
    %480 = arith.andi %464, %474 : vector<1x128xi1>
    %cst_141 = arith.constant 1.000000e+00 : f32
    %481 = vector.broadcast %cst_141 : f32 to vector<1x128xf32>
    %482 = arith.subf %481, %452 : vector<1x128xf32>
    %cst_142 = arith.constant 1.000000e+00 : f32
    %483 = vector.broadcast %cst_142 : f32 to vector<1x128xf32>
    %484 = arith.subf %483, %453 : vector<1x128xf32>
    %485 = arith.mulf %482, %484 : vector<1x128xf32>
    %cst_143 = arith.constant 0.000000e+00 : f32
    %486 = vector.broadcast %cst_143 : f32 to vector<1x128xf32>
    %487 = arith.select %480, %485, %486 : vector<1x128xi1>, vector<1x128xf32>
    %488 = arith.mulf %487, %443 : vector<1x128xf32>
    %489 = arith.andi %464, %479 : vector<1x128xi1>
    %cst_144 = arith.constant 1.000000e+00 : f32
    %490 = vector.broadcast %cst_144 : f32 to vector<1x128xf32>
    %491 = arith.subf %490, %452 : vector<1x128xf32>
    %492 = arith.mulf %491, %453 : vector<1x128xf32>
    %cst_145 = arith.constant 0.000000e+00 : f32
    %493 = vector.broadcast %cst_145 : f32 to vector<1x128xf32>
    %494 = arith.select %489, %492, %493 : vector<1x128xi1>, vector<1x128xf32>
    %495 = arith.mulf %494, %443 : vector<1x128xf32>
    %496 = arith.andi %469, %474 : vector<1x128xi1>
    %cst_146 = arith.constant 1.000000e+00 : f32
    %497 = vector.broadcast %cst_146 : f32 to vector<1x128xf32>
    %498 = arith.subf %497, %453 : vector<1x128xf32>
    %499 = arith.mulf %452, %498 : vector<1x128xf32>
    %cst_147 = arith.constant 0.000000e+00 : f32
    %500 = vector.broadcast %cst_147 : f32 to vector<1x128xf32>
    %501 = arith.select %496, %499, %500 : vector<1x128xi1>, vector<1x128xf32>
    %502 = arith.mulf %501, %443 : vector<1x128xf32>
    %503 = arith.andi %469, %479 : vector<1x128xi1>
    %504 = arith.mulf %452, %453 : vector<1x128xf32>
    %cst_148 = arith.constant 0.000000e+00 : f32
    %505 = vector.broadcast %cst_148 : f32 to vector<1x128xf32>
    %506 = arith.select %503, %504, %505 : vector<1x128xi1>, vector<1x128xf32>
    %507 = arith.mulf %506, %443 : vector<1x128xf32>
    %c16_i32_149 = arith.constant 16 : i32
    %508 = vector.broadcast %c16_i32_149 : i32 to vector<1x128xi32>
    %509 = arith.muli %454, %508 : vector<1x128xi32>
    %510 = arith.addi %509, %455 : vector<1x128xi32>
    %c16_i32_150 = arith.constant 16 : i32
    %511 = vector.broadcast %c16_i32_150 : i32 to vector<1x128xi32>
    %512 = arith.muli %454, %511 : vector<1x128xi32>
    %513 = arith.addi %512, %459 : vector<1x128xi32>
    %c16_i32_151 = arith.constant 16 : i32
    %514 = vector.broadcast %c16_i32_151 : i32 to vector<1x128xi32>
    %515 = arith.muli %457, %514 : vector<1x128xi32>
    %516 = arith.addi %515, %455 : vector<1x128xi32>
    %c16_i32_152 = arith.constant 16 : i32
    %517 = vector.broadcast %c16_i32_152 : i32 to vector<1x128xi32>
    %518 = arith.muli %457, %517 : vector<1x128xi32>
    %519 = arith.addi %518, %459 : vector<1x128xi32>
    %520 = vector.broadcast %510 : vector<1x128xi32> to vector<256x128xi32>
    %521 = arith.cmpi eq, %8, %520 : vector<256x128xi32>
    %cst_153 = arith.constant 0.000000e+00 : f32
    %522 = vector.shape_cast %488 : vector<1x128xf32> to vector<1x128xf32>
    %523 = vector.broadcast %522 : vector<1x128xf32> to vector<256x128xf32>
    %524 = vector.broadcast %cst_153 : f32 to vector<256x128xf32>
    %525 = arith.select %521, %523, %524 : vector<256x128xi1>, vector<256x128xf32>
    %526 = vector.broadcast %513 : vector<1x128xi32> to vector<256x128xi32>
    %527 = arith.cmpi eq, %8, %526 : vector<256x128xi32>
    %cst_154 = arith.constant 0.000000e+00 : f32
    %528 = vector.shape_cast %495 : vector<1x128xf32> to vector<1x128xf32>
    %529 = vector.broadcast %528 : vector<1x128xf32> to vector<256x128xf32>
    %530 = vector.broadcast %cst_154 : f32 to vector<256x128xf32>
    %531 = arith.select %527, %529, %530 : vector<256x128xi1>, vector<256x128xf32>
    %532 = arith.addf %525, %531 : vector<256x128xf32>
    %533 = vector.broadcast %516 : vector<1x128xi32> to vector<256x128xi32>
    %534 = arith.cmpi eq, %8, %533 : vector<256x128xi32>
    %cst_155 = arith.constant 0.000000e+00 : f32
    %535 = vector.shape_cast %502 : vector<1x128xf32> to vector<1x128xf32>
    %536 = vector.broadcast %535 : vector<1x128xf32> to vector<256x128xf32>
    %537 = vector.broadcast %cst_155 : f32 to vector<256x128xf32>
    %538 = arith.select %534, %536, %537 : vector<256x128xi1>, vector<256x128xf32>
    %539 = arith.addf %532, %538 : vector<256x128xf32>
    %540 = vector.broadcast %519 : vector<1x128xi32> to vector<256x128xi32>
    %541 = arith.cmpi eq, %8, %540 : vector<256x128xi32>
    %cst_156 = arith.constant 0.000000e+00 : f32
    %542 = vector.shape_cast %507 : vector<1x128xf32> to vector<1x128xf32>
    %543 = vector.broadcast %542 : vector<1x128xf32> to vector<256x128xf32>
    %544 = vector.broadcast %cst_156 : f32 to vector<256x128xf32>
    %545 = arith.select %541, %543, %544 : vector<256x128xi1>, vector<256x128xf32>
    %546 = arith.addf %539, %545 : vector<256x128xf32>
    %cst_157 = arith.constant dense<0.000000e+00> : vector<8x128xf32>
    %547 = tpu.matmul %1, %546, %cst_157 {dimension_numbers = #tpu.dot_dimension_numbers<[1], [0], [0], [1], [0, 0, 1, 1], [], []>} : vector<8x256xf32>, vector<256x128xf32>, vector<8x128xf32> -> vector<8x128xf32>
    %c32 = arith.constant 32 : index
    %c0_158 = arith.constant 0 : index
    %548 = vector.load %arg10[%c32, %c0_158] : memref<72x128xf32, #tpu.memory_space<vmem>>, vector<8x128xf32>
    tpu.vector_store %arg10[%c32, %c0_158], %547 {strides = array<i32>} : memref<72x128xf32, #tpu.memory_space<vmem>>, vector<8x128xf32>,
    %549 = vector.extract_strided_slice %3 {offsets = [10, 0], sizes = [1, 128], strides = [1, 1]} : vector<18x128xf32> to vector<1x128xf32>
    %550 = vector.extract_strided_slice %3 {offsets = [11, 0], sizes = [1, 128], strides = [1, 1]} : vector<18x128xf32> to vector<1x128xf32>
    %551 = vector.extract_strided_slice %5 {offsets = [5, 0], sizes = [1, 128], strides = [1, 1]} : vector<9x128xf32> to vector<1x128xf32>
    %cst_159 = arith.constant 1.000000e+00 : f32
    %552 = vector.broadcast %cst_159 : f32 to vector<1x128xf32>
    %553 = arith.addf %6, %552 : vector<1x128xf32>
    %554 = arith.addf %553, %549 : vector<1x128xf32>
    %cst_160 = arith.constant 2.000000e+00 : f32
    %555 = vector.broadcast %cst_160 : f32 to vector<1x128xf32>
    %556 = arith.addf %7, %555 : vector<1x128xf32>
    %557 = arith.addf %556, %550 : vector<1x128xf32>
    %558 = math.floor %554 : vector<1x128xf32>
    %559 = math.floor %557 : vector<1x128xf32>
    %560 = arith.subf %554, %558 : vector<1x128xf32>
    %561 = arith.subf %557, %559 : vector<1x128xf32>
    %562 = arith.fptosi %558 : vector<1x128xf32> to vector<1x128xi32>
    %563 = arith.fptosi %559 : vector<1x128xf32> to vector<1x128xi32>
    %c1_i32_161 = arith.constant 1 : i32
    %564 = vector.broadcast %c1_i32_161 : i32 to vector<1x128xi32>
    %565 = arith.addi %562, %564 : vector<1x128xi32>
    %c1_i32_162 = arith.constant 1 : i32
    %566 = vector.broadcast %c1_i32_162 : i32 to vector<1x128xi32>
    %567 = arith.addi %563, %566 : vector<1x128xi32>
    %c0_i32_163 = arith.constant 0 : i32
    %568 = vector.broadcast %c0_i32_163 : i32 to vector<1x128xi32>
    %569 = arith.cmpi sge, %562, %568 : vector<1x128xi32>
    %c16_i32_164 = arith.constant 16 : i32
    %570 = vector.broadcast %c16_i32_164 : i32 to vector<1x128xi32>
    %571 = arith.cmpi slt, %562, %570 : vector<1x128xi32>
    %572 = arith.andi %569, %571 : vector<1x128xi1>
    %c0_i32_165 = arith.constant 0 : i32
    %573 = vector.broadcast %c0_i32_165 : i32 to vector<1x128xi32>
    %574 = arith.cmpi sge, %565, %573 : vector<1x128xi32>
    %c16_i32_166 = arith.constant 16 : i32
    %575 = vector.broadcast %c16_i32_166 : i32 to vector<1x128xi32>
    %576 = arith.cmpi slt, %565, %575 : vector<1x128xi32>
    %577 = arith.andi %574, %576 : vector<1x128xi1>
    %c0_i32_167 = arith.constant 0 : i32
    %578 = vector.broadcast %c0_i32_167 : i32 to vector<1x128xi32>
    %579 = arith.cmpi sge, %563, %578 : vector<1x128xi32>
    %c16_i32_168 = arith.constant 16 : i32
    %580 = vector.broadcast %c16_i32_168 : i32 to vector<1x128xi32>
    %581 = arith.cmpi slt, %563, %580 : vector<1x128xi32>
    %582 = arith.andi %579, %581 : vector<1x128xi1>
    %c0_i32_169 = arith.constant 0 : i32
    %583 = vector.broadcast %c0_i32_169 : i32 to vector<1x128xi32>
    %584 = arith.cmpi sge, %567, %583 : vector<1x128xi32>
    %c16_i32_170 = arith.constant 16 : i32
    %585 = vector.broadcast %c16_i32_170 : i32 to vector<1x128xi32>
    %586 = arith.cmpi slt, %567, %585 : vector<1x128xi32>
    %587 = arith.andi %584, %586 : vector<1x128xi1>
    %588 = arith.andi %572, %582 : vector<1x128xi1>
    %cst_171 = arith.constant 1.000000e+00 : f32
    %589 = vector.broadcast %cst_171 : f32 to vector<1x128xf32>
    %590 = arith.subf %589, %560 : vector<1x128xf32>
    %cst_172 = arith.constant 1.000000e+00 : f32
    %591 = vector.broadcast %cst_172 : f32 to vector<1x128xf32>
    %592 = arith.subf %591, %561 : vector<1x128xf32>
    %593 = arith.mulf %590, %592 : vector<1x128xf32>
    %cst_173 = arith.constant 0.000000e+00 : f32
    %594 = vector.broadcast %cst_173 : f32 to vector<1x128xf32>
    %595 = arith.select %588, %593, %594 : vector<1x128xi1>, vector<1x128xf32>
    %596 = arith.mulf %595, %551 : vector<1x128xf32>
    %597 = arith.andi %572, %587 : vector<1x128xi1>
    %cst_174 = arith.constant 1.000000e+00 : f32
    %598 = vector.broadcast %cst_174 : f32 to vector<1x128xf32>
    %599 = arith.subf %598, %560 : vector<1x128xf32>
    %600 = arith.mulf %599, %561 : vector<1x128xf32>
    %cst_175 = arith.constant 0.000000e+00 : f32
    %601 = vector.broadcast %cst_175 : f32 to vector<1x128xf32>
    %602 = arith.select %597, %600, %601 : vector<1x128xi1>, vector<1x128xf32>
    %603 = arith.mulf %602, %551 : vector<1x128xf32>
    %604 = arith.andi %577, %582 : vector<1x128xi1>
    %cst_176 = arith.constant 1.000000e+00 : f32
    %605 = vector.broadcast %cst_176 : f32 to vector<1x128xf32>
    %606 = arith.subf %605, %561 : vector<1x128xf32>
    %607 = arith.mulf %560, %606 : vector<1x128xf32>
    %cst_177 = arith.constant 0.000000e+00 : f32
    %608 = vector.broadcast %cst_177 : f32 to vector<1x128xf32>
    %609 = arith.select %604, %607, %608 : vector<1x128xi1>, vector<1x128xf32>
    %610 = arith.mulf %609, %551 : vector<1x128xf32>
    %611 = arith.andi %577, %587 : vector<1x128xi1>
    %612 = arith.mulf %560, %561 : vector<1x128xf32>
    %cst_178 = arith.constant 0.000000e+00 : f32
    %613 = vector.broadcast %cst_178 : f32 to vector<1x128xf32>
    %614 = arith.select %611, %612, %613 : vector<1x128xi1>, vector<1x128xf32>
    %615 = arith.mulf %614, %551 : vector<1x128xf32>
    %c16_i32_179 = arith.constant 16 : i32
    %616 = vector.broadcast %c16_i32_179 : i32 to vector<1x128xi32>
    %617 = arith.muli %562, %616 : vector<1x128xi32>
    %618 = arith.addi %617, %563 : vector<1x128xi32>
    %c16_i32_180 = arith.constant 16 : i32
    %619 = vector.broadcast %c16_i32_180 : i32 to vector<1x128xi32>
    %620 = arith.muli %562, %619 : vector<1x128xi32>
    %621 = arith.addi %620, %567 : vector<1x128xi32>
    %c16_i32_181 = arith.constant 16 : i32
    %622 = vector.broadcast %c16_i32_181 : i32 to vector<1x128xi32>
    %623 = arith.muli %565, %622 : vector<1x128xi32>
    %624 = arith.addi %623, %563 : vector<1x128xi32>
    %c16_i32_182 = arith.constant 16 : i32
    %625 = vector.broadcast %c16_i32_182 : i32 to vector<1x128xi32>
    %626 = arith.muli %565, %625 : vector<1x128xi32>
    %627 = arith.addi %626, %567 : vector<1x128xi32>
    %628 = vector.broadcast %618 : vector<1x128xi32> to vector<256x128xi32>
    %629 = arith.cmpi eq, %8, %628 : vector<256x128xi32>
    %cst_183 = arith.constant 0.000000e+00 : f32
    %630 = vector.shape_cast %596 : vector<1x128xf32> to vector<1x128xf32>
    %631 = vector.broadcast %630 : vector<1x128xf32> to vector<256x128xf32>
    %632 = vector.broadcast %cst_183 : f32 to vector<256x128xf32>
    %633 = arith.select %629, %631, %632 : vector<256x128xi1>, vector<256x128xf32>
    %634 = vector.broadcast %621 : vector<1x128xi32> to vector<256x128xi32>
    %635 = arith.cmpi eq, %8, %634 : vector<256x128xi32>
    %cst_184 = arith.constant 0.000000e+00 : f32
    %636 = vector.shape_cast %603 : vector<1x128xf32> to vector<1x128xf32>
    %637 = vector.broadcast %636 : vector<1x128xf32> to vector<256x128xf32>
    %638 = vector.broadcast %cst_184 : f32 to vector<256x128xf32>
    %639 = arith.select %635, %637, %638 : vector<256x128xi1>, vector<256x128xf32>
    %640 = arith.addf %633, %639 : vector<256x128xf32>
    %641 = vector.broadcast %624 : vector<1x128xi32> to vector<256x128xi32>
    %642 = arith.cmpi eq, %8, %641 : vector<256x128xi32>
    %cst_185 = arith.constant 0.000000e+00 : f32
    %643 = vector.shape_cast %610 : vector<1x128xf32> to vector<1x128xf32>
    %644 = vector.broadcast %643 : vector<1x128xf32> to vector<256x128xf32>
    %645 = vector.broadcast %cst_185 : f32 to vector<256x128xf32>
    %646 = arith.select %642, %644, %645 : vector<256x128xi1>, vector<256x128xf32>
    %647 = arith.addf %640, %646 : vector<256x128xf32>
    %648 = vector.broadcast %627 : vector<1x128xi32> to vector<256x128xi32>
    %649 = arith.cmpi eq, %8, %648 : vector<256x128xi32>
    %cst_186 = arith.constant 0.000000e+00 : f32
    %650 = vector.shape_cast %615 : vector<1x128xf32> to vector<1x128xf32>
    %651 = vector.broadcast %650 : vector<1x128xf32> to vector<256x128xf32>
    %652 = vector.broadcast %cst_186 : f32 to vector<256x128xf32>
    %653 = arith.select %649, %651, %652 : vector<256x128xi1>, vector<256x128xf32>
    %654 = arith.addf %647, %653 : vector<256x128xf32>
    %cst_187 = arith.constant dense<0.000000e+00> : vector<8x128xf32>
    %655 = tpu.matmul %1, %654, %cst_187 {dimension_numbers = #tpu.dot_dimension_numbers<[1], [0], [0], [1], [0, 0, 1, 1], [], []>} : vector<8x256xf32>, vector<256x128xf32>, vector<8x128xf32> -> vector<8x128xf32>
    %c40 = arith.constant 40 : index
    %c0_188 = arith.constant 0 : index
    %656 = vector.load %arg10[%c40, %c0_188] : memref<72x128xf32, #tpu.memory_space<vmem>>, vector<8x128xf32>
    tpu.vector_store %arg10[%c40, %c0_188], %655 {strides = array<i32>} : memref<72x128xf32, #tpu.memory_space<vmem>>, vector<8x128xf32>,
    %657 = vector.extract_strided_slice %3 {offsets = [12, 0], sizes = [1, 128], strides = [1, 1]} : vector<18x128xf32> to vector<1x128xf32>
    %658 = vector.extract_strided_slice %3 {offsets = [13, 0], sizes = [1, 128], strides = [1, 1]} : vector<18x128xf32> to vector<1x128xf32>
    %659 = vector.extract_strided_slice %5 {offsets = [6, 0], sizes = [1, 128], strides = [1, 1]} : vector<9x128xf32> to vector<1x128xf32>
    %cst_189 = arith.constant 2.000000e+00 : f32
    %660 = vector.broadcast %cst_189 : f32 to vector<1x128xf32>
    %661 = arith.addf %6, %660 : vector<1x128xf32>
    %662 = arith.addf %661, %657 : vector<1x128xf32>
    %cst_190 = arith.constant 0.000000e+00 : f32
    %663 = vector.broadcast %cst_190 : f32 to vector<1x128xf32>
    %664 = arith.addf %7, %663 : vector<1x128xf32>
    %665 = arith.addf %664, %658 : vector<1x128xf32>
    %666 = math.floor %662 : vector<1x128xf32>
    %667 = math.floor %665 : vector<1x128xf32>
    %668 = arith.subf %662, %666 : vector<1x128xf32>
    %669 = arith.subf %665, %667 : vector<1x128xf32>
    %670 = arith.fptosi %666 : vector<1x128xf32> to vector<1x128xi32>
    %671 = arith.fptosi %667 : vector<1x128xf32> to vector<1x128xi32>
    %c1_i32_191 = arith.constant 1 : i32
    %672 = vector.broadcast %c1_i32_191 : i32 to vector<1x128xi32>
    %673 = arith.addi %670, %672 : vector<1x128xi32>
    %c1_i32_192 = arith.constant 1 : i32
    %674 = vector.broadcast %c1_i32_192 : i32 to vector<1x128xi32>
    %675 = arith.addi %671, %674 : vector<1x128xi32>
    %c0_i32_193 = arith.constant 0 : i32
    %676 = vector.broadcast %c0_i32_193 : i32 to vector<1x128xi32>
    %677 = arith.cmpi sge, %670, %676 : vector<1x128xi32>
    %c16_i32_194 = arith.constant 16 : i32
    %678 = vector.broadcast %c16_i32_194 : i32 to vector<1x128xi32>
    %679 = arith.cmpi slt, %670, %678 : vector<1x128xi32>
    %680 = arith.andi %677, %679 : vector<1x128xi1>
    %c0_i32_195 = arith.constant 0 : i32
    %681 = vector.broadcast %c0_i32_195 : i32 to vector<1x128xi32>
    %682 = arith.cmpi sge, %673, %681 : vector<1x128xi32>
    %c16_i32_196 = arith.constant 16 : i32
    %683 = vector.broadcast %c16_i32_196 : i32 to vector<1x128xi32>
    %684 = arith.cmpi slt, %673, %683 : vector<1x128xi32>
    %685 = arith.andi %682, %684 : vector<1x128xi1>
    %c0_i32_197 = arith.constant 0 : i32
    %686 = vector.broadcast %c0_i32_197 : i32 to vector<1x128xi32>
    %687 = arith.cmpi sge, %671, %686 : vector<1x128xi32>
    %c16_i32_198 = arith.constant 16 : i32
    %688 = vector.broadcast %c16_i32_198 : i32 to vector<1x128xi32>
    %689 = arith.cmpi slt, %671, %688 : vector<1x128xi32>
    %690 = arith.andi %687, %689 : vector<1x128xi1>
    %c0_i32_199 = arith.constant 0 : i32
    %691 = vector.broadcast %c0_i32_199 : i32 to vector<1x128xi32>
    %692 = arith.cmpi sge, %675, %691 : vector<1x128xi32>
    %c16_i32_200 = arith.constant 16 : i32
    %693 = vector.broadcast %c16_i32_200 : i32 to vector<1x128xi32>
    %694 = arith.cmpi slt, %675, %693 : vector<1x128xi32>
    %695 = arith.andi %692, %694 : vector<1x128xi1>
    %696 = arith.andi %680, %690 : vector<1x128xi1>
    %cst_201 = arith.constant 1.000000e+00 : f32
    %697 = vector.broadcast %cst_201 : f32 to vector<1x128xf32>
    %698 = arith.subf %697, %668 : vector<1x128xf32>
    %cst_202 = arith.constant 1.000000e+00 : f32
    %699 = vector.broadcast %cst_202 : f32 to vector<1x128xf32>
    %700 = arith.subf %699, %669 : vector<1x128xf32>
    %701 = arith.mulf %698, %700 : vector<1x128xf32>
    %cst_203 = arith.constant 0.000000e+00 : f32
    %702 = vector.broadcast %cst_203 : f32 to vector<1x128xf32>
    %703 = arith.select %696, %701, %702 : vector<1x128xi1>, vector<1x128xf32>
    %704 = arith.mulf %703, %659 : vector<1x128xf32>
    %705 = arith.andi %680, %695 : vector<1x128xi1>
    %cst_204 = arith.constant 1.000000e+00 : f32
    %706 = vector.broadcast %cst_204 : f32 to vector<1x128xf32>
    %707 = arith.subf %706, %668 : vector<1x128xf32>
    %708 = arith.mulf %707, %669 : vector<1x128xf32>
    %cst_205 = arith.constant 0.000000e+00 : f32
    %709 = vector.broadcast %cst_205 : f32 to vector<1x128xf32>
    %710 = arith.select %705, %708, %709 : vector<1x128xi1>, vector<1x128xf32>
    %711 = arith.mulf %710, %659 : vector<1x128xf32>
    %712 = arith.andi %685, %690 : vector<1x128xi1>
    %cst_206 = arith.constant 1.000000e+00 : f32
    %713 = vector.broadcast %cst_206 : f32 to vector<1x128xf32>
    %714 = arith.subf %713, %669 : vector<1x128xf32>
    %715 = arith.mulf %668, %714 : vector<1x128xf32>
    %cst_207 = arith.constant 0.000000e+00 : f32
    %716 = vector.broadcast %cst_207 : f32 to vector<1x128xf32>
    %717 = arith.select %712, %715, %716 : vector<1x128xi1>, vector<1x128xf32>
    %718 = arith.mulf %717, %659 : vector<1x128xf32>
    %719 = arith.andi %685, %695 : vector<1x128xi1>
    %720 = arith.mulf %668, %669 : vector<1x128xf32>
    %cst_208 = arith.constant 0.000000e+00 : f32
    %721 = vector.broadcast %cst_208 : f32 to vector<1x128xf32>
    %722 = arith.select %719, %720, %721 : vector<1x128xi1>, vector<1x128xf32>
    %723 = arith.mulf %722, %659 : vector<1x128xf32>
    %c16_i32_209 = arith.constant 16 : i32
    %724 = vector.broadcast %c16_i32_209 : i32 to vector<1x128xi32>
    %725 = arith.muli %670, %724 : vector<1x128xi32>
    %726 = arith.addi %725, %671 : vector<1x128xi32>
    %c16_i32_210 = arith.constant 16 : i32
    %727 = vector.broadcast %c16_i32_210 : i32 to vector<1x128xi32>
    %728 = arith.muli %670, %727 : vector<1x128xi32>
    %729 = arith.addi %728, %675 : vector<1x128xi32>
    %c16_i32_211 = arith.constant 16 : i32
    %730 = vector.broadcast %c16_i32_211 : i32 to vector<1x128xi32>
    %731 = arith.muli %673, %730 : vector<1x128xi32>
    %732 = arith.addi %731, %671 : vector<1x128xi32>
    %c16_i32_212 = arith.constant 16 : i32
    %733 = vector.broadcast %c16_i32_212 : i32 to vector<1x128xi32>
    %734 = arith.muli %673, %733 : vector<1x128xi32>
    %735 = arith.addi %734, %675 : vector<1x128xi32>
    %736 = vector.broadcast %726 : vector<1x128xi32> to vector<256x128xi32>
    %737 = arith.cmpi eq, %8, %736 : vector<256x128xi32>
    %cst_213 = arith.constant 0.000000e+00 : f32
    %738 = vector.shape_cast %704 : vector<1x128xf32> to vector<1x128xf32>
    %739 = vector.broadcast %738 : vector<1x128xf32> to vector<256x128xf32>
    %740 = vector.broadcast %cst_213 : f32 to vector<256x128xf32>
    %741 = arith.select %737, %739, %740 : vector<256x128xi1>, vector<256x128xf32>
    %742 = vector.broadcast %729 : vector<1x128xi32> to vector<256x128xi32>
    %743 = arith.cmpi eq, %8, %742 : vector<256x128xi32>
    %cst_214 = arith.constant 0.000000e+00 : f32
    %744 = vector.shape_cast %711 : vector<1x128xf32> to vector<1x128xf32>
    %745 = vector.broadcast %744 : vector<1x128xf32> to vector<256x128xf32>
    %746 = vector.broadcast %cst_214 : f32 to vector<256x128xf32>
    %747 = arith.select %743, %745, %746 : vector<256x128xi1>, vector<256x128xf32>
    %748 = arith.addf %741, %747 : vector<256x128xf32>
    %749 = vector.broadcast %732 : vector<1x128xi32> to vector<256x128xi32>
    %750 = arith.cmpi eq, %8, %749 : vector<256x128xi32>
    %cst_215 = arith.constant 0.000000e+00 : f32
    %751 = vector.shape_cast %718 : vector<1x128xf32> to vector<1x128xf32>
    %752 = vector.broadcast %751 : vector<1x128xf32> to vector<256x128xf32>
    %753 = vector.broadcast %cst_215 : f32 to vector<256x128xf32>
    %754 = arith.select %750, %752, %753 : vector<256x128xi1>, vector<256x128xf32>
    %755 = arith.addf %748, %754 : vector<256x128xf32>
    %756 = vector.broadcast %735 : vector<1x128xi32> to vector<256x128xi32>
    %757 = arith.cmpi eq, %8, %756 : vector<256x128xi32>
    %cst_216 = arith.constant 0.000000e+00 : f32
    %758 = vector.shape_cast %723 : vector<1x128xf32> to vector<1x128xf32>
    %759 = vector.broadcast %758 : vector<1x128xf32> to vector<256x128xf32>
    %760 = vector.broadcast %cst_216 : f32 to vector<256x128xf32>
    %761 = arith.select %757, %759, %760 : vector<256x128xi1>, vector<256x128xf32>
    %762 = arith.addf %755, %761 : vector<256x128xf32>
    %cst_217 = arith.constant dense<0.000000e+00> : vector<8x128xf32>
    %763 = tpu.matmul %1, %762, %cst_217 {dimension_numbers = #tpu.dot_dimension_numbers<[1], [0], [0], [1], [0, 0, 1, 1], [], []>} : vector<8x256xf32>, vector<256x128xf32>, vector<8x128xf32> -> vector<8x128xf32>
    %c48 = arith.constant 48 : index
    %c0_218 = arith.constant 0 : index
    %764 = vector.load %arg10[%c48, %c0_218] : memref<72x128xf32, #tpu.memory_space<vmem>>, vector<8x128xf32>
    tpu.vector_store %arg10[%c48, %c0_218], %763 {strides = array<i32>} : memref<72x128xf32, #tpu.memory_space<vmem>>, vector<8x128xf32>,
    %765 = vector.extract_strided_slice %3 {offsets = [14, 0], sizes = [1, 128], strides = [1, 1]} : vector<18x128xf32> to vector<1x128xf32>
    %766 = vector.extract_strided_slice %3 {offsets = [15, 0], sizes = [1, 128], strides = [1, 1]} : vector<18x128xf32> to vector<1x128xf32>
    %767 = vector.extract_strided_slice %5 {offsets = [7, 0], sizes = [1, 128], strides = [1, 1]} : vector<9x128xf32> to vector<1x128xf32>
    %cst_219 = arith.constant 2.000000e+00 : f32
    %768 = vector.broadcast %cst_219 : f32 to vector<1x128xf32>
    %769 = arith.addf %6, %768 : vector<1x128xf32>
    %770 = arith.addf %769, %765 : vector<1x128xf32>
    %cst_220 = arith.constant 1.000000e+00 : f32
    %771 = vector.broadcast %cst_220 : f32 to vector<1x128xf32>
    %772 = arith.addf %7, %771 : vector<1x128xf32>
    %773 = arith.addf %772, %766 : vector<1x128xf32>
    %774 = math.floor %770 : vector<1x128xf32>
    %775 = math.floor %773 : vector<1x128xf32>
    %776 = arith.subf %770, %774 : vector<1x128xf32>
    %777 = arith.subf %773, %775 : vector<1x128xf32>
    %778 = arith.fptosi %774 : vector<1x128xf32> to vector<1x128xi32>
    %779 = arith.fptosi %775 : vector<1x128xf32> to vector<1x128xi32>
    %c1_i32_221 = arith.constant 1 : i32
    %780 = vector.broadcast %c1_i32_221 : i32 to vector<1x128xi32>
    %781 = arith.addi %778, %780 : vector<1x128xi32>
    %c1_i32_222 = arith.constant 1 : i32
    %782 = vector.broadcast %c1_i32_222 : i32 to vector<1x128xi32>
    %783 = arith.addi %779, %782 : vector<1x128xi32>
    %c0_i32_223 = arith.constant 0 : i32
    %784 = vector.broadcast %c0_i32_223 : i32 to vector<1x128xi32>
    %785 = arith.cmpi sge, %778, %784 : vector<1x128xi32>
    %c16_i32_224 = arith.constant 16 : i32
    %786 = vector.broadcast %c16_i32_224 : i32 to vector<1x128xi32>
    %787 = arith.cmpi slt, %778, %786 : vector<1x128xi32>
    %788 = arith.andi %785, %787 : vector<1x128xi1>
    %c0_i32_225 = arith.constant 0 : i32
    %789 = vector.broadcast %c0_i32_225 : i32 to vector<1x128xi32>
    %790 = arith.cmpi sge, %781, %789 : vector<1x128xi32>
    %c16_i32_226 = arith.constant 16 : i32
    %791 = vector.broadcast %c16_i32_226 : i32 to vector<1x128xi32>
    %792 = arith.cmpi slt, %781, %791 : vector<1x128xi32>
    %793 = arith.andi %790, %792 : vector<1x128xi1>
    %c0_i32_227 = arith.constant 0 : i32
    %794 = vector.broadcast %c0_i32_227 : i32 to vector<1x128xi32>
    %795 = arith.cmpi sge, %779, %794 : vector<1x128xi32>
    %c16_i32_228 = arith.constant 16 : i32
    %796 = vector.broadcast %c16_i32_228 : i32 to vector<1x128xi32>
    %797 = arith.cmpi slt, %779, %796 : vector<1x128xi32>
    %798 = arith.andi %795, %797 : vector<1x128xi1>
    %c0_i32_229 = arith.constant 0 : i32
    %799 = vector.broadcast %c0_i32_229 : i32 to vector<1x128xi32>
    %800 = arith.cmpi sge, %783, %799 : vector<1x128xi32>
    %c16_i32_230 = arith.constant 16 : i32
    %801 = vector.broadcast %c16_i32_230 : i32 to vector<1x128xi32>
    %802 = arith.cmpi slt, %783, %801 : vector<1x128xi32>
    %803 = arith.andi %800, %802 : vector<1x128xi1>
    %804 = arith.andi %788, %798 : vector<1x128xi1>
    %cst_231 = arith.constant 1.000000e+00 : f32
    %805 = vector.broadcast %cst_231 : f32 to vector<1x128xf32>
    %806 = arith.subf %805, %776 : vector<1x128xf32>
    %cst_232 = arith.constant 1.000000e+00 : f32
    %807 = vector.broadcast %cst_232 : f32 to vector<1x128xf32>
    %808 = arith.subf %807, %777 : vector<1x128xf32>
    %809 = arith.mulf %806, %808 : vector<1x128xf32>
    %cst_233 = arith.constant 0.000000e+00 : f32
    %810 = vector.broadcast %cst_233 : f32 to vector<1x128xf32>
    %811 = arith.select %804, %809, %810 : vector<1x128xi1>, vector<1x128xf32>
    %812 = arith.mulf %811, %767 : vector<1x128xf32>
    %813 = arith.andi %788, %803 : vector<1x128xi1>
    %cst_234 = arith.constant 1.000000e+00 : f32
    %814 = vector.broadcast %cst_234 : f32 to vector<1x128xf32>
    %815 = arith.subf %814, %776 : vector<1x128xf32>
    %816 = arith.mulf %815, %777 : vector<1x128xf32>
    %cst_235 = arith.constant 0.000000e+00 : f32
    %817 = vector.broadcast %cst_235 : f32 to vector<1x128xf32>
    %818 = arith.select %813, %816, %817 : vector<1x128xi1>, vector<1x128xf32>
    %819 = arith.mulf %818, %767 : vector<1x128xf32>
    %820 = arith.andi %793, %798 : vector<1x128xi1>
    %cst_236 = arith.constant 1.000000e+00 : f32
    %821 = vector.broadcast %cst_236 : f32 to vector<1x128xf32>
    %822 = arith.subf %821, %777 : vector<1x128xf32>
    %823 = arith.mulf %776, %822 : vector<1x128xf32>
    %cst_237 = arith.constant 0.000000e+00 : f32
    %824 = vector.broadcast %cst_237 : f32 to vector<1x128xf32>
    %825 = arith.select %820, %823, %824 : vector<1x128xi1>, vector<1x128xf32>
    %826 = arith.mulf %825, %767 : vector<1x128xf32>
    %827 = arith.andi %793, %803 : vector<1x128xi1>
    %828 = arith.mulf %776, %777 : vector<1x128xf32>
    %cst_238 = arith.constant 0.000000e+00 : f32
    %829 = vector.broadcast %cst_238 : f32 to vector<1x128xf32>
    %830 = arith.select %827, %828, %829 : vector<1x128xi1>, vector<1x128xf32>
    %831 = arith.mulf %830, %767 : vector<1x128xf32>
    %c16_i32_239 = arith.constant 16 : i32
    %832 = vector.broadcast %c16_i32_239 : i32 to vector<1x128xi32>
    %833 = arith.muli %778, %832 : vector<1x128xi32>
    %834 = arith.addi %833, %779 : vector<1x128xi32>
    %c16_i32_240 = arith.constant 16 : i32
    %835 = vector.broadcast %c16_i32_240 : i32 to vector<1x128xi32>
    %836 = arith.muli %778, %835 : vector<1x128xi32>
    %837 = arith.addi %836, %783 : vector<1x128xi32>
    %c16_i32_241 = arith.constant 16 : i32
    %838 = vector.broadcast %c16_i32_241 : i32 to vector<1x128xi32>
    %839 = arith.muli %781, %838 : vector<1x128xi32>
    %840 = arith.addi %839, %779 : vector<1x128xi32>
    %c16_i32_242 = arith.constant 16 : i32
    %841 = vector.broadcast %c16_i32_242 : i32 to vector<1x128xi32>
    %842 = arith.muli %781, %841 : vector<1x128xi32>
    %843 = arith.addi %842, %783 : vector<1x128xi32>
    %844 = vector.broadcast %834 : vector<1x128xi32> to vector<256x128xi32>
    %845 = arith.cmpi eq, %8, %844 : vector<256x128xi32>
    %cst_243 = arith.constant 0.000000e+00 : f32
    %846 = vector.shape_cast %812 : vector<1x128xf32> to vector<1x128xf32>
    %847 = vector.broadcast %846 : vector<1x128xf32> to vector<256x128xf32>
    %848 = vector.broadcast %cst_243 : f32 to vector<256x128xf32>
    %849 = arith.select %845, %847, %848 : vector<256x128xi1>, vector<256x128xf32>
    %850 = vector.broadcast %837 : vector<1x128xi32> to vector<256x128xi32>
    %851 = arith.cmpi eq, %8, %850 : vector<256x128xi32>
    %cst_244 = arith.constant 0.000000e+00 : f32
    %852 = vector.shape_cast %819 : vector<1x128xf32> to vector<1x128xf32>
    %853 = vector.broadcast %852 : vector<1x128xf32> to vector<256x128xf32>
    %854 = vector.broadcast %cst_244 : f32 to vector<256x128xf32>
    %855 = arith.select %851, %853, %854 : vector<256x128xi1>, vector<256x128xf32>
    %856 = arith.addf %849, %855 : vector<256x128xf32>
    %857 = vector.broadcast %840 : vector<1x128xi32> to vector<256x128xi32>
    %858 = arith.cmpi eq, %8, %857 : vector<256x128xi32>
    %cst_245 = arith.constant 0.000000e+00 : f32
    %859 = vector.shape_cast %826 : vector<1x128xf32> to vector<1x128xf32>
    %860 = vector.broadcast %859 : vector<1x128xf32> to vector<256x128xf32>
    %861 = vector.broadcast %cst_245 : f32 to vector<256x128xf32>
    %862 = arith.select %858, %860, %861 : vector<256x128xi1>, vector<256x128xf32>
    %863 = arith.addf %856, %862 : vector<256x128xf32>
    %864 = vector.broadcast %843 : vector<1x128xi32> to vector<256x128xi32>
    %865 = arith.cmpi eq, %8, %864 : vector<256x128xi32>
    %cst_246 = arith.constant 0.000000e+00 : f32
    %866 = vector.shape_cast %831 : vector<1x128xf32> to vector<1x128xf32>
    %867 = vector.broadcast %866 : vector<1x128xf32> to vector<256x128xf32>
    %868 = vector.broadcast %cst_246 : f32 to vector<256x128xf32>
    %869 = arith.select %865, %867, %868 : vector<256x128xi1>, vector<256x128xf32>
    %870 = arith.addf %863, %869 : vector<256x128xf32>
    %cst_247 = arith.constant dense<0.000000e+00> : vector<8x128xf32>
    %871 = tpu.matmul %1, %870, %cst_247 {dimension_numbers = #tpu.dot_dimension_numbers<[1], [0], [0], [1], [0, 0, 1, 1], [], []>} : vector<8x256xf32>, vector<256x128xf32>, vector<8x128xf32> -> vector<8x128xf32>
    %c56 = arith.constant 56 : index
    %c0_248 = arith.constant 0 : index
    %872 = vector.load %arg10[%c56, %c0_248] : memref<72x128xf32, #tpu.memory_space<vmem>>, vector<8x128xf32>
    tpu.vector_store %arg10[%c56, %c0_248], %871 {strides = array<i32>} : memref<72x128xf32, #tpu.memory_space<vmem>>, vector<8x128xf32>,
    %873 = vector.extract_strided_slice %3 {offsets = [16, 0], sizes = [1, 128], strides = [1, 1]} : vector<18x128xf32> to vector<1x128xf32>
    %874 = vector.extract_strided_slice %3 {offsets = [17, 0], sizes = [1, 128], strides = [1, 1]} : vector<18x128xf32> to vector<1x128xf32>
    %875 = vector.extract_strided_slice %5 {offsets = [8, 0], sizes = [1, 128], strides = [1, 1]} : vector<9x128xf32> to vector<1x128xf32>
    %cst_249 = arith.constant 2.000000e+00 : f32
    %876 = vector.broadcast %cst_249 : f32 to vector<1x128xf32>
    %877 = arith.addf %6, %876 : vector<1x128xf32>
    %878 = arith.addf %877, %873 : vector<1x128xf32>
    %cst_250 = arith.constant 2.000000e+00 : f32
    %879 = vector.broadcast %cst_250 : f32 to vector<1x128xf32>
    %880 = arith.addf %7, %879 : vector<1x128xf32>
    %881 = arith.addf %880, %874 : vector<1x128xf32>
    %882 = math.floor %878 : vector<1x128xf32>
    %883 = math.floor %881 : vector<1x128xf32>
    %884 = arith.subf %878, %882 : vector<1x128xf32>
    %885 = arith.subf %881, %883 : vector<1x128xf32>
    %886 = arith.fptosi %882 : vector<1x128xf32> to vector<1x128xi32>
    %887 = arith.fptosi %883 : vector<1x128xf32> to vector<1x128xi32>
    %c1_i32_251 = arith.constant 1 : i32
    %888 = vector.broadcast %c1_i32_251 : i32 to vector<1x128xi32>
    %889 = arith.addi %886, %888 : vector<1x128xi32>
    %c1_i32_252 = arith.constant 1 : i32
    %890 = vector.broadcast %c1_i32_252 : i32 to vector<1x128xi32>
    %891 = arith.addi %887, %890 : vector<1x128xi32>
    %c0_i32_253 = arith.constant 0 : i32
    %892 = vector.broadcast %c0_i32_253 : i32 to vector<1x128xi32>
    %893 = arith.cmpi sge, %886, %892 : vector<1x128xi32>
    %c16_i32_254 = arith.constant 16 : i32
    %894 = vector.broadcast %c16_i32_254 : i32 to vector<1x128xi32>
    %895 = arith.cmpi slt, %886, %894 : vector<1x128xi32>
    %896 = arith.andi %893, %895 : vector<1x128xi1>
    %c0_i32_255 = arith.constant 0 : i32
    %897 = vector.broadcast %c0_i32_255 : i32 to vector<1x128xi32>
    %898 = arith.cmpi sge, %889, %897 : vector<1x128xi32>
    %c16_i32_256 = arith.constant 16 : i32
    %899 = vector.broadcast %c16_i32_256 : i32 to vector<1x128xi32>
    %900 = arith.cmpi slt, %889, %899 : vector<1x128xi32>
    %901 = arith.andi %898, %900 : vector<1x128xi1>
    %c0_i32_257 = arith.constant 0 : i32
    %902 = vector.broadcast %c0_i32_257 : i32 to vector<1x128xi32>
    %903 = arith.cmpi sge, %887, %902 : vector<1x128xi32>
    %c16_i32_258 = arith.constant 16 : i32
    %904 = vector.broadcast %c16_i32_258 : i32 to vector<1x128xi32>
    %905 = arith.cmpi slt, %887, %904 : vector<1x128xi32>
    %906 = arith.andi %903, %905 : vector<1x128xi1>
    %c0_i32_259 = arith.constant 0 : i32
    %907 = vector.broadcast %c0_i32_259 : i32 to vector<1x128xi32>
    %908 = arith.cmpi sge, %891, %907 : vector<1x128xi32>
    %c16_i32_260 = arith.constant 16 : i32
    %909 = vector.broadcast %c16_i32_260 : i32 to vector<1x128xi32>
    %910 = arith.cmpi slt, %891, %909 : vector<1x128xi32>
    %911 = arith.andi %908, %910 : vector<1x128xi1>
    %912 = arith.andi %896, %906 : vector<1x128xi1>
    %cst_261 = arith.constant 1.000000e+00 : f32
    %913 = vector.broadcast %cst_261 : f32 to vector<1x128xf32>
    %914 = arith.subf %913, %884 : vector<1x128xf32>
    %cst_262 = arith.constant 1.000000e+00 : f32
    %915 = vector.broadcast %cst_262 : f32 to vector<1x128xf32>
    %916 = arith.subf %915, %885 : vector<1x128xf32>
    %917 = arith.mulf %914, %916 : vector<1x128xf32>
    %cst_263 = arith.constant 0.000000e+00 : f32
    %918 = vector.broadcast %cst_263 : f32 to vector<1x128xf32>
    %919 = arith.select %912, %917, %918 : vector<1x128xi1>, vector<1x128xf32>
    %920 = arith.mulf %919, %875 : vector<1x128xf32>
    %921 = arith.andi %896, %911 : vector<1x128xi1>
    %cst_264 = arith.constant 1.000000e+00 : f32
    %922 = vector.broadcast %cst_264 : f32 to vector<1x128xf32>
    %923 = arith.subf %922, %884 : vector<1x128xf32>
    %924 = arith.mulf %923, %885 : vector<1x128xf32>
    %cst_265 = arith.constant 0.000000e+00 : f32
    %925 = vector.broadcast %cst_265 : f32 to vector<1x128xf32>
    %926 = arith.select %921, %924, %925 : vector<1x128xi1>, vector<1x128xf32>
    %927 = arith.mulf %926, %875 : vector<1x128xf32>
    %928 = arith.andi %901, %906 : vector<1x128xi1>
    %cst_266 = arith.constant 1.000000e+00 : f32
    %929 = vector.broadcast %cst_266 : f32 to vector<1x128xf32>
    %930 = arith.subf %929, %885 : vector<1x128xf32>
    %931 = arith.mulf %884, %930 : vector<1x128xf32>
    %cst_267 = arith.constant 0.000000e+00 : f32
    %932 = vector.broadcast %cst_267 : f32 to vector<1x128xf32>
    %933 = arith.select %928, %931, %932 : vector<1x128xi1>, vector<1x128xf32>
    %934 = arith.mulf %933, %875 : vector<1x128xf32>
    %935 = arith.andi %901, %911 : vector<1x128xi1>
    %936 = arith.mulf %884, %885 : vector<1x128xf32>
    %cst_268 = arith.constant 0.000000e+00 : f32
    %937 = vector.broadcast %cst_268 : f32 to vector<1x128xf32>
    %938 = arith.select %935, %936, %937 : vector<1x128xi1>, vector<1x128xf32>
    %939 = arith.mulf %938, %875 : vector<1x128xf32>
    %c16_i32_269 = arith.constant 16 : i32
    %940 = vector.broadcast %c16_i32_269 : i32 to vector<1x128xi32>
    %941 = arith.muli %886, %940 : vector<1x128xi32>
    %942 = arith.addi %941, %887 : vector<1x128xi32>
    %c16_i32_270 = arith.constant 16 : i32
    %943 = vector.broadcast %c16_i32_270 : i32 to vector<1x128xi32>
    %944 = arith.muli %886, %943 : vector<1x128xi32>
    %945 = arith.addi %944, %891 : vector<1x128xi32>
    %c16_i32_271 = arith.constant 16 : i32
    %946 = vector.broadcast %c16_i32_271 : i32 to vector<1x128xi32>
    %947 = arith.muli %889, %946 : vector<1x128xi32>
    %948 = arith.addi %947, %887 : vector<1x128xi32>
    %c16_i32_272 = arith.constant 16 : i32
    %949 = vector.broadcast %c16_i32_272 : i32 to vector<1x128xi32>
    %950 = arith.muli %889, %949 : vector<1x128xi32>
    %951 = arith.addi %950, %891 : vector<1x128xi32>
    %952 = vector.broadcast %942 : vector<1x128xi32> to vector<256x128xi32>
    %953 = arith.cmpi eq, %8, %952 : vector<256x128xi32>
    %cst_273 = arith.constant 0.000000e+00 : f32
    %954 = vector.shape_cast %920 : vector<1x128xf32> to vector<1x128xf32>
    %955 = vector.broadcast %954 : vector<1x128xf32> to vector<256x128xf32>
    %956 = vector.broadcast %cst_273 : f32 to vector<256x128xf32>
    %957 = arith.select %953, %955, %956 : vector<256x128xi1>, vector<256x128xf32>
    %958 = vector.broadcast %945 : vector<1x128xi32> to vector<256x128xi32>
    %959 = arith.cmpi eq, %8, %958 : vector<256x128xi32>
    %cst_274 = arith.constant 0.000000e+00 : f32
    %960 = vector.shape_cast %927 : vector<1x128xf32> to vector<1x128xf32>
    %961 = vector.broadcast %960 : vector<1x128xf32> to vector<256x128xf32>
    %962 = vector.broadcast %cst_274 : f32 to vector<256x128xf32>
    %963 = arith.select %959, %961, %962 : vector<256x128xi1>, vector<256x128xf32>
    %964 = arith.addf %957, %963 : vector<256x128xf32>
    %965 = vector.broadcast %948 : vector<1x128xi32> to vector<256x128xi32>
    %966 = arith.cmpi eq, %8, %965 : vector<256x128xi32>
    %cst_275 = arith.constant 0.000000e+00 : f32
    %967 = vector.shape_cast %934 : vector<1x128xf32> to vector<1x128xf32>
    %968 = vector.broadcast %967 : vector<1x128xf32> to vector<256x128xf32>
    %969 = vector.broadcast %cst_275 : f32 to vector<256x128xf32>
    %970 = arith.select %966, %968, %969 : vector<256x128xi1>, vector<256x128xf32>
    %971 = arith.addf %964, %970 : vector<256x128xf32>
    %972 = vector.broadcast %951 : vector<1x128xi32> to vector<256x128xi32>
    %973 = arith.cmpi eq, %8, %972 : vector<256x128xi32>
    %cst_276 = arith.constant 0.000000e+00 : f32
    %974 = vector.shape_cast %939 : vector<1x128xf32> to vector<1x128xf32>
    %975 = vector.broadcast %974 : vector<1x128xf32> to vector<256x128xf32>
    %976 = vector.broadcast %cst_276 : f32 to vector<256x128xf32>
    %977 = arith.select %973, %975, %976 : vector<256x128xi1>, vector<256x128xf32>
    %978 = arith.addf %971, %977 : vector<256x128xf32>
    %cst_277 = arith.constant dense<0.000000e+00> : vector<8x128xf32>
    %979 = tpu.matmul %1, %978, %cst_277 {dimension_numbers = #tpu.dot_dimension_numbers<[1], [0], [0], [1], [0, 0, 1, 1], [], []>} : vector<8x256xf32>, vector<256x128xf32>, vector<8x128xf32> -> vector<8x128xf32>
    %c64 = arith.constant 64 : index
    %c0_278 = arith.constant 0 : index
    %980 = vector.load %arg10[%c64, %c0_278] : memref<72x128xf32, #tpu.memory_space<vmem>>, vector<8x128xf32>
    tpu.vector_store %arg10[%c64, %c0_278], %979 {strides = array<i32>} : memref<72x128xf32, #tpu.memory_space<vmem>>, vector<8x128xf32>,
    %c0_279 = arith.constant 0 : index
    %c0_280 = arith.constant 0 : index
    %981 = vector.load %arg5[%c0_279, %c0_280] : memref<8x72xf32, #tpu.memory_space<vmem>>, vector<8x72xf32>
    %c0_281 = arith.constant 0 : index
    %c0_282 = arith.constant 0 : index
    %982 = vector.load %arg10[%c0_281, %c0_282] : memref<72x128xf32, #tpu.memory_space<vmem>>, vector<72x128xf32>
    %cst_283 = arith.constant dense<0.000000e+00> : vector<8x128xf32>
    %983 = tpu.matmul %981, %982, %cst_283 {dimension_numbers = #tpu.dot_dimension_numbers<[1], [0], [0], [1], [0, 0, 1, 1], [], []>} : vector<8x72xf32>, vector<72x128xf32>, vector<8x128xf32> -> vector<8x128xf32>
    %c0_284 = arith.constant 0 : index
    %c0_285 = arith.constant 0 : index
    %984 = vector.load %arg6[%c0_284, %c0_285] : memref<8x1xf32, #tpu.memory_space<vmem>>, vector<8x1xf32>
    %985 = vector.broadcast %984 : vector<8x1xf32> to vector<8x128xf32>
    %986 = arith.addf %983, %985 : vector<8x128xf32>
    %c0_286 = arith.constant 0 : index
    %c0_287 = arith.constant 0 : index
    %c0_288 = arith.constant 0 : index
    %987 = vector.load %arg9[%c0_286, %c0_287, %c0_288] : memref<1x8x128xf32, #tpu.memory_space<vmem>>, vector<1x8x128xf32>
    %988 = vector.shape_cast %987 : vector<1x8x128xf32> to vector<8x128xf32>
    %989 = vector.shape_cast %986 : vector<8x128xf32> to vector<1x8x128xf32>
    tpu.vector_store %arg9[%c0_286, %c0_287, %c0_288], %989 {strides = array<i32>} : memref<1x8x128xf32, #tpu.memory_space<vmem>>, vector<1x8x128xf32>,
    return
  }
  func.func @transform_0(%arg0: i32, %arg1: i32) -> (i32, i32, i32) {
    %c0_i32 = arith.constant 0 : i32
    %c0_i32_0 = arith.constant 0 : i32
    %c0_i32_1 = arith.constant 0 : i32
    return %arg0, %c0_i32, %c0_i32_0 : i32, i32, i32
  }
  func.func @transform_1(%arg0: i32, %arg1: i32) -> (i32, i32, i32) {
    %c0_i32 = arith.constant 0 : i32
    %c0_i32_0 = arith.constant 0 : i32
    return %arg0, %c0_i32, %arg1 : i32, i32, i32
  }
  func.func @transform_2(%arg0: i32, %arg1: i32) -> (i32, i32, i32) {
    %c0_i32 = arith.constant 0 : i32
    %c0_i32_0 = arith.constant 0 : i32
    return %arg0, %c0_i32, %arg1 : i32, i32, i32
  }
  func.func @transform_3(%arg0: i32, %arg1: i32) -> (i32, i32) {
    %c0_i32 = arith.constant 0 : i32
    %c0_i32_0 = arith.constant 0 : i32
    %c0_i32_1 = arith.constant 0 : i32
    return %c0_i32, %c0_i32_0 : i32, i32
  }
  func.func @transform_4(%arg0: i32, %arg1: i32) -> (i32, i32) {
    %c0_i32 = arith.constant 0 : i32
    %c0_i32_0 = arith.constant 0 : i32
    %c0_i32_1 = arith.constant 0 : i32
    return %c0_i32, %c0_i32_0 : i32, i32
  }
  func.func @transform_5(%arg0: i32, %arg1: i32) -> (i32, i32) {
    %c0_i32 = arith.constant 0 : i32
    %c0_i32_0 = arith.constant 0 : i32
    return %c0_i32, %arg1 : i32, i32
  }
  func.func @transform_6(%arg0: i32, %arg1: i32) -> (i32, i32) {
    %c0_i32 = arith.constant 0 : i32
    %c0_i32_0 = arith.constant 0 : i32
    return %c0_i32, %arg1 : i32, i32
  }
  func.func @transform_7(%arg0: i32, %arg1: i32) -> (i32, i32, i32) {
    %c0_i32 = arith.constant 0 : i32
    %c0_i32_0 = arith.constant 0 : i32
    return %arg0, %c0_i32, %arg1 : i32, i32, i32
  }
}

</mosaic_0001>

<bundles_post_ra>
// kernel: tpu_custom_call.1
= control target key start
LH: loop header
LB: loop body
LE: loop exit
PB: predicated region body
PF: predicated region fallthrough
CT: control target
= control target key end

     0   :  { %s9765_s0 = inlined_call_operand.vmem [shape: f32[2,8,256], index: 0, kind: input, shape index: {}]   ;;  %s9766_s1 = inlined_call_operand.vmem [shape: f32[2,18,256], index: 1, kind: input, shape index: {}]   ;;  %s9767_s2 = inlined_call_operand.vmem [shape: f32[2,9,256], index: 2, kind: input, shape index: {}]   ;;  %s9768_s3 = inlined_call_operand.vmem [shape: f32[8,72], index: 3, kind: input, shape index: {}]   ;;  %s9769_s4 = inlined_call_operand.vmem [shape: f32[8,1], index: 4, kind: input, shape index: {}]   ;;  %s9770_s5 = inlined_call_operand.vmem [shape: f32[1,256], index: 5, kind: input, shape index: {}]   ;;  %s9771_s6 = inlined_call_operand.vmem [shape: f32[1,256], index: 6, kind: input, shape index: {}]   ;;  %s9772_s7 = inlined_call_operand.hbm [shape: f32[2,8,256], index: 7, kind: output, shape index: {}]  }
   0x1   :  { %9839 = sst [smem:[#allocation34_spill]] %s9765_s0 }
   0x2   :  { %9840 = sst [smem:[#allocation35_spill]] %s9766_s1 }
   0x3   :  { %12 = vsyncpa [#allocation6], 0 }
   0x4   :  { %14 = vsyncpa [#allocation6 + $0x1], 0  ;;  %s5239_s24 = smov 0   ;;  %s5241_s25 = smov 0  }
   0x5   :  { %s5243_s26 = smov 0   ;;  %s5245_s27 = smov 0  }
   0x6   :  { %s5247_s28 = smov 0   ;;  %s5249_s29 = smov 0  }
   0x7   :  { %s5251_s30 = smov 0   ;;  %s5253_s8 = smov 0  }
   0x8 LB: > { %s4957_s9 = sadd.s32 4294967295, %s5196_s8   ;;  %s4958_s10 = sadd.s32 4294967294, %s5196_s8   ;;  %s5196_s8 = sphi %s5253_s8, %s20_s8   ;;  %s5192_s30 = sphi %s5251_s30, %s10006_s30   ;;  %s5188_s29 = sphi %s5249_s29, %s10005_s29   ;;  %s5184_s28 = sphi %s5247_s28, %s10004_s28   ;;  %s5180_s27 = sphi %s5245_s27, %s10003_s27   ;;  %s5176_s26 = sphi %s5243_s26, %s10002_s26   ;;  %s5172_s25 = sphi %s5241_s25, %s10001_s25   ;;  %s5168_s24 = sphi %s5239_s24, %s10000_s24  }
   0x9   : > { %s29_s11 = sadd.s32 1, %s5188_s29  ;;  %s32_s12 = sadd.s32 1, %s5192_s30 }
   0xa   : > { %p30_p0 = scmp.ge.s32.totalorder %s29_s11, 2  ;;  %p74_p1 = scmp.ne.s32.totalorder %s5176_s26, %s5172_s25 }
   0xb   : > { %p75_p2 = scmp.eq.s32.totalorder %s5196_s8, 0  ;;  %p228_p5 = scmp.eq.s32.totalorder %s4957_s9, 3 }
   0xc   : > { %s10008_s11 = smov (%p30_p0, %s29_s11), 0  ;;  %s10010_s12 = smov (!%p30_p0, %s32_s12), %s5192_s30 }
   0xd   : > { %s63_s13 = ssub.s32 %s5188_s29, %s10008_s11  ;;  %p5291_p3 = por %p75_p2, %p74_p1 }
   0xe   : > { %p34_p4 = scmp.ge.s32.totalorder %s10010_s12, 2  ;;  %p233_p6 = scmp.ne.s32.totalorder %s5172_s25, %s5168_s24 }
   0xf   : > { %p234_p7 = scmp.eq.s32.totalorder %s4958_s10, 3  ;;  %p5299_p8 = por %p228_p5, %p74_p1 }
  0x10   : > { %s10012_s12 = smov (%p34_p4, %s10010_s12), 0  ;;  %s67_s19 = sadd.s32 1, %s5176_s26 }
  0x11   : > { %9842 = sst [smem:[#allocation8_spill]] %s10012_s12  ;;  %p5303_p9 = por %p234_p7, %p233_p6 }
  0x12   : > { %s62_s17 = ssub.s32 %s5192_s30, %s10012_s12  ;;  %p4960_p11 = scmp.ge.s32.totalorder %s5196_s8, 4 }
  0x13   : > { %s64_s18 = sor.u32 %s63_s13, %s62_s17 }
  0x14   : > { %p65_p10 = scmp.eq.s32.totalorder %s64_s18, 0  ;;  %256 = sbr.rel (%p4960_p11) target bundleno = 45 (0x2d), region = 24 }
  0x16   : > { %s5311_s20 = scalar_select %p65_p10, %s5176_s26, %s67_s19  }
  0x19   : > { %267 = sbr.rel (!%p5291_p3) target bundleno = 37 (0x25), region = 32  ;;  %s269_s21 = sand.u32 (%p5291_p3), 1, %s5176_s26  }
  0x1a   : > { %s4978_s22 = smul.u32 (%p5291_p3), 6, %s5192_s30  ;;  %s9845_s1 = sld [smem:[#allocation35_spill]] (%p5291_p3) }
  0x1b   : > { %s4977_s23 = smul.u32 (%p5291_p3), 24, %s269_s21 }
  0x1c   : > { %s273_s9 = sadd.s32 (%p5291_p3), %s5188_s29, %s4978_s22 }
  0x1d   : > { %s4961_s10 = sshll.u32 (%p5291_p3), %s273_s9, 3  ;;  %s271_s18 = scalar_lea.vmem (%p5291_p3), [#allocation3], %s4977_s23 }
  0x20   : > { %s275_s17 = scalar_lea.vmem %s9845_s1, %s4961_s10 }
  0x21   : > { %v308_v0 = vld [vmem:[%s275_s17] sm:$0xff]  ;;  %v310_v1 = vld [vmem:[%s275_s17 + $0x10] sm:$0xff] }
  0x22   : > { %v312_v2 = vld [vmem:[%s275_s17 + $0x20] sm:$0xff]  ;;  %309 = vst [vmem:[%s271_s18] sm:$0xff] %v308_v0 }
  0x23   : > { %311 = vst [vmem:[%s271_s18 + $0x8] sm:$0xff] %v310_v1 }
  0x24   : > { %313 = vst [vmem:[%s271_s18 + $0x10] sm:$0xff] %v312_v2 }
  0x25 PF: > { %319 = sbr.rel (!%p5291_p3) target bundleno = 45 (0x2d), region = 70  ;;  %s321_s19 = sand.u32 (%p5291_p3), 1, %s5176_s26  }
  0x26   : > { %s4963_s21 = sshll.u32 (%p5291_p3), %s5192_s30, 2  ;;  %s4962_s22 = sshll.u32 (%p5291_p3), %s321_s19, 4 }
  0x27   : > { %s325_s9 = sadd.s32 (%p5291_p3), %s5188_s29, %s4963_s21  ;;  %s323_s23 = scalar_lea.vmem (%p5291_p3), [#allocation4], %s4962_s22 }
  0x28   : > { %s4964_s12 = sshll.u32 (%p5291_p3), %s325_s9, 3 }
  0x29   : > { %s327_s17 = scalar_lea.vmem (%p5291_p3), %s9767_s2, %s4964_s12 }
  0x2a   : > { %v358_v3 = vld [vmem:[%s327_s17] sm:$0xff]  ;;  %v360_v4 = vld [vmem:[%s327_s17 + $0x10] sm:$0xff] }
  0x2b   : > { %359 = vst [vmem:[%s323_s23] sm:$0xff] %v358_v3 }
  0x2c   : > { %361 = vst [vmem:[%s323_s23 + $0x8] sm:$0xff] %v360_v4 }
  0x2d PF: > { %p4965_p12 = scmp.ge.s32.totalorder %s5196_s8, 1  ;;  %p378_p13 = scmp.lt.s32.totalorder %s5196_s8, 5 }
  0x2f   : > { %p379_p0 = pnand %p4965_p12, %p378_p13 }
  0x31   : > { %382 = sbr.rel (%p379_p0) target bundleno = 1331 (0x533), region = 116 }
  0x36   : > { %s5333_s14 = sand.u32 1, %s5172_s25   ;;  %p443_p1 = scmp.lt.s32.totalorder %s5180_s27, 1  ;;  %v458_v9 = vlaneseq }
  0x37   : > { %s4979_s18 = smul.u32 24, %s5333_s14  ;;  %s4966_s23 = sshll.u32 %s5333_s14, 4 }
  0x38   : > { %s444_s19 = scalar_select %p443_p1, %s5180_s27, 1  ;;  %v5364_v15 = vshrl.u32 %v458_v9, 7 }
  0x39   : > { %s5338_s21 = scalar_lea.vmem [#allocation3], %s4979_s18  ;;  %s5395_s18 = scalar_lea.vmem [#allocation4], %s4966_s23 }
  0x3a   : > { %v5341_v5 = vld [vmem:[%s5338_s21] sm:$0xff]  ;;  %s5347_s12 = scalar_lea.vmem %s9770_s5, %s444_s19  ;;  %s5352_s17 = scalar_lea.vmem %s9771_s6, %s444_s19  ;;  %v5376_v27 = vadd.s32 120, %v5364_v15  ;;  %v5398_v40 = vld [vmem:[%s5395_s18] sm:$0xff] }
  0x3b   : > { %495 = vst [vmem:[#allocation1] sm:$0xff] %v5341_v5  ;;  %v5355_v6 = vld [vmem:[%s5347_s12] sm:$0x1]  ;;  %p438_p2 = scmp.lt.s32.totalorder %s5184_s28, 1  ;;  %s9910_s0 = sld [smem:[#allocation34_spill]] }
  0x3c   : > { %v492_v7 = vadd.f32 %v5355_v6, %v5341_v5  ;;  %v5360_v8 = vld [vmem:[%s5352_s17] sm:$0x1] }
  0x3d   : > { %s6847_s19 = scalar_select %p438_p2, %s5184_s28, 1 }
  0x3e   : > { %v500_v10 = vfloor.f32 %v492_v7 }
  0x3f   : > { %s4976_s22 = sshll.u32 %s6847_s19, 4 }
  0x40   : > { %v502_v12 = vsub.f32 %v492_v7, %v500_v10  ;;  %v4981_v13 = vcvt.f32.s32 %v500_v10 }
  0x41   : > { %s6879_s13 = scalar_lea.vmem %s9910_s0, %s4976_s22  ;;  %s4967_s22 = sshll.u32 %s5333_s14, 3 }
  0x42   : > { %v497_v11 = vld [vmem:[#allocation1 + $0x1] ss:$9 sm:$0xff]  ;;  %v506_v16 = vadd.s32 1, %v4981_v13  ;;  %vm508_vm0 = vcmp.ge.s32.totalorder %v4981_v13, 0  ;;  %vm509_vm1 = vcmp.lt.s32.totalorder %v4981_v13, 16  ;;  %v521_v18 = vsub.f32 1.0, %v502_v12 }
  0x43   : > { %v499_v14 = vadd.f32 %v497_v11, %v5360_v8  ;;  %953 = vst [vmem:[#allocation1] sm:$0xff] %v5341_v5  ;;  %v538_v19 = vmul.u32 16, %v4981_v13  ;;  %vm5367_vm4 = vmand %vm508_vm0, %vm509_vm1 }
  0x44   : > { %vm511_vm2 = vcmp.ge.s32.totalorder %v506_v16, 0  ;;  %vm512_vm3 = vcmp.lt.s32.totalorder %v506_v16, 16  ;;  %v541_v20 = vmul.u32 16, %v506_v16  ;;  %v5482_v16 = vadd.s32 248, %v5364_v15 }
  0x45   : > { %v501_v17 = vfloor.f32 %v499_v14  ;;  %vm5371_vm5 = vmand %vm511_vm2, %vm512_vm3 }
  0x47   : > { %v503_v21 = vsub.f32 %v499_v14, %v501_v17  ;;  %v4983_v22 = vcvt.f32.s32 %v501_v17  ;;  %v5485_v17 = vadd.s32 112, %v5364_v15 }
  0x49   : > { %v507_v24 = vadd.s32 1, %v4983_v22  ;;  %vm514_vm6 = vcmp.ge.s32.totalorder %v4983_v22, 0  ;;  %vm515_vm7 = vcmp.lt.s32.totalorder %v4983_v22, 16  ;;  %v522_v26 = vsub.f32 1.0, %v503_v21 }
  0x4a   : > { %vm5378_vm8 = vmand %vm514_vm6, %vm515_vm7  ;;  %v527_v29 = vmul.f32 %v521_v18, %v503_v21  ;;  %v539_v30 = vadd.s32 %v4983_v22, %v538_v19  ;;  %v542_v31 = vadd.s32 %v4983_v22, %v541_v20  ;;  %v5382_v32 = vld [vmem:[#allocation1 + $0x2] ss:$9 sm:$0xff]  ;;  %v535_v36 = vmul.f32 %v503_v21, %v502_v12 }
  0x4b   : > { %vm517_vm9 = vcmp.ge.s32.totalorder %v507_v24, 0  ;;  %vm518_vm10 = vcmp.lt.s32.totalorder %v507_v24, 16  ;;  %vm520_vm11 = vmand %vm5367_vm4, %vm5378_vm8  ;;  %v523_v33 = vmul.f32 %v522_v26, %v521_v18  ;;  %v531_v34 = vmul.f32 %v522_v26, %v502_v12  ;;  %959 = vst [vmem:[#allocation1] sm:$0xff] %v5341_v5 }
  0x4c   : > { %vm5389_vm12 = vmand %vm517_vm9, %vm518_vm10  ;;  %v540_v37 = vadd.s32 %v538_v19, %v507_v24  ;;  %v543_v38 = vadd.s32 %v541_v20, %v507_v24  ;;  %v5393_v39 = vperm.slane %v539_v30, 0  ;;  %v5404_v42 = vperm.slane %v542_v31, 0 }
  0x4d   : > { %v524_v41 = vsel %vm520_vm11, %v523_v33, 0.0  ;;  %vm526_vm13 = vmand %vm5367_vm4, %vm5389_vm12  ;;  %v5488_v18 = vadd.s32 240, %v5364_v15  ;;  %v5491_v19 = vadd.s32 104, %v5364_v15  ;;  %v5494_v20 = vadd.s32 232, %v5364_v15 }
  0x4e   : > { %v525_v43 = vmul.f32 %v524_v41, %v5398_v40  ;;  %v528_v44 = vsel %vm526_vm13, %v527_v29, 0.0  ;;  %vm530_vm14 = vmand %vm5371_vm5, %vm5378_vm8  ;;  %v5411_v45 = vperm.slane %v540_v37, 0  ;;  %vm560_vm0 = vcmp.eq.s32.totalorder %v5376_v27, %v5393_v39 }
  0x4f   : > { %v529_v46 = vmul.f32 %v528_v44, %v5398_v40  ;;  %v532_v47 = vsel %vm530_vm14, %v531_v34, 0.0  ;;  %vm534_vm15 = vmand %vm5371_vm5, %vm5389_vm12  ;;  %v5420_v48 = vperm.slane %v543_v38, 0  ;;  %vm728_vm2 = vcmp.eq.s32.totalorder %v5376_v27, %v5404_v42 }
  0x50   : > { %v533_v49 = vmul.f32 %v532_v47, %v5398_v40  ;;  %v536_v50 = vsel %vm534_vm15, %v535_v36, 0.0  ;;  %v5423_v51 = vperm.slane %v525_v43, 0  ;;  %vm628_vm1 = vcmp.eq.s32.totalorder %v5376_v27, %v5411_v45 }
  0x51   : > { %v537_v52 = vmul.f32 %v536_v50, %v5398_v40  ;;  %v5428_v53 = vperm.slane %v529_v46, 0  ;;  %vm828_vm3 = vcmp.eq.s32.totalorder %v5376_v27, %v5420_v48  ;;  %v5500_v21 = vadd.s32 224, %v5364_v15 }
  0x52   : > { %v595_v54 = vsel %vm560_vm0, %v5423_v51, 0.0  ;;  %v5433_v55 = vperm.slane %v533_v49, 0  ;;  %v5437_v56 = vld [vmem:[#allocation1 + $0x3] ss:$9 sm:$0xff]  ;;  %v5503_v22 = vadd.s32 88, %v5364_v15  ;;  %vm576_vm4 = vcmp.eq.s32.totalorder %v5482_v16, %v5393_v39 }
  0x53   : > { %v663_v57 = vsel %vm628_vm1, %v5428_v53, 0.0  ;;  %v5440_v58 = vperm.slane %v537_v52, 0  ;;  %990 = vst [vmem:[#allocation1] sm:$0xff] %v5398_v40  ;;  %vm644_vm5 = vcmp.eq.s32.totalorder %v5482_v16, %v5411_v45  ;;  %vm744_vm6 = vcmp.eq.s32.totalorder %v5482_v16, %v5404_v42 }
  0x54   : > { %v695_v59 = vadd.f32 %v663_v57, %v595_v54  ;;  %v763_v60 = vsel %vm728_vm2, %v5433_v55, 0.0  ;;  %vm844_vm7 = vcmp.eq.s32.totalorder %v5482_v16, %v5420_v48  ;;  %v611_v23 = vsel %vm576_vm4, %v5423_v51, 0.0 }
  0x55   : > { %v863_v61 = vsel %vm828_vm3, %v5440_v58, 0.0  ;;  %v679_v24 = vsel %vm644_vm5, %v5428_v53, 0.0  ;;  %v779_v25 = vsel %vm744_vm6, %v5433_v55, 0.0  ;;  %v879_v26 = vsel %vm844_vm7, %v5440_v58, 0.0 }
  0x56   : > { %v795_v62 = vadd.f32 %v763_v60, %v695_v59  ;;  %v711_v28 = vadd.f32 %v679_v24, %v611_v23  ;;  %vm559_vm8 = vcmp.eq.s32.totalorder %v5485_v17, %v5393_v39  ;;  %vm627_vm9 = vcmp.eq.s32.totalorder %v5485_v17, %v5411_v45 }
  0x57   : > { %vm727_vm10 = vcmp.eq.s32.totalorder %v5485_v17, %v5404_v42  ;;  %v594_v29 = vsel %vm559_vm8, %v5423_v51, 0.0  ;;  %v662_v30 = vsel %vm627_vm9, %v5428_v53, 0.0  ;;  %vm827_vm11 = vcmp.eq.s32.totalorder %v5485_v17, %v5420_v48 }
  0x58   : > { %v895_v63 = vadd.f32 %v863_v61, %v795_v62  ;;  %v762_v31 = vsel %vm727_vm10, %v5433_v55, 0.0  ;;  %v811_v33 = vadd.f32 %v779_v25, %v711_v28  ;;  %v694_v34 = vadd.f32 %v662_v30, %v594_v29 }
  0x59   : > { %v862_v35 = vsel %vm827_vm11, %v5440_v58, 0.0  ;;  %vm575_vm12 = vcmp.eq.s32.totalorder %v5488_v18, %v5393_v39  ;;  %vm643_vm13 = vcmp.eq.s32.totalorder %v5488_v18, %v5411_v45  ;;  %vm743_vm14 = vcmp.eq.s32.totalorder %v5488_v18, %v5404_v42 }
  0x5a   : > { %912 = vmatpush.msra.mxu0 %v895_v63  ;;  %v5445_v0 = vld [vmem:[#allocation1 + $0x1] ss:$9 sm:$0xff]  ;;  %v610_v37 = vsel %vm575_vm12, %v5423_v51, 0.0  ;;  %vm843_vm15 = vcmp.eq.s32.totalorder %v5488_v18, %v5420_v48  ;;  %v911_v38 = vadd.f32 %v879_v26, %v811_v33  ;;  %v794_v41 = vadd.f32 %v762_v31, %v694_v34 }
  0x5b   : > { %998 = vst [vmem:[#allocation1] sm:$0xff] %v5398_v40  ;;  %v678_v43 = vsel %vm643_vm13, %v5428_v53, 0.0  ;;  %v778_v44 = vsel %vm743_vm14, %v5433_v55, 0.0  ;;  %v878_v47 = vsel %vm843_vm15, %v5440_v58, 0.0  ;;  %vm558_vm0 = vcmp.eq.s32.totalorder %v5491_v19, %v5393_v39 }
  0x5c   : > { %v710_v46 = vadd.f32 %v678_v43, %v610_v37  ;;  %vm626_vm1 = vcmp.eq.s32.totalorder %v5491_v19, %v5411_v45  ;;  %932 = vmatpush.msra.mxu1 %v911_v38  ;;  %v894_v49 = vadd.f32 %v862_v35, %v794_v41  ;;  %v593_v50 = vsel %vm558_vm0, %v5423_v51, 0.0 }
  0x5d   : > { %v661_v52 = vsel %vm626_vm1, %v5428_v53, 0.0  ;;  %vm726_vm2 = vcmp.eq.s32.totalorder %v5491_v19, %v5404_v42  ;;  %vm826_vm3 = vcmp.eq.s32.totalorder %v5491_v19, %v5420_v48  ;;  %vm574_vm4 = vcmp.eq.s32.totalorder %v5494_v20, %v5393_v39 }
  0x5e   : > { %v810_v54 = vadd.f32 %v778_v44, %v710_v46  ;;  %v693_v57 = vadd.f32 %v661_v52, %v593_v50  ;;  %v761_v59 = vsel %vm726_vm2, %v5433_v55, 0.0  ;;  %913 = vmatpush.msra.mxu0 %v894_v49  ;;  %v861_v60 = vsel %vm826_vm3, %v5440_v58, 0.0 }
  0x5f   : > { %vm642_vm5 = vcmp.eq.s32.totalorder %v5494_v20, %v5411_v45  ;;  %vm742_vm6 = vcmp.eq.s32.totalorder %v5494_v20, %v5404_v42  ;;  %v609_v63 = vsel %vm574_vm4, %v5423_v51, 0.0  ;;  %vm842_vm7 = vcmp.eq.s32.totalorder %v5494_v20, %v5420_v48 }
  0x60   : > { %v910_v61 = vadd.f32 %v878_v47, %v810_v54  ;;  %v793_v62 = vadd.f32 %v761_v59, %v693_v57  ;;  %v677_v23 = vsel %vm642_vm5, %v5428_v53, 0.0  ;;  %v777_v25 = vsel %vm742_vm6, %v5433_v55, 0.0 }
  0x61   : > { %v709_v24 = vadd.f32 %v677_v23, %v609_v63  ;;  %v877_v29 = vsel %vm842_vm7, %v5440_v58, 0.0  ;;  %vm573_vm12 = vcmp.eq.s32.totalorder %v5500_v21, %v5393_v39  ;;  %vm641_vm13 = vcmp.eq.s32.totalorder %v5500_v21, %v5411_v45 }
  0x62   : > { %v5448_v1 = vld [vmem:[#allocation1 + $0x1] ss:$9 sm:$0xff]  ;;  %933 = vmatpush.msra.mxu1 %v910_v61  ;;  %v893_v28 = vadd.f32 %v861_v60, %v793_v62  ;;  %v608_v41 = vsel %vm573_vm12, %v5423_v51, 0.0  ;;  %vm741_vm14 = vcmp.eq.s32.totalorder %v5500_v21, %v5404_v42  ;;  %v676_v44 = vsel %vm641_vm13, %v5428_v53, 0.0 }
  0x63   : > { %1006 = vst [vmem:[#allocation1] sm:$0xff] %v5398_v40  ;;  %v809_v31 = vadd.f32 %v777_v25, %v709_v24  ;;  %v776_v46 = vsel %vm741_vm14, %v5433_v55, 0.0  ;;  %vm841_vm15 = vcmp.eq.s32.totalorder %v5500_v21, %v5420_v48  ;;  %v708_v47 = vadd.f32 %v676_v44, %v608_v41  ;;  %v5648_v44 = vld [vmem:[%s5338_s21 + $0x8] sm:$0xff] }
  0x64   : > { %914 = vmatpush.msra.mxu0 %v893_v28  ;;  %v876_v49 = vsel %vm841_vm15, %v5440_v58, 0.0  ;;  %vm556_vm0 = vcmp.eq.s32.totalorder %v5503_v22, %v5393_v39  ;;  %vm624_vm1 = vcmp.eq.s32.totalorder %v5503_v22, %v5411_v45  ;;  %vm724_vm2 = vcmp.eq.s32.totalorder %v5503_v22, %v5404_v42  ;;  %9860 = vst [vmem:[#allocation15_spill] sm:$0xff] %v5648_v44 }
  0x65   : > { %v909_v38 = vadd.f32 %v877_v29, %v809_v31  ;;  %v591_v52 = vsel %vm556_vm0, %v5423_v51, 0.0  ;;  %v659_v54 = vsel %vm624_vm1, %v5428_v53, 0.0  ;;  %v808_v57 = vadd.f32 %v776_v46, %v708_v47 }
  0x66   : > { %v691_v59 = vadd.f32 %v659_v54, %v591_v52  ;;  %v759_v60 = vsel %vm724_vm2, %v5433_v55, 0.0  ;;  %vm824_vm3 = vcmp.eq.s32.totalorder %v5503_v22, %v5420_v48  ;;  %v5610_v63 = vadd.s32 216, %v5364_v15 }
  0x67   : > { %934 = vmatpush.msra.mxu1 %v909_v38  ;;  %v859_v62 = vsel %vm824_vm3, %v5440_v58, 0.0  ;;  %v5613_v23 = vadd.s32 80, %v5364_v15  ;;  %v5616_v24 = vadd.s32 208, %v5364_v15  ;;  %v908_v25 = vadd.f32 %v876_v49, %v808_v57 }
  0x68   : > { %v791_v28 = vadd.f32 %v759_v60, %v691_v59  ;;  %v5620_v29 = vadd.s32 72, %v5364_v15  ;;  %vm572_vm4 = vcmp.eq.s32.totalorder %v5610_v63, %v5393_v39  ;;  %vm640_vm5 = vcmp.eq.s32.totalorder %v5610_v63, %v5411_v45 }
  0x69   : > { %vm740_vm6 = vcmp.eq.s32.totalorder %v5610_v63, %v5404_v42  ;;  %vm840_vm7 = vcmp.eq.s32.totalorder %v5610_v63, %v5420_v48  ;;  %935 = vmatpush.msra.mxu1 %v908_v25  ;;  %vm571_vm12 = vcmp.eq.s32.totalorder %v5616_v24, %v5393_v39  ;;  %vm639_vm13 = vcmp.eq.s32.totalorder %v5616_v24, %v5411_v45 }
  0x6a   : > { %v5451_v2 = vld [vmem:[#allocation1 + $0x1] ss:$9 sm:$0xff]  ;;  %v891_v31 = vadd.f32 %v859_v62, %v791_v28  ;;  %v875_v38 = vsel %vm840_vm7, %v5440_v58, 0.0  ;;  %vm739_vm14 = vcmp.eq.s32.totalorder %v5616_v24, %v5404_v42  ;;  %vm839_vm15 = vcmp.eq.s32.totalorder %v5616_v24, %v5420_v48 }
  0x6b   : > { %1014 = vst [vmem:[#allocation1] sm:$0xff] %v5398_v40  ;;  %v606_v59 = vsel %vm571_vm12, %v5423_v51, 0.0  ;;  %v674_v60 = vsel %vm639_vm13, %v5428_v53, 0.0  ;;  %v774_v25 = vsel %vm739_vm14, %v5433_v55, 0.0  ;;  %v874_v28 = vsel %vm839_vm15, %v5440_v58, 0.0 }
  0x6c   : > { %v706_v62 = vadd.f32 %v674_v60, %v606_v59  ;;  %vm554_vm0 = vcmp.eq.s32.totalorder %v5620_v29, %v5393_v39  ;;  %vm622_vm1 = vcmp.eq.s32.totalorder %v5620_v29, %v5411_v45  ;;  %vm722_vm2 = vcmp.eq.s32.totalorder %v5620_v29, %v5404_v42 }
  0x6d   : > { %vm822_vm3 = vcmp.eq.s32.totalorder %v5620_v29, %v5420_v48  ;;  %v5692_v59 = vadd.s32 64, %v5364_v15  ;;  %v5695_v60 = vadd.s32 192, %v5364_v15 }
  0x6f   : > { %9862 = vst [vmem:[#allocation17_spill] sm:$0xff] %v5692_v59  ;;  %vm569_vm12 = vcmp.eq.s32.totalorder %v5695_v60, %v5393_v39  ;;  %vm637_vm13 = vcmp.eq.s32.totalorder %v5695_v60, %v5411_v45  ;;  %vm737_vm14 = vcmp.eq.s32.totalorder %v5695_v60, %v5404_v42  ;;  %vm837_vm15 = vcmp.eq.s32.totalorder %v5695_v60, %v5420_v48 }
  0x70   : > { %9863 = vst [vmem:[#allocation18_spill] sm:$0xff] %v5695_v60 }
  0x72   : > { %v5454_v3 = vld [vmem:[#allocation1 + $0x1] ss:$9 sm:$0xff] }
  0x73   : > { %1434 = vst [vmem:[#allocation1] sm:$0xff] %v5341_v5 }
  0x7a   : > { %v5457_v4 = vld [vmem:[#allocation1 + $0x4] ss:$9 sm:$0xff] }
  0x7b   : > { %1440 = vst [vmem:[#allocation1] sm:$0xff] %v5341_v5 }
  0x82   : > { %v5460_v7 = vld [vmem:[#allocation1 + $0x5] ss:$9 sm:$0xff] }
  0x83   : > { %1470 = vst [vmem:[#allocation1] sm:$0xff] %v5398_v40 }
  0x8a   : > { %v5463_v9 = vld [vmem:[#allocation1 + $0x2] ss:$9 sm:$0xff] }
  0x8b   : > { %1478 = vst [vmem:[#allocation1] sm:$0xff] %v5398_v40 }
  0x92   : > { %v5466_v10 = vld [vmem:[#allocation1 + $0x2] ss:$9 sm:$0xff] }
  0x93   : > { %1486 = vst [vmem:[#allocation1] sm:$0xff] %v5398_v40 }
  0x9a   : > { %v5469_v11 = vld [vmem:[#allocation1 + $0x2] ss:$9 sm:$0xff] }
  0x9b   : > { %1494 = vst [vmem:[#allocation1] sm:$0xff] %v5398_v40 }
  0xa2   : > { %v5472_v12 = vld [vmem:[#allocation1 + $0x2] ss:$9 sm:$0xff] }
  0xa3   : > { %1915 = vst [vmem:[#allocation1] sm:$0xff] %v5341_v5 }
  0xaa   : > { %v5475_v13 = vld [vmem:[#allocation1 + $0x6] ss:$9 sm:$0xff] }
  0xab   : > { %9854 = vst [vmem:[#allocation9_spill] sm:$0xff] %v5475_v13 }
  0xac   : > { %1920 = vst [vmem:[#allocation1] sm:$0xff] %v5341_v5  ;;  %v5497_v5 = vadd.s32 96, %v5364_v15 }
  0xae   : > { %vm557_vm8 = vcmp.eq.s32.totalorder %v5497_v5, %v5393_v39  ;;  %vm625_vm9 = vcmp.eq.s32.totalorder %v5497_v5, %v5411_v45  ;;  %vm725_vm10 = vcmp.eq.s32.totalorder %v5497_v5, %v5404_v42  ;;  %vm825_vm11 = vcmp.eq.s32.totalorder %v5497_v5, %v5420_v48 }
  0xaf   : > { %v592_v30 = vsel %vm557_vm8, %v5423_v51, 0.0  ;;  %v660_v33 = vsel %vm625_vm9, %v5428_v53, 0.0  ;;  %v760_v35 = vsel %vm725_vm10, %v5433_v55, 0.0  ;;  %v860_v37 = vsel %vm825_vm11, %v5440_v58, 0.0 }
  0xb0   : > { %v692_v34 = vadd.f32 %v660_v33, %v592_v30  ;;  %v5623_v30 = vadd.s32 200, %v5364_v15  ;;  %v607_v33 = vsel %vm572_vm4, %v5423_v51, 0.0  ;;  %vm555_vm8 = vcmp.eq.s32.totalorder %v5613_v23, %v5393_v39 }
  0xb1   : > { %vm623_vm9 = vcmp.eq.s32.totalorder %v5613_v23, %v5411_v45  ;;  %v590_v41 = vsel %vm555_vm8, %v5423_v51, 0.0  ;;  %vm723_vm10 = vcmp.eq.s32.totalorder %v5613_v23, %v5404_v42  ;;  %vm823_vm11 = vcmp.eq.s32.totalorder %v5613_v23, %v5420_v48 }
  0xb2   : > { %v792_v43 = vadd.f32 %v760_v35, %v692_v34  ;;  %9859 = vst [vmem:[#allocation14_spill] sm:$0xff] %v5623_v30  ;;  %v675_v34 = vsel %vm640_vm5, %v5428_v53, 0.0  ;;  %v775_v35 = vsel %vm740_vm6, %v5433_v55, 0.0  ;;  %v758_v49 = vsel %vm723_vm10, %v5433_v55, 0.0 }
  0xb3   : > { %v5478_v14 = vld [vmem:[#allocation1 + $0x7] ss:$9 sm:$0xff]  ;;  %vm570_vm4 = vcmp.eq.s32.totalorder %v5623_v30, %v5393_v39  ;;  %vm638_vm5 = vcmp.eq.s32.totalorder %v5623_v30, %v5411_v45  ;;  %vm738_vm6 = vcmp.eq.s32.totalorder %v5623_v30, %v5404_v42  ;;  %vm838_vm7 = vcmp.eq.s32.totalorder %v5623_v30, %v5420_v48 }
  0xb4   : > { %9855 = vst [vmem:[#allocation10_spill] sm:$0xff] %v5478_v14  ;;  %v892_v50 = vadd.f32 %v860_v37, %v792_v43  ;;  %v707_v37 = vadd.f32 %v675_v34, %v607_v33  ;;  %v658_v43 = vsel %vm623_vm9, %v5428_v53, 0.0  ;;  %v589_v33 = vsel %vm554_vm0, %v5423_v51, 0.0 }
  0xb5   : > { %1950 = vst [vmem:[#allocation1] sm:$0xff] %v5398_v40  ;;  %v690_v47 = vadd.f32 %v658_v43, %v590_v41  ;;  %v806_v34 = vadd.f32 %v774_v25, %v706_v62  ;;  %v857_v41 = vsel %vm822_vm3, %v5440_v58, 0.0  ;;  %v5698_v62 = vadd.s32 56, %v5364_v15 }
  0xb6   : > { %915 = vmatpush.msra.mxu0 %v892_v50  ;;  %v807_v46 = vadd.f32 %v775_v35, %v707_v37  ;;  %v858_v50 = vsel %vm823_vm11, %v5440_v58, 0.0  ;;  %v657_v35 = vsel %vm622_vm1, %v5428_v53, 0.0  ;;  %v757_v37 = vsel %vm722_vm2, %v5433_v55, 0.0 }
  0xb7   : > { %v790_v57 = vadd.f32 %v758_v49, %v690_v47  ;;  %v906_v43 = vadd.f32 %v874_v28, %v806_v34  ;;  %v673_v47 = vsel %vm638_vm5, %v5428_v53, 0.0  ;;  %9864 = vst [vmem:[#allocation19_spill] sm:$0xff] %v5698_v62  ;;  %vm553_vm8 = vcmp.eq.s32.totalorder %v5692_v59, %v5393_v39 }
  0xb8   : > { %916 = vmatpush.msra.mxu0 %v891_v31  ;;  %v907_v54 = vadd.f32 %v875_v38, %v807_v46  ;;  %v689_v38 = vadd.f32 %v657_v35, %v589_v33  ;;  %v605_v46 = vsel %vm570_vm4, %v5423_v51, 0.0  ;;  %v5704_v33 = vadd.s32 48, %v5364_v15 }
  0xb9   : > { %v890_v31 = vadd.f32 %v858_v50, %v790_v57  ;;  %v705_v50 = vadd.f32 %v673_v47, %v605_v46  ;;  %v873_v57 = vsel %vm838_vm7, %v5440_v58, 0.0  ;;  %vm621_vm9 = vcmp.eq.s32.totalorder %v5692_v59, %v5411_v45 }
  0xba   : > { %936 = vmatpush.msra.mxu1 %v907_v54  ;;  %v789_v49 = vadd.f32 %v757_v37, %v689_v38  ;;  %v773_v54 = vsel %vm738_vm6, %v5433_v55, 0.0  ;;  %9866 = vst [vmem:[#allocation21_spill] sm:$0xff] %v5704_v33  ;;  %vm721_vm10 = vcmp.eq.s32.totalorder %v5692_v59, %v5404_v42  ;;  %vm821_vm11 = vcmp.eq.s32.totalorder %v5692_v59, %v5420_v48 }
  0xbb   : > { %917 = vmatpush.msra.mxu0 %v890_v31  ;;  %v805_v28 = vadd.f32 %v773_v54, %v705_v50  ;;  %v5701_v31 = vadd.s32 184, %v5364_v15  ;;  %v588_v35 = vsel %vm553_vm8, %v5423_v51, 0.0  ;;  %v656_v37 = vsel %vm621_vm9, %v5428_v53, 0.0 }
  0xbc   : > { %v5531_v36 = vld [vmem:[#allocation1 + $0x3] ss:$9 sm:$0xff]  ;;  %937 = vmatpush.msra.mxu1 %v906_v43  ;;  %v889_v25 = vadd.f32 %v857_v41, %v789_v49  ;;  %v756_v38 = vsel %vm721_vm10, %v5433_v55, 0.0  ;;  %v688_v41 = vadd.f32 %v656_v37, %v588_v35  ;;  %v856_v43 = vsel %vm821_vm11, %v5440_v58, 0.0 }
  0xbd   : > { %9856 = vst [vmem:[#allocation11_spill] sm:$0xff] %v5531_v36  ;;  %v905_v34 = vadd.f32 %v873_v57, %v805_v28  ;;  %v604_v46 = vsel %vm569_vm12, %v5423_v51, 0.0  ;;  %v672_v47 = vsel %vm637_vm13, %v5428_v53, 0.0  ;;  %v772_v54 = vsel %vm737_vm14, %v5433_v55, 0.0 }
  0xbe   : > { %1958 = vst [vmem:[#allocation1] sm:$0xff] %v5398_v40  ;;  %918 = vmatpush.msra.mxu0 %v889_v25  ;;  %v788_v49 = vadd.f32 %v756_v38, %v688_v41  ;;  %v704_v50 = vadd.f32 %v672_v47, %v604_v46  ;;  %v872_v57 = vsel %vm837_vm15, %v5440_v58, 0.0  ;;  %vm552_vm0 = vcmp.eq.s32.totalorder %v5698_v62, %v5393_v39 }
  0xbf   : > { %9865 = vst [vmem:[#allocation20_spill] sm:$0xff] %v5701_v31  ;;  %938 = vmatpush.msra.mxu1 %v905_v34  ;;  %vm620_vm1 = vcmp.eq.s32.totalorder %v5698_v62, %v5411_v45  ;;  %vm720_vm2 = vcmp.eq.s32.totalorder %v5698_v62, %v5404_v42  ;;  %vm820_vm3 = vcmp.eq.s32.totalorder %v5698_v62, %v5420_v48  ;;  %v587_v34 = vsel %vm552_vm0, %v5423_v51, 0.0 }
  0xc0   : > { %v888_v25 = vadd.f32 %v856_v43, %v788_v49  ;;  %v804_v28 = vadd.f32 %v772_v54, %v704_v50  ;;  %v655_v35 = vsel %vm620_vm1, %v5428_v53, 0.0  ;;  %v755_v38 = vsel %vm720_vm2, %v5433_v55, 0.0 }
  0xc1   : > { %v687_v37 = vadd.f32 %v655_v35, %v587_v34  ;;  %v855_v41 = vsel %vm820_vm3, %v5440_v58, 0.0  ;;  %vm568_vm4 = vcmp.eq.s32.totalorder %v5701_v31, %v5393_v39  ;;  %vm636_vm5 = vcmp.eq.s32.totalorder %v5701_v31, %v5411_v45 }
  0xc2   : > { %919 = vmatpush.msra.mxu0 %v888_v25  ;;  %v904_v46 = vadd.f32 %v872_v57, %v804_v28  ;;  %v603_v47 = vsel %vm568_vm4, %v5423_v51, 0.0  ;;  %vm736_vm6 = vcmp.eq.s32.totalorder %v5701_v31, %v5404_v42  ;;  %v671_v49 = vsel %vm636_vm5, %v5428_v53, 0.0 }
  0xc3   : > { %v787_v43 = vadd.f32 %v755_v38, %v687_v37  ;;  %v771_v50 = vsel %vm736_vm6, %v5433_v55, 0.0  ;;  %vm836_vm7 = vcmp.eq.s32.totalorder %v5701_v31, %v5420_v48  ;;  %v703_v54 = vadd.f32 %v671_v49, %v603_v47 }
  0xc4   : > { %939 = vmatpush.msra.mxu1 %v904_v46  ;;  %v871_v57 = vsel %vm836_vm7, %v5440_v58, 0.0  ;;  %vm551_vm8 = vcmp.eq.s32.totalorder %v5704_v33, %v5393_v39  ;;  %vm619_vm9 = vcmp.eq.s32.totalorder %v5704_v33, %v5411_v45  ;;  %vm719_vm10 = vcmp.eq.s32.totalorder %v5704_v33, %v5404_v42 }
  0xc5   : > { %v5569_v26 = vld [vmem:[#allocation1 + $0x3] ss:$9 sm:$0xff]  ;;  %v887_v25 = vadd.f32 %v855_v41, %v787_v43  ;;  %v586_v28 = vsel %vm551_vm8, %v5423_v51, 0.0  ;;  %v654_v34 = vsel %vm619_vm9, %v5428_v53, 0.0  ;;  %v803_v35 = vadd.f32 %v771_v50, %v703_v54 }
  0xc6   : > { %9857 = vst [vmem:[#allocation12_spill] sm:$0xff] %v5569_v26  ;;  %v686_v37 = vadd.f32 %v654_v34, %v586_v28  ;;  %v754_v38 = vsel %vm719_vm10, %v5433_v55, 0.0  ;;  %vm819_vm11 = vcmp.eq.s32.totalorder %v5704_v33, %v5420_v48  ;;  %v5767_v47 = vadd.s32 176, %v5364_v15 }
  0xc7   : > { %1966 = vst [vmem:[#allocation1] sm:$0xff] %v5398_v40  ;;  %920 = vmatpush.msra.mxu0 %v887_v25  ;;  %v854_v46 = vsel %vm819_vm11, %v5440_v58, 0.0  ;;  %v5770_v41 = vadd.s32 40, %v5364_v15  ;;  %v5773_v43 = vadd.s32 168, %v5364_v15  ;;  %v903_v49 = vadd.f32 %v871_v57, %v803_v35 }
  0xc8   : > { %9867 = vst [vmem:[#allocation22_spill] sm:$0xff] %v5767_v47  ;;  %v786_v50 = vadd.f32 %v754_v38, %v686_v37  ;;  %v5776_v54 = vadd.s32 32, %v5364_v15  ;;  %v5779_v28 = vadd.s32 160, %v5364_v15  ;;  %vm567_vm12 = vcmp.eq.s32.totalorder %v5767_v47, %v5393_v39 }
  0xc9   : > { %9868 = vst [vmem:[#allocation23_spill] sm:$0xff] %v5770_v41  ;;  %vm635_vm13 = vcmp.eq.s32.totalorder %v5767_v47, %v5411_v45  ;;  %vm735_vm14 = vcmp.eq.s32.totalorder %v5767_v47, %v5404_v42  ;;  %vm835_vm15 = vcmp.eq.s32.totalorder %v5767_v47, %v5420_v48  ;;  %940 = vmatpush.msra.mxu1 %v903_v49  ;;  %v602_v25 = vsel %vm567_vm12, %v5423_v51, 0.0 }
  0xca   : > { %9869 = vst [vmem:[#allocation24_spill] sm:$0xff] %v5773_v43  ;;  %v886_v57 = vadd.f32 %v854_v46, %v786_v50  ;;  %v670_v34 = vsel %vm635_vm13, %v5428_v53, 0.0  ;;  %v770_v35 = vsel %vm735_vm14, %v5433_v55, 0.0  ;;  %v870_v38 = vsel %vm835_vm15, %v5440_v58, 0.0 }
  0xcb   : > { %9870 = vst [vmem:[#allocation25_spill] sm:$0xff] %v5776_v54  ;;  %v702_v37 = vadd.f32 %v670_v34, %v602_v25  ;;  %vm550_vm0 = vcmp.eq.s32.totalorder %v5770_v41, %v5393_v39  ;;  %vm618_vm1 = vcmp.eq.s32.totalorder %v5770_v41, %v5411_v45  ;;  %vm718_vm2 = vcmp.eq.s32.totalorder %v5770_v41, %v5404_v42 }
  0xcc   : > { %9871 = vst [vmem:[#allocation26_spill] sm:$0xff] %v5779_v28  ;;  %921 = vmatpush.msra.mxu0 %v886_v57  ;;  %v653_v46 = vsel %vm618_vm1, %v5428_v53, 0.0  ;;  %vm818_vm3 = vcmp.eq.s32.totalorder %v5770_v41, %v5420_v48  ;;  %v753_v25 = vsel %vm718_vm2, %v5433_v55, 0.0  ;;  %vm566_vm4 = vcmp.eq.s32.totalorder %v5773_v43, %v5393_v39 }
  0xcd   : > { %v802_v49 = vadd.f32 %v770_v35, %v702_v37  ;;  %v853_v34 = vsel %vm818_vm3, %v5440_v58, 0.0  ;;  %vm634_vm5 = vcmp.eq.s32.totalorder %v5773_v43, %v5411_v45  ;;  %vm734_vm6 = vcmp.eq.s32.totalorder %v5773_v43, %v5404_v42 }
  0xce   : > { %v5606_v61 = vld [vmem:[#allocation1 + $0x3] ss:$9 sm:$0xff]  ;;  %vm834_vm7 = vcmp.eq.s32.totalorder %v5773_v43, %v5420_v48  ;;  %v669_v35 = vsel %vm634_vm5, %v5428_v53, 0.0  ;;  %vm549_vm8 = vcmp.eq.s32.totalorder %v5776_v54, %v5393_v39  ;;  %vm617_vm9 = vcmp.eq.s32.totalorder %v5776_v54, %v5411_v45 }
  0xcf   : > { %9858 = vst [vmem:[#allocation13_spill] sm:$0xff] %v5606_v61  ;;  %v902_v57 = vadd.f32 %v870_v38, %v802_v49  ;;  %v869_v26 = vsel %vm834_vm7, %v5440_v58, 0.0  ;;  %v584_v13 = vsel %vm549_vm8, %v5423_v51, 0.0  ;;  %vm717_vm10 = vcmp.eq.s32.totalorder %v5776_v54, %v5404_v42 }
  0xd0   : > { %1974 = vst [vmem:[#allocation1] sm:$0xff] %v5398_v40  ;;  %v652_v49 = vsel %vm617_vm9, %v5428_v53, 0.0  ;;  %vm817_vm11 = vcmp.eq.s32.totalorder %v5776_v54, %v5420_v48  ;;  %vm565_vm12 = vcmp.eq.s32.totalorder %v5779_v28, %v5393_v39  ;;  %vm633_vm13 = vcmp.eq.s32.totalorder %v5779_v28, %v5411_v45 }
  0xd1   : > { %941 = vmatpush.msra.mxu1 %v902_v57  ;;  %v600_v57 = vsel %vm565_vm12, %v5423_v51, 0.0  ;;  %vm733_vm14 = vcmp.eq.s32.totalorder %v5779_v28, %v5404_v42  ;;  %vm833_vm15 = vcmp.eq.s32.totalorder %v5779_v28, %v5420_v48 }
  0xd7   : > { %v5660_v52 = vld [vmem:[#allocation1 + $0x3] ss:$9 sm:$0xff] }
  0xd8   : > { %9861 = vst [vmem:[#allocation16_spill] sm:$0xff] %v5660_v52  ;;  %v585_v52 = vsel %vm550_vm0, %v5423_v51, 0.0 }
  0xd9   : > { %2396 = vst [vmem:[#allocation1] sm:$0xff] %v5648_v44  ;;  %v685_v50 = vadd.f32 %v653_v46, %v585_v52  ;;  %v601_v52 = vsel %vm566_vm4, %v5423_v51, 0.0  ;;  %v769_v46 = vsel %vm734_vm6, %v5433_v55, 0.0 }
  0xda   : > { %v701_v37 = vadd.f32 %v669_v35, %v601_v52  ;;  %v668_v52 = vsel %vm633_vm13, %v5428_v53, 0.0 }
  0xdb   : > { %v785_v61 = vadd.f32 %v753_v25, %v685_v50  ;;  %v752_v50 = vsel %vm717_vm10, %v5433_v55, 0.0  ;;  %v684_v25 = vadd.f32 %v652_v49, %v584_v13  ;;  %v768_v13 = vsel %vm733_vm14, %v5433_v55, 0.0 }
  0xdc   : > { %v801_v38 = vadd.f32 %v769_v46, %v701_v37  ;;  %v700_v37 = vadd.f32 %v668_v52, %v600_v57  ;;  %v5842_v46 = vadd.s32 24, %v5364_v15  ;;  %v957_v57 = vadd.f32 %v5382_v32, %v5355_v6 }
  0xdd   : > { %v885_v36 = vadd.f32 %v853_v34, %v785_v61  ;;  %v852_v61 = vsel %vm817_vm11, %v5440_v58, 0.0  ;;  %v784_v35 = vadd.f32 %v752_v50, %v684_v25  ;;  %v5851_v25 = vadd.s32 144, %v5364_v15 }
  0xde   : > { %v901_v34 = vadd.f32 %v869_v26, %v801_v38  ;;  %9872 = vst [vmem:[#allocation27_spill] sm:$0xff] %v5842_v46  ;;  %v5845_v26 = vadd.s32 152, %v5364_v15  ;;  %v5848_v38 = vadd.s32 16, %v5364_v15  ;;  %v800_v50 = vadd.f32 %v768_v13, %v700_v37 }
  0xdf   : > { %922 = vmatpush.msra.mxu0 %v885_v36  ;;  %v868_v36 = vsel %vm833_vm15, %v5440_v58, 0.0  ;;  %v884_v49 = vadd.f32 %v852_v61, %v784_v35  ;;  %9875 = vst [vmem:[#allocation30_spill] sm:$0xff] %v5851_v25  ;;  %vm548_vm0 = vcmp.eq.s32.totalorder %v5842_v46, %v5393_v39  ;;  %vm616_vm1 = vcmp.eq.s32.totalorder %v5842_v46, %v5411_v45 }
  0xe0   : > { %942 = vmatpush.msra.mxu1 %v901_v34  ;;  %9873 = vst [vmem:[#allocation28_spill] sm:$0xff] %v5845_v26  ;;  %vm716_vm2 = vcmp.eq.s32.totalorder %v5842_v46, %v5404_v42  ;;  %vm816_vm3 = vcmp.eq.s32.totalorder %v5842_v46, %v5420_v48  ;;  %v900_v61 = vadd.f32 %v868_v36, %v800_v50  ;;  %v583_v34 = vsel %vm548_vm0, %v5423_v51, 0.0 }
  0xe1   : > { %9874 = vst [vmem:[#allocation29_spill] sm:$0xff] %v5848_v38  ;;  %923 = vmatpush.msra.mxu0 %v884_v49  ;;  %v651_v52 = vsel %vm616_vm1, %v5428_v53, 0.0  ;;  %v751_v6 = vsel %vm716_vm2, %v5433_v55, 0.0  ;;  %v851_v35 = vsel %vm816_vm3, %v5440_v58, 0.0  ;;  %vm564_vm4 = vcmp.eq.s32.totalorder %v5845_v26, %v5393_v39 }
  0xe2   : > { %v683_v32 = vadd.f32 %v651_v52, %v583_v34  ;;  %vm632_vm5 = vcmp.eq.s32.totalorder %v5845_v26, %v5411_v45  ;;  %943 = vmatpush.msra.mxu1 %v900_v61  ;;  %v599_v37 = vsel %vm564_vm4, %v5423_v51, 0.0  ;;  %vm732_vm6 = vcmp.eq.s32.totalorder %v5845_v26, %v5404_v42 }
  0xe3   : > { %v667_v13 = vsel %vm632_vm5, %v5428_v53, 0.0  ;;  %vm832_vm7 = vcmp.eq.s32.totalorder %v5845_v26, %v5420_v48  ;;  %v767_v50 = vsel %vm732_vm6, %v5433_v55, 0.0  ;;  %vm547_vm8 = vcmp.eq.s32.totalorder %v5848_v38, %v5393_v39 }
  0xe4   : > { %v783_v36 = vadd.f32 %v751_v6, %v683_v32  ;;  %v699_v49 = vadd.f32 %v667_v13, %v599_v37  ;;  %v867_v34 = vsel %vm832_vm7, %v5440_v58, 0.0  ;;  %vm615_vm9 = vcmp.eq.s32.totalorder %v5848_v38, %v5411_v45 }
  0xe5   : > { %vm715_vm10 = vcmp.eq.s32.totalorder %v5848_v38, %v5404_v42  ;;  %vm815_vm11 = vcmp.eq.s32.totalorder %v5848_v38, %v5420_v48  ;;  %v582_v6 = vsel %vm547_vm8, %v5423_v51, 0.0  ;;  %v650_v32 = vsel %vm615_vm9, %v5428_v53, 0.0 }
  0xe6   : > { %v883_v61 = vadd.f32 %v851_v35, %v783_v36  ;;  %v799_v52 = vadd.f32 %v767_v50, %v699_v49  ;;  %v682_v37 = vadd.f32 %v650_v32, %v582_v6  ;;  %v750_v13 = vsel %vm715_vm10, %v5433_v55, 0.0 }
  0xe7   : > { %v850_v14 = vsel %vm815_vm11, %v5440_v58, 0.0  ;;  %vm563_vm12 = vcmp.eq.s32.totalorder %v5851_v25, %v5393_v39  ;;  %vm631_vm13 = vcmp.eq.s32.totalorder %v5851_v25, %v5411_v45  ;;  %vm731_vm14 = vcmp.eq.s32.totalorder %v5851_v25, %v5404_v42 }
  0xe8   : > { %924 = vmatpush.msra.mxu0 %v883_v61  ;;  %v899_v26 = vadd.f32 %v867_v34, %v799_v52  ;;  %v598_v46 = vsel %vm563_vm12, %v5423_v51, 0.0  ;;  %v782_v35 = vadd.f32 %v750_v13, %v682_v37  ;;  %v666_v36 = vsel %vm631_vm13, %v5428_v53, 0.0 }
  0xe9   : > { %v766_v49 = vsel %vm731_vm14, %v5433_v55, 0.0  ;;  %vm831_vm15 = vcmp.eq.s32.totalorder %v5851_v25, %v5420_v48  ;;  %v698_v50 = vadd.f32 %v666_v36, %v598_v46  ;;  %v5903_v34 = vadd.f32 1.0, %v5360_v8 }
  0xea   : > { %944 = vmatpush.msra.mxu1 %v899_v26  ;;  %v964_v61 = vfloor.f32 %v957_v57  ;;  %v882_v52 = vadd.f32 %v850_v14, %v782_v35  ;;  %v866_v6 = vsel %vm831_vm15, %v5440_v58, 0.0  ;;  %v5907_v32 = vadd.s32 8, %v5364_v15 }
  0xeb   : > { %9876 = vst [vmem:[#allocation31_spill] sm:$0xff] %v5903_v34  ;;  %v5910_v37 = vadd.s32 136, %v5364_v15  ;;  %v798_v13 = vadd.f32 %v766_v49, %v698_v50  ;;  %v963_v38 = vadd.f32 %v5437_v56, %v5903_v34 }
  0xec   : > { %9877 = vst [vmem:[#allocation32_spill] sm:$0xff] %v5907_v32  ;;  %v966_v25 = vsub.f32 %v957_v57, %v964_v61  ;;  %v4985_v26 = vcvt.f32.s32 %v964_v61  ;;  %925 = vmatpush.msra.mxu0 %v882_v52  ;;  %vm546_vm0 = vcmp.eq.s32.totalorder %v5907_v32, %v5393_v39  ;;  %vm614_vm1 = vcmp.eq.s32.totalorder %v5907_v32, %v5411_v45 }
  0xed   : > { %vm714_vm2 = vcmp.eq.s32.totalorder %v5907_v32, %v5404_v42  ;;  %vm814_vm3 = vcmp.eq.s32.totalorder %v5907_v32, %v5420_v48  ;;  %v898_v8 = vadd.f32 %v866_v6, %v798_v13  ;;  %v965_v14 = vfloor.f32 %v963_v38 }
  0xee   : > { %v970_v46 = vadd.s32 1, %v4985_v26  ;;  %vm972_vm4 = vcmp.ge.s32.totalorder %v4985_v26, 0  ;;  %vm973_vm5 = vcmp.lt.s32.totalorder %v4985_v26, 16  ;;  %v985_v56 = vsub.f32 1.0, %v966_v25 }
  0xef   : > { %v1019_v57 = vmul.u32 16, %v4985_v26  ;;  %v581_v35 = vsel %vm546_vm0, %v5423_v51, 0.0  ;;  %945 = vmatpush.msra.mxu1 %v898_v8  ;;  %v967_v36 = vsub.f32 %v963_v38, %v965_v14  ;;  %v4987_v49 = vcvt.f32.s32 %v965_v14  ;;  %vm5923_vm8 = vmand %vm972_vm4, %vm973_vm5 }
  0xf0   : > { %vm975_vm6 = vcmp.ge.s32.totalorder %v970_v46, 0  ;;  %vm976_vm7 = vcmp.lt.s32.totalorder %v970_v46, 16  ;;  %v1022_v61 = vmul.u32 16, %v970_v46  ;;  %v649_v52 = vsel %vm614_vm1, %v5428_v53, 0.0 }
  0xf1   : > { %v749_v6 = vsel %vm714_vm2, %v5433_v55, 0.0  ;;  %v5939_v38 = vsel %vm814_vm3, %v5440_v58, 0.0  ;;  %v971_v13 = vadd.s32 1, %v4987_v49  ;;  %vm5941_vm9 = vmand %vm975_vm6, %vm976_vm7  ;;  %vm978_vm10 = vcmp.ge.s32.totalorder %v4987_v49, 0 }
  0xf2   : > { %vm979_vm11 = vcmp.lt.s32.totalorder %v4987_v49, 16  ;;  %v986_v8 = vsub.f32 1.0, %v967_v36  ;;  %v996_v46 = vmul.f32 %v985_v56, %v967_v36  ;;  %v1012_v34 = vmul.f32 %v967_v36, %v966_v25 }
  0xf3   : > { %vm5945_vm12 = vmand %vm978_vm10, %vm979_vm11  ;;  %v1020_v28 = vadd.s32 %v4987_v49, %v1019_v57  ;;  %v1023_v54 = vadd.s32 %v4987_v49, %v1022_v61  ;;  %vm981_vm13 = vcmp.ge.s32.totalorder %v971_v13, 0  ;;  %vm982_vm14 = vcmp.lt.s32.totalorder %v971_v13, 16 }
  0xf4   : > { %vm984_vm15 = vmand %vm5923_vm8, %vm5945_vm12  ;;  %v987_v32 = vmul.f32 %v986_v8, %v985_v56  ;;  %v1004_v43 = vmul.f32 %v986_v8, %v966_v25  ;;  %v1021_v47 = vadd.s32 %v1019_v57, %v971_v13  ;;  %v1024_v33 = vadd.s32 %v1022_v61, %v971_v13 }
  0xf5   : > { %vm5953_vm0 = vmand %vm981_vm13, %vm982_vm14  ;;  %v5957_v44 = vperm.slane %v1020_v28, 0  ;;  %v5959_v36 = vperm.slane %v1023_v54, 0  ;;  %v681_v31 = vadd.f32 %v649_v52, %v581_v35  ;;  %vm562_vm2 = vcmp.eq.s32.totalorder %v5910_v37, %v5393_v39 }
  0xf6   : > { %v988_v49 = vsel %vm984_vm15, %v987_v32, 0.0  ;;  %vm995_vm1 = vmand %vm5923_vm8, %vm5953_vm0  ;;  %vm630_vm3 = vcmp.eq.s32.totalorder %v5910_v37, %v5411_v45  ;;  %v5976_v54 = vperm.slane %v1021_v47, 0  ;;  %vm730_vm14 = vcmp.eq.s32.totalorder %v5910_v37, %v5404_v42 }
  0xf7   : > { %v994_v25 = vmul.f32 %v5445_v0, %v988_v49  ;;  %v997_v56 = vsel %vm995_vm1, %v996_v46, 0.0  ;;  %vm1003_vm4 = vmand %vm5941_vm9, %vm5945_vm12  ;;  %vm1041_vm5 = vcmp.eq.s32.totalorder %v5376_v27, %v5957_v44  ;;  %vm1209_vm7 = vcmp.eq.s32.totalorder %v5376_v27, %v5959_v36 }
  0xf8   : > { %v1002_v28 = vmul.f32 %v5448_v1, %v997_v56  ;;  %v1005_v32 = vsel %vm1003_vm4, %v1004_v43, 0.0  ;;  %vm1011_vm6 = vmand %vm5941_vm9, %vm5953_vm0  ;;  %v5985_v0 = vperm.slane %v1024_v33, 0  ;;  %vm1109_vm8 = vcmp.eq.s32.totalorder %v5376_v27, %v5976_v54 }
  0xf9   : > { %v1010_v57 = vmul.f32 %v5451_v2, %v1005_v32  ;;  %v1013_v35 = vsel %vm1011_vm6, %v1012_v34, 0.0  ;;  %v5988_v50 = vperm.slane %v994_v25, 0  ;;  %vm1057_vm10 = vcmp.eq.s32.totalorder %v5482_v16, %v5957_v44 }
  0xfa   : > { %v1018_v1 = vmul.f32 %v5454_v3, %v1013_v35  ;;  %v5993_v47 = vperm.slane %v1002_v28, 0  ;;  %vm1309_vm9 = vcmp.eq.s32.totalorder %v5376_v27, %v5985_v0  ;;  %vm1125_vm11 = vcmp.eq.s32.totalorder %v5482_v16, %v5976_v54 }
  0xfb   : > { %v1076_v33 = vsel %vm1041_vm5, %v5988_v50, 0.0  ;;  %v6000_v41 = vperm.slane %v1010_v57, 0  ;;  %v1092_v2 = vsel %vm1057_vm10, %v5988_v50, 0.0  ;;  %vm1225_vm12 = vcmp.eq.s32.totalorder %v5482_v16, %v5959_v36 }
  0xfc   : > { %v1144_v43 = vsel %vm1109_vm8, %v5993_v47, 0.0  ;;  %v6006_v3 = vperm.slane %v1018_v1, 0  ;;  %v1160_v34 = vsel %vm1125_vm11, %v5993_v47, 0.0  ;;  %vm1325_vm13 = vcmp.eq.s32.totalorder %v5482_v16, %v5985_v0 }
  0xfd   : > { %v1176_v61 = vadd.f32 %v1144_v43, %v1076_v33  ;;  %v1244_v52 = vsel %vm1209_vm7, %v6000_v41, 0.0  ;;  %v1192_v13 = vadd.f32 %v1160_v34, %v1092_v2  ;;  %v1260_v26 = vsel %vm1225_vm12, %v6000_v41, 0.0 }
  0xfe   : > { %v1344_v8 = vsel %vm1309_vm9, %v6006_v3, 0.0  ;;  %v781_v14 = vadd.f32 %v749_v6, %v681_v31  ;;  %v597_v46 = vsel %vm562_vm2, %v5423_v51, 0.0  ;;  %v1360_v56 = vsel %vm1325_vm13, %v6006_v3, 0.0 }
  0xff   : > { %v1276_v49 = vadd.f32 %v1244_v52, %v1176_v61  ;;  %v1292_v25 = vadd.f32 %v1260_v26, %v1192_v13  ;;  %v665_v28 = vsel %vm630_vm3, %v5428_v53, 0.0  ;;  %vm830_vm15 = vcmp.eq.s32.totalorder %v5910_v37, %v5420_v48 }
 0x100   : > { %v881_v32 = vadd.f32 %v5939_v38, %v781_v14  ;;  %v697_v57 = vadd.f32 %v665_v28, %v597_v46  ;;  %v765_v35 = vsel %vm730_vm14, %v5433_v55, 0.0  ;;  %v865_v1 = vsel %vm830_vm15, %v5440_v58, 0.0 }
 0x101   : > { %v1376_v31 = vadd.f32 %v1344_v8, %v1276_v49  ;;  %v1392_v6 = vadd.f32 %v1360_v56, %v1292_v25  ;;  %vm1040_vm0 = vcmp.eq.s32.totalorder %v5485_v17, %v5957_v44  ;;  %vm1108_vm1 = vcmp.eq.s32.totalorder %v5485_v17, %v5976_v54 }
 0x102   : > { %926 = vmatpush.msra.mxu0 %v881_v32  ;;  %v797_v33 = vadd.f32 %v765_v35, %v697_v57  ;;  %vm1208_vm2 = vcmp.eq.s32.totalorder %v5485_v17, %v5959_v36  ;;  %v1075_v38 = vsel %vm1040_vm0, %v5988_v50, 0.0  ;;  %v1143_v2 = vsel %vm1108_vm1, %v5993_v47, 0.0 }
 0x103   : > { %1393 = vmatpush.msra.mxu2 %v1376_v31  ;;  %1413 = vmatpush.msra.mxu3 %v1392_v6  ;;  %v1243_v43 = vsel %vm1208_vm2, %v6000_v41, 0.0  ;;  %vm1308_vm3 = vcmp.eq.s32.totalorder %v5485_v17, %v5985_v0  ;;  %v1175_v61 = vadd.f32 %v1143_v2, %v1075_v38  ;;  %vm1056_vm4 = vcmp.eq.s32.totalorder %v5488_v18, %v5957_v44 }
 0x104   : > { %v897_v34 = vadd.f32 %v865_v1, %v797_v33  ;;  %v1343_v52 = vsel %vm1308_vm3, %v6006_v3, 0.0  ;;  %v1091_v13 = vsel %vm1056_vm4, %v5988_v50, 0.0  ;;  %vm1124_vm5 = vcmp.eq.s32.totalorder %v5488_v18, %v5976_v54 }
 0x105   : > { %vm1224_vm6 = vcmp.eq.s32.totalorder %v5488_v18, %v5959_v36  ;;  %vm1324_vm7 = vcmp.eq.s32.totalorder %v5488_v18, %v5985_v0  ;;  %v1275_v26 = vadd.f32 %v1243_v43, %v1175_v61  ;;  %v1159_v8 = vsel %vm1124_vm5, %v5993_v47, 0.0 }
 0x106   : > { %946 = vmatpush.msra.mxu1 %v897_v34  ;;  %v1259_v14 = vsel %vm1224_vm6, %v6000_v41, 0.0  ;;  %v1359_v46 = vsel %vm1324_vm7, %v6006_v3, 0.0  ;;  %v1191_v49 = vadd.f32 %v1159_v8, %v1091_v13  ;;  %vm545_vm8 = vcmp.eq.s32.totalorder %v5364_v15, %v5393_v39 }
 0x107   : > { %vm613_vm9 = vcmp.eq.s32.totalorder %v5364_v15, %v5411_v45  ;;  %vm713_vm10 = vcmp.eq.s32.totalorder %v5364_v15, %v5404_v42  ;;  %v1375_v25 = vadd.f32 %v1343_v52, %v1275_v26  ;;  %v580_v56 = vsel %vm545_vm8, %v5423_v51, 0.0 }
 0x108   : > { %v648_v28 = vsel %vm613_vm9, %v5428_v53, 0.0  ;;  %v748_v32 = vsel %vm713_vm10, %v5433_v55, 0.0  ;;  %v1291_v57 = vadd.f32 %v1259_v14, %v1191_v49  ;;  %vm813_vm11 = vcmp.eq.s32.totalorder %v5364_v15, %v5420_v48  ;;  %v5089_v49 = vld [vmem:[%s5347_s12] sm:$0x1] }
 0x109   : > { %v680_v31 = vadd.f32 %v648_v28, %v580_v56  ;;  %v6071_v6 = vadd.s32 128, %v5364_v15  ;;  %1394 = vmatpush.msra.mxu2 %v1375_v25  ;;  %v848_v35 = vsel %vm813_vm11, %v5440_v58, 0.0  ;;  %vm1039_vm12 = vcmp.eq.s32.totalorder %v5491_v19, %v5957_v44  ;;  %v5090_v56 = vld [vmem:[%s5352_s17] sm:$0x1] }
 0x10a   : > { %vm1107_vm13 = vcmp.eq.s32.totalorder %v5491_v19, %v5976_v54  ;;  %vm1207_vm14 = vcmp.eq.s32.totalorder %v5491_v19, %v5959_v36  ;;  %v1391_v1 = vadd.f32 %v1359_v46, %v1291_v57  ;;  %vm1307_vm3 = vcmp.eq.s32.totalorder %v5491_v19, %v5985_v0 }
 0x10b   : > { %v780_v33 = vadd.f32 %v748_v32, %v680_v31  ;;  %vm561_vm15 = vcmp.eq.s32.totalorder %v6071_v6, %v5393_v39  ;;  %vm629_vm0 = vcmp.eq.s32.totalorder %v6071_v6, %v5411_v45  ;;  %vm729_vm1 = vcmp.eq.s32.totalorder %v6071_v6, %v5404_v42 }
 0x10c   : > { %v596_v38 = vsel %vm561_vm15, %v5423_v51, 0.0  ;;  %v664_v2 = vsel %vm629_vm0, %v5428_v53, 0.0  ;;  %vm829_vm2 = vcmp.eq.s32.totalorder %v6071_v6, %v5420_v48  ;;  %1414 = vmatpush.msra.mxu3 %v1391_v1  ;;  %v764_v61 = vsel %vm729_vm1, %v5433_v55, 0.0 }
 0x10d   : > { %v880_v43 = vadd.f32 %v848_v35, %v780_v33  ;;  %v696_v34 = vadd.f32 %v664_v2, %v596_v38  ;;  %v864_v39 = vsel %vm829_vm2, %v5440_v58, 0.0  ;;  %v1074_v45 = vsel %vm1039_vm12, %v5988_v50, 0.0 }
 0x10e   : > { %v1142_v42 = vsel %vm1107_vm13, %v5993_v47, 0.0  ;;  %v1242_v48 = vsel %vm1207_vm14, %v6000_v41, 0.0  ;;  %v1342_v55 = vsel %vm1307_vm3, %v6006_v3, 0.0  ;;  %vm1055_vm4 = vcmp.eq.s32.totalorder %v5494_v20, %v5957_v44 }
 0x10f   : > { %927 = vmatpush.msra.mxu0 %v880_v43  ;;  %v796_v51 = vadd.f32 %v764_v61, %v696_v34  ;;  %v1174_v53 = vadd.f32 %v1142_v42, %v1074_v45  ;;  %v1090_v58 = vsel %vm1055_vm4, %v5988_v50, 0.0  ;;  %vm1123_vm5 = vcmp.eq.s32.totalorder %v5494_v20, %v5976_v54 }
 0x110   : > { %vm1223_vm6 = vcmp.eq.s32.totalorder %v5494_v20, %v5959_v36  ;;  %vm1323_vm7 = vcmp.eq.s32.totalorder %v5494_v20, %v5985_v0  ;;  %v1158_v26 = vsel %vm1123_vm5, %v5993_v47, 0.0  ;;  %v1438_v25 = vadd.f32 %v5089_v49, %v5457_v4 }
 0x111   : > { %v896_v52 = vadd.f32 %v864_v39, %v796_v51  ;;  %v1274_v13 = vadd.f32 %v1242_v48, %v1174_v53  ;;  %v1258_v8 = vsel %vm1223_vm6, %v6000_v41, 0.0  ;;  %v1190_v14 = vadd.f32 %v1158_v26, %v1090_v58 }
 0x112   : > { %v1358_v46 = vsel %vm1323_vm7, %v6006_v3, 0.0  ;;  %v6122_v28 = vadd.f32 2.0, %v5090_v56  ;;  %vm1038_vm8 = vcmp.eq.s32.totalorder %v5497_v5, %v5957_v44  ;;  %vm1106_vm9 = vcmp.eq.s32.totalorder %v5497_v5, %v5976_v54 }
 0x113   : > { %947 = vmatpush.msra.mxu1 %v896_v52  ;;  %v1374_v32 = vadd.f32 %v1342_v55, %v1274_v13  ;;  %vm1206_vm10 = vcmp.eq.s32.totalorder %v5497_v5, %v5959_v36  ;;  %v1290_v57 = vadd.f32 %v1258_v8, %v1190_v14  ;;  %v1445_v35 = vfloor.f32 %v1438_v25 }
 0x114   : > { %9886 = vst [vmem:[#allocation33_spill] sm:$0xff] %v6122_v28  ;;  %v1444_v31 = vadd.f32 %v5460_v7, %v6122_v28  ;;  %v1073_v4 = vsel %vm1038_vm8, %v5988_v50, 0.0  ;;  %v1141_v1 = vsel %vm1106_vm9, %v5993_v47, 0.0  ;;  %v1241_v33 = vsel %vm1206_vm10, %v6000_v41, 0.0 }
 0x115   : > { %1395 = vmatpush.msra.mxu2 %v1374_v32  ;;  %vm1306_vm11 = vcmp.eq.s32.totalorder %v5497_v5, %v5985_v0  ;;  %vm1054_vm12 = vcmp.eq.s32.totalorder %v5500_v21, %v5957_v44  ;;  %v1390_v38 = vadd.f32 %v1358_v46, %v1290_v57  ;;  %v1447_v43 = vsub.f32 %v1438_v25, %v1445_v35 }
 0x116   : > { %v1446_v2 = vfloor.f32 %v1444_v31  ;;  %v4989_v34 = vcvt.f32.s32 %v1445_v35  ;;  %v1173_v61 = vadd.f32 %v1141_v1, %v1073_v4  ;;  %v1341_v7 = vsel %vm1306_vm11, %v6006_v3, 0.0 }
 0x117   : > { %v1089_v39 = vsel %vm1054_vm12, %v5988_v50, 0.0  ;;  %vm1122_vm13 = vcmp.eq.s32.totalorder %v5500_v21, %v5976_v54  ;;  %1415 = vmatpush.msra.mxu3 %v1390_v38  ;;  %v1466_v51 = vsub.f32 1.0, %v1447_v43  ;;  %vm1222_vm11 = vcmp.eq.s32.totalorder %v5500_v21, %v5959_v36 }
 0x118   : > { %v1448_v45 = vsub.f32 %v1444_v31, %v1446_v2  ;;  %v4991_v42 = vcvt.f32.s32 %v1446_v2  ;;  %v1451_v48 = vadd.s32 1, %v4989_v34  ;;  %vm1453_vm14 = vcmp.ge.s32.totalorder %v4989_v34, 0 }
 0x119   : > { %vm1454_vm15 = vcmp.lt.s32.totalorder %v4989_v34, 16  ;;  %v1499_v53 = vmul.u32 16, %v4989_v34  ;;  %v1273_v55 = vadd.f32 %v1241_v33, %v1173_v61  ;;  %v1157_v33 = vsel %vm1122_vm13, %v5993_v47, 0.0 }
 0x11a   : > { %v1452_v58 = vadd.s32 1, %v4991_v42  ;;  %vm6143_vm0 = vmand %vm1453_vm14, %vm1454_vm15  ;;  %vm1456_vm1 = vcmp.ge.s32.totalorder %v1451_v48, 0  ;;  %vm1457_vm2 = vcmp.lt.s32.totalorder %v1451_v48, 16  ;;  %vm1459_vm3 = vcmp.ge.s32.totalorder %v4991_v42, 0 }
 0x11b   : > { %vm6147_vm4 = vmand %vm1456_vm1, %vm1457_vm2  ;;  %vm1460_vm5 = vcmp.lt.s32.totalorder %v4991_v42, 16  ;;  %v1467_v26 = vsub.f32 1.0, %v1448_v45  ;;  %v1476_v8 = vmul.f32 %v1466_v51, %v1448_v45  ;;  %v1492_v14 = vmul.f32 %v1448_v45, %v1447_v43 }
 0x11c   : > { %vm6151_vm6 = vmand %vm1459_vm3, %vm1460_vm5  ;;  %vm1462_vm7 = vcmp.ge.s32.totalorder %v1452_v58, 0  ;;  %vm1463_vm8 = vcmp.lt.s32.totalorder %v1452_v58, 16  ;;  %v1500_v49 = vadd.s32 %v4991_v42, %v1499_v53  ;;  %v1501_v25 = vadd.s32 %v1499_v53, %v1452_v58 }
 0x11d   : > { %vm6155_vm9 = vmand %vm1462_vm7, %vm1463_vm8  ;;  %v1468_v32 = vmul.f32 %v1467_v26, %v1466_v51  ;;  %v1484_v57 = vmul.f32 %v1467_v26, %v1447_v43  ;;  %v1502_v31 = vmul.u32 16, %v1451_v48  ;;  %v1373_v35 = vadd.f32 %v1341_v7, %v1273_v55 }
 0x11e   : > { %vm1465_vm10 = vmand %vm6143_vm0, %vm6151_vm6  ;;  %v6163_v4 = vperm.slane %v1500_v49, 0  ;;  %v6165_v1 = vperm.slane %v1501_v25, 0  ;;  %v1189_v34 = vadd.f32 %v1157_v33, %v1089_v39  ;;  %v1257_v56 = vsel %vm1222_vm11, %v6000_v41, 0.0 }
 0x11f   : > { %v1469_v38 = vsel %vm1465_vm10, %v1468_v32, 0.0  ;;  %vm1475_vm12 = vmand %vm6143_vm0, %vm6155_vm9  ;;  %v1503_v2 = vadd.s32 %v4991_v42, %v1502_v31  ;;  %v1504_v43 = vadd.s32 %v1502_v31, %v1452_v58  ;;  %1396 = vmatpush.msra.mxu2 %v1373_v35  ;;  %vm1322_vm7 = vcmp.eq.s32.totalorder %v5500_v21, %v5985_v0 }
 0x120   : > { %v1474_v61 = vmul.f32 %v5463_v9, %v1469_v38  ;;  %v1477_v7 = vsel %vm1475_vm12, %v1476_v8, 0.0  ;;  %vm1483_vm13 = vmand %vm6147_vm4, %vm6151_vm6  ;;  %vm1521_vm14 = vcmp.eq.s32.totalorder %v5376_v27, %v6163_v4  ;;  %vm1589_vm15 = vcmp.eq.s32.totalorder %v5376_v27, %v6165_v1 }
 0x121   : > { %v1482_v45 = vmul.f32 %v5466_v10, %v1477_v7  ;;  %v1485_v42 = vsel %vm1483_vm13, %v1484_v57, 0.0  ;;  %vm1491_vm0 = vmand %vm6147_vm4, %vm6155_vm9  ;;  %v6191_v9 = vperm.slane %v1503_v2, 0  ;;  %v6193_v39 = vperm.slane %v1504_v43, 0 }
 0x122   : > { %v1490_v48 = vmul.f32 %v5469_v11, %v1485_v42  ;;  %v1493_v51 = vsel %vm1491_vm0, %v1492_v14, 0.0  ;;  %v6196_v53 = vperm.slane %v1474_v61, 0  ;;  %vm1537_vm1 = vcmp.eq.s32.totalorder %v5482_v16, %v6163_v4 }
 0x123   : > { %v1498_v10 = vmul.f32 %v5472_v12, %v1493_v51  ;;  %v6201_v55 = vperm.slane %v1482_v45, 0  ;;  %vm1689_vm2 = vcmp.eq.s32.totalorder %v5376_v27, %v6191_v9  ;;  %vm1789_vm3 = vcmp.eq.s32.totalorder %v5376_v27, %v6193_v39 }
 0x124   : > { %v1556_v58 = vsel %vm1521_vm14, %v6196_v53, 0.0  ;;  %v6208_v52 = vperm.slane %v1490_v48, 0  ;;  %v1572_v11 = vsel %vm1537_vm1, %v6196_v53, 0.0  ;;  %vm1605_vm4 = vcmp.eq.s32.totalorder %v5482_v16, %v6165_v1 }
 0x125   : > { %v1624_v12 = vsel %vm1589_vm15, %v6201_v55, 0.0  ;;  %v6217_v13 = vperm.slane %v1498_v10, 0  ;;  %v1640_v26 = vsel %vm1605_vm4, %v6201_v55, 0.0  ;;  %vm1705_vm5 = vcmp.eq.s32.totalorder %v5482_v16, %v6191_v9 }
 0x126   : > { %v1656_v8 = vadd.f32 %v1624_v12, %v1556_v58  ;;  %v1724_v14 = vsel %vm1689_vm2, %v6208_v52, 0.0  ;;  %v1672_v46 = vadd.f32 %v1640_v26, %v1572_v11  ;;  %v1740_v49 = vsel %vm1705_vm5, %v6208_v52, 0.0 }
 0x127   : > { %v1824_v25 = vsel %vm1789_vm3, %v6217_v13, 0.0  ;;  %vm1805_vm6 = vcmp.eq.s32.totalorder %v5482_v16, %v6193_v39  ;;  %v1289_v35 = vadd.f32 %v1257_v56, %v1189_v34  ;;  %v1357_v33 = vsel %vm1322_vm7, %v6006_v3, 0.0 }
 0x128   : > { %v1756_v32 = vadd.f32 %v1724_v14, %v1656_v8  ;;  %v1772_v57 = vadd.f32 %v1740_v49, %v1672_v46  ;;  %v1840_v31 = vsel %vm1805_vm6, %v6217_v13, 0.0  ;;  %vm1520_vm8 = vcmp.eq.s32.totalorder %v5485_v17, %v6163_v4 }
 0x129   : > { %vm1588_vm9 = vcmp.eq.s32.totalorder %v5485_v17, %v6165_v1  ;;  %vm1688_vm10 = vcmp.eq.s32.totalorder %v5485_v17, %v6191_v9  ;;  %v1389_v43 = vadd.f32 %v1357_v33, %v1289_v35  ;;  %v1555_v61 = vsel %vm1520_vm8, %v6196_v53, 0.0 }
 0x12a   : > { %v1856_v38 = vadd.f32 %v1824_v25, %v1756_v32  ;;  %v1872_v2 = vadd.f32 %v1840_v31, %v1772_v57  ;;  %v1623_v7 = vsel %vm1588_vm9, %v6201_v55, 0.0  ;;  %v1723_v34 = vsel %vm1688_vm10, %v6208_v52, 0.0 }
 0x12b   : > { %vm1788_vm11 = vcmp.eq.s32.totalorder %v5485_v17, %v6193_v39  ;;  %vm1536_vm12 = vcmp.eq.s32.totalorder %v5488_v18, %v6163_v4  ;;  %v1655_v45 = vadd.f32 %v1623_v7, %v1555_v61  ;;  %vm1604_vm13 = vcmp.eq.s32.totalorder %v5488_v18, %v6165_v1  ;;  %1416 = vmatpush.msra.mxu3 %v1389_v43 }
 0x12c   : > { %1873 = vmatpush.msrb.mxu0 %v1856_v38  ;;  %1893 = vmatpush.msrb.mxu1 %v1872_v2  ;;  %v1823_v42 = vsel %vm1788_vm11, %v6217_v13, 0.0  ;;  %v1571_v48 = vsel %vm1536_vm12, %v6196_v53, 0.0  ;;  %v1639_v51 = vsel %vm1604_vm13, %v6201_v55, 0.0  ;;  %vm1704_vm14 = vcmp.eq.s32.totalorder %v5488_v18, %v6191_v9 }
 0x12d   : > { %vm1804_vm15 = vcmp.eq.s32.totalorder %v5488_v18, %v6193_v39  ;;  %vm1037_vm0 = vcmp.eq.s32.totalorder %v5503_v22, %v5957_v44  ;;  %v1755_v10 = vadd.f32 %v1723_v34, %v1655_v45  ;;  %v1671_v58 = vadd.f32 %v1639_v51, %v1571_v48 }
 0x12e   : > { %v1739_v11 = vsel %vm1704_vm14, %v6208_v52, 0.0  ;;  %v1839_v12 = vsel %vm1804_vm15, %v6217_v13, 0.0  ;;  %v1072_v26 = vsel %vm1037_vm0, %v5988_v50, 0.0  ;;  %vm1105_vm1 = vcmp.eq.s32.totalorder %v5503_v22, %v5976_v54 }
 0x12f   : > { %vm1205_vm2 = vcmp.eq.s32.totalorder %v5503_v22, %v5959_v36  ;;  %vm1305_vm3 = vcmp.eq.s32.totalorder %v5503_v22, %v5985_v0  ;;  %v1855_v8 = vadd.f32 %v1823_v42, %v1755_v10  ;;  %v1771_v14 = vadd.f32 %v1739_v11, %v1671_v58 }
 0x130   : > { %v1140_v46 = vsel %vm1105_vm1, %v5993_v47, 0.0  ;;  %v1240_v49 = vsel %vm1205_vm2, %v6000_v41, 0.0  ;;  %v1340_v56 = vsel %vm1305_vm3, %v6006_v3, 0.0  ;;  %vm1053_vm4 = vcmp.eq.s32.totalorder %v5610_v63, %v5957_v44 }
 0x131   : > { %v1172_v25 = vadd.f32 %v1140_v46, %v1072_v26  ;;  %vm1121_vm5 = vcmp.eq.s32.totalorder %v5610_v63, %v5976_v54  ;;  %1874 = vmatpush.msrb.mxu0 %v1855_v8  ;;  %v1871_v32 = vadd.f32 %v1839_v12, %v1771_v14  ;;  %v1088_v57 = vsel %vm1053_vm4, %v5988_v50, 0.0 }
 0x132   : > { %v1156_v31 = vsel %vm1121_vm5, %v5993_v47, 0.0  ;;  %vm1221_vm6 = vcmp.eq.s32.totalorder %v5610_v63, %v5959_v36  ;;  %vm1321_vm7 = vcmp.eq.s32.totalorder %v5610_v63, %v5985_v0  ;;  %vm1519_vm8 = vcmp.eq.s32.totalorder %v5491_v19, %v6163_v4 }
 0x133   : > { %v1272_v35 = vadd.f32 %v1240_v49, %v1172_v25  ;;  %v1188_v33 = vadd.f32 %v1156_v31, %v1088_v57  ;;  %v1256_v38 = vsel %vm1221_vm6, %v6000_v41, 0.0  ;;  %1894 = vmatpush.msrb.mxu1 %v1871_v32  ;;  %v1356_v2 = vsel %vm1321_vm7, %v6006_v3, 0.0 }
 0x134   : > { %vm1587_vm9 = vcmp.eq.s32.totalorder %v5491_v19, %v6165_v1  ;;  %vm1687_vm10 = vcmp.eq.s32.totalorder %v5491_v19, %v6191_v9  ;;  %v1554_v7 = vsel %vm1519_vm8, %v6196_v53, 0.0  ;;  %vm1787_vm11 = vcmp.eq.s32.totalorder %v5491_v19, %v6193_v39 }
 0x135   : > { %v1372_v43 = vadd.f32 %v1340_v56, %v1272_v35  ;;  %v1288_v61 = vadd.f32 %v1256_v38, %v1188_v33  ;;  %v1622_v34 = vsel %vm1587_vm9, %v6201_v55, 0.0  ;;  %v1722_v42 = vsel %vm1687_vm10, %v6208_v52, 0.0  ;;  %v6327_v38 = vld [vmem:[#allocation1 + $0x1] ss:$9 sm:$0xff] }
 0x136   : > { %v1654_v45 = vadd.f32 %v1622_v34, %v1554_v7  ;;  %vm1535_vm12 = vcmp.eq.s32.totalorder %v5494_v20, %v6163_v4  ;;  %v1822_v51 = vsel %vm1787_vm11, %v6217_v13, 0.0  ;;  %vm1603_vm13 = vcmp.eq.s32.totalorder %v5494_v20, %v6165_v1  ;;  %2426 = vst [vmem:[#allocation1] sm:$0xff] %v5398_v40 }
 0x137   : > { %1397 = vmatpush.msra.mxu2 %v1372_v43  ;;  %v1388_v48 = vadd.f32 %v1356_v2, %v1288_v61  ;;  %v1570_v10 = vsel %vm1535_vm12, %v6196_v53, 0.0  ;;  %v1638_v11 = vsel %vm1603_vm13, %v6201_v55, 0.0  ;;  %vm1703_vm14 = vcmp.eq.s32.totalorder %v5494_v20, %v6191_v9 }
 0x138   : > { %v1754_v58 = vadd.f32 %v1722_v42, %v1654_v45  ;;  %vm1803_vm15 = vcmp.eq.s32.totalorder %v5494_v20, %v6193_v39  ;;  %v1670_v12 = vadd.f32 %v1638_v11, %v1570_v10  ;;  %v1738_v26 = vsel %vm1703_vm14, %v6208_v52, 0.0 }
 0x139   : > { %1417 = vmatpush.msra.mxu3 %v1388_v48  ;;  %v1838_v8 = vsel %vm1803_vm15, %v6217_v13, 0.0  ;;  %vm1036_vm0 = vcmp.eq.s32.totalorder %v5613_v23, %v5957_v44  ;;  %vm1104_vm1 = vcmp.eq.s32.totalorder %v5613_v23, %v5976_v54  ;;  %vm1204_vm2 = vcmp.eq.s32.totalorder %v5613_v23, %v5959_v36 }
 0x13a   : > { %v1854_v14 = vadd.f32 %v1822_v51, %v1754_v58  ;;  %v1071_v46 = vsel %vm1036_vm0, %v5988_v50, 0.0  ;;  %v1770_v49 = vadd.f32 %v1738_v26, %v1670_v12  ;;  %v1139_v25 = vsel %vm1104_vm1, %v5993_v47, 0.0 }
 0x13b   : > { %v1239_v56 = vsel %vm1204_vm2, %v6000_v41, 0.0  ;;  %vm1304_vm3 = vcmp.eq.s32.totalorder %v5613_v23, %v5985_v0  ;;  %v1171_v32 = vadd.f32 %v1139_v25, %v1071_v46  ;;  %vm1052_vm4 = vcmp.eq.s32.totalorder %v5616_v24, %v5957_v44 }
 0x13c   : > { %1875 = vmatpush.msrb.mxu0 %v1854_v14  ;;  %v1339_v57 = vsel %vm1304_vm3, %v6006_v3, 0.0  ;;  %vm1120_vm5 = vcmp.eq.s32.totalorder %v5616_v24, %v5976_v54  ;;  %v1870_v31 = vadd.f32 %v1838_v8, %v1770_v49  ;;  %v1087_v35 = vsel %vm1052_vm4, %v5988_v50, 0.0 }
 0x13d   : > { %v1155_v33 = vsel %vm1120_vm5, %v5993_v47, 0.0  ;;  %vm1220_vm6 = vcmp.eq.s32.totalorder %v5616_v24, %v5959_v36  ;;  %v1271_v2 = vadd.f32 %v1239_v56, %v1171_v32  ;;  %vm1320_vm7 = vcmp.eq.s32.totalorder %v5616_v24, %v5985_v0 }
 0x13e   : > { %v1187_v43 = vadd.f32 %v1155_v33, %v1087_v35  ;;  %v1255_v61 = vsel %vm1220_vm6, %v6000_v41, 0.0  ;;  %1895 = vmatpush.msrb.mxu1 %v1870_v31  ;;  %v1355_v7 = vsel %vm1320_vm7, %v6006_v3, 0.0  ;;  %vm1518_vm8 = vcmp.eq.s32.totalorder %v5497_v5, %v6163_v4 }
 0x13f   : > { %vm1586_vm9 = vcmp.eq.s32.totalorder %v5497_v5, %v6165_v1  ;;  %vm1686_vm10 = vcmp.eq.s32.totalorder %v5497_v5, %v6191_v9  ;;  %v1371_v34 = vadd.f32 %v1339_v57, %v1271_v2  ;;  %v1553_v42 = vsel %vm1518_vm8, %v6196_v53, 0.0  ;;  %v6374_v2 = vld [vmem:[#allocation1 + $0x4] ss:$9 sm:$0xff] }
 0x140   : > { %v1287_v45 = vadd.f32 %v1255_v61, %v1187_v43  ;;  %v1621_v48 = vsel %vm1586_vm9, %v6201_v55, 0.0  ;;  %v1721_v10 = vsel %vm1686_vm10, %v6208_v52, 0.0  ;;  %vm1786_vm11 = vcmp.eq.s32.totalorder %v5497_v5, %v6193_v39  ;;  %2434 = vst [vmem:[#allocation1] sm:$0xff] %v5398_v40 }
 0x141   : > { %v1653_v51 = vadd.f32 %v1621_v48, %v1553_v42  ;;  %vm1534_vm12 = vcmp.eq.s32.totalorder %v5500_v21, %v6163_v4  ;;  %1398 = vmatpush.msra.mxu2 %v1371_v34  ;;  %v1821_v11 = vsel %vm1786_vm11, %v6217_v13, 0.0  ;;  %vm1602_vm13 = vcmp.eq.s32.totalorder %v5500_v21, %v6165_v1 }
 0x142   : > { %v1387_v58 = vadd.f32 %v1355_v7, %v1287_v45  ;;  %v1569_v12 = vsel %vm1534_vm12, %v6196_v53, 0.0  ;;  %v1637_v8 = vsel %vm1602_vm13, %v6201_v55, 0.0  ;;  %vm1702_vm14 = vcmp.eq.s32.totalorder %v5500_v21, %v6191_v9 }
 0x143   : > { %v1753_v26 = vadd.f32 %v1721_v10, %v1653_v51  ;;  %vm1802_vm15 = vcmp.eq.s32.totalorder %v5500_v21, %v6193_v39  ;;  %v1669_v14 = vadd.f32 %v1637_v8, %v1569_v12  ;;  %v1737_v46 = vsel %vm1702_vm14, %v6208_v52, 0.0 }
 0x144   : > { %1418 = vmatpush.msra.mxu3 %v1387_v58  ;;  %v1837_v49 = vsel %vm1802_vm15, %v6217_v13, 0.0  ;;  %vm1035_vm0 = vcmp.eq.s32.totalorder %v5620_v29, %v5957_v44  ;;  %vm1103_vm1 = vcmp.eq.s32.totalorder %v5620_v29, %v5976_v54  ;;  %vm1203_vm2 = vcmp.eq.s32.totalorder %v5620_v29, %v5959_v36 }
 0x145   : > { %v1853_v25 = vadd.f32 %v1821_v11, %v1753_v26  ;;  %v1070_v56 = vsel %vm1035_vm0, %v5988_v50, 0.0  ;;  %v1769_v32 = vadd.f32 %v1737_v46, %v1669_v14  ;;  %v1138_v57 = vsel %vm1103_vm1, %v5993_v47, 0.0 }
 0x146   : > { %v1238_v31 = vsel %vm1203_vm2, %v6000_v41, 0.0  ;;  %vm1303_vm3 = vcmp.eq.s32.totalorder %v5620_v29, %v5985_v0  ;;  %v1170_v35 = vadd.f32 %v1138_v57, %v1070_v56  ;;  %vm1051_vm4 = vcmp.eq.s32.totalorder %v5623_v30, %v5957_v44 }
 0x147   : > { %1876 = vmatpush.msrb.mxu0 %v1853_v25  ;;  %v1338_v33 = vsel %vm1303_vm3, %v6006_v3, 0.0  ;;  %vm1119_vm5 = vcmp.eq.s32.totalorder %v5623_v30, %v5976_v54  ;;  %v1869_v43 = vadd.f32 %v1837_v49, %v1769_v32  ;;  %v1086_v61 = vsel %vm1051_vm4, %v5988_v50, 0.0 }
 0x148   : > { %v1154_v7 = vsel %vm1119_vm5, %v5993_v47, 0.0  ;;  %vm1219_vm6 = vcmp.eq.s32.totalorder %v5623_v30, %v5959_v36  ;;  %v1270_v34 = vadd.f32 %v1238_v31, %v1170_v35  ;;  %vm1319_vm7 = vcmp.eq.s32.totalorder %v5623_v30, %v5985_v0 }
 0x149   : > { %v1186_v45 = vadd.f32 %v1154_v7, %v1086_v61  ;;  %v1254_v42 = vsel %vm1219_vm6, %v6000_v41, 0.0  ;;  %1896 = vmatpush.msrb.mxu1 %v1869_v43  ;;  %v1354_v48 = vsel %vm1319_vm7, %v6006_v3, 0.0  ;;  %vm1517_vm8 = vcmp.eq.s32.totalorder %v5503_v22, %v6163_v4 }
 0x14a   : > { %vm1585_vm9 = vcmp.eq.s32.totalorder %v5503_v22, %v6165_v1  ;;  %vm1685_vm10 = vcmp.eq.s32.totalorder %v5503_v22, %v6191_v9  ;;  %v1370_v51 = vadd.f32 %v1338_v33, %v1270_v34  ;;  %v1552_v58 = vsel %vm1517_vm8, %v6196_v53, 0.0  ;;  %v6416_v33 = vld [vmem:[#allocation1 + $0x4] ss:$9 sm:$0xff] }
 0x14b   : > { %v1286_v10 = vadd.f32 %v1254_v42, %v1186_v45  ;;  %v1620_v11 = vsel %vm1585_vm9, %v6201_v55, 0.0  ;;  %v1720_v26 = vsel %vm1685_vm10, %v6208_v52, 0.0  ;;  %vm1785_vm11 = vcmp.eq.s32.totalorder %v5503_v22, %v6193_v39  ;;  %2442 = vst [vmem:[#allocation1] sm:$0xff] %v5398_v40 }
 0x14c   : > { %v1652_v12 = vadd.f32 %v1620_v11, %v1552_v58  ;;  %vm1533_vm12 = vcmp.eq.s32.totalorder %v5610_v63, %v6163_v4  ;;  %1399 = vmatpush.msra.mxu2 %v1370_v51  ;;  %v1820_v14 = vsel %vm1785_vm11, %v6217_v13, 0.0  ;;  %vm1601_vm13 = vcmp.eq.s32.totalorder %v5610_v63, %v6165_v1 }
 0x14d   : > { %v1386_v8 = vadd.f32 %v1354_v48, %v1286_v10  ;;  %v1568_v46 = vsel %vm1533_vm12, %v6196_v53, 0.0  ;;  %v1636_v25 = vsel %vm1601_vm13, %v6201_v55, 0.0  ;;  %vm1701_vm14 = vcmp.eq.s32.totalorder %v5610_v63, %v6191_v9 }
 0x14e   : > { %v1752_v49 = vadd.f32 %v1720_v26, %v1652_v12  ;;  %vm1801_vm15 = vcmp.eq.s32.totalorder %v5610_v63, %v6193_v39  ;;  %v1668_v56 = vadd.f32 %v1636_v25, %v1568_v46  ;;  %v1736_v32 = vsel %vm1701_vm14, %v6208_v52, 0.0 }
 0x14f   : > { %1419 = vmatpush.msra.mxu3 %v1386_v8  ;;  %v1836_v57 = vsel %vm1801_vm15, %v6217_v13, 0.0  ;;  %vm1034_vm0 = vcmp.eq.s32.totalorder %v5692_v59, %v5957_v44  ;;  %vm1102_vm1 = vcmp.eq.s32.totalorder %v5692_v59, %v5976_v54  ;;  %vm1202_vm2 = vcmp.eq.s32.totalorder %v5692_v59, %v5959_v36 }
 0x150   : > { %v1852_v31 = vadd.f32 %v1820_v14, %v1752_v49  ;;  %v1069_v35 = vsel %vm1034_vm0, %v5988_v50, 0.0  ;;  %v1768_v43 = vadd.f32 %v1736_v32, %v1668_v56  ;;  %v1137_v61 = vsel %vm1102_vm1, %v5993_v47, 0.0 }
 0x151   : > { %v1237_v7 = vsel %vm1202_vm2, %v6000_v41, 0.0  ;;  %vm1302_vm3 = vcmp.eq.s32.totalorder %v5692_v59, %v5985_v0  ;;  %v1169_v34 = vadd.f32 %v1137_v61, %v1069_v35  ;;  %vm1050_vm4 = vcmp.eq.s32.totalorder %v5695_v60, %v5957_v44 }
 0x152   : > { %1877 = vmatpush.msrb.mxu0 %v1852_v31  ;;  %v1337_v45 = vsel %vm1302_vm3, %v6006_v3, 0.0  ;;  %vm1118_vm5 = vcmp.eq.s32.totalorder %v5695_v60, %v5976_v54  ;;  %v1868_v42 = vadd.f32 %v1836_v57, %v1768_v43  ;;  %v1085_v48 = vsel %vm1050_vm4, %v5988_v50, 0.0  ;;  %v6453_v31 = vld [vmem:[#allocation1 + $0x4] ss:$9 sm:$0xff] }
 0x153   : > { %v1153_v51 = vsel %vm1118_vm5, %v5993_v47, 0.0  ;;  %vm1218_vm6 = vcmp.eq.s32.totalorder %v5695_v60, %v5959_v36  ;;  %v1269_v10 = vadd.f32 %v1237_v7, %v1169_v34  ;;  %vm1318_vm7 = vcmp.eq.s32.totalorder %v5695_v60, %v5985_v0  ;;  %2450 = vst [vmem:[#allocation1] sm:$0xff] %v5398_v40 }
 0x154   : > { %v1185_v58 = vadd.f32 %v1153_v51, %v1085_v48  ;;  %v1253_v11 = vsel %vm1218_vm6, %v6000_v41, 0.0  ;;  %1897 = vmatpush.msrb.mxu1 %v1868_v42  ;;  %v1353_v12 = vsel %vm1318_vm7, %v6006_v3, 0.0  ;;  %vm1516_vm8 = vcmp.eq.s32.totalorder %v5613_v23, %v6163_v4 }
 0x155   : > { %vm1584_vm9 = vcmp.eq.s32.totalorder %v5613_v23, %v6165_v1  ;;  %vm1684_vm10 = vcmp.eq.s32.totalorder %v5613_v23, %v6191_v9  ;;  %v1369_v26 = vadd.f32 %v1337_v45, %v1269_v10  ;;  %v1551_v14 = vsel %vm1516_vm8, %v6196_v53, 0.0 }
 0x156   : > { %v1285_v8 = vadd.f32 %v1253_v11, %v1185_v58  ;;  %v1619_v46 = vsel %vm1584_vm9, %v6201_v55, 0.0  ;;  %v1719_v25 = vsel %vm1684_vm10, %v6208_v52, 0.0  ;;  %vm1784_vm11 = vcmp.eq.s32.totalorder %v5613_v23, %v6193_v39 }
 0x157   : > { %v1651_v49 = vadd.f32 %v1619_v46, %v1551_v14  ;;  %vm1532_vm12 = vcmp.eq.s32.totalorder %v5616_v24, %v6163_v4  ;;  %1400 = vmatpush.msra.mxu2 %v1369_v26  ;;  %v1819_v32 = vsel %vm1784_vm11, %v6217_v13, 0.0  ;;  %vm1600_vm13 = vcmp.eq.s32.totalorder %v5616_v24, %v6165_v1 }
 0x158   : > { %v1385_v56 = vadd.f32 %v1353_v12, %v1285_v8  ;;  %v1567_v57 = vsel %vm1532_vm12, %v6196_v53, 0.0  ;;  %v1635_v43 = vsel %vm1600_vm13, %v6201_v55, 0.0  ;;  %vm1700_vm14 = vcmp.eq.s32.totalorder %v5616_v24, %v6191_v9  ;;  %v9895_v12 = vld [vmem:[#allocation20_spill] sm:$0xff] }
 0x159   : > { %v1751_v35 = vadd.f32 %v1719_v25, %v1651_v49  ;;  %vm1800_vm15 = vcmp.eq.s32.totalorder %v5616_v24, %v6193_v39  ;;  %v1667_v61 = vadd.f32 %v1635_v43, %v1567_v57  ;;  %v1735_v7 = vsel %vm1700_vm14, %v6208_v52, 0.0 }
 0x15a   : > { %1420 = vmatpush.msra.mxu3 %v1385_v56  ;;  %v1835_v34 = vsel %vm1800_vm15, %v6217_v13, 0.0  ;;  %vm1033_vm0 = vcmp.eq.s32.totalorder %v5698_v62, %v5957_v44  ;;  %vm1101_vm1 = vcmp.eq.s32.totalorder %v5698_v62, %v5976_v54  ;;  %vm1201_vm2 = vcmp.eq.s32.totalorder %v5698_v62, %v5959_v36 }
 0x15b   : > { %v1851_v45 = vadd.f32 %v1819_v32, %v1751_v35  ;;  %v1068_v42 = vsel %vm1033_vm0, %v5988_v50, 0.0  ;;  %v1767_v48 = vadd.f32 %v1735_v7, %v1667_v61  ;;  %v1136_v51 = vsel %vm1101_vm1, %v5993_v47, 0.0  ;;  %v6493_v32 = vld [vmem:[#allocation1 + $0x4] ss:$9 sm:$0xff] }
 0x15c   : > { %v1236_v10 = vsel %vm1201_vm2, %v6000_v41, 0.0  ;;  %vm1301_vm3 = vcmp.eq.s32.totalorder %v5698_v62, %v5985_v0  ;;  %v1168_v58 = vadd.f32 %v1136_v51, %v1068_v42  ;;  %vm1049_vm4 = vcmp.eq.s32.totalorder %v9895_v12, %v5957_v44  ;;  %v9896_v7 = vld [vmem:[#allocation15_spill] sm:$0xff] }
 0x15d   : > { %1878 = vmatpush.msrb.mxu0 %v1851_v45  ;;  %v1336_v11 = vsel %vm1301_vm3, %v6006_v3, 0.0  ;;  %vm1117_vm5 = vcmp.eq.s32.totalorder %v9895_v12, %v5976_v54  ;;  %v1867_v26 = vadd.f32 %v1835_v34, %v1767_v48  ;;  %v1084_v8 = vsel %vm1049_vm4, %v5988_v50, 0.0  ;;  %2870 = vst [vmem:[#allocation1] sm:$0xff] %v9896_v7 }
 0x15e   : > { %v1152_v14 = vsel %vm1117_vm5, %v5993_v47, 0.0  ;;  %vm1217_vm6 = vcmp.eq.s32.totalorder %v9895_v12, %v5959_v36  ;;  %v1268_v46 = vadd.f32 %v1236_v10, %v1168_v58  ;;  %vm1317_vm7 = vcmp.eq.s32.totalorder %v9895_v12, %v5985_v0 }
 0x15f   : > { %v1184_v49 = vadd.f32 %v1152_v14, %v1084_v8  ;;  %v1252_v25 = vsel %vm1217_vm6, %v6000_v41, 0.0  ;;  %1898 = vmatpush.msrb.mxu1 %v1867_v26  ;;  %v1352_v56 = vsel %vm1317_vm7, %v6006_v3, 0.0  ;;  %vm1515_vm8 = vcmp.eq.s32.totalorder %v5620_v29, %v6163_v4  ;;  %v9897_v14 = vld [vmem:[#allocation21_spill] sm:$0xff] }
 0x160   : > { %vm1583_vm9 = vcmp.eq.s32.totalorder %v5620_v29, %v6165_v1  ;;  %vm1683_vm10 = vcmp.eq.s32.totalorder %v5620_v29, %v6191_v9  ;;  %v1368_v57 = vadd.f32 %v1336_v11, %v1268_v46  ;;  %v1550_v43 = vsel %vm1515_vm8, %v6196_v53, 0.0 }
 0x161   : > { %v1284_v35 = vadd.f32 %v1252_v25, %v1184_v49  ;;  %v1618_v61 = vsel %vm1583_vm9, %v6201_v55, 0.0  ;;  %v1718_v45 = vsel %vm1683_vm10, %v6208_v52, 0.0  ;;  %vm1783_vm11 = vcmp.eq.s32.totalorder %v5620_v29, %v6193_v39 }
 0x162   : > { %v1650_v34 = vadd.f32 %v1618_v61, %v1550_v43  ;;  %vm1531_vm12 = vcmp.eq.s32.totalorder %v5623_v30, %v6163_v4  ;;  %1401 = vmatpush.msra.mxu2 %v1368_v57  ;;  %v1818_v48 = vsel %vm1783_vm11, %v6217_v13, 0.0  ;;  %vm1599_vm13 = vcmp.eq.s32.totalorder %v5623_v30, %v6165_v1  ;;  %v9898_v61 = vld [vmem:[#allocation22_spill] sm:$0xff] }
 0x163   : > { %v1384_v42 = vadd.f32 %v1352_v56, %v1284_v35  ;;  %v1566_v51 = vsel %vm1531_vm12, %v6196_v53, 0.0  ;;  %v1634_v58 = vsel %vm1599_vm13, %v6201_v55, 0.0  ;;  %vm1699_vm14 = vcmp.eq.s32.totalorder %v5623_v30, %v6191_v9 }
 0x164   : > { %v1750_v10 = vadd.f32 %v1718_v45, %v1650_v34  ;;  %vm1799_vm15 = vcmp.eq.s32.totalorder %v5623_v30, %v6193_v39  ;;  %v1666_v11 = vadd.f32 %v1634_v58, %v1566_v51  ;;  %v1734_v26 = vsel %vm1699_vm14, %v6208_v52, 0.0 }
 0x165   : > { %1421 = vmatpush.msra.mxu3 %v1384_v42  ;;  %v1834_v8 = vsel %vm1799_vm15, %v6217_v13, 0.0  ;;  %vm1032_vm0 = vcmp.eq.s32.totalorder %v9897_v14, %v5957_v44  ;;  %vm1100_vm1 = vcmp.eq.s32.totalorder %v9897_v14, %v5976_v54  ;;  %vm1200_vm2 = vcmp.eq.s32.totalorder %v9897_v14, %v5959_v36 }
 0x166   : > { %v1850_v46 = vadd.f32 %v1818_v48, %v1750_v10  ;;  %v1067_v49 = vsel %vm1032_vm0, %v5988_v50, 0.0  ;;  %v1766_v25 = vadd.f32 %v1734_v26, %v1666_v11  ;;  %v1135_v56 = vsel %vm1100_vm1, %v5993_v47, 0.0 }
 0x167   : > { %v1235_v57 = vsel %vm1200_vm2, %v6000_v41, 0.0  ;;  %vm1300_vm3 = vcmp.eq.s32.totalorder %v9897_v14, %v5985_v0  ;;  %v1167_v35 = vadd.f32 %v1135_v56, %v1067_v49  ;;  %vm1048_vm4 = vcmp.eq.s32.totalorder %v9898_v61, %v5957_v44 }
 0x168   : > { %1879 = vmatpush.msrb.mxu0 %v1850_v46  ;;  %v1335_v43 = vsel %vm1300_vm3, %v6006_v3, 0.0  ;;  %vm1116_vm5 = vcmp.eq.s32.totalorder %v9898_v61, %v5976_v54  ;;  %v1866_v7 = vadd.f32 %v1834_v8, %v1766_v25  ;;  %v1083_v34 = vsel %vm1048_vm4, %v5988_v50, 0.0 }
 0x169   : > { %v1151_v45 = vsel %vm1116_vm5, %v5993_v47, 0.0  ;;  %vm1216_vm6 = vcmp.eq.s32.totalorder %v9898_v61, %v5959_v36  ;;  %v1267_v42 = vadd.f32 %v1235_v57, %v1167_v35  ;;  %vm1316_vm7 = vcmp.eq.s32.totalorder %v9898_v61, %v5985_v0 }
 0x16a   : > { %v1183_v48 = vadd.f32 %v1151_v45, %v1083_v34  ;;  %v1251_v51 = vsel %vm1216_vm6, %v6000_v41, 0.0  ;;  %1899 = vmatpush.msrb.mxu1 %v1866_v7  ;;  %v1351_v10 = vsel %vm1316_vm7, %v6006_v3, 0.0  ;;  %vm1514_vm8 = vcmp.eq.s32.totalorder %v5692_v59, %v6163_v4 }
 0x16b   : > { %vm1582_vm9 = vcmp.eq.s32.totalorder %v5692_v59, %v6165_v1  ;;  %vm1682_vm10 = vcmp.eq.s32.totalorder %v5692_v59, %v6191_v9  ;;  %v1367_v58 = vadd.f32 %v1335_v43, %v1267_v42  ;;  %v1549_v26 = vsel %vm1514_vm8, %v6196_v53, 0.0  ;;  %v9899_v42 = vld [vmem:[#allocation23_spill] sm:$0xff] }
 0x16c   : > { %v1283_v11 = vadd.f32 %v1251_v51, %v1183_v48  ;;  %v1617_v8 = vsel %vm1582_vm9, %v6201_v55, 0.0  ;;  %v1717_v49 = vsel %vm1682_vm10, %v6208_v52, 0.0  ;;  %vm1782_vm11 = vcmp.eq.s32.totalorder %v5692_v59, %v6193_v39 }
 0x16d   : > { %v1649_v46 = vadd.f32 %v1617_v8, %v1549_v26  ;;  %vm1530_vm12 = vcmp.eq.s32.totalorder %v5695_v60, %v6163_v4  ;;  %1402 = vmatpush.msra.mxu2 %v1367_v58  ;;  %v1817_v56 = vsel %vm1782_vm11, %v6217_v13, 0.0  ;;  %vm1598_vm13 = vcmp.eq.s32.totalorder %v5695_v60, %v6165_v1 }
 0x16e   : > { %v1383_v25 = vadd.f32 %v1351_v10, %v1283_v11  ;;  %v1565_v57 = vsel %vm1530_vm12, %v6196_v53, 0.0  ;;  %v1633_v43 = vsel %vm1598_vm13, %v6201_v55, 0.0  ;;  %vm1698_vm14 = vcmp.eq.s32.totalorder %v5695_v60, %v6191_v9 }
 0x16f   : > { %v1749_v35 = vadd.f32 %v1717_v49, %v1649_v46  ;;  %vm1798_vm15 = vcmp.eq.s32.totalorder %v5695_v60, %v6193_v39  ;;  %v1665_v7 = vadd.f32 %v1633_v43, %v1565_v57  ;;  %v1733_v34 = vsel %vm1698_vm14, %v6208_v52, 0.0  ;;  %v9900_v46 = vld [vmem:[#allocation24_spill] sm:$0xff] }
 0x170   : > { %1422 = vmatpush.msra.mxu3 %v1383_v25  ;;  %v1833_v45 = vsel %vm1798_vm15, %v6217_v13, 0.0  ;;  %vm1031_vm0 = vcmp.eq.s32.totalorder %v9899_v42, %v5957_v44  ;;  %vm1099_vm1 = vcmp.eq.s32.totalorder %v9899_v42, %v5976_v54  ;;  %vm1199_vm2 = vcmp.eq.s32.totalorder %v9899_v42, %v5959_v36 }
 0x171   : > { %v1849_v48 = vadd.f32 %v1817_v56, %v1749_v35  ;;  %v1066_v51 = vsel %vm1031_vm0, %v5988_v50, 0.0  ;;  %v1765_v10 = vadd.f32 %v1733_v34, %v1665_v7  ;;  %v1134_v58 = vsel %vm1099_vm1, %v5993_v47, 0.0 }
 0x172   : > { %v1234_v11 = vsel %vm1199_vm2, %v6000_v41, 0.0  ;;  %vm1299_vm3 = vcmp.eq.s32.totalorder %v9899_v42, %v5985_v0  ;;  %v1166_v26 = vadd.f32 %v1134_v58, %v1066_v51  ;;  %vm1047_vm4 = vcmp.eq.s32.totalorder %v9900_v46, %v5957_v44 }
 0x173   : > { %1880 = vmatpush.msrb.mxu0 %v1849_v48  ;;  %v1334_v8 = vsel %vm1299_vm3, %v6006_v3, 0.0  ;;  %vm1115_vm5 = vcmp.eq.s32.totalorder %v9900_v46, %v5976_v54  ;;  %v1865_v49 = vadd.f32 %v1833_v45, %v1765_v10  ;;  %v1082_v25 = vsel %vm1047_vm4, %v5988_v50, 0.0 }
 0x174   : > { %v1150_v56 = vsel %vm1115_vm5, %v5993_v47, 0.0  ;;  %vm1215_vm6 = vcmp.eq.s32.totalorder %v9900_v46, %v5959_v36  ;;  %v1266_v57 = vadd.f32 %v1234_v11, %v1166_v26  ;;  %vm1315_vm7 = vcmp.eq.s32.totalorder %v9900_v46, %v5985_v0 }
 0x175   : > { %v1182_v35 = vadd.f32 %v1150_v56, %v1082_v25  ;;  %v1250_v43 = vsel %vm1215_vm6, %v6000_v41, 0.0  ;;  %1900 = vmatpush.msrb.mxu1 %v1865_v49  ;;  %v1350_v7 = vsel %vm1315_vm7, %v6006_v3, 0.0  ;;  %vm1513_vm8 = vcmp.eq.s32.totalorder %v5698_v62, %v6163_v4 }
 0x176   : > { %vm1581_vm9 = vcmp.eq.s32.totalorder %v5698_v62, %v6165_v1  ;;  %vm1681_vm10 = vcmp.eq.s32.totalorder %v5698_v62, %v6191_v9  ;;  %v1366_v34 = vadd.f32 %v1334_v8, %v1266_v57  ;;  %v1548_v48 = vsel %vm1513_vm8, %v6196_v53, 0.0 }
 0x177   : > { %v1282_v45 = vadd.f32 %v1250_v43, %v1182_v35  ;;  %v1616_v51 = vsel %vm1581_vm9, %v6201_v55, 0.0  ;;  %v1716_v58 = vsel %vm1681_vm10, %v6208_v52, 0.0  ;;  %vm1781_vm11 = vcmp.eq.s32.totalorder %v5698_v62, %v6193_v39  ;;  %v9901_v43 = vld [vmem:[#allocation25_spill] sm:$0xff] }
 0x178   : > { %v1648_v10 = vadd.f32 %v1616_v51, %v1548_v48  ;;  %vm1529_vm12 = vcmp.eq.s32.totalorder %v9895_v12, %v6163_v4  ;;  %1403 = vmatpush.msra.mxu2 %v1366_v34  ;;  %v1816_v26 = vsel %vm1781_vm11, %v6217_v13, 0.0  ;;  %vm1597_vm13 = vcmp.eq.s32.totalorder %v9895_v12, %v6165_v1 }
 0x179   : > { %v1382_v11 = vadd.f32 %v1350_v7, %v1282_v45  ;;  %v1564_v8 = vsel %vm1529_vm12, %v6196_v53, 0.0  ;;  %v1632_v25 = vsel %vm1597_vm13, %v6201_v55, 0.0  ;;  %vm1697_vm14 = vcmp.eq.s32.totalorder %v9895_v12, %v6191_v9 }
 0x17a   : > { %v1748_v49 = vadd.f32 %v1716_v58, %v1648_v10  ;;  %vm1797_vm15 = vcmp.eq.s32.totalorder %v9895_v12, %v6193_v39  ;;  %v1664_v56 = vadd.f32 %v1632_v25, %v1564_v8  ;;  %v1732_v57 = vsel %vm1697_vm14, %v6208_v52, 0.0 }
 0x17b   : > { %1423 = vmatpush.msra.mxu3 %v1382_v11  ;;  %v1832_v35 = vsel %vm1797_vm15, %v6217_v13, 0.0  ;;  %vm1030_vm0 = vcmp.eq.s32.totalorder %v9901_v43, %v5957_v44  ;;  %vm1098_vm1 = vcmp.eq.s32.totalorder %v9901_v43, %v5976_v54  ;;  %vm1198_vm2 = vcmp.eq.s32.totalorder %v9901_v43, %v5959_v36  ;;  %v9902_v11 = vld [vmem:[#allocation26_spill] sm:$0xff] }
 0x17c   : > { %v1848_v7 = vadd.f32 %v1816_v26, %v1748_v49  ;;  %v1065_v34 = vsel %vm1030_vm0, %v5988_v50, 0.0  ;;  %v1764_v45 = vadd.f32 %v1732_v57, %v1664_v56  ;;  %v1133_v48 = vsel %vm1098_vm1, %v5993_v47, 0.0 }
 0x17d   : > { %v1233_v51 = vsel %vm1198_vm2, %v6000_v41, 0.0  ;;  %vm1298_vm3 = vcmp.eq.s32.totalorder %v9901_v43, %v5985_v0  ;;  %v1165_v10 = vadd.f32 %v1133_v48, %v1065_v34  ;;  %vm1046_vm4 = vcmp.eq.s32.totalorder %v9902_v11, %v5957_v44 }
 0x17e   : > { %1881 = vmatpush.msrb.mxu0 %v1848_v7  ;;  %v1333_v58 = vsel %vm1298_vm3, %v6006_v3, 0.0  ;;  %vm1114_vm5 = vcmp.eq.s32.totalorder %v9902_v11, %v5976_v54  ;;  %v1864_v26 = vadd.f32 %v1832_v35, %v1764_v45  ;;  %v1081_v8 = vsel %vm1046_vm4, %v5988_v50, 0.0 }
 0x17f   : > { %v1149_v49 = vsel %vm1114_vm5, %v5993_v47, 0.0  ;;  %vm1214_vm6 = vcmp.eq.s32.totalorder %v9902_v11, %v5959_v36  ;;  %v1265_v25 = vadd.f32 %v1233_v51, %v1165_v10  ;;  %vm1314_vm7 = vcmp.eq.s32.totalorder %v9902_v11, %v5985_v0 }
 0x180   : > { %v1181_v56 = vadd.f32 %v1149_v49, %v1081_v8  ;;  %v1249_v57 = vsel %vm1214_vm6, %v6000_v41, 0.0  ;;  %1901 = vmatpush.msrb.mxu1 %v1864_v26  ;;  %v1349_v7 = vsel %vm1314_vm7, %v6006_v3, 0.0  ;;  %vm1512_vm8 = vcmp.eq.s32.totalorder %v9897_v14, %v6163_v4 }
 0x181   : > { %vm1580_vm9 = vcmp.eq.s32.totalorder %v9897_v14, %v6165_v1  ;;  %vm1680_vm10 = vcmp.eq.s32.totalorder %v9897_v14, %v6191_v9  ;;  %v1365_v35 = vadd.f32 %v1333_v58, %v1265_v25  ;;  %v1547_v45 = vsel %vm1512_vm8, %v6196_v53, 0.0 }
 0x182   : > { %v1281_v34 = vadd.f32 %v1249_v57, %v1181_v56  ;;  %v1615_v48 = vsel %vm1580_vm9, %v6201_v55, 0.0  ;;  %v1715_v10 = vsel %vm1680_vm10, %v6208_v52, 0.0  ;;  %vm1780_vm11 = vcmp.eq.s32.totalorder %v9897_v14, %v6193_v39 }
 0x183   : > { %v1647_v51 = vadd.f32 %v1615_v48, %v1547_v45  ;;  %vm1528_vm12 = vcmp.eq.s32.totalorder %v9898_v61, %v6163_v4  ;;  %1404 = vmatpush.msra.mxu2 %v1365_v35  ;;  %v1815_v8 = vsel %vm1780_vm11, %v6217_v13, 0.0  ;;  %vm1596_vm13 = vcmp.eq.s32.totalorder %v9898_v61, %v6165_v1  ;;  %v9903_v35 = vld [vmem:[#allocation27_spill] sm:$0xff] }
 0x184   : > { %v1381_v26 = vadd.f32 %v1349_v7, %v1281_v34  ;;  %v1563_v58 = vsel %vm1528_vm12, %v6196_v53, 0.0  ;;  %v1631_v25 = vsel %vm1596_vm13, %v6201_v55, 0.0  ;;  %vm1696_vm14 = vcmp.eq.s32.totalorder %v9898_v61, %v6191_v9 }
 0x185   : > { %v1747_v49 = vadd.f32 %v1715_v10, %v1647_v51  ;;  %vm1796_vm15 = vcmp.eq.s32.totalorder %v9898_v61, %v6193_v39  ;;  %v1663_v56 = vadd.f32 %v1631_v25, %v1563_v58  ;;  %v1731_v57 = vsel %vm1696_vm14, %v6208_v52, 0.0  ;;  %v9904_v58 = vld [vmem:[#allocation28_spill] sm:$0xff] }
 0x186   : > { %1424 = vmatpush.msra.mxu3 %v1381_v26  ;;  %v1831_v7 = vsel %vm1796_vm15, %v6217_v13, 0.0  ;;  %vm1029_vm0 = vcmp.eq.s32.totalorder %v9903_v35, %v5957_v44  ;;  %vm1097_vm1 = vcmp.eq.s32.totalorder %v9903_v35, %v5976_v54  ;;  %vm1197_vm2 = vcmp.eq.s32.totalorder %v9903_v35, %v5959_v36 }
 0x187   : > { %v1847_v34 = vadd.f32 %v1815_v8, %v1747_v49  ;;  %v1064_v45 = vsel %vm1029_vm0, %v5988_v50, 0.0  ;;  %v1763_v48 = vadd.f32 %v1731_v57, %v1663_v56  ;;  %v1132_v51 = vsel %vm1097_vm1, %v5993_v47, 0.0 }
 0x188   : > { %v1232_v10 = vsel %vm1197_vm2, %v6000_v41, 0.0  ;;  %vm1297_vm3 = vcmp.eq.s32.totalorder %v9903_v35, %v5985_v0  ;;  %v1164_v26 = vadd.f32 %v1132_v51, %v1064_v45  ;;  %vm1045_vm4 = vcmp.eq.s32.totalorder %v9904_v58, %v5957_v44 }
 0x189   : > { %1882 = vmatpush.msrb.mxu0 %v1847_v34  ;;  %v1332_v8 = vsel %vm1297_vm3, %v6006_v3, 0.0  ;;  %vm1113_vm5 = vcmp.eq.s32.totalorder %v9904_v58, %v5976_v54  ;;  %v1863_v49 = vadd.f32 %v1831_v7, %v1763_v48  ;;  %v1080_v25 = vsel %vm1045_vm4, %v5988_v50, 0.0 }
 0x18a   : > { %v1148_v56 = vsel %vm1113_vm5, %v5993_v47, 0.0  ;;  %vm1213_vm6 = vcmp.eq.s32.totalorder %v9904_v58, %v5959_v36  ;;  %v1264_v57 = vadd.f32 %v1232_v10, %v1164_v26  ;;  %vm1313_vm7 = vcmp.eq.s32.totalorder %v9904_v58, %v5985_v0 }
 0x18b   : > { %v1180_v28 = vadd.f32 %v1148_v56, %v1080_v25  ;;  %v1248_v34 = vsel %vm1213_vm6, %v6000_v41, 0.0  ;;  %1902 = vmatpush.msrb.mxu1 %v1863_v49  ;;  %v1348_v45 = vsel %vm1313_vm7, %v6006_v3, 0.0  ;;  %vm1511_vm8 = vcmp.eq.s32.totalorder %v9899_v42, %v6163_v4 }
 0x18c   : > { %vm1579_vm9 = vcmp.eq.s32.totalorder %v9899_v42, %v6165_v1  ;;  %vm1679_vm10 = vcmp.eq.s32.totalorder %v9899_v42, %v6191_v9  ;;  %v1364_v7 = vadd.f32 %v1332_v8, %v1264_v57  ;;  %v1546_v51 = vsel %vm1511_vm8, %v6196_v53, 0.0 }
 0x18d   : > { %v1280_v48 = vadd.f32 %v1248_v34, %v1180_v28  ;;  %v1614_v10 = vsel %vm1579_vm9, %v6201_v55, 0.0  ;;  %v1714_v49 = vsel %vm1679_vm10, %v6208_v52, 0.0  ;;  %vm1779_vm11 = vcmp.eq.s32.totalorder %v9899_v42, %v6193_v39 }
 0x18e   : > { %v1646_v26 = vadd.f32 %v1614_v10, %v1546_v51  ;;  %vm1527_vm12 = vcmp.eq.s32.totalorder %v9900_v46, %v6163_v4  ;;  %1405 = vmatpush.msra.mxu2 %v1364_v7  ;;  %v1814_v56 = vsel %vm1779_vm11, %v6217_v13, 0.0  ;;  %vm1595_vm13 = vcmp.eq.s32.totalorder %v9900_v46, %v6165_v1 }
 0x18f   : > { %v1380_v25 = vadd.f32 %v1348_v45, %v1280_v48  ;;  %v1562_v8 = vsel %vm1527_vm12, %v6196_v53, 0.0  ;;  %v1630_v57 = vsel %vm1595_vm13, %v6201_v55, 0.0  ;;  %vm1695_vm14 = vcmp.eq.s32.totalorder %v9900_v46, %v6191_v9  ;;  %v9905_v48 = vld [vmem:[#allocation29_spill] sm:$0xff] }
 0x190   : > { %v1746_v28 = vadd.f32 %v1714_v49, %v1646_v26  ;;  %vm1795_vm15 = vcmp.eq.s32.totalorder %v9900_v46, %v6193_v39  ;;  %v1662_v34 = vadd.f32 %v1630_v57, %v1562_v8  ;;  %v1730_v45 = vsel %vm1695_vm14, %v6208_v52, 0.0 }
 0x191   : > { %1425 = vmatpush.msra.mxu3 %v1380_v25  ;;  %v1830_v7 = vsel %vm1795_vm15, %v6217_v13, 0.0  ;;  %vm1028_vm0 = vcmp.eq.s32.totalorder %v9905_v48, %v5957_v44  ;;  %vm1096_vm1 = vcmp.eq.s32.totalorder %v9905_v48, %v5976_v54  ;;  %vm1196_vm2 = vcmp.eq.s32.totalorder %v9905_v48, %v5959_v36 }
 0x192   : > { %v1846_v51 = vadd.f32 %v1814_v56, %v1746_v28  ;;  %v1063_v10 = vsel %vm1028_vm0, %v5988_v50, 0.0  ;;  %v1762_v26 = vadd.f32 %v1730_v45, %v1662_v34  ;;  %v1131_v49 = vsel %vm1096_vm1, %v5993_v47, 0.0  ;;  %v9906_v28 = vld [vmem:[#allocation30_spill] sm:$0xff] }
 0x193   : > { %v1231_v25 = vsel %vm1196_vm2, %v6000_v41, 0.0  ;;  %vm1296_vm3 = vcmp.eq.s32.totalorder %v9905_v48, %v5985_v0  ;;  %v1163_v8 = vadd.f32 %v1131_v49, %v1063_v10  ;;  %vm1044_vm4 = vcmp.eq.s32.totalorder %v9906_v28, %v5957_v44 }
 0x194   : > { %1883 = vmatpush.msrb.mxu0 %v1846_v51  ;;  %v1331_v56 = vsel %vm1296_vm3, %v6006_v3, 0.0  ;;  %vm1112_vm5 = vcmp.eq.s32.totalorder %v9906_v28, %v5976_v54  ;;  %v1862_v57 = vadd.f32 %v1830_v7, %v1762_v26  ;;  %v1079_v34 = vsel %vm1044_vm4, %v5988_v50, 0.0 }
 0x195   : > { %v1147_v45 = vsel %vm1112_vm5, %v5993_v47, 0.0  ;;  %vm1212_vm6 = vcmp.eq.s32.totalorder %v9906_v28, %v5959_v36  ;;  %v1263_v46 = vadd.f32 %v1231_v25, %v1163_v8  ;;  %vm1312_vm7 = vcmp.eq.s32.totalorder %v9906_v28, %v5985_v0 }
 0x196   : > { %v1179_v42 = vadd.f32 %v1147_v45, %v1079_v34  ;;  %v1247_v51 = vsel %vm1212_vm6, %v6000_v41, 0.0  ;;  %1903 = vmatpush.msrb.mxu1 %v1862_v57  ;;  %v1347_v10 = vsel %vm1312_vm7, %v6006_v3, 0.0  ;;  %vm1510_vm8 = vcmp.eq.s32.totalorder %v9901_v43, %v6163_v4 }
 0x197   : > { %vm1578_vm9 = vcmp.eq.s32.totalorder %v9901_v43, %v6165_v1  ;;  %vm1678_vm10 = vcmp.eq.s32.totalorder %v9901_v43, %v6191_v9  ;;  %v1363_v7 = vadd.f32 %v1331_v56, %v1263_v46  ;;  %v1545_v49 = vsel %vm1510_vm8, %v6196_v53, 0.0 }
 0x198   : > { %v1279_v26 = vadd.f32 %v1247_v51, %v1179_v42  ;;  %v1613_v25 = vsel %vm1578_vm9, %v6201_v55, 0.0  ;;  %v1713_v57 = vsel %vm1678_vm10, %v6208_v52, 0.0  ;;  %vm1778_vm11 = vcmp.eq.s32.totalorder %v9901_v43, %v6193_v39 }
 0x199   : > { %v1645_v8 = vadd.f32 %v1613_v25, %v1545_v49  ;;  %vm1526_vm12 = vcmp.eq.s32.totalorder %v9902_v11, %v6163_v4  ;;  %1406 = vmatpush.msra.mxu2 %v1363_v7  ;;  %v1813_v45 = vsel %vm1778_vm11, %v6217_v13, 0.0  ;;  %vm1594_vm13 = vcmp.eq.s32.totalorder %v9902_v11, %v6165_v1 }
 0x19a   : > { %v1379_v34 = vadd.f32 %v1347_v10, %v1279_v26  ;;  %v1561_v46 = vsel %vm1526_vm12, %v6196_v53, 0.0  ;;  %v1629_v56 = vsel %vm1594_vm13, %v6201_v55, 0.0  ;;  %vm1694_vm14 = vcmp.eq.s32.totalorder %v9902_v11, %v6191_v9  ;;  %v9907_v26 = vld [vmem:[#allocation32_spill] sm:$0xff] }
 0x19b   : > { %v1745_v42 = vadd.f32 %v1713_v57, %v1645_v8  ;;  %vm1794_vm15 = vcmp.eq.s32.totalorder %v9902_v11, %v6193_v39  ;;  %v1661_v51 = vadd.f32 %v1629_v56, %v1561_v46  ;;  %v1729_v10 = vsel %vm1694_vm14, %v6208_v52, 0.0 }
 0x19c   : > { %1426 = vmatpush.msra.mxu3 %v1379_v34  ;;  %v1829_v7 = vsel %vm1794_vm15, %v6217_v13, 0.0  ;;  %vm1027_vm0 = vcmp.eq.s32.totalorder %v9907_v26, %v5957_v44  ;;  %vm1095_vm1 = vcmp.eq.s32.totalorder %v9907_v26, %v5976_v54  ;;  %vm1195_vm2 = vcmp.eq.s32.totalorder %v9907_v26, %v5959_v36 }
 0x19d   : > { %v1845_v49 = vadd.f32 %v1813_v45, %v1745_v42  ;;  %v1062_v25 = vsel %vm1027_vm0, %v5988_v50, 0.0  ;;  %v1761_v8 = vadd.f32 %v1729_v10, %v1661_v51  ;;  %v1130_v57 = vsel %vm1095_vm1, %v5993_v47, 0.0 }
 0x19e   : > { %v1230_v34 = vsel %vm1195_vm2, %v6000_v41, 0.0  ;;  %vm1295_vm3 = vcmp.eq.s32.totalorder %v9907_v26, %v5985_v0  ;;  %v1162_v46 = vadd.f32 %v1130_v57, %v1062_v25  ;;  %vm1043_vm4 = vcmp.eq.s32.totalorder %v5910_v37, %v5957_v44 }
 0x19f   : > { %1884 = vmatpush.msrb.mxu0 %v1845_v49  ;;  %v1330_v45 = vsel %vm1295_vm3, %v6006_v3, 0.0  ;;  %vm1111_vm5 = vcmp.eq.s32.totalorder %v5910_v37, %v5976_v54  ;;  %v1861_v42 = vadd.f32 %v1829_v7, %v1761_v8  ;;  %v1078_v56 = vsel %vm1043_vm4, %v5988_v50, 0.0 }
 0x1a0   : > { %v1146_v51 = vsel %vm1111_vm5, %v5993_v47, 0.0  ;;  %vm1211_vm6 = vcmp.eq.s32.totalorder %v5910_v37, %v5959_v36  ;;  %v1262_v10 = vadd.f32 %v1230_v34, %v1162_v46  ;;  %vm1311_vm7 = vcmp.eq.s32.totalorder %v5910_v37, %v5985_v0 }
 0x1a1   : > { %v1178_v11 = vadd.f32 %v1146_v51, %v1078_v56  ;;  %v1246_v49 = vsel %vm1211_vm6, %v6000_v41, 0.0  ;;  %1904 = vmatpush.msrb.mxu1 %v1861_v42  ;;  %v1346_v25 = vsel %vm1311_vm7, %v6006_v3, 0.0  ;;  %vm1509_vm8 = vcmp.eq.s32.totalorder %v9903_v35, %v6163_v4 }
 0x1a2   : > { %vm1577_vm9 = vcmp.eq.s32.totalorder %v9903_v35, %v6165_v1  ;;  %vm1677_vm10 = vcmp.eq.s32.totalorder %v9903_v35, %v6191_v9  ;;  %v1362_v7 = vadd.f32 %v1330_v45, %v1262_v10  ;;  %v1544_v57 = vsel %vm1509_vm8, %v6196_v53, 0.0 }
 0x1a3   : > { %v1278_v8 = vadd.f32 %v1246_v49, %v1178_v11  ;;  %v1612_v34 = vsel %vm1577_vm9, %v6201_v55, 0.0  ;;  %v1712_v42 = vsel %vm1677_vm10, %v6208_v52, 0.0  ;;  %vm1777_vm11 = vcmp.eq.s32.totalorder %v9903_v35, %v6193_v39  ;;  %v9919_v35 = vld [vmem:[#allocation11_spill] sm:$0xff] }
 0x1a4   : > { %v1644_v46 = vadd.f32 %v1612_v34, %v1544_v57  ;;  %vm1525_vm12 = vcmp.eq.s32.totalorder %v9904_v58, %v6163_v4  ;;  %1407 = vmatpush.msra.mxu2 %v1362_v7  ;;  %v1812_v51 = vsel %vm1777_vm11, %v6217_v13, 0.0  ;;  %vm1593_vm13 = vcmp.eq.s32.totalorder %v9904_v58, %v6165_v1 }
 0x1a5   : > { %v1378_v56 = vadd.f32 %v1346_v25, %v1278_v8  ;;  %v1560_v45 = vsel %vm1525_vm12, %v6196_v53, 0.0  ;;  %v1628_v10 = vsel %vm1593_vm13, %v6201_v55, 0.0  ;;  %vm1693_vm14 = vcmp.eq.s32.totalorder %v9904_v58, %v6191_v9 }
 0x1a6   : > { %v1744_v11 = vadd.f32 %v1712_v42, %v1644_v46  ;;  %vm1793_vm15 = vcmp.eq.s32.totalorder %v9904_v58, %v6193_v39  ;;  %v1660_v49 = vadd.f32 %v1628_v10, %v1560_v45  ;;  %v1728_v25 = vsel %vm1693_vm14, %v6208_v52, 0.0 }
 0x1a7   : > { %1427 = vmatpush.msra.mxu3 %v1378_v56  ;;  %v1828_v7 = vsel %vm1793_vm15, %v6217_v13, 0.0  ;;  %vm1026_vm0 = vcmp.eq.s32.totalorder %v5364_v15, %v5957_v44  ;;  %vm1094_vm1 = vcmp.eq.s32.totalorder %v5364_v15, %v5976_v54  ;;  %vm1194_vm2 = vcmp.eq.s32.totalorder %v5364_v15, %v5959_v36 }
 0x1a8   : > { %v1844_v8 = vadd.f32 %v1812_v51, %v1744_v11  ;;  %v1061_v57 = vsel %vm1026_vm0, %v5988_v50, 0.0  ;;  %v1760_v34 = vadd.f32 %v1728_v25, %v1660_v49  ;;  %v1129_v46 = vsel %vm1094_vm1, %v5993_v47, 0.0 }
 0x1a9   : > { %v1229_v42 = vsel %vm1194_vm2, %v6000_v41, 0.0  ;;  %vm1294_vm3 = vcmp.eq.s32.totalorder %v5364_v15, %v5985_v0  ;;  %v1161_v56 = vadd.f32 %v1129_v46, %v1061_v57  ;;  %vm1042_vm4 = vcmp.eq.s32.totalorder %v6071_v6, %v5957_v44 }
 0x1aa   : > { %1885 = vmatpush.msrb.mxu0 %v1844_v8  ;;  %v1329_v51 = vsel %vm1294_vm3, %v6006_v3, 0.0  ;;  %vm1110_vm5 = vcmp.eq.s32.totalorder %v6071_v6, %v5976_v54  ;;  %v1860_v45 = vadd.f32 %v1828_v7, %v1760_v34  ;;  %v1077_v11 = vsel %vm1042_vm4, %v5988_v50, 0.0 }
 0x1ab   : > { %v1145_v10 = vsel %vm1110_vm5, %v5993_v47, 0.0  ;;  %vm1210_vm6 = vcmp.eq.s32.totalorder %v6071_v6, %v5959_v36  ;;  %v1261_v49 = vadd.f32 %v1229_v42, %v1161_v56  ;;  %vm1310_vm7 = vcmp.eq.s32.totalorder %v6071_v6, %v5985_v0 }
 0x1ac   : > { %v1177_v25 = vadd.f32 %v1145_v10, %v1077_v11  ;;  %v1245_v8 = vsel %vm1210_vm6, %v6000_v41, 0.0  ;;  %1905 = vmatpush.msrb.mxu1 %v1860_v45  ;;  %v1345_v44 = vsel %vm1310_vm7, %v6006_v3, 0.0  ;;  %vm1508_vm8 = vcmp.eq.s32.totalorder %v9905_v48, %v6163_v4  ;;  %v5091_v45 = vld [vmem:[%s5347_s12] sm:$0x1] }
 0x1ad   : > { %vm1576_vm9 = vcmp.eq.s32.totalorder %v9905_v48, %v6165_v1  ;;  %vm1676_vm10 = vcmp.eq.s32.totalorder %v9905_v48, %v6191_v9  ;;  %v1361_v36 = vadd.f32 %v1329_v51, %v1261_v49  ;;  %v1543_v50 = vsel %vm1508_vm8, %v6196_v53, 0.0  ;;  %v5092_v49 = vld [vmem:[%s5352_s17] sm:$0x1] }
 0x1ae   : > { %v1277_v54 = vadd.f32 %v1245_v8, %v1177_v25  ;;  %v1611_v0 = vsel %vm1576_vm9, %v6201_v55, 0.0  ;;  %v1711_v41 = vsel %vm1676_vm10, %v6208_v52, 0.0  ;;  %vm1776_vm11 = vcmp.eq.s32.totalorder %v9905_v48, %v6193_v39  ;;  %v9908_v25 = vld [vmem:[#allocation10_spill] sm:$0xff] }
 0x1af   : > { %v1643_v47 = vadd.f32 %v1611_v0, %v1543_v50  ;;  %vm1524_vm12 = vcmp.eq.s32.totalorder %v9906_v28, %v6163_v4  ;;  %1408 = vmatpush.msra.mxu2 %v1361_v36  ;;  %v1811_v7 = vsel %vm1776_vm11, %v6217_v13, 0.0  ;;  %vm1592_vm13 = vcmp.eq.s32.totalorder %v9906_v28, %v6165_v1  ;;  %v9909_v36 = vld [vmem:[#allocation9_spill] sm:$0xff] }
 0x1b0   : > { %v1377_v3 = vadd.f32 %v1345_v44, %v1277_v54  ;;  %v1559_v57 = vsel %vm1524_vm12, %v6196_v53, 0.0  ;;  %v1627_v46 = vsel %vm1592_vm13, %v6201_v55, 0.0  ;;  %vm1692_vm14 = vcmp.eq.s32.totalorder %v9906_v28, %v6191_v9 }
 0x1b1   : > { %v1743_v34 = vadd.f32 %v1711_v41, %v1643_v47  ;;  %vm1792_vm15 = vcmp.eq.s32.totalorder %v9906_v28, %v6193_v39  ;;  %v1659_v42 = vadd.f32 %v1627_v46, %v1559_v57  ;;  %v1727_v56 = vsel %vm1692_vm14, %v6208_v52, 0.0 }
 0x1b2   : > { %1428 = vmatpush.msra.mxu3 %v1377_v3  ;;  %v1827_v51 = vsel %vm1792_vm15, %v6217_v13, 0.0  ;;  %v6857_v11 = vadd.f32 1.0, %v5091_v45  ;;  %v1924_v8 = vadd.f32 %v5092_v49, %v9908_v25  ;;  %vm1507_vm0 = vcmp.eq.s32.totalorder %v9907_v26, %v6163_v4 }
 0x1b3   : > { %v1843_v10 = vadd.f32 %v1811_v7, %v1743_v34  ;;  %vm1575_vm1 = vcmp.eq.s32.totalorder %v9907_v26, %v6165_v1  ;;  %v1759_v44 = vadd.f32 %v1727_v56, %v1659_v42  ;;  %v1542_v50 = vsel %vm1507_vm0, %v6196_v53, 0.0 }
 0x1b4   : > { %v1919_v54 = vadd.f32 %v9909_v36, %v6857_v11  ;;  %v1610_v0 = vsel %vm1575_vm1, %v6201_v55, 0.0  ;;  %v1926_v47 = vfloor.f32 %v1924_v8  ;;  %vm1675_vm2 = vcmp.eq.s32.totalorder %v9907_v26, %v6191_v9  ;;  %v6890_v36 = vld [vmem:[%s6879_s13] sm:$0xff] }
 0x1b5   : > { %1886 = vmatpush.msrb.mxu0 %v1843_v10  ;;  %v1642_v41 = vadd.f32 %v1610_v0, %v1542_v50  ;;  %vm1775_vm3 = vcmp.eq.s32.totalorder %v9907_v26, %v6193_v39  ;;  %v1859_v3 = vadd.f32 %v1827_v51, %v1759_v44  ;;  %v1710_v57 = vsel %vm1675_vm2, %v6208_v52, 0.0  ;;  %1409 = vmatmul.f32.vlgmr.msra.gmra.mxu2 %v6890_v36 }
 0x1b6   : > { %v1925_v7 = vfloor.f32 %v1919_v54  ;;  %v1928_v34 = vsub.f32 %v1924_v8, %v1926_v47  ;;  %v4995_v46 = vcvt.f32.s32 %v1926_v47  ;;  %v1810_v56 = vsel %vm1775_vm3, %v6217_v13, 0.0  ;;  %928 = vmatmul.f32.vlgmr.msra.gmra.mxu0 %v6890_v36 }
 0x1b7   : > { %v1742_v42 = vadd.f32 %v1710_v57, %v1642_v41  ;;  %1906 = vmatpush.msrb.mxu1 %v1859_v3  ;;  %vm1523_vm4 = vcmp.eq.s32.totalorder %v5910_v37, %v6163_v4  ;;  %vm1591_vm5 = vcmp.eq.s32.totalorder %v5910_v37, %v6165_v1  ;;  %vm1691_vm3 = vcmp.eq.s32.totalorder %v5910_v37, %v6191_v9 }
 0x1b8   : > { %v1927_v45 = vsub.f32 %v1919_v54, %v1925_v7  ;;  %v4993_v10 = vcvt.f32.s32 %v1925_v7  ;;  %v1932_v51 = vadd.s32 1, %v4995_v46  ;;  %vm1939_vm6 = vcmp.ge.s32.totalorder %v4995_v46, 0  ;;  %v6893_v54 = vld [vmem:[%s6879_s13 + $0x8] sm:$0xff] }
 0x1b9   : > { %vm1940_vm7 = vcmp.lt.s32.totalorder %v4995_v46, 16  ;;  %v1947_v49 = vsub.f32 1.0, %v1928_v34  ;;  %v1558_v47 = vsel %vm1523_vm4, %v6196_v53, 0.0  ;;  %948 = vmatmul.f32.vlgmr.msra.gmra.mxu1 %v6893_v54  ;;  %1429 = vmatmul.f32.vlgmr.msra.gmra.mxu3 %v6893_v54  ;;  %v1842_v48 = vadd.f32 %v1810_v56, %v1742_v42 }
 0x1ba   : > { %v1931_v25 = vadd.s32 1, %v4993_v10  ;;  %vm1933_vm8 = vcmp.ge.s32.totalorder %v4993_v10, 0  ;;  %vm1934_vm9 = vcmp.lt.s32.totalorder %v4993_v10, 16  ;;  %vm6885_vm10 = vmand %vm1939_vm6, %vm1940_vm7  ;;  %v1946_v44 = vsub.f32 1.0, %v1927_v45 }
 0x1bb   : > { %vm6895_vm11 = vmand %vm1933_vm8, %vm1934_vm9  ;;  %vm1942_vm12 = vcmp.ge.s32.totalorder %v1932_v51, 0  ;;  %vm1943_vm13 = vcmp.lt.s32.totalorder %v1932_v51, 16  ;;  %v1964_v0 = vmul.f32 %v1947_v49, %v1927_v45  ;;  %v1979_v26 = vmul.u32 16, %v4993_v10  ;;  %1887 = vmatpush.msrb.mxu0 %v1842_v48 }
 0x1bc   : > { %vm1936_vm14 = vcmp.ge.s32.totalorder %v1931_v25, 0  ;;  %vm1937_vm15 = vcmp.lt.s32.totalorder %v1931_v25, 16  ;;  %vm6905_vm0 = vmand %vm1942_vm12, %vm1943_vm13  ;;  %v1948_v3 = vmul.f32 %v1947_v49, %v1946_v44  ;;  %v1956_v7 = vmul.f32 %v1946_v44, %v1928_v34 }
 0x1bd   : > { %vm6911_vm1 = vmand %vm1936_vm14, %vm1937_vm15  ;;  %v1982_v28 = vmul.u32 16, %v1931_v25  ;;  %v1626_v58 = vsel %vm1591_vm5, %v6201_v55, 0.0  ;;  %v1972_v49 = vmul.f32 %v1928_v34, %v1927_v45  ;;  %vm1791_vm4 = vcmp.eq.s32.totalorder %v5910_v37, %v6193_v39 }
 0x1be   : > { %vm1945_vm2 = vmand %vm6895_vm11, %vm6885_vm10  ;;  %v1658_v44 = vadd.f32 %v1626_v58, %v1558_v47  ;;  %v1980_v42 = vadd.s32 %v4995_v46, %v1979_v26  ;;  %v1981_v56 = vadd.s32 %v1979_v26, %v1932_v51  ;;  %v1726_v45 = vsel %vm1691_vm3, %v6208_v52, 0.0  ;;  %v9920_v47 = vld [vmem:[#allocation12_spill] sm:$0xff]  ;;  %v9921_v26 = vld [vmem:[#allocation13_spill] sm:$0xff] }
 0x1bf   : > { %v1949_v10 = vsel %vm1945_vm2, %v1948_v3, 0.0  ;;  %vm1955_vm6 = vmand %vm6895_vm11, %vm6905_vm0  ;;  %v1983_v25 = vadd.s32 %v4995_v46, %v1982_v28  ;;  %v1984_v58 = vadd.s32 %v1982_v28, %v1932_v51  ;;  %v9922_v51 = vld [vmem:[#allocation16_spill] sm:$0xff] }
 0x1c0   : > { %v1954_v43 = vmul.f32 %v9919_v35, %v1949_v10  ;;  %v1957_v34 = vsel %vm1955_vm6, %v1956_v7, 0.0  ;;  %vm1963_vm5 = vmand %vm6911_vm1, %vm6885_vm10  ;;  %v6942_v48 = vperm.slane %v1980_v42, 0  ;;  %v6944_v35 = vperm.slane %v1981_v56, 0 }
 0x1c1   : > { %v1962_v3 = vmul.f32 %v9920_v47, %v1957_v34  ;;  %v1965_v61 = vsel %vm1963_vm5, %v1964_v0, 0.0  ;;  %vm1971_vm7 = vmand %vm6911_vm1, %vm6905_vm0  ;;  %v6949_v28 = vperm.slane %v1983_v25, 0  ;;  %vm1506_vm10 = vcmp.eq.s32.totalorder %v5364_v15, %v6163_v4 }
 0x1c2   : > { %v1970_v46 = vmul.f32 %v9921_v26, %v1965_v61  ;;  %v1973_v8 = vsel %vm1971_vm7, %v1972_v49, 0.0  ;;  %v6947_v50 = vperm.slane %v1954_v43, 0  ;;  %vm2001_vm8 = vcmp.eq.s32.totalorder %v5376_v27, %v6942_v48 }
 0x1c3   : > { %v1978_v7 = vmul.f32 %v9922_v51, %v1973_v8  ;;  %vm2069_vm9 = vcmp.eq.s32.totalorder %v5376_v27, %v6944_v35  ;;  %v6956_v0 = vperm.slane %v1962_v3, 0  ;;  %vm2169_vm11 = vcmp.eq.s32.totalorder %v5376_v27, %v6949_v28 }
 0x1c4   : > { %v2036_v61 = vsel %vm2001_vm8, %v6947_v50, 0.0  ;;  %v6963_v43 = vperm.slane %v1970_v46, 0  ;;  %v6965_v41 = vperm.slane %v1984_v58, 0  ;;  %vm2017_vm12 = vcmp.eq.s32.totalorder %v5482_v16, %v6942_v48 }
 0x1c5   : > { %v2104_v57 = vsel %vm2069_vm9, %v6956_v0, 0.0  ;;  %v6968_v49 = vperm.slane %v1978_v7, 0  ;;  %vm2085_vm13 = vcmp.eq.s32.totalorder %v5482_v16, %v6944_v35  ;;  %v2052_v56 = vsel %vm2017_vm12, %v6947_v50, 0.0 }
 0x1c6   : > { %v2136_v10 = vadd.f32 %v2104_v57, %v2036_v61  ;;  %v2204_v42 = vsel %vm2169_vm11, %v6963_v43, 0.0  ;;  %vm2269_vm14 = vcmp.eq.s32.totalorder %v5376_v27, %v6965_v41  ;;  %v2120_v34 = vsel %vm2085_vm13, %v6956_v0, 0.0 }
 0x1c7   : > { %v2304_v25 = vsel %vm2269_vm14, %v6968_v49, 0.0  ;;  %vm2185_vm15 = vcmp.eq.s32.totalorder %v5482_v16, %v6949_v28  ;;  %vm2285_vm0 = vcmp.eq.s32.totalorder %v5482_v16, %v6965_v41  ;;  %v2152_v47 = vadd.f32 %v2120_v34, %v2052_v56 }
 0x1c8   : > { %v2236_v58 = vadd.f32 %v2204_v42, %v2136_v10  ;;  %v2220_v3 = vsel %vm2185_vm15, %v6963_v43, 0.0  ;;  %v2320_v26 = vsel %vm2285_vm0, %v6968_v49, 0.0  ;;  %v1758_v46 = vadd.f32 %v1726_v45, %v1658_v44 }
 0x1c9   : > { %v1826_v8 = vsel %vm1791_vm4, %v6217_v13, 0.0  ;;  %vm2000_vm1 = vcmp.eq.s32.totalorder %v5485_v17, %v6942_v48  ;;  %vm2068_vm2 = vcmp.eq.s32.totalorder %v5485_v17, %v6944_v35  ;;  %v2252_v7 = vadd.f32 %v2220_v3, %v2152_v47 }
 0x1ca   : > { %v2336_v51 = vadd.f32 %v2304_v25, %v2236_v58  ;;  %v2035_v61 = vsel %vm2000_vm1, %v6947_v50, 0.0  ;;  %v2103_v57 = vsel %vm2068_vm2, %v6956_v0, 0.0  ;;  %v1858_v10 = vadd.f32 %v1826_v8, %v1758_v46 }
 0x1cb   : > { %v2135_v42 = vadd.f32 %v2103_v57, %v2035_v61  ;;  %vm2168_vm3 = vcmp.eq.s32.totalorder %v5485_v17, %v6949_v28  ;;  %vm2268_vm4 = vcmp.eq.s32.totalorder %v5485_v17, %v6965_v41  ;;  %v2352_v44 = vadd.f32 %v2320_v26, %v2252_v7 }
 0x1cc   : > { %2353 = vmatpush.msrb.mxu2 %v2336_v51  ;;  %v2203_v45 = vsel %vm2168_vm3, %v6963_v43, 0.0  ;;  %v2303_v56 = vsel %vm2268_vm4, %v6968_v49, 0.0  ;;  %vm2016_vm6 = vcmp.eq.s32.totalorder %v5488_v18, %v6942_v48  ;;  %1907 = vmatpush.msrb.mxu1 %v1858_v10  ;;  %vm2084_vm5 = vcmp.eq.s32.totalorder %v5488_v18, %v6944_v35 }
 0x1cd   : > { %v2235_v25 = vadd.f32 %v2203_v45, %v2135_v42  ;;  %v2051_v34 = vsel %vm2016_vm6, %v6947_v50, 0.0  ;;  %vm2184_vm7 = vcmp.eq.s32.totalorder %v5488_v18, %v6949_v28  ;;  %2373 = vmatpush.msrb.mxu3 %v2352_v44  ;;  %v2119_v58 = vsel %vm2084_vm5, %v6956_v0, 0.0 }
 0x1ce   : > { %v2219_v47 = vsel %vm2184_vm7, %v6963_v43, 0.0  ;;  %vm2284_vm8 = vcmp.eq.s32.totalorder %v5488_v18, %v6965_v41  ;;  %v1541_v3 = vsel %vm1506_vm10, %v6196_v53, 0.0  ;;  %v2151_v46 = vadd.f32 %v2119_v58, %v2051_v34 }
 0x1cf   : > { %v2335_v26 = vadd.f32 %v2303_v56, %v2235_v25  ;;  %v2319_v8 = vsel %vm2284_vm8, %v6968_v49, 0.0  ;;  %vm1574_vm9 = vcmp.eq.s32.totalorder %v5364_v15, %v6165_v1  ;;  %vm1674_vm11 = vcmp.eq.s32.totalorder %v5364_v15, %v6191_v9 }
 0x1d0   : > { %v1609_v51 = vsel %vm1574_vm9, %v6201_v55, 0.0  ;;  %vm1774_vm12 = vcmp.eq.s32.totalorder %v5364_v15, %v6193_v39  ;;  %vm1522_vm13 = vcmp.eq.s32.totalorder %v6071_v6, %v6163_v4  ;;  %v2251_v7 = vadd.f32 %v2219_v47, %v2151_v46 }
 0x1d1   : > { %2354 = vmatpush.msrb.mxu2 %v2335_v26  ;;  %v1641_v61 = vadd.f32 %v1609_v51, %v1541_v3  ;;  %v1709_v57 = vsel %vm1674_vm11, %v6208_v52, 0.0  ;;  %v1809_v10 = vsel %vm1774_vm12, %v6217_v13, 0.0  ;;  %v1557_v42 = vsel %vm1522_vm13, %v6196_v53, 0.0  ;;  %v7063_v51 = vld [vmem:[#allocation1] sm:$0xff] }
 0x1d2   : > { %vm1590_vm10 = vcmp.eq.s32.totalorder %v6071_v6, %v6165_v1  ;;  %vm1690_vm14 = vcmp.eq.s32.totalorder %v6071_v6, %v6191_v9  ;;  %vm1790_vm15 = vcmp.eq.s32.totalorder %v6071_v6, %v6193_v39  ;;  %v2351_v44 = vadd.f32 %v2319_v8, %v2251_v7 }
 0x1d3   : > { %v1741_v4 = vadd.f32 %v1709_v57, %v1641_v61  ;;  %v1625_v45 = vsel %vm1590_vm10, %v6201_v55, 0.0  ;;  %v1725_v56 = vsel %vm1690_vm14, %v6208_v52, 0.0  ;;  %v1825_v34 = vsel %vm1790_vm15, %v6217_v13, 0.0 }
 0x1d4   : > { %v1657_v25 = vadd.f32 %v1625_v45, %v1557_v42  ;;  %vm1999_vm0 = vcmp.eq.s32.totalorder %v5491_v19, %v6942_v48  ;;  %vm2067_vm1 = vcmp.eq.s32.totalorder %v5491_v19, %v6944_v35  ;;  %2374 = vmatpush.msrb.mxu3 %v2351_v44  ;;  %vm2167_vm2 = vcmp.eq.s32.totalorder %v5491_v19, %v6949_v28  ;;  %v7075_v45 = vld [vmem:[#allocation1 + $0x2] ss:$9 sm:$0xff] }
 0x1d5   : > { %v1841_v1 = vadd.f32 %v1809_v10, %v1741_v4  ;;  %v2034_v9 = vsel %vm1999_vm0, %v6947_v50, 0.0  ;;  %v2102_v39 = vsel %vm2067_vm1, %v6956_v0, 0.0  ;;  %v2202_v52 = vsel %vm2167_vm2, %v6963_v43, 0.0  ;;  %v9923_v10 = vld [vmem:[#allocation31_spill] sm:$0xff]  ;;  %2875 = vst [vmem:[#allocation1] sm:$0xff] %v7063_v51 }
 0x1d6   : > { %v1757_v53 = vadd.f32 %v1725_v56, %v1657_v25  ;;  %v2134_v55 = vadd.f32 %v2102_v39, %v2034_v9  ;;  %vm2267_vm3 = vcmp.eq.s32.totalorder %v5491_v19, %v6965_v41  ;;  %vm2015_vm4 = vcmp.eq.s32.totalorder %v5494_v20, %v6942_v48 }
 0x1d7   : > { %1888 = vmatpush.msrb.mxu0 %v1841_v1  ;;  %v2302_v13 = vsel %vm2267_vm3, %v6968_v49, 0.0  ;;  %vm2083_vm6 = vcmp.eq.s32.totalorder %v5494_v20, %v6944_v35  ;;  %vm2183_vm5 = vcmp.eq.s32.totalorder %v5494_v20, %v6949_v28  ;;  %v2050_v3 = vsel %vm2015_vm4, %v6947_v50, 0.0 }
 0x1d8   : > { %v1857_v58 = vadd.f32 %v1825_v34, %v1757_v53  ;;  %v2234_v47 = vadd.f32 %v2202_v52, %v2134_v55  ;;  %v2118_v26 = vsel %vm2083_vm6, %v6956_v0, 0.0  ;;  %1889 = vmatmul.f32.vlgmr.msrb.gmra.mxu0 %v6890_v36  ;;  %v2218_v8 = vsel %vm2183_vm5, %v6963_v43, 0.0 }
 0x1d9   : > { %v2150_v46 = vadd.f32 %v2118_v26, %v2050_v3  ;;  %vm2283_vm7 = vcmp.eq.s32.totalorder %v5494_v20, %v6965_v41  ;;  %v2394_v7 = vadd.f32 %v7063_v51, %v6857_v11  ;;  %v2400_v42 = vadd.f32 %v6327_v38, %v9923_v10 }
 0x1da   : > { %1908 = vmatpush.msrb.mxu1 %v1857_v58  ;;  %v2334_v61 = vadd.f32 %v2302_v13, %v2234_v47  ;;  %v2318_v57 = vsel %vm2283_vm7, %v6968_v49, 0.0  ;;  %vm1998_vm8 = vcmp.eq.s32.totalorder %v5497_v5, %v6942_v48  ;;  %vm2066_vm9 = vcmp.eq.s32.totalorder %v5497_v5, %v6944_v35 }
 0x1db   : > { %v2250_v36 = vadd.f32 %v2218_v8, %v2150_v46  ;;  %v2401_v44 = vfloor.f32 %v2394_v7  ;;  %v2033_v4 = vsel %vm1998_vm8, %v6947_v50, 0.0  ;;  %1909 = vmatmul.f32.vlgmr.msrb.gmra.mxu1 %v6893_v54  ;;  %v2402_v56 = vfloor.f32 %v2400_v42 }
 0x1dc   : > { %2355 = vmatpush.msrb.mxu2 %v2334_v61  ;;  %v2101_v25 = vsel %vm2066_vm9, %v6956_v0, 0.0  ;;  %vm2166_vm11 = vcmp.eq.s32.totalorder %v5497_v5, %v6949_v28  ;;  %vm2266_vm12 = vcmp.eq.s32.totalorder %v5497_v5, %v6965_v41  ;;  %vm2014_vm8 = vcmp.eq.s32.totalorder %v5500_v21, %v6942_v48 }
 0x1dd   : > { %v2350_v38 = vadd.f32 %v2318_v57, %v2250_v36  ;;  %v2403_v34 = vsub.f32 %v2394_v7, %v2401_v44  ;;  %v4997_v1 = vcvt.f32.s32 %v2401_v44  ;;  %v2133_v9 = vadd.f32 %v2101_v25, %v2033_v4 }
 0x1de   : > { %v2404_v39 = vsub.f32 %v2400_v42, %v2402_v56  ;;  %v4999_v53 = vcvt.f32.s32 %v2402_v56  ;;  %v2201_v54 = vsel %vm2166_vm11, %v6963_v43, 0.0  ;;  %v2301_v55 = vsel %vm2266_vm12, %v6968_v49, 0.0 }
 0x1df   : > { %2375 = vmatpush.msrb.mxu3 %v2350_v38  ;;  %v2407_v52 = vadd.s32 1, %v4997_v1  ;;  %vm2409_vm13 = vcmp.ge.s32.totalorder %v4997_v1, 0  ;;  %vm2410_vm10 = vcmp.lt.s32.totalorder %v4997_v1, 16  ;;  %v2422_v13 = vsub.f32 1.0, %v2403_v34 }
 0x1e0   : > { %v2408_v58 = vadd.s32 1, %v4999_v53  ;;  %vm7086_vm14 = vmand %vm2409_vm13, %vm2410_vm10  ;;  %vm2415_vm15 = vcmp.ge.s32.totalorder %v4999_v53, 0  ;;  %vm2416_vm0 = vcmp.lt.s32.totalorder %v4999_v53, 16  ;;  %v2423_v3 = vsub.f32 1.0, %v2404_v39 }
 0x1e1   : > { %vm2412_vm1 = vcmp.ge.s32.totalorder %v2407_v52, 0  ;;  %vm2413_vm2 = vcmp.lt.s32.totalorder %v2407_v52, 16  ;;  %vm7090_vm3 = vmand %vm2415_vm15, %vm2416_vm0  ;;  %v2432_v46 = vmul.f32 %v2422_v13, %v2404_v39  ;;  %v2448_v8 = vmul.f32 %v2404_v39, %v2403_v34 }
 0x1e2   : > { %vm7094_vm4 = vmand %vm2412_vm1, %vm2413_vm2  ;;  %vm2418_vm6 = vcmp.ge.s32.totalorder %v2408_v58, 0  ;;  %vm2419_vm5 = vcmp.lt.s32.totalorder %v2408_v58, 16  ;;  %v2424_v61 = vmul.f32 %v2423_v3, %v2422_v13  ;;  %v2440_v57 = vmul.f32 %v2423_v3, %v2403_v34 }
 0x1e3   : > { %vm7098_vm7 = vmand %vm2418_vm6, %vm2419_vm5  ;;  %v2455_v36 = vmul.u32 16, %v4997_v1  ;;  %v2458_v44 = vmul.u32 16, %v2407_v52  ;;  %v2233_v4 = vadd.f32 %v2201_v54, %v2133_v9  ;;  %v2049_v56 = vsel %vm2014_vm8, %v6947_v50, 0.0 }
 0x1e4   : > { %vm2421_vm9 = vmand %vm7086_vm14, %vm7090_vm3  ;;  %vm2082_vm11 = vcmp.eq.s32.totalorder %v5500_v21, %v6944_v35  ;;  %vm2182_vm12 = vcmp.eq.s32.totalorder %v5500_v21, %v6949_v28  ;;  %vm2282_vm13 = vcmp.eq.s32.totalorder %v5500_v21, %v6965_v41 }
 0x1e5   : > { %v2425_v25 = vsel %vm2421_vm9, %v2424_v61, 0.0  ;;  %vm2431_vm10 = vmand %vm7086_vm14, %vm7098_vm7  ;;  %v2456_v38 = vadd.s32 %v4999_v53, %v2455_v36  ;;  %v2457_v34 = vadd.s32 %v2455_v36, %v2408_v58  ;;  %v2459_v1 = vadd.s32 %v4999_v53, %v2458_v44 }
 0x1e6   : > { %v2430_v9 = vmul.f32 %v6374_v2, %v2425_v25  ;;  %v2433_v39 = vsel %vm2431_vm10, %v2432_v46, 0.0  ;;  %vm2439_vm15 = vmand %vm7094_vm4, %vm7090_vm3  ;;  %v2460_v54 = vadd.s32 %v2458_v44, %v2408_v58  ;;  %v2333_v52 = vadd.f32 %v2301_v55, %v2233_v4 }
 0x1e7   : > { %v2438_v13 = vmul.f32 %v6416_v33, %v2433_v39  ;;  %v2441_v3 = vsel %vm2439_vm15, %v2440_v57, 0.0  ;;  %vm2447_vm14 = vmand %vm7094_vm4, %vm7098_vm7  ;;  %v7129_v47 = vperm.slane %v2456_v38, 0  ;;  %v7131_v53 = vperm.slane %v2457_v34, 0 }
 0x1e8   : > { %v2446_v2 = vmul.f32 %v6453_v31, %v2441_v3  ;;  %v2449_v26 = vsel %vm2447_vm14, %v2448_v8, 0.0  ;;  %v7134_v46 = vperm.slane %v2430_v9, 0  ;;  %v7136_v61 = vperm.slane %v2459_v1, 0  ;;  %2356 = vmatpush.msrb.mxu2 %v2333_v52 }
 0x1e9   : > { %v2454_v33 = vmul.f32 %v6493_v32, %v2449_v26  ;;  %vm2477_vm0 = vcmp.eq.s32.totalorder %v5376_v27, %v7129_v47  ;;  %vm2545_vm1 = vcmp.eq.s32.totalorder %v5376_v27, %v7131_v53  ;;  %v7143_v55 = vperm.slane %v2438_v13, 0 }
 0x1ea   : > { %v2512_v58 = vsel %vm2477_vm0, %v7134_v46, 0.0  ;;  %vm2645_vm2 = vcmp.eq.s32.totalorder %v5376_v27, %v7136_v61  ;;  %v7148_v31 = vperm.slane %v2446_v2, 0  ;;  %v7150_v8 = vperm.slane %v2460_v54, 0 }
 0x1eb   : > { %v2580_v7 = vsel %vm2545_vm1, %v7143_v55, 0.0  ;;  %v7153_v32 = vperm.slane %v2454_v33, 0  ;;  %vm2493_vm3 = vcmp.eq.s32.totalorder %v5482_v16, %v7129_v47  ;;  %vm2561_vm4 = vcmp.eq.s32.totalorder %v5482_v16, %v7131_v53 }
 0x1ec   : > { %v2612_v57 = vadd.f32 %v2580_v7, %v2512_v58  ;;  %v2680_v42 = vsel %vm2645_vm2, %v7148_v31, 0.0  ;;  %vm2745_vm6 = vcmp.eq.s32.totalorder %v5376_v27, %v7150_v8  ;;  %v2528_v36 = vsel %vm2493_vm3, %v7134_v46, 0.0  ;;  %v7196_v7 = vld [vmem:[#allocation1 + $0x3] ss:$9 sm:$0xff] }
 0x1ed   : > { %v2780_v44 = vsel %vm2745_vm6, %v7153_v32, 0.0  ;;  %v2596_v4 = vsel %vm2561_vm4, %v7143_v55, 0.0  ;;  %vm2661_vm5 = vcmp.eq.s32.totalorder %v5482_v16, %v7136_v61  ;;  %vm2761_vm7 = vcmp.eq.s32.totalorder %v5482_v16, %v7150_v8  ;;  %2905 = vst [vmem:[#allocation1] sm:$0xff] %v5398_v40 }
 0x1ee   : > { %v2712_v25 = vadd.f32 %v2680_v42, %v2612_v57  ;;  %v2628_v38 = vadd.f32 %v2596_v4, %v2528_v36  ;;  %v2696_v34 = vsel %vm2661_vm5, %v7148_v31, 0.0  ;;  %v2796_v1 = vsel %vm2761_vm7, %v7153_v32, 0.0 }
 0x1ef   : > { %v2117_v9 = vsel %vm2082_vm11, %v6956_v0, 0.0  ;;  %v2217_v39 = vsel %vm2182_vm12, %v6963_v43, 0.0  ;;  %v2317_v54 = vsel %vm2282_vm13, %v6968_v49, 0.0  ;;  %vm2476_vm8 = vcmp.eq.s32.totalorder %v5485_v17, %v7129_v47 }
 0x1f0   : > { %v2812_v52 = vadd.f32 %v2780_v44, %v2712_v25  ;;  %v2728_v13 = vadd.f32 %v2696_v34, %v2628_v38  ;;  %v2149_v3 = vadd.f32 %v2117_v9, %v2049_v56  ;;  %v2511_v2 = vsel %vm2476_vm8, %v7134_v46, 0.0 }
 0x1f1   : > { %vm2544_vm9 = vcmp.eq.s32.totalorder %v5485_v17, %v7131_v53  ;;  %vm2644_vm11 = vcmp.eq.s32.totalorder %v5485_v17, %v7136_v61  ;;  %vm2744_vm12 = vcmp.eq.s32.totalorder %v5485_v17, %v7150_v8  ;;  %vm2492_vm13 = vcmp.eq.s32.totalorder %v5488_v18, %v7129_v47 }
 0x1f2   : > { %2829 = vmatpush.msra.mxu0 %v2812_v52  ;;  %v2828_v26 = vadd.f32 %v2796_v1, %v2728_v13  ;;  %v2249_v33 = vadd.f32 %v2217_v39, %v2149_v3  ;;  %v2579_v58 = vsel %vm2544_vm9, %v7143_v55, 0.0  ;;  %v2679_v56 = vsel %vm2644_vm11, %v7148_v31, 0.0 }
 0x1f3   : > { %v2611_v57 = vadd.f32 %v2579_v58, %v2511_v2  ;;  %v2779_v42 = vsel %vm2744_vm12, %v7153_v32, 0.0  ;;  %v2527_v36 = vsel %vm2492_vm13, %v7134_v46, 0.0  ;;  %vm2560_vm10 = vcmp.eq.s32.totalorder %v5488_v18, %v7131_v53 }
 0x1f4   : > { %2849 = vmatpush.msra.mxu1 %v2828_v26  ;;  %v2349_v44 = vadd.f32 %v2317_v54, %v2249_v33  ;;  %v2595_v4 = vsel %vm2560_vm10, %v7143_v55, 0.0  ;;  %vm2660_vm15 = vcmp.eq.s32.totalorder %v5488_v18, %v7136_v61  ;;  %vm2760_vm14 = vcmp.eq.s32.totalorder %v5488_v18, %v7150_v8 }
 0x1f5   : > { %v2711_v25 = vadd.f32 %v2679_v56, %v2611_v57  ;;  %v2627_v38 = vadd.f32 %v2595_v4, %v2527_v36  ;;  %v2695_v34 = vsel %vm2660_vm15, %v7148_v31, 0.0  ;;  %v2795_v1 = vsel %vm2760_vm14, %v7153_v32, 0.0 }
 0x1f6   : > { %2376 = vmatpush.msrb.mxu3 %v2349_v44  ;;  %vm1997_vm0 = vcmp.eq.s32.totalorder %v5503_v22, %v6942_v48  ;;  %vm2065_vm1 = vcmp.eq.s32.totalorder %v5503_v22, %v6944_v35  ;;  %vm2165_vm2 = vcmp.eq.s32.totalorder %v5503_v22, %v6949_v28  ;;  %vm2265_vm3 = vcmp.eq.s32.totalorder %v5503_v22, %v6965_v41 }
 0x1f7   : > { %v2811_v9 = vadd.f32 %v2779_v42, %v2711_v25  ;;  %v2727_v39 = vadd.f32 %v2695_v34, %v2627_v38  ;;  %v2032_v54 = vsel %vm1997_vm0, %v6947_v50, 0.0  ;;  %v2100_v52 = vsel %vm2065_vm1, %v6956_v0, 0.0  ;;  %v7242_v38 = vld [vmem:[#allocation1 + $0x5] ss:$9 sm:$0xff] }
 0x1f8   : > { %v2132_v13 = vadd.f32 %v2100_v52, %v2032_v54  ;;  %v2200_v3 = vsel %vm2165_vm2, %v6963_v43, 0.0  ;;  %v2300_v2 = vsel %vm2265_vm3, %v6968_v49, 0.0  ;;  %vm2013_vm4 = vcmp.eq.s32.totalorder %v5610_v63, %v6942_v48  ;;  %2913 = vst [vmem:[#allocation1] sm:$0xff] %v5398_v40 }
 0x1f9   : > { %2830 = vmatpush.msra.mxu0 %v2811_v9  ;;  %v2827_v26 = vadd.f32 %v2795_v1, %v2727_v39  ;;  %v2048_v33 = vsel %vm2013_vm4, %v6947_v50, 0.0  ;;  %vm2081_vm6 = vcmp.eq.s32.totalorder %v5610_v63, %v6944_v35  ;;  %vm2181_vm5 = vcmp.eq.s32.totalorder %v5610_v63, %v6949_v28 }
 0x1fa   : > { %v2232_v58 = vadd.f32 %v2200_v3, %v2132_v13  ;;  %v2116_v56 = vsel %vm2081_vm6, %v6956_v0, 0.0  ;;  %v2216_v57 = vsel %vm2181_vm5, %v6963_v43, 0.0  ;;  %vm2281_vm7 = vcmp.eq.s32.totalorder %v5610_v63, %v6965_v41 }
 0x1fb   : > { %2850 = vmatpush.msra.mxu1 %v2827_v26  ;;  %v2148_v42 = vadd.f32 %v2116_v56, %v2048_v33  ;;  %v2316_v36 = vsel %vm2281_vm7, %v6968_v49, 0.0  ;;  %vm2475_vm8 = vcmp.eq.s32.totalorder %v5491_v19, %v7129_v47  ;;  %vm2543_vm9 = vcmp.eq.s32.totalorder %v5491_v19, %v7131_v53 }
 0x1fc   : > { %v2332_v44 = vadd.f32 %v2300_v2, %v2232_v58  ;;  %v2510_v4 = vsel %vm2475_vm8, %v7134_v46, 0.0  ;;  %v2578_v25 = vsel %vm2543_vm9, %v7143_v55, 0.0  ;;  %vm2643_vm11 = vcmp.eq.s32.totalorder %v5491_v19, %v7136_v61 }
 0x1fd   : > { %v2248_v34 = vadd.f32 %v2216_v57, %v2148_v42  ;;  %v2610_v1 = vadd.f32 %v2578_v25, %v2510_v4  ;;  %v2678_v9 = vsel %vm2643_vm11, %v7148_v31, 0.0  ;;  %vm2743_vm12 = vcmp.eq.s32.totalorder %v5491_v19, %v7150_v8 }
 0x1fe   : > { %2357 = vmatpush.msrb.mxu2 %v2332_v44  ;;  %v2778_v39 = vsel %vm2743_vm12, %v7153_v32, 0.0  ;;  %vm2491_vm13 = vcmp.eq.s32.totalorder %v5494_v20, %v7129_v47  ;;  %vm2559_vm10 = vcmp.eq.s32.totalorder %v5494_v20, %v7131_v53  ;;  %vm2659_vm15 = vcmp.eq.s32.totalorder %v5494_v20, %v7136_v61 }
 0x1ff   : > { %v2348_v54 = vadd.f32 %v2316_v36, %v2248_v34  ;;  %v2710_v52 = vadd.f32 %v2678_v9, %v2610_v1  ;;  %v2526_v13 = vsel %vm2491_vm13, %v7134_v46, 0.0  ;;  %v2594_v3 = vsel %vm2559_vm10, %v7143_v55, 0.0 }
 0x200   : > { %v2626_v2 = vadd.f32 %v2594_v3, %v2526_v13  ;;  %v2694_v26 = vsel %vm2659_vm15, %v7148_v31, 0.0  ;;  %vm2759_vm14 = vcmp.eq.s32.totalorder %v5494_v20, %v7150_v8  ;;  %vm1996_vm0 = vcmp.eq.s32.totalorder %v5613_v23, %v6942_v48 }
 0x201   : > { %2377 = vmatpush.msrb.mxu3 %v2348_v54  ;;  %v2810_v33 = vadd.f32 %v2778_v39, %v2710_v52  ;;  %v2794_v58 = vsel %vm2759_vm14, %v7153_v32, 0.0  ;;  %v2031_v56 = vsel %vm1996_vm0, %v6947_v50, 0.0  ;;  %vm2064_vm1 = vcmp.eq.s32.totalorder %v5613_v23, %v6944_v35  ;;  %v7284_v54 = vld [vmem:[#allocation1 + $0x5] ss:$9 sm:$0xff] }
 0x202   : > { %v2726_v57 = vadd.f32 %v2694_v26, %v2626_v2  ;;  %v2099_v42 = vsel %vm2064_vm1, %v6956_v0, 0.0  ;;  %vm2164_vm2 = vcmp.eq.s32.totalorder %v5613_v23, %v6949_v28  ;;  %vm2264_vm3 = vcmp.eq.s32.totalorder %v5613_v23, %v6965_v41  ;;  %2921 = vst [vmem:[#allocation1] sm:$0xff] %v5398_v40 }
 0x203   : > { %2831 = vmatpush.msra.mxu0 %v2810_v33  ;;  %v2131_v36 = vadd.f32 %v2099_v42, %v2031_v56  ;;  %v2199_v44 = vsel %vm2164_vm2, %v6963_v43, 0.0  ;;  %v2299_v4 = vsel %vm2264_vm3, %v6968_v49, 0.0  ;;  %vm2012_vm4 = vcmp.eq.s32.totalorder %v5616_v24, %v6942_v48 }
 0x204   : > { %v2826_v25 = vadd.f32 %v2794_v58, %v2726_v57  ;;  %v2047_v34 = vsel %vm2012_vm4, %v6947_v50, 0.0  ;;  %vm2080_vm6 = vcmp.eq.s32.totalorder %v5616_v24, %v6944_v35  ;;  %vm2180_vm5 = vcmp.eq.s32.totalorder %v5616_v24, %v6949_v28 }
 0x205   : > { %v2231_v1 = vadd.f32 %v2199_v44, %v2131_v36  ;;  %v2115_v9 = vsel %vm2080_vm6, %v6956_v0, 0.0  ;;  %v2215_v39 = vsel %vm2180_vm5, %v6963_v43, 0.0  ;;  %vm2280_vm7 = vcmp.eq.s32.totalorder %v5616_v24, %v6965_v41 }
 0x206   : > { %2851 = vmatpush.msra.mxu1 %v2826_v25  ;;  %v2147_v52 = vadd.f32 %v2115_v9, %v2047_v34  ;;  %v2315_v13 = vsel %vm2280_vm7, %v6968_v49, 0.0  ;;  %vm2474_vm8 = vcmp.eq.s32.totalorder %v5497_v5, %v7129_v47  ;;  %vm2542_vm9 = vcmp.eq.s32.totalorder %v5497_v5, %v7131_v53 }
 0x207   : > { %v2331_v3 = vadd.f32 %v2299_v4, %v2231_v1  ;;  %v2509_v2 = vsel %vm2474_vm8, %v7134_v46, 0.0  ;;  %v2577_v26 = vsel %vm2542_vm9, %v7143_v55, 0.0  ;;  %vm2642_vm11 = vcmp.eq.s32.totalorder %v5497_v5, %v7136_v61 }
 0x208   : > { %v2247_v33 = vadd.f32 %v2215_v39, %v2147_v52  ;;  %v2609_v58 = vadd.f32 %v2577_v26, %v2509_v2  ;;  %v2677_v56 = vsel %vm2642_vm11, %v7148_v31, 0.0  ;;  %vm2742_vm12 = vcmp.eq.s32.totalorder %v5497_v5, %v7150_v8 }
 0x209   : > { %2358 = vmatpush.msrb.mxu2 %v2331_v3  ;;  %v2777_v57 = vsel %vm2742_vm12, %v7153_v32, 0.0  ;;  %vm2490_vm13 = vcmp.eq.s32.totalorder %v5500_v21, %v7129_v47  ;;  %vm2558_vm10 = vcmp.eq.s32.totalorder %v5500_v21, %v7131_v53  ;;  %vm2658_vm15 = vcmp.eq.s32.totalorder %v5500_v21, %v7136_v61  ;;  %v7322_v3 = vld [vmem:[#allocation1 + $0x5] ss:$9 sm:$0xff] }
 0x20a   : > { %v2347_v42 = vadd.f32 %v2315_v13, %v2247_v33  ;;  %v2709_v36 = vadd.f32 %v2677_v56, %v2609_v58  ;;  %v2525_v44 = vsel %vm2490_vm13, %v7134_v46, 0.0  ;;  %v2593_v4 = vsel %vm2558_vm10, %v7143_v55, 0.0  ;;  %2929 = vst [vmem:[#allocation1] sm:$0xff] %v5398_v40 }
 0x20b   : > { %v2625_v25 = vadd.f32 %v2593_v4, %v2525_v44  ;;  %v2693_v34 = vsel %vm2658_vm15, %v7148_v31, 0.0  ;;  %vm2758_vm14 = vcmp.eq.s32.totalorder %v5500_v21, %v7150_v8  ;;  %vm1995_vm0 = vcmp.eq.s32.totalorder %v5620_v29, %v6942_v48 }
 0x20c   : > { %2378 = vmatpush.msrb.mxu3 %v2347_v42  ;;  %v2809_v1 = vadd.f32 %v2777_v57, %v2709_v36  ;;  %v2793_v9 = vsel %vm2758_vm14, %v7153_v32, 0.0  ;;  %v2030_v39 = vsel %vm1995_vm0, %v6947_v50, 0.0  ;;  %vm2063_vm1 = vcmp.eq.s32.totalorder %v5620_v29, %v6944_v35 }
 0x20d   : > { %v2725_v52 = vadd.f32 %v2693_v34, %v2625_v25  ;;  %v2098_v13 = vsel %vm2063_vm1, %v6956_v0, 0.0  ;;  %vm2163_vm2 = vcmp.eq.s32.totalorder %v5620_v29, %v6949_v28  ;;  %vm2263_vm3 = vcmp.eq.s32.totalorder %v5620_v29, %v6965_v41 }
 0x20e   : > { %2832 = vmatpush.msra.mxu0 %v2809_v1  ;;  %v2130_v2 = vadd.f32 %v2098_v13, %v2030_v39  ;;  %v2198_v26 = vsel %vm2163_vm2, %v6963_v43, 0.0  ;;  %v2298_v33 = vsel %vm2263_vm3, %v6968_v49, 0.0  ;;  %vm2011_vm4 = vcmp.eq.s32.totalorder %v5623_v30, %v6942_v48 }
 0x20f   : > { %v2825_v58 = vadd.f32 %v2793_v9, %v2725_v52  ;;  %v2046_v56 = vsel %vm2011_vm4, %v6947_v50, 0.0  ;;  %vm2079_vm6 = vcmp.eq.s32.totalorder %v5623_v30, %v6944_v35  ;;  %vm2179_vm5 = vcmp.eq.s32.totalorder %v5623_v30, %v6949_v28 }
 0x210   : > { %v2230_v57 = vadd.f32 %v2198_v26, %v2130_v2  ;;  %v2114_v42 = vsel %vm2079_vm6, %v6956_v0, 0.0  ;;  %v2214_v36 = vsel %vm2179_vm5, %v6963_v43, 0.0  ;;  %vm2279_vm7 = vcmp.eq.s32.totalorder %v5623_v30, %v6965_v41 }
 0x211   : > { %2852 = vmatpush.msra.mxu1 %v2825_v58  ;;  %v2146_v44 = vadd.f32 %v2114_v42, %v2046_v56  ;;  %v2314_v4 = vsel %vm2279_vm7, %v6968_v49, 0.0  ;;  %vm2473_vm8 = vcmp.eq.s32.totalorder %v5503_v22, %v7129_v47  ;;  %vm2541_vm9 = vcmp.eq.s32.totalorder %v5503_v22, %v7131_v53  ;;  %v7359_v56 = vld [vmem:[#allocation1 + $0x5] ss:$9 sm:$0xff] }
 0x212   : > { %v2330_v25 = vadd.f32 %v2298_v33, %v2230_v57  ;;  %v2508_v34 = vsel %vm2473_vm8, %v7134_v46, 0.0  ;;  %v2576_v1 = vsel %vm2541_vm9, %v7143_v55, 0.0  ;;  %vm2641_vm11 = vcmp.eq.s32.totalorder %v5503_v22, %v7136_v61  ;;  %3350 = vst [vmem:[#allocation1] sm:$0xff] %v7063_v51 }
 0x213   : > { %v2246_v9 = vadd.f32 %v2214_v36, %v2146_v44  ;;  %v2608_v39 = vadd.f32 %v2576_v1, %v2508_v34  ;;  %v2676_v52 = vsel %vm2641_vm11, %v7148_v31, 0.0  ;;  %vm2741_vm12 = vcmp.eq.s32.totalorder %v5503_v22, %v7150_v8 }
 0x214   : > { %2359 = vmatpush.msrb.mxu2 %v2330_v25  ;;  %v2776_v13 = vsel %vm2741_vm12, %v7153_v32, 0.0  ;;  %vm2489_vm13 = vcmp.eq.s32.totalorder %v5610_v63, %v7129_v47  ;;  %vm2557_vm10 = vcmp.eq.s32.totalorder %v5610_v63, %v7131_v53  ;;  %vm2657_vm15 = vcmp.eq.s32.totalorder %v5610_v63, %v7136_v61 }
 0x215   : > { %v2346_v2 = vadd.f32 %v2314_v4, %v2246_v9  ;;  %v2708_v26 = vadd.f32 %v2676_v52, %v2608_v39  ;;  %v2524_v33 = vsel %vm2489_vm13, %v7134_v46, 0.0  ;;  %v2592_v58 = vsel %vm2557_vm10, %v7143_v55, 0.0 }
 0x216   : > { %v2624_v57 = vadd.f32 %v2592_v58, %v2524_v33  ;;  %v2692_v42 = vsel %vm2657_vm15, %v7148_v31, 0.0  ;;  %vm2757_vm14 = vcmp.eq.s32.totalorder %v5610_v63, %v7150_v8  ;;  %vm1994_vm0 = vcmp.eq.s32.totalorder %v5692_v59, %v6942_v48 }
 0x217   : > { %2379 = vmatpush.msrb.mxu3 %v2346_v2  ;;  %v2808_v36 = vadd.f32 %v2776_v13, %v2708_v26  ;;  %v2792_v44 = vsel %vm2757_vm14, %v7153_v32, 0.0  ;;  %v2029_v4 = vsel %vm1994_vm0, %v6947_v50, 0.0  ;;  %vm2062_vm1 = vcmp.eq.s32.totalorder %v5692_v59, %v6944_v35 }
 0x218   : > { %v2724_v25 = vadd.f32 %v2692_v42, %v2624_v57  ;;  %v2097_v34 = vsel %vm2062_vm1, %v6956_v0, 0.0  ;;  %vm2162_vm2 = vcmp.eq.s32.totalorder %v5692_v59, %v6949_v28  ;;  %vm2262_vm3 = vcmp.eq.s32.totalorder %v5692_v59, %v6965_v41 }
 0x219   : > { %2833 = vmatpush.msra.mxu0 %v2808_v36  ;;  %v2129_v1 = vadd.f32 %v2097_v34, %v2029_v4  ;;  %v2197_v9 = vsel %vm2162_vm2, %v6963_v43, 0.0  ;;  %v2297_v39 = vsel %vm2262_vm3, %v6968_v49, 0.0  ;;  %vm2010_vm4 = vcmp.eq.s32.totalorder %v5695_v60, %v6942_v48 }
 0x21a   : > { %v2824_v52 = vadd.f32 %v2792_v44, %v2724_v25  ;;  %v2045_v13 = vsel %vm2010_vm4, %v6947_v50, 0.0  ;;  %vm2078_vm6 = vcmp.eq.s32.totalorder %v5695_v60, %v6944_v35  ;;  %vm2178_vm5 = vcmp.eq.s32.totalorder %v5695_v60, %v6949_v28 }
 0x21b   : > { %v2229_v2 = vadd.f32 %v2197_v9, %v2129_v1  ;;  %v2113_v26 = vsel %vm2078_vm6, %v6956_v0, 0.0  ;;  %v2213_v33 = vsel %vm2178_vm5, %v6963_v43, 0.0  ;;  %vm2278_vm7 = vcmp.eq.s32.totalorder %v5695_v60, %v6965_v41 }
 0x21c   : > { %2853 = vmatpush.msra.mxu1 %v2824_v52  ;;  %v2145_v58 = vadd.f32 %v2113_v26, %v2045_v13  ;;  %v2313_v57 = vsel %vm2278_vm7, %v6968_v49, 0.0  ;;  %vm2472_vm8 = vcmp.eq.s32.totalorder %v5613_v23, %v7129_v47  ;;  %vm2540_vm9 = vcmp.eq.s32.totalorder %v5613_v23, %v7131_v53 }
 0x21d   : > { %v2329_v42 = vadd.f32 %v2297_v39, %v2229_v2  ;;  %v2507_v36 = vsel %vm2472_vm8, %v7134_v46, 0.0  ;;  %v2575_v44 = vsel %vm2540_vm9, %v7143_v55, 0.0  ;;  %vm2640_vm11 = vcmp.eq.s32.totalorder %v5613_v23, %v7136_v61 }
 0x21e   : > { %v2245_v4 = vadd.f32 %v2213_v33, %v2145_v58  ;;  %v2607_v25 = vadd.f32 %v2575_v44, %v2507_v36  ;;  %v2675_v34 = vsel %vm2640_vm11, %v7148_v31, 0.0  ;;  %vm2740_vm12 = vcmp.eq.s32.totalorder %v5613_v23, %v7150_v8 }
 0x21f   : > { %2360 = vmatpush.msrb.mxu2 %v2329_v42  ;;  %v2775_v1 = vsel %vm2740_vm12, %v7153_v32, 0.0  ;;  %vm2488_vm13 = vcmp.eq.s32.totalorder %v5616_v24, %v7129_v47  ;;  %vm2556_vm10 = vcmp.eq.s32.totalorder %v5616_v24, %v7131_v53  ;;  %vm2656_vm15 = vcmp.eq.s32.totalorder %v5616_v24, %v7136_v61 }
 0x220   : > { %v2345_v9 = vadd.f32 %v2313_v57, %v2245_v4  ;;  %v2707_v39 = vadd.f32 %v2675_v34, %v2607_v25  ;;  %v2523_v52 = vsel %vm2488_vm13, %v7134_v46, 0.0  ;;  %v2591_v13 = vsel %vm2556_vm10, %v7143_v55, 0.0 }
 0x221   : > { %v2623_v2 = vadd.f32 %v2591_v13, %v2523_v52  ;;  %v2691_v26 = vsel %vm2656_vm15, %v7148_v31, 0.0  ;;  %vm2756_vm14 = vcmp.eq.s32.totalorder %v5616_v24, %v7150_v8  ;;  %vm1993_vm0 = vcmp.eq.s32.totalorder %v5698_v62, %v6942_v48 }
 0x222   : > { %2380 = vmatpush.msrb.mxu3 %v2345_v9  ;;  %v2807_v33 = vadd.f32 %v2775_v1, %v2707_v39  ;;  %v2791_v58 = vsel %vm2756_vm14, %v7153_v32, 0.0  ;;  %v2028_v57 = vsel %vm1993_vm0, %v6947_v50, 0.0  ;;  %vm2061_vm1 = vcmp.eq.s32.totalorder %v5698_v62, %v6944_v35 }
 0x223   : > { %v2723_v42 = vadd.f32 %v2691_v26, %v2623_v2  ;;  %v2096_v36 = vsel %vm2061_vm1, %v6956_v0, 0.0  ;;  %vm2161_vm2 = vcmp.eq.s32.totalorder %v5698_v62, %v6949_v28  ;;  %vm2261_vm3 = vcmp.eq.s32.totalorder %v5698_v62, %v6965_v41 }
 0x224   : > { %2834 = vmatpush.msra.mxu0 %v2807_v33  ;;  %v2128_v44 = vadd.f32 %v2096_v36, %v2028_v57  ;;  %v2196_v4 = vsel %vm2161_vm2, %v6963_v43, 0.0  ;;  %v2296_v25 = vsel %vm2261_vm3, %v6968_v49, 0.0  ;;  %vm2009_vm4 = vcmp.eq.s32.totalorder %v9895_v12, %v6942_v48 }
 0x225   : > { %v2823_v34 = vadd.f32 %v2791_v58, %v2723_v42  ;;  %v2044_v1 = vsel %vm2009_vm4, %v6947_v50, 0.0  ;;  %vm2077_vm6 = vcmp.eq.s32.totalorder %v9895_v12, %v6944_v35  ;;  %vm2177_vm5 = vcmp.eq.s32.totalorder %v9895_v12, %v6949_v28 }
 0x226   : > { %v2228_v9 = vadd.f32 %v2196_v4, %v2128_v44  ;;  %v2112_v39 = vsel %vm2077_vm6, %v6956_v0, 0.0  ;;  %v2212_v52 = vsel %vm2177_vm5, %v6963_v43, 0.0  ;;  %vm2277_vm7 = vcmp.eq.s32.totalorder %v9895_v12, %v6965_v41 }
 0x227   : > { %2854 = vmatpush.msra.mxu1 %v2823_v34  ;;  %v2144_v13 = vadd.f32 %v2112_v39, %v2044_v1  ;;  %v2312_v2 = vsel %vm2277_vm7, %v6968_v49, 0.0  ;;  %vm2471_vm8 = vcmp.eq.s32.totalorder %v5620_v29, %v7129_v47  ;;  %vm2539_vm9 = vcmp.eq.s32.totalorder %v5620_v29, %v7131_v53 }
 0x228   : > { %v2328_v26 = vadd.f32 %v2296_v25, %v2228_v9  ;;  %v2506_v33 = vsel %vm2471_vm8, %v7134_v46, 0.0  ;;  %v2574_v58 = vsel %vm2539_vm9, %v7143_v55, 0.0  ;;  %vm2639_vm11 = vcmp.eq.s32.totalorder %v5620_v29, %v7136_v61 }
 0x229   : > { %v2244_v57 = vadd.f32 %v2212_v52, %v2144_v13  ;;  %v2606_v42 = vadd.f32 %v2574_v58, %v2506_v33  ;;  %v2674_v36 = vsel %vm2639_vm11, %v7148_v31, 0.0  ;;  %vm2739_vm12 = vcmp.eq.s32.totalorder %v5620_v29, %v7150_v8 }
 0x22a   : > { %2361 = vmatpush.msrb.mxu2 %v2328_v26  ;;  %v2774_v44 = vsel %vm2739_vm12, %v7153_v32, 0.0  ;;  %vm2487_vm13 = vcmp.eq.s32.totalorder %v5623_v30, %v7129_v47  ;;  %vm2555_vm10 = vcmp.eq.s32.totalorder %v5623_v30, %v7131_v53  ;;  %vm2655_vm15 = vcmp.eq.s32.totalorder %v5623_v30, %v7136_v61 }
 0x22b   : > { %v2344_v4 = vadd.f32 %v2312_v2, %v2244_v57  ;;  %v2706_v25 = vadd.f32 %v2674_v36, %v2606_v42  ;;  %v2522_v34 = vsel %vm2487_vm13, %v7134_v46, 0.0  ;;  %v2590_v1 = vsel %vm2555_vm10, %v7143_v55, 0.0  ;;  %v9932_v36 = vld [vmem:[#allocation22_spill] sm:$0xff] }
 0x22c   : > { %v2622_v9 = vadd.f32 %v2590_v1, %v2522_v34  ;;  %v2690_v39 = vsel %vm2655_vm15, %v7148_v31, 0.0  ;;  %vm2755_vm14 = vcmp.eq.s32.totalorder %v5623_v30, %v7150_v8  ;;  %vm1992_vm0 = vcmp.eq.s32.totalorder %v9897_v14, %v6942_v48 }
 0x22d   : > { %2381 = vmatpush.msrb.mxu3 %v2344_v4  ;;  %v2806_v52 = vadd.f32 %v2774_v44, %v2706_v25  ;;  %v2790_v13 = vsel %vm2755_vm14, %v7153_v32, 0.0  ;;  %v2027_v2 = vsel %vm1992_vm0, %v6947_v50, 0.0  ;;  %vm2060_vm1 = vcmp.eq.s32.totalorder %v9897_v14, %v6944_v35 }
 0x22e   : > { %v2722_v26 = vadd.f32 %v2690_v39, %v2622_v9  ;;  %v2095_v33 = vsel %vm2060_vm1, %v6956_v0, 0.0  ;;  %vm2160_vm2 = vcmp.eq.s32.totalorder %v9897_v14, %v6949_v28  ;;  %vm2260_vm3 = vcmp.eq.s32.totalorder %v9897_v14, %v6965_v41 }
 0x22f   : > { %2835 = vmatpush.msra.mxu0 %v2806_v52  ;;  %v2127_v58 = vadd.f32 %v2095_v33, %v2027_v2  ;;  %v2195_v57 = vsel %vm2160_vm2, %v6963_v43, 0.0  ;;  %v2295_v42 = vsel %vm2260_vm3, %v6968_v49, 0.0  ;;  %vm2008_vm4 = vcmp.eq.s32.totalorder %v9932_v36, %v6942_v48 }
 0x230   : > { %v2822_v44 = vadd.f32 %v2790_v13, %v2722_v26  ;;  %v2043_v4 = vsel %vm2008_vm4, %v6947_v50, 0.0  ;;  %vm2076_vm6 = vcmp.eq.s32.totalorder %v9932_v36, %v6944_v35  ;;  %vm2176_vm5 = vcmp.eq.s32.totalorder %v9932_v36, %v6949_v28 }
 0x231   : > { %v2227_v25 = vadd.f32 %v2195_v57, %v2127_v58  ;;  %v2111_v34 = vsel %vm2076_vm6, %v6956_v0, 0.0  ;;  %v2211_v1 = vsel %vm2176_vm5, %v6963_v43, 0.0  ;;  %vm2276_vm7 = vcmp.eq.s32.totalorder %v9932_v36, %v6965_v41 }
 0x232   : > { %2855 = vmatpush.msra.mxu1 %v2822_v44  ;;  %v2143_v9 = vadd.f32 %v2111_v34, %v2043_v4  ;;  %v2311_v39 = vsel %vm2276_vm7, %v6968_v49, 0.0  ;;  %vm2470_vm8 = vcmp.eq.s32.totalorder %v5692_v59, %v7129_v47  ;;  %vm2538_vm9 = vcmp.eq.s32.totalorder %v5692_v59, %v7131_v53 }
 0x233   : > { %v2327_v52 = vadd.f32 %v2295_v42, %v2227_v25  ;;  %v2505_v13 = vsel %vm2470_vm8, %v7134_v46, 0.0  ;;  %v2573_v2 = vsel %vm2538_vm9, %v7143_v55, 0.0  ;;  %vm2638_vm11 = vcmp.eq.s32.totalorder %v5692_v59, %v7136_v61 }
 0x234   : > { %v2243_v26 = vadd.f32 %v2211_v1, %v2143_v9  ;;  %v2605_v33 = vadd.f32 %v2573_v2, %v2505_v13  ;;  %v2673_v58 = vsel %vm2638_vm11, %v7148_v31, 0.0  ;;  %vm2738_vm12 = vcmp.eq.s32.totalorder %v5692_v59, %v7150_v8  ;;  %v9933_v9 = vld [vmem:[#allocation23_spill] sm:$0xff] }
 0x235   : > { %2362 = vmatpush.msrb.mxu2 %v2327_v52  ;;  %v2773_v57 = vsel %vm2738_vm12, %v7153_v32, 0.0  ;;  %vm2486_vm13 = vcmp.eq.s32.totalorder %v5695_v60, %v7129_v47  ;;  %vm2554_vm10 = vcmp.eq.s32.totalorder %v5695_v60, %v7131_v53  ;;  %vm2654_vm15 = vcmp.eq.s32.totalorder %v5695_v60, %v7136_v61 }
 0x236   : > { %v2343_v42 = vadd.f32 %v2311_v39, %v2243_v26  ;;  %v2705_v44 = vadd.f32 %v2673_v58, %v2605_v33  ;;  %v2521_v4 = vsel %vm2486_vm13, %v7134_v46, 0.0  ;;  %v2589_v25 = vsel %vm2554_vm10, %v7143_v55, 0.0 }
 0x237   : > { %v2621_v34 = vadd.f32 %v2589_v25, %v2521_v4  ;;  %v2689_v1 = vsel %vm2654_vm15, %v7148_v31, 0.0  ;;  %vm2754_vm14 = vcmp.eq.s32.totalorder %v5695_v60, %v7150_v8  ;;  %vm1991_vm0 = vcmp.eq.s32.totalorder %v9933_v9, %v6942_v48 }
 0x238   : > { %2382 = vmatpush.msrb.mxu3 %v2343_v42  ;;  %v2805_v52 = vadd.f32 %v2773_v57, %v2705_v44  ;;  %v2789_v13 = vsel %vm2754_vm14, %v7153_v32, 0.0  ;;  %v2026_v39 = vsel %vm1991_vm0, %v6947_v50, 0.0  ;;  %vm2059_vm1 = vcmp.eq.s32.totalorder %v9933_v9, %v6944_v35  ;;  %v9934_v42 = vld [vmem:[#allocation24_spill] sm:$0xff] }
 0x239   : > { %v2721_v2 = vadd.f32 %v2689_v1, %v2621_v34  ;;  %v2094_v26 = vsel %vm2059_vm1, %v6956_v0, 0.0  ;;  %vm2159_vm2 = vcmp.eq.s32.totalorder %v9933_v9, %v6949_v28  ;;  %vm2259_vm3 = vcmp.eq.s32.totalorder %v9933_v9, %v6965_v41 }
 0x23a   : > { %2836 = vmatpush.msra.mxu0 %v2805_v52  ;;  %v2126_v33 = vadd.f32 %v2094_v26, %v2026_v39  ;;  %v2194_v58 = vsel %vm2159_vm2, %v6963_v43, 0.0  ;;  %v2294_v57 = vsel %vm2259_vm3, %v6968_v49, 0.0  ;;  %vm2007_vm4 = vcmp.eq.s32.totalorder %v9934_v42, %v6942_v48 }
 0x23b   : > { %v2821_v44 = vadd.f32 %v2789_v13, %v2721_v2  ;;  %v2042_v4 = vsel %vm2007_vm4, %v6947_v50, 0.0  ;;  %vm2075_vm6 = vcmp.eq.s32.totalorder %v9934_v42, %v6944_v35  ;;  %vm2175_vm5 = vcmp.eq.s32.totalorder %v9934_v42, %v6949_v28 }
 0x23c   : > { %v2226_v25 = vadd.f32 %v2194_v58, %v2126_v33  ;;  %v2110_v34 = vsel %vm2075_vm6, %v6956_v0, 0.0  ;;  %v2210_v1 = vsel %vm2175_vm5, %v6963_v43, 0.0  ;;  %vm2275_vm7 = vcmp.eq.s32.totalorder %v9934_v42, %v6965_v41 }
 0x23d   : > { %2856 = vmatpush.msra.mxu1 %v2821_v44  ;;  %v2142_v52 = vadd.f32 %v2110_v34, %v2042_v4  ;;  %v2310_v13 = vsel %vm2275_vm7, %v6968_v49, 0.0  ;;  %vm2469_vm8 = vcmp.eq.s32.totalorder %v5698_v62, %v7129_v47  ;;  %vm2537_vm9 = vcmp.eq.s32.totalorder %v5698_v62, %v7131_v53  ;;  %v7545_v4 = vld [vmem:[#allocation1 + $0x4] ss:$9 sm:$0xff] }
 0x23e   : > { %v2326_v39 = vadd.f32 %v2294_v57, %v2226_v25  ;;  %v2504_v2 = vsel %vm2469_vm8, %v7134_v46, 0.0  ;;  %v2572_v26 = vsel %vm2537_vm9, %v7143_v55, 0.0  ;;  %vm2637_vm11 = vcmp.eq.s32.totalorder %v5698_v62, %v7136_v61  ;;  %3355 = vst [vmem:[#allocation1] sm:$0xff] %v7063_v51 }
 0x23f   : > { %v2242_v33 = vadd.f32 %v2210_v1, %v2142_v52  ;;  %v2604_v58 = vadd.f32 %v2572_v26, %v2504_v2  ;;  %v2672_v44 = vsel %vm2637_vm11, %v7148_v31, 0.0  ;;  %vm2737_vm12 = vcmp.eq.s32.totalorder %v5698_v62, %v7150_v8  ;;  %v9935_v26 = vld [vmem:[#allocation25_spill] sm:$0xff] }
 0x240   : > { %2363 = vmatpush.msrb.mxu2 %v2326_v39  ;;  %v2772_v34 = vsel %vm2737_vm12, %v7153_v32, 0.0  ;;  %vm2485_vm13 = vcmp.eq.s32.totalorder %v9895_v12, %v7129_v47  ;;  %vm2553_vm10 = vcmp.eq.s32.totalorder %v9895_v12, %v7131_v53  ;;  %vm2653_vm15 = vcmp.eq.s32.totalorder %v9895_v12, %v7136_v61 }
 0x241   : > { %v2342_v57 = vadd.f32 %v2310_v13, %v2242_v33  ;;  %v2704_v25 = vadd.f32 %v2672_v44, %v2604_v58  ;;  %v2520_v1 = vsel %vm2485_vm13, %v7134_v46, 0.0  ;;  %v2588_v52 = vsel %vm2553_vm10, %v7143_v55, 0.0 }
 0x242   : > { %v2620_v39 = vadd.f32 %v2588_v52, %v2520_v1  ;;  %v2688_v2 = vsel %vm2653_vm15, %v7148_v31, 0.0  ;;  %vm2753_vm14 = vcmp.eq.s32.totalorder %v9895_v12, %v7150_v8  ;;  %vm1990_vm0 = vcmp.eq.s32.totalorder %v9935_v26, %v6942_v48 }
 0x243   : > { %2383 = vmatpush.msrb.mxu3 %v2342_v57  ;;  %v2804_v10 = vadd.f32 %v2772_v34, %v2704_v25  ;;  %v2788_v62 = vsel %vm2753_vm14, %v7153_v32, 0.0  ;;  %v2025_v13 = vsel %vm1990_vm0, %v6947_v50, 0.0  ;;  %vm2058_vm1 = vcmp.eq.s32.totalorder %v9935_v26, %v6944_v35  ;;  %v9936_v25 = vld [vmem:[#allocation26_spill] sm:$0xff] }
 0x244   : > { %v2720_v33 = vadd.f32 %v2688_v2, %v2620_v39  ;;  %v2093_v58 = vsel %vm2058_vm1, %v6956_v0, 0.0  ;;  %vm2158_vm2 = vcmp.eq.s32.totalorder %v9935_v26, %v6949_v28  ;;  %vm2258_vm3 = vcmp.eq.s32.totalorder %v9935_v26, %v6965_v41 }
 0x245   : > { %2837 = vmatpush.msra.mxu0 %v2804_v10  ;;  %v2125_v44 = vadd.f32 %v2093_v58, %v2025_v13  ;;  %v2193_v34 = vsel %vm2158_vm2, %v6963_v43, 0.0  ;;  %v2293_v57 = vsel %vm2258_vm3, %v6968_v49, 0.0  ;;  %vm2006_vm4 = vcmp.eq.s32.totalorder %v9936_v25, %v6942_v48  ;;  %v7584_v13 = vld [vmem:[#allocation1 + $0x5] ss:$9 sm:$0xff] }
 0x246   : > { %v2820_v1 = vadd.f32 %v2788_v62, %v2720_v33  ;;  %v2041_v52 = vsel %vm2006_vm4, %v6947_v50, 0.0  ;;  %vm2074_vm6 = vcmp.eq.s32.totalorder %v9936_v25, %v6944_v35  ;;  %vm2174_vm5 = vcmp.eq.s32.totalorder %v9936_v25, %v6949_v28  ;;  %3385 = vst [vmem:[#allocation1] sm:$0xff] %v5398_v40 }
 0x247   : > { %v2225_v39 = vadd.f32 %v2193_v34, %v2125_v44  ;;  %v2109_v10 = vsel %vm2074_vm6, %v6956_v0, 0.0  ;;  %v2209_v2 = vsel %vm2174_vm5, %v6963_v43, 0.0  ;;  %vm2274_vm7 = vcmp.eq.s32.totalorder %v9936_v25, %v6965_v41 }
 0x248   : > { %2857 = vmatpush.msra.mxu1 %v2820_v1  ;;  %v2141_v62 = vadd.f32 %v2109_v10, %v2041_v52  ;;  %v2309_v33 = vsel %vm2274_vm7, %v6968_v49, 0.0  ;;  %vm2468_vm8 = vcmp.eq.s32.totalorder %v9897_v14, %v7129_v47  ;;  %vm2536_vm9 = vcmp.eq.s32.totalorder %v9897_v14, %v7131_v53 }
 0x249   : > { %v2325_v58 = vadd.f32 %v2293_v57, %v2225_v39  ;;  %v2503_v44 = vsel %vm2468_vm8, %v7134_v46, 0.0  ;;  %v2571_v34 = vsel %vm2536_vm9, %v7143_v55, 0.0  ;;  %vm2636_vm11 = vcmp.eq.s32.totalorder %v9897_v14, %v7136_v61 }
 0x24a   : > { %v2241_v1 = vadd.f32 %v2209_v2, %v2141_v62  ;;  %v2603_v52 = vadd.f32 %v2571_v34, %v2503_v44  ;;  %v2671_v10 = vsel %vm2636_vm11, %v7148_v31, 0.0  ;;  %vm2736_vm12 = vcmp.eq.s32.totalorder %v9897_v14, %v7150_v8  ;;  %v9937_v34 = vld [vmem:[#allocation27_spill] sm:$0xff] }
 0x24b   : > { %2364 = vmatpush.msrb.mxu2 %v2325_v58  ;;  %v2771_v12 = vsel %vm2736_vm12, %v7153_v32, 0.0  ;;  %vm2484_vm13 = vcmp.eq.s32.totalorder %v9932_v36, %v7129_v47  ;;  %vm2552_vm10 = vcmp.eq.s32.totalorder %v9932_v36, %v7131_v53  ;;  %vm2652_vm15 = vcmp.eq.s32.totalorder %v9932_v36, %v7136_v61 }
 0x24c   : > { %v2341_v57 = vadd.f32 %v2309_v33, %v2241_v1  ;;  %v2703_v39 = vadd.f32 %v2671_v10, %v2603_v52  ;;  %v2519_v2 = vsel %vm2484_vm13, %v7134_v46, 0.0  ;;  %v2587_v62 = vsel %vm2552_vm10, %v7143_v55, 0.0 }
 0x24d   : > { %v2619_v44 = vadd.f32 %v2587_v62, %v2519_v2  ;;  %v2687_v58 = vsel %vm2652_vm15, %v7148_v31, 0.0  ;;  %vm2752_vm14 = vcmp.eq.s32.totalorder %v9932_v36, %v7150_v8  ;;  %vm1989_vm0 = vcmp.eq.s32.totalorder %v9937_v34, %v6942_v48  ;;  %v7626_v2 = vld [vmem:[#allocation1 + $0x6] ss:$9 sm:$0xff] }
 0x24e   : > { %2384 = vmatpush.msrb.mxu3 %v2341_v57  ;;  %v2803_v14 = vadd.f32 %v2771_v12, %v2703_v39  ;;  %v2787_v60 = vsel %vm2752_vm14, %v7153_v32, 0.0  ;;  %v2024_v33 = vsel %vm1989_vm0, %v6947_v50, 0.0  ;;  %vm2057_vm1 = vcmp.eq.s32.totalorder %v9937_v34, %v6944_v35  ;;  %v9938_v39 = vld [vmem:[#allocation28_spill] sm:$0xff]  ;;  %3393 = vst [vmem:[#allocation1] sm:$0xff] %v5398_v40 }
 0x24f   : > { %v2719_v1 = vadd.f32 %v2687_v58, %v2619_v44  ;;  %v2092_v52 = vsel %vm2057_vm1, %v6956_v0, 0.0  ;;  %vm2157_vm2 = vcmp.eq.s32.totalorder %v9937_v34, %v6949_v28  ;;  %vm2257_vm3 = vcmp.eq.s32.totalorder %v9937_v34, %v6965_v41 }
 0x250   : > { %2838 = vmatpush.msra.mxu0 %v2803_v14  ;;  %v2124_v10 = vadd.f32 %v2092_v52, %v2024_v33  ;;  %v2192_v12 = vsel %vm2157_vm2, %v6963_v43, 0.0  ;;  %v2292_v57 = vsel %vm2257_vm3, %v6968_v49, 0.0  ;;  %vm2005_vm4 = vcmp.eq.s32.totalorder %v9938_v39, %v6942_v48 }
 0x251   : > { %v2819_v62 = vadd.f32 %v2787_v60, %v2719_v1  ;;  %v2040_v44 = vsel %vm2005_vm4, %v6947_v50, 0.0  ;;  %vm2073_vm6 = vcmp.eq.s32.totalorder %v9938_v39, %v6944_v35  ;;  %vm2173_vm5 = vcmp.eq.s32.totalorder %v9938_v39, %v6949_v28 }
 0x252   : > { %v2224_v14 = vadd.f32 %v2192_v12, %v2124_v10  ;;  %v2108_v58 = vsel %vm2073_vm6, %v6956_v0, 0.0  ;;  %v2208_v33 = vsel %vm2173_vm5, %v6963_v43, 0.0  ;;  %vm2273_vm7 = vcmp.eq.s32.totalorder %v9938_v39, %v6965_v41 }
 0x253   : > { %2858 = vmatpush.msra.mxu1 %v2819_v62  ;;  %v2140_v60 = vadd.f32 %v2108_v58, %v2040_v44  ;;  %v2308_v1 = vsel %vm2273_vm7, %v6968_v49, 0.0  ;;  %vm2467_vm8 = vcmp.eq.s32.totalorder %v9933_v9, %v7129_v47  ;;  %vm2535_vm9 = vcmp.eq.s32.totalorder %v9933_v9, %v7131_v53 }
 0x254   : > { %v2324_v52 = vadd.f32 %v2292_v57, %v2224_v14  ;;  %v2502_v10 = vsel %vm2467_vm8, %v7134_v46, 0.0  ;;  %v2570_v12 = vsel %vm2535_vm9, %v7143_v55, 0.0  ;;  %vm2635_vm11 = vcmp.eq.s32.totalorder %v9933_v9, %v7136_v61 }
 0x255   : > { %v2240_v36 = vadd.f32 %v2208_v33, %v2140_v60  ;;  %v2602_v59 = vadd.f32 %v2570_v12, %v2502_v10  ;;  %v2670_v62 = vsel %vm2635_vm11, %v7148_v31, 0.0  ;;  %vm2735_vm12 = vcmp.eq.s32.totalorder %v9933_v9, %v7150_v8  ;;  %v9939_v10 = vld [vmem:[#allocation29_spill] sm:$0xff] }
 0x256   : > { %2365 = vmatpush.msrb.mxu2 %v2324_v52  ;;  %v2770_v44 = vsel %vm2735_vm12, %v7153_v32, 0.0  ;;  %vm2483_vm13 = vcmp.eq.s32.totalorder %v9934_v42, %v7129_v47  ;;  %vm2551_vm10 = vcmp.eq.s32.totalorder %v9934_v42, %v7131_v53  ;;  %vm2651_vm15 = vcmp.eq.s32.totalorder %v9934_v42, %v7136_v61 }
 0x257   : > { %v2340_v57 = vadd.f32 %v2308_v1, %v2240_v36  ;;  %v2702_v14 = vadd.f32 %v2670_v62, %v2602_v59  ;;  %v2518_v58 = vsel %vm2483_vm13, %v7134_v46, 0.0  ;;  %v2586_v33 = vsel %vm2551_vm10, %v7143_v55, 0.0  ;;  %v7668_v59 = vld [vmem:[#allocation1 + $0x6] ss:$9 sm:$0xff] }
 0x258   : > { %v2618_v60 = vadd.f32 %v2586_v33, %v2518_v58  ;;  %v2686_v52 = vsel %vm2651_vm15, %v7148_v31, 0.0  ;;  %vm2751_vm14 = vcmp.eq.s32.totalorder %v9934_v42, %v7150_v8  ;;  %vm1988_vm0 = vcmp.eq.s32.totalorder %v9939_v10, %v6942_v48  ;;  %3401 = vst [vmem:[#allocation1] sm:$0xff] %v5398_v40  ;;  %v9940_v58 = vld [vmem:[#allocation30_spill] sm:$0xff] }
 0x259   : > { %2385 = vmatpush.msrb.mxu3 %v2340_v57  ;;  %v2802_v12 = vadd.f32 %v2770_v44, %v2702_v14  ;;  %v2786_v9 = vsel %vm2751_vm14, %v7153_v32, 0.0  ;;  %v2023_v36 = vsel %vm1988_vm0, %v6947_v50, 0.0  ;;  %vm2056_vm1 = vcmp.eq.s32.totalorder %v9939_v10, %v6944_v35 }
 0x25a   : > { %v2718_v1 = vadd.f32 %v2686_v52, %v2618_v60  ;;  %v2091_v62 = vsel %vm2056_vm1, %v6956_v0, 0.0  ;;  %vm2156_vm2 = vcmp.eq.s32.totalorder %v9939_v10, %v6949_v28  ;;  %vm2256_vm3 = vcmp.eq.s32.totalorder %v9939_v10, %v6965_v41 }
 0x25b   : > { %2839 = vmatpush.msra.mxu0 %v2802_v12  ;;  %v2123_v44 = vadd.f32 %v2091_v62, %v2023_v36  ;;  %v2191_v57 = vsel %vm2156_vm2, %v6963_v43, 0.0  ;;  %v2291_v14 = vsel %vm2256_vm3, %v6968_v49, 0.0  ;;  %vm2004_vm4 = vcmp.eq.s32.totalorder %v9940_v58, %v6942_v48 }
 0x25c   : > { %v2818_v33 = vadd.f32 %v2786_v9, %v2718_v1  ;;  %v2039_v60 = vsel %vm2004_vm4, %v6947_v50, 0.0  ;;  %vm2072_vm6 = vcmp.eq.s32.totalorder %v9940_v58, %v6944_v35  ;;  %vm2172_vm5 = vcmp.eq.s32.totalorder %v9940_v58, %v6949_v28 }
 0x25d   : > { %v2223_v52 = vadd.f32 %v2191_v57, %v2123_v44  ;;  %v2107_v12 = vsel %vm2072_vm6, %v6956_v0, 0.0  ;;  %v2207_v36 = vsel %vm2172_vm5, %v6963_v43, 0.0  ;;  %vm2272_vm7 = vcmp.eq.s32.totalorder %v9940_v58, %v6965_v41 }
 0x25e   : > { %2859 = vmatpush.msra.mxu1 %v2818_v33  ;;  %v2139_v62 = vadd.f32 %v2107_v12, %v2039_v60  ;;  %v2307_v9 = vsel %vm2272_vm7, %v6968_v49, 0.0  ;;  %vm2466_vm8 = vcmp.eq.s32.totalorder %v9935_v26, %v7129_v47  ;;  %vm2534_vm9 = vcmp.eq.s32.totalorder %v9935_v26, %v7131_v53 }
 0x25f   : > { %v2323_v1 = vadd.f32 %v2291_v14, %v2223_v52  ;;  %v2501_v44 = vsel %vm2466_vm8, %v7134_v46, 0.0  ;;  %v2569_v57 = vsel %vm2534_vm9, %v7143_v55, 0.0  ;;  %vm2634_vm11 = vcmp.eq.s32.totalorder %v9935_v26, %v7136_v61  ;;  %v7708_v14 = vld [vmem:[#allocation1 + $0x6] ss:$9 sm:$0xff] }
 0x260   : > { %v2239_v42 = vadd.f32 %v2207_v36, %v2139_v62  ;;  %v2601_v30 = vadd.f32 %v2569_v57, %v2501_v44  ;;  %v2669_v33 = vsel %vm2634_vm11, %v7148_v31, 0.0  ;;  %vm2734_vm12 = vcmp.eq.s32.totalorder %v9935_v26, %v7150_v8  ;;  %3409 = vst [vmem:[#allocation1] sm:$0xff] %v5398_v40  ;;  %v9941_v57 = vld [vmem:[#allocation32_spill] sm:$0xff] }
 0x261   : > { %2366 = vmatpush.msrb.mxu2 %v2323_v1  ;;  %v2769_v60 = vsel %vm2734_vm12, %v7153_v32, 0.0  ;;  %vm2482_vm13 = vcmp.eq.s32.totalorder %v9936_v25, %v7129_v47  ;;  %vm2550_vm10 = vcmp.eq.s32.totalorder %v9936_v25, %v7131_v53  ;;  %vm2650_vm15 = vcmp.eq.s32.totalorder %v9936_v25, %v7136_v61 }
 0x262   : > { %v2339_v52 = vadd.f32 %v2307_v9, %v2239_v42  ;;  %v2701_v12 = vadd.f32 %v2669_v33, %v2601_v30  ;;  %v2517_v36 = vsel %vm2482_vm13, %v7134_v46, 0.0  ;;  %v2585_v62 = vsel %vm2550_vm10, %v7143_v55, 0.0 }
 0x263   : > { %v2617_v1 = vadd.f32 %v2585_v62, %v2517_v36  ;;  %v2685_v44 = vsel %vm2650_vm15, %v7148_v31, 0.0  ;;  %vm2750_vm14 = vcmp.eq.s32.totalorder %v9936_v25, %v7150_v8  ;;  %vm1987_vm0 = vcmp.eq.s32.totalorder %v9941_v57, %v6942_v48 }
 0x264   : > { %2386 = vmatpush.msrb.mxu3 %v2339_v52  ;;  %v2801_v26 = vadd.f32 %v2769_v60, %v2701_v12  ;;  %v2785_v42 = vsel %vm2750_vm14, %v7153_v32, 0.0  ;;  %v2022_v30 = vsel %vm1987_vm0, %v6947_v50, 0.0  ;;  %vm2055_vm1 = vcmp.eq.s32.totalorder %v9941_v57, %v6944_v35 }
 0x265   : > { %v2717_v9 = vadd.f32 %v2685_v44, %v2617_v1  ;;  %v2090_v33 = vsel %vm2055_vm1, %v6956_v0, 0.0  ;;  %vm2155_vm2 = vcmp.eq.s32.totalorder %v9941_v57, %v6949_v28  ;;  %vm2255_vm3 = vcmp.eq.s32.totalorder %v9941_v57, %v6965_v41 }
 0x266   : > { %2840 = vmatpush.msra.mxu0 %v2801_v26  ;;  %v2122_v36 = vadd.f32 %v2090_v33, %v2022_v30  ;;  %v2190_v60 = vsel %vm2155_vm2, %v6963_v43, 0.0  ;;  %v2290_v52 = vsel %vm2255_vm3, %v6968_v49, 0.0  ;;  %vm2003_vm4 = vcmp.eq.s32.totalorder %v5910_v37, %v6942_v48 }
 0x267   : > { %v2817_v12 = vadd.f32 %v2785_v42, %v2717_v9  ;;  %v2038_v62 = vsel %vm2003_vm4, %v6947_v50, 0.0  ;;  %vm2071_vm6 = vcmp.eq.s32.totalorder %v5910_v37, %v6944_v35  ;;  %vm2171_vm5 = vcmp.eq.s32.totalorder %v5910_v37, %v6949_v28  ;;  %v7745_v9 = vld [vmem:[#allocation1 + $0x6] ss:$9 sm:$0xff] }
 0x268   : > { %v2222_v1 = vadd.f32 %v2190_v60, %v2122_v36  ;;  %v2106_v26 = vsel %vm2071_vm6, %v6956_v0, 0.0  ;;  %v2206_v44 = vsel %vm2171_vm5, %v6963_v43, 0.0  ;;  %vm2271_vm7 = vcmp.eq.s32.totalorder %v5910_v37, %v6965_v41  ;;  %3829 = vst [vmem:[#allocation1] sm:$0xff] %v7063_v51 }
 0x269   : > { %2860 = vmatpush.msra.mxu1 %v2817_v12  ;;  %v2138_v30 = vadd.f32 %v2106_v26, %v2038_v62  ;;  %v2306_v42 = vsel %vm2271_vm7, %v6968_v49, 0.0  ;;  %vm2465_vm8 = vcmp.eq.s32.totalorder %v9937_v34, %v7129_v47  ;;  %vm2533_vm9 = vcmp.eq.s32.totalorder %v9937_v34, %v7131_v53 }
 0x26a   : > { %v2322_v33 = vadd.f32 %v2290_v52, %v2222_v1  ;;  %v2500_v36 = vsel %vm2465_vm8, %v7134_v46, 0.0  ;;  %v2568_v60 = vsel %vm2533_vm9, %v7143_v55, 0.0  ;;  %vm2633_vm11 = vcmp.eq.s32.totalorder %v9937_v34, %v7136_v61 }
 0x26b   : > { %v2238_v12 = vadd.f32 %v2206_v44, %v2138_v30  ;;  %v2600_v62 = vadd.f32 %v2568_v60, %v2500_v36  ;;  %v2668_v26 = vsel %vm2633_vm11, %v7148_v31, 0.0  ;;  %vm2733_vm12 = vcmp.eq.s32.totalorder %v9937_v34, %v7150_v8 }
 0x26c   : > { %2367 = vmatpush.msrb.mxu2 %v2322_v33  ;;  %v2768_v25 = vsel %vm2733_vm12, %v7153_v32, 0.0  ;;  %vm2481_vm13 = vcmp.eq.s32.totalorder %v9938_v39, %v7129_v47  ;;  %vm2549_vm10 = vcmp.eq.s32.totalorder %v9938_v39, %v7131_v53  ;;  %vm2649_vm15 = vcmp.eq.s32.totalorder %v9938_v39, %v7136_v61 }
 0x26d   : > { %v2338_v52 = vadd.f32 %v2306_v42, %v2238_v12  ;;  %v2700_v1 = vadd.f32 %v2668_v26, %v2600_v62  ;;  %v2516_v44 = vsel %vm2481_vm13, %v7134_v46, 0.0  ;;  %v2584_v30 = vsel %vm2549_vm10, %v7143_v55, 0.0 }
 0x26e   : > { %v2616_v36 = vadd.f32 %v2584_v30, %v2516_v44  ;;  %v2684_v33 = vsel %vm2649_vm15, %v7148_v31, 0.0  ;;  %vm2749_vm14 = vcmp.eq.s32.totalorder %v9938_v39, %v7150_v8  ;;  %vm1986_vm0 = vcmp.eq.s32.totalorder %v5364_v15, %v6942_v48 }
 0x26f   : > { %2387 = vmatpush.msrb.mxu3 %v2338_v52  ;;  %v2800_v60 = vadd.f32 %v2768_v25, %v2700_v1  ;;  %v2784_v34 = vsel %vm2749_vm14, %v7153_v32, 0.0  ;;  %v2021_v42 = vsel %vm1986_vm0, %v6947_v50, 0.0  ;;  %vm2054_vm1 = vcmp.eq.s32.totalorder %v5364_v15, %v6944_v35 }
 0x270   : > { %v2716_v12 = vadd.f32 %v2684_v33, %v2616_v36  ;;  %v2089_v62 = vsel %vm2054_vm1, %v6956_v0, 0.0  ;;  %vm2154_vm2 = vcmp.eq.s32.totalorder %v5364_v15, %v6949_v28  ;;  %vm2254_vm3 = vcmp.eq.s32.totalorder %v5364_v15, %v6965_v41 }
 0x271   : > { %2841 = vmatpush.msra.mxu0 %v2800_v60  ;;  %v2121_v26 = vadd.f32 %v2089_v62, %v2021_v42  ;;  %v2189_v25 = vsel %vm2154_vm2, %v6963_v43, 0.0  ;;  %v2289_v52 = vsel %vm2254_vm3, %v6968_v49, 0.0  ;;  %vm2002_vm4 = vcmp.eq.s32.totalorder %v6071_v6, %v6942_v48 }
 0x272   : > { %v2816_v1 = vadd.f32 %v2784_v34, %v2716_v12  ;;  %v2037_v44 = vsel %vm2002_vm4, %v6947_v50, 0.0  ;;  %vm2070_vm6 = vcmp.eq.s32.totalorder %v6071_v6, %v6944_v35  ;;  %vm2170_vm5 = vcmp.eq.s32.totalorder %v6071_v6, %v6949_v28 }
 0x273   : > { %v2221_v30 = vadd.f32 %v2189_v25, %v2121_v26  ;;  %v2105_v36 = vsel %vm2070_vm6, %v6956_v0, 0.0  ;;  %v2205_v33 = vsel %vm2170_vm5, %v6963_v43, 0.0  ;;  %vm2270_vm7 = vcmp.eq.s32.totalorder %v6071_v6, %v6965_v41  ;;  %v7813_v26 = vld [vmem:[%s6879_s13] sm:$0xff] }
 0x274   : > { %2861 = vmatpush.msra.mxu1 %v2816_v1  ;;  %v2137_v60 = vadd.f32 %v2105_v36, %v2037_v44  ;;  %v2305_v48 = vsel %vm2270_vm7, %v6968_v49, 0.0  ;;  %vm2464_vm8 = vcmp.eq.s32.totalorder %v9939_v10, %v7129_v47  ;;  %vm2532_vm9 = vcmp.eq.s32.totalorder %v9939_v10, %v7131_v53  ;;  %v9942_v36 = vld [vmem:[#allocation33_spill] sm:$0xff] }
 0x275   : > { %v2321_v35 = vadd.f32 %v2289_v52, %v2221_v30  ;;  %v2499_v50 = vsel %vm2464_vm8, %v7134_v46, 0.0  ;;  %v2567_v28 = vsel %vm2532_vm9, %v7143_v55, 0.0  ;;  %vm2632_vm11 = vcmp.eq.s32.totalorder %v9939_v10, %v7136_v61 }
 0x276   : > { %v2237_v0 = vadd.f32 %v2205_v33, %v2137_v60  ;;  %v2599_v43 = vadd.f32 %v2567_v28, %v2499_v50  ;;  %v2667_v41 = vsel %vm2632_vm11, %v7148_v31, 0.0  ;;  %vm2732_vm12 = vcmp.eq.s32.totalorder %v9939_v10, %v7150_v8  ;;  %v7830_v50 = vld [vmem:[%s6879_s13 + $0x8] sm:$0xff] }
 0x277   : > { %2368 = vmatpush.msrb.mxu2 %v2321_v35  ;;  %v2767_v49 = vsel %vm2732_vm12, %v7153_v32, 0.0  ;;  %vm2480_vm13 = vcmp.eq.s32.totalorder %v9940_v58, %v7129_v47  ;;  %vm2548_vm10 = vcmp.eq.s32.totalorder %v9940_v58, %v7131_v53  ;;  %vm2648_vm15 = vcmp.eq.s32.totalorder %v9940_v58, %v7136_v61 }
 0x278   : > { %v2337_v34 = vadd.f32 %v2305_v48, %v2237_v0  ;;  %v2699_v42 = vadd.f32 %v2667_v41, %v2599_v43  ;;  %v2515_v12 = vsel %vm2480_vm13, %v7134_v46, 0.0  ;;  %v2583_v62 = vsel %vm2548_vm10, %v7143_v55, 0.0  ;;  %2369 = vmatmul.f32.vlgmr.msrb.gmra.mxu2 %v7813_v26 }
 0x279   : > { %v2615_v25 = vadd.f32 %v2583_v62, %v2515_v12  ;;  %v2683_v52 = vsel %vm2648_vm15, %v7148_v31, 0.0  ;;  %vm2748_vm14 = vcmp.eq.s32.totalorder %v9940_v58, %v7150_v8  ;;  %v2874_v1 = vadd.f32 %v7075_v45, %v6857_v11 }
 0x27a   : > { %2388 = vmatpush.msrb.mxu3 %v2337_v34  ;;  %v2799_v44 = vadd.f32 %v2767_v49, %v2699_v42  ;;  %v2783_v30 = vsel %vm2748_vm14, %v7153_v32, 0.0  ;;  %v2879_v33 = vadd.f32 %v7196_v7, %v9942_v36  ;;  %vm2463_vm0 = vcmp.eq.s32.totalorder %v9941_v57, %v7129_v47 }
 0x27b   : > { %v2715_v60 = vadd.f32 %v2683_v52, %v2615_v25  ;;  %v2880_v48 = vfloor.f32 %v2874_v1  ;;  %v2498_v35 = vsel %vm2463_vm0, %v7134_v46, 0.0  ;;  %vm2531_vm1 = vcmp.eq.s32.totalorder %v9941_v57, %v7131_v53  ;;  %2389 = vmatmul.f32.vlgmr.msrb.gmra.mxu3 %v7830_v50 }
 0x27c   : > { %2842 = vmatpush.msra.mxu0 %v2799_v44  ;;  %v2881_v11 = vfloor.f32 %v2879_v33  ;;  %v2566_v45 = vsel %vm2531_vm1, %v7143_v55, 0.0  ;;  %vm2631_vm2 = vcmp.eq.s32.totalorder %v9941_v57, %v7136_v61  ;;  %vm2731_vm3 = vcmp.eq.s32.totalorder %v9941_v57, %v7150_v8 }
 0x27d   : > { %v2815_v7 = vadd.f32 %v2783_v30, %v2715_v60  ;;  %v2882_v28 = vsub.f32 %v2874_v1, %v2880_v48  ;;  %v5001_v0 = vcvt.f32.s32 %v2880_v48  ;;  %v2598_v43 = vadd.f32 %v2566_v45, %v2498_v35 }
 0x27e   : > { %v2883_v41 = vsub.f32 %v2879_v33, %v2881_v11  ;;  %v5003_v49 = vcvt.f32.s32 %v2881_v11  ;;  %v2666_v34 = vsel %vm2631_vm2, %v7148_v31, 0.0  ;;  %v2766_v42 = vsel %vm2731_vm3, %v7153_v32, 0.0 }
 0x27f   : > { %2862 = vmatpush.msra.mxu1 %v2815_v7  ;;  %v2886_v12 = vadd.s32 1, %v5001_v0  ;;  %vm2888_vm4 = vcmp.ge.s32.totalorder %v5001_v0, 0  ;;  %vm2889_vm6 = vcmp.lt.s32.totalorder %v5001_v0, 16  ;;  %v2901_v62 = vsub.f32 1.0, %v2882_v28 }
 0x280   : > { %v2887_v25 = vadd.s32 1, %v5003_v49  ;;  %vm7840_vm5 = vmand %vm2888_vm4, %vm2889_vm6  ;;  %vm2894_vm7 = vcmp.ge.s32.totalorder %v5003_v49, 0  ;;  %vm2895_vm8 = vcmp.lt.s32.totalorder %v5003_v49, 16  ;;  %v2902_v1 = vsub.f32 1.0, %v2883_v41 }
 0x281   : > { %vm2891_vm9 = vcmp.ge.s32.totalorder %v2886_v12, 0  ;;  %vm2892_vm11 = vcmp.lt.s32.totalorder %v2886_v12, 16  ;;  %vm7844_vm12 = vmand %vm2894_vm7, %vm2895_vm8  ;;  %v2911_v30 = vmul.f32 %v2901_v62, %v2883_v41  ;;  %v2927_v33 = vmul.f32 %v2883_v41, %v2882_v28 }
 0x282   : > { %vm7848_vm13 = vmand %vm2891_vm9, %vm2892_vm11  ;;  %vm2897_vm10 = vcmp.ge.s32.totalorder %v2887_v25, 0  ;;  %vm2898_vm15 = vcmp.lt.s32.totalorder %v2887_v25, 16  ;;  %v2903_v48 = vmul.f32 %v2902_v1, %v2901_v62  ;;  %v2919_v35 = vmul.f32 %v2902_v1, %v2882_v28 }
 0x283   : > { %vm7852_vm14 = vmand %vm2897_vm10, %vm2898_vm15  ;;  %v2934_v45 = vmul.u32 16, %v5001_v0  ;;  %v2937_v7 = vmul.u32 16, %v2886_v12  ;;  %v2698_v36 = vadd.f32 %v2666_v34, %v2598_v43  ;;  %vm2479_vm0 = vcmp.eq.s32.totalorder %v5910_v37, %v7129_v47 }
 0x284   : > { %vm2900_vm1 = vmand %vm7840_vm5, %vm7844_vm12  ;;  %v2514_v41 = vsel %vm2479_vm0, %v7134_v46, 0.0  ;;  %vm2547_vm2 = vcmp.eq.s32.totalorder %v5910_v37, %v7131_v53  ;;  %vm2647_vm3 = vcmp.eq.s32.totalorder %v5910_v37, %v7136_v61  ;;  %vm2747_vm4 = vcmp.eq.s32.totalorder %v5910_v37, %v7150_v8 }
 0x285   : > { %v2904_v28 = vsel %vm2900_vm1, %v2903_v48, 0.0  ;;  %vm2910_vm6 = vmand %vm7840_vm5, %vm7852_vm14  ;;  %v2935_v0 = vadd.s32 %v5003_v49, %v2934_v45  ;;  %v2936_v43 = vadd.s32 %v2934_v45, %v2887_v25  ;;  %v2938_v34 = vadd.s32 %v5003_v49, %v2937_v7 }
 0x286   : > { %v2909_v12 = vmul.f32 %v7242_v38, %v2904_v28  ;;  %v2912_v62 = vsel %vm2910_vm6, %v2911_v30, 0.0  ;;  %vm2918_vm7 = vmand %vm7848_vm13, %vm7844_vm12  ;;  %v2939_v1 = vadd.s32 %v2937_v7, %v2887_v25  ;;  %v2798_v57 = vadd.f32 %v2766_v42, %v2698_v36 }
 0x287   : > { %v2917_v48 = vmul.f32 %v7284_v54, %v2912_v62  ;;  %v2920_v58 = vsel %vm2918_vm7, %v2919_v35, 0.0  ;;  %vm2926_vm5 = vmand %vm7848_vm13, %vm7852_vm14  ;;  %v7883_v52 = vperm.slane %v2935_v0, 0  ;;  %v7885_v49 = vperm.slane %v2936_v43, 0 }
 0x288   : > { %v2925_v38 = vmul.f32 %v7322_v3, %v2920_v58  ;;  %v2928_v44 = vsel %vm2926_vm5, %v2927_v33, 0.0  ;;  %v7888_v30 = vperm.slane %v2909_v12, 0  ;;  %v7890_v45 = vperm.slane %v2938_v34, 0  ;;  %2843 = vmatpush.msra.mxu0 %v2798_v57 }
 0x289   : > { %v2933_v54 = vmul.f32 %v7359_v56, %v2928_v44  ;;  %vm2956_vm8 = vcmp.eq.s32.totalorder %v5376_v27, %v7883_v52  ;;  %vm3024_vm9 = vcmp.eq.s32.totalorder %v5376_v27, %v7885_v49  ;;  %v7897_v36 = vperm.slane %v2917_v48, 0 }
 0x28a   : > { %v2991_v42 = vsel %vm2956_vm8, %v7888_v30, 0.0  ;;  %vm3124_vm11 = vcmp.eq.s32.totalorder %v5376_v27, %v7890_v45  ;;  %v7902_v3 = vperm.slane %v2925_v38, 0  ;;  %v7904_v58 = vperm.slane %v2939_v1, 0 }
 0x28b   : > { %v3059_v57 = vsel %vm3024_vm9, %v7897_v36, 0.0  ;;  %v7907_v56 = vperm.slane %v2933_v54, 0  ;;  %vm2972_vm12 = vcmp.eq.s32.totalorder %v5482_v16, %v7883_v52  ;;  %vm3040_vm13 = vcmp.eq.s32.totalorder %v5482_v16, %v7885_v49 }
 0x28c   : > { %v3091_v25 = vadd.f32 %v3059_v57, %v2991_v42  ;;  %v3159_v33 = vsel %vm3124_vm11, %v7902_v3, 0.0  ;;  %vm3224_vm10 = vcmp.eq.s32.totalorder %v5376_v27, %v7904_v58  ;;  %v3007_v60 = vsel %vm2972_vm12, %v7888_v30, 0.0 }
 0x28d   : > { %v3259_v35 = vsel %vm3224_vm10, %v7907_v56, 0.0  ;;  %v3075_v11 = vsel %vm3040_vm13, %v7897_v36, 0.0  ;;  %vm3140_vm15 = vcmp.eq.s32.totalorder %v5482_v16, %v7890_v45  ;;  %vm3240_vm14 = vcmp.eq.s32.totalorder %v5482_v16, %v7904_v58 }
 0x28e   : > { %v3191_v7 = vadd.f32 %v3159_v33, %v3091_v25  ;;  %v3107_v28 = vadd.f32 %v3075_v11, %v3007_v60  ;;  %v3175_v0 = vsel %vm3140_vm15, %v7902_v3, 0.0  ;;  %v3275_v43 = vsel %vm3240_vm14, %v7907_v56, 0.0 }
 0x28f   : > { %v2582_v34 = vsel %vm2547_vm2, %v7143_v55, 0.0  ;;  %v2682_v12 = vsel %vm2647_vm3, %v7148_v31, 0.0  ;;  %v2782_v62 = vsel %vm2747_vm4, %v7153_v32, 0.0  ;;  %vm2955_vm0 = vcmp.eq.s32.totalorder %v5485_v17, %v7883_v52 }
 0x290   : > { %v3291_v1 = vadd.f32 %v3259_v35, %v3191_v7  ;;  %v3207_v48 = vadd.f32 %v3175_v0, %v3107_v28  ;;  %v2614_v38 = vadd.f32 %v2582_v34, %v2514_v41  ;;  %v2990_v44 = vsel %vm2955_vm0, %v7888_v30, 0.0 }
 0x291   : > { %vm3023_vm1 = vcmp.eq.s32.totalorder %v5485_v17, %v7885_v49  ;;  %vm3123_vm2 = vcmp.eq.s32.totalorder %v5485_v17, %v7890_v45  ;;  %vm3223_vm3 = vcmp.eq.s32.totalorder %v5485_v17, %v7904_v58  ;;  %vm2971_vm4 = vcmp.eq.s32.totalorder %v5488_v18, %v7883_v52 }
 0x292   : > { %3308 = vmatpush.msra.mxu2 %v3291_v1  ;;  %v3307_v54 = vadd.f32 %v3275_v43, %v3207_v48  ;;  %v2714_v42 = vadd.f32 %v2682_v12, %v2614_v38  ;;  %v3058_v57 = vsel %vm3023_vm1, %v7897_v36, 0.0  ;;  %v3158_v41 = vsel %vm3123_vm2, %v7902_v3, 0.0 }
 0x293   : > { %v3090_v25 = vadd.f32 %v3058_v57, %v2990_v44  ;;  %v3258_v33 = vsel %vm3223_vm3, %v7907_v56, 0.0  ;;  %v3006_v60 = vsel %vm2971_vm4, %v7888_v30, 0.0  ;;  %vm3039_vm6 = vcmp.eq.s32.totalorder %v5488_v18, %v7885_v49 }
 0x294   : > { %3328 = vmatpush.msra.mxu3 %v3307_v54  ;;  %v2814_v35 = vadd.f32 %v2782_v62, %v2714_v42  ;;  %v3074_v11 = vsel %vm3039_vm6, %v7897_v36, 0.0  ;;  %vm3139_vm7 = vcmp.eq.s32.totalorder %v5488_v18, %v7890_v45  ;;  %vm3239_vm5 = vcmp.eq.s32.totalorder %v5488_v18, %v7904_v58 }
 0x295   : > { %v3190_v7 = vadd.f32 %v3158_v41, %v3090_v25  ;;  %v3106_v28 = vadd.f32 %v3074_v11, %v3006_v60  ;;  %v3174_v0 = vsel %vm3139_vm7, %v7902_v3, 0.0  ;;  %v3274_v43 = vsel %vm3239_vm5, %v7907_v56, 0.0 }
 0x296   : > { %2863 = vmatpush.msra.mxu1 %v2814_v35  ;;  %vm2462_vm8 = vcmp.eq.s32.totalorder %v5364_v15, %v7129_v47  ;;  %vm2530_vm9 = vcmp.eq.s32.totalorder %v5364_v15, %v7131_v53  ;;  %vm2630_vm11 = vcmp.eq.s32.totalorder %v5364_v15, %v7136_v61  ;;  %vm2730_vm12 = vcmp.eq.s32.totalorder %v5364_v15, %v7150_v8 }
 0x297   : > { %v3290_v34 = vadd.f32 %v3258_v33, %v3190_v7  ;;  %v3206_v12 = vadd.f32 %v3174_v0, %v3106_v28  ;;  %v2497_v62 = vsel %vm2462_vm8, %v7134_v46, 0.0  ;;  %v2565_v1 = vsel %vm2530_vm9, %v7143_v55, 0.0 }
 0x298   : > { %v2597_v48 = vadd.f32 %v2565_v1, %v2497_v62  ;;  %v2665_v38 = vsel %vm2630_vm11, %v7148_v31, 0.0  ;;  %v2765_v44 = vsel %vm2730_vm12, %v7153_v32, 0.0  ;;  %vm2478_vm13 = vcmp.eq.s32.totalorder %v6071_v6, %v7129_v47  ;;  %v5097_v1 = vld [vmem:[%s5352_s17] sm:$0x1]  ;;  %s4810_s17 = scalar_lea.sflag [#allocation6], %s5333_s14 }
 0x299   : > { %3309 = vmatpush.msra.mxu2 %v3290_v34  ;;  %v3306_v54 = vadd.f32 %v3274_v43, %v3206_v12  ;;  %v2513_v42 = vsel %vm2478_vm13, %v7134_v46, 0.0  ;;  %vm2546_vm10 = vcmp.eq.s32.totalorder %v6071_v6, %v7131_v53  ;;  %vm2646_vm15 = vcmp.eq.s32.totalorder %v6071_v6, %v7136_v61  ;;  %v5096_v43 = vld [vmem:[%s5347_s12] sm:$0x1]  ;;  %s437_s12 = scalar_lea.vmem [#allocation5], %s4967_s22 }
 0x29a   : > { %v2697_v57 = vadd.f32 %v2665_v38, %v2597_v48  ;;  %v2581_v41 = vsel %vm2546_vm10, %v7143_v55, 0.0  ;;  %v2681_v25 = vsel %vm2646_vm15, %v7148_v31, 0.0  ;;  %vm2746_vm14 = vcmp.eq.s32.totalorder %v6071_v6, %v7150_v8  ;;  %s4824_s0 = sshll.u32 %s437_s12, 4  ;;  %s4825_s0 = int_to_ptr.vmem [resolvable:$true] %s4824_s0 }
 0x29b   : > { %3329 = vmatpush.msra.mxu3 %v3306_v54  ;;  %v2613_v47 = vadd.f32 %v2581_v41, %v2513_v42  ;;  %v2781_v33 = vsel %vm2746_vm14, %v7153_v32, 0.0  ;;  %vm2954_vm0 = vcmp.eq.s32.totalorder %v5491_v19, %v7883_v52  ;;  %vm3022_vm1 = vcmp.eq.s32.totalorder %v5491_v19, %v7885_v49 }
 0x29c   : > { %v2797_v53 = vadd.f32 %v2765_v44, %v2697_v57  ;;  %v2989_v46 = vsel %vm2954_vm0, %v7888_v30, 0.0  ;;  %v3057_v61 = vsel %vm3022_vm1, %v7897_v36, 0.0  ;;  %vm3122_vm2 = vcmp.eq.s32.totalorder %v5491_v19, %v7890_v45 }
 0x29d   : > { %v2713_v55 = vadd.f32 %v2681_v25, %v2613_v47  ;;  %v3089_v31 = vadd.f32 %v3057_v61, %v2989_v46  ;;  %v3157_v8 = vsel %vm3122_vm2, %v7902_v3, 0.0  ;;  %vm3222_vm3 = vcmp.eq.s32.totalorder %v5491_v19, %v7904_v58 }
 0x29e   : > { %2844 = vmatpush.msra.mxu0 %v2797_v53  ;;  %v3257_v32 = vsel %vm3222_vm3, %v7907_v56, 0.0  ;;  %vm2970_vm4 = vcmp.eq.s32.totalorder %v5494_v20, %v7883_v52  ;;  %vm3038_vm6 = vcmp.eq.s32.totalorder %v5494_v20, %v7885_v49  ;;  %vm3138_vm7 = vcmp.eq.s32.totalorder %v5494_v20, %v7890_v45 }
 0x29f   : > { %v2813_v60 = vadd.f32 %v2781_v33, %v2713_v55  ;;  %v3189_v35 = vadd.f32 %v3157_v8, %v3089_v31  ;;  %v3005_v11 = vsel %vm2970_vm4, %v7888_v30, 0.0  ;;  %v3073_v7 = vsel %vm3038_vm6, %v7897_v36, 0.0  ;;  %2845 = vmatmul.f32.vlgmr.msra.gmra.mxu0 %v7813_v26 }
 0x2a0   : > { %v3105_v28 = vadd.f32 %v3073_v7, %v3005_v11  ;;  %v3173_v0 = vsel %vm3138_vm7, %v7902_v3, 0.0  ;;  %vm3238_vm5 = vcmp.eq.s32.totalorder %v5494_v20, %v7904_v58  ;;  %v8010_v34 = vadd.f32 2.0, %v5096_v43 }
 0x2a1   : > { %2864 = vmatpush.msra.mxu1 %v2813_v60  ;;  %v3289_v12 = vadd.f32 %v3257_v32, %v3189_v35  ;;  %v3273_v62 = vsel %vm3238_vm5, %v7907_v56, 0.0  ;;  %v3359_v48 = vadd.f32 %v5097_v1, %v7584_v13  ;;  %vm2953_vm8 = vcmp.eq.s32.totalorder %v5497_v5, %v7883_v52 }
 0x2a2   : > { %v3205_v26 = vadd.f32 %v3173_v0, %v3105_v28  ;;  %v3354_v38 = vadd.f32 %v7545_v4, %v8010_v34  ;;  %v2988_v44 = vsel %vm2953_vm8, %v7888_v30, 0.0  ;;  %vm3021_vm9 = vcmp.eq.s32.totalorder %v5497_v5, %v7885_v49  ;;  %2865 = vmatmul.f32.vlgmr.msra.gmra.mxu1 %v7830_v50 }
 0x2a3   : > { %3310 = vmatpush.msra.mxu2 %v3289_v12  ;;  %v3361_v54 = vfloor.f32 %v3359_v48  ;;  %v3056_v42 = vsel %vm3021_vm9, %v7897_v36, 0.0  ;;  %vm3121_vm11 = vcmp.eq.s32.totalorder %v5497_v5, %v7890_v45  ;;  %vm3221_vm12 = vcmp.eq.s32.totalorder %v5497_v5, %v7904_v58 }
 0x2a4   : > { %v3305_v13 = vadd.f32 %v3273_v62, %v3205_v26  ;;  %v3360_v57 = vfloor.f32 %v3354_v38  ;;  %v3088_v4 = vadd.f32 %v3056_v42, %v2988_v44  ;;  %v3156_v41 = vsel %vm3121_vm11, %v7902_v3, 0.0 }
 0x2a5   : > { %v3363_v25 = vsub.f32 %v3359_v48, %v3361_v54  ;;  %v5007_v47 = vcvt.f32.s32 %v3361_v54  ;;  %v3256_v33 = vsel %vm3221_vm12, %v7907_v56, 0.0  ;;  %vm2969_vm13 = vcmp.eq.s32.totalorder %v5500_v21, %v7883_v52 }
 0x2a6   : > { %3330 = vmatpush.msra.mxu3 %v3305_v13  ;;  %v3362_v50 = vsub.f32 %v3354_v38, %v3360_v57  ;;  %v5005_v53 = vcvt.f32.s32 %v3360_v57  ;;  %v3188_v46 = vadd.f32 %v3156_v41, %v3088_v4  ;;  %v3004_v11 = vsel %vm2969_vm13, %v7888_v30, 0.0 }
 0x2a7   : > { %v3367_v61 = vadd.s32 1, %v5007_v47  ;;  %vm3374_vm10 = vcmp.ge.s32.totalorder %v5007_v47, 0  ;;  %vm3375_vm15 = vcmp.lt.s32.totalorder %v5007_v47, 16  ;;  %v3382_v55 = vsub.f32 1.0, %v3363_v25 }
 0x2a8   : > { %v3366_v31 = vadd.s32 1, %v5005_v53  ;;  %vm3368_vm14 = vcmp.ge.s32.totalorder %v5005_v53, 0  ;;  %vm3369_vm0 = vcmp.lt.s32.totalorder %v5005_v53, 16  ;;  %vm8032_vm1 = vmand %vm3374_vm10, %vm3375_vm15  ;;  %v3381_v32 = vsub.f32 1.0, %v3362_v50 }
 0x2a9   : > { %vm8036_vm2 = vmand %vm3368_vm14, %vm3369_vm0  ;;  %vm3377_vm3 = vcmp.ge.s32.totalorder %v3367_v61, 0  ;;  %vm3378_vm4 = vcmp.lt.s32.totalorder %v3367_v61, 16  ;;  %v3399_v35 = vmul.f32 %v3382_v55, %v3362_v50  ;;  %v3414_v12 = vmul.u32 16, %v5005_v53 }
 0x2aa   : > { %vm3371_vm6 = vcmp.ge.s32.totalorder %v3366_v31, 0  ;;  %vm3372_vm7 = vcmp.lt.s32.totalorder %v3366_v31, 16  ;;  %vm8041_vm5 = vmand %vm3377_vm3, %vm3378_vm4  ;;  %v3383_v28 = vmul.f32 %v3382_v55, %v3381_v32  ;;  %v3391_v0 = vmul.f32 %v3381_v32, %v3363_v25 }
 0x2ab   : > { %vm8045_vm8 = vmand %vm3371_vm6, %vm3372_vm7  ;;  %v3417_v62 = vmul.u32 16, %v3366_v31  ;;  %v3288_v1 = vadd.f32 %v3256_v33, %v3188_v46  ;;  %vm3037_vm9 = vcmp.eq.s32.totalorder %v5500_v21, %v7885_v49  ;;  %v3407_v48 = vmul.f32 %v3363_v25, %v3362_v50 }
 0x2ac   : > { %vm3380_vm11 = vmand %vm8036_vm2, %vm8032_vm1  ;;  %v3072_v26 = vsel %vm3037_vm9, %v7897_v36, 0.0  ;;  %vm3137_vm12 = vcmp.eq.s32.totalorder %v5500_v21, %v7890_v45  ;;  %vm3237_vm13 = vcmp.eq.s32.totalorder %v5500_v21, %v7904_v58  ;;  %v3415_v44 = vadd.s32 %v5007_v47, %v3414_v12 }
 0x2ad   : > { %v3384_v38 = vsel %vm3380_vm11, %v3383_v28, 0.0  ;;  %vm3390_vm10 = vmand %vm8036_vm2, %vm8041_vm5  ;;  %v3416_v54 = vadd.s32 %v3414_v12, %v3367_v61  ;;  %v3418_v42 = vadd.s32 %v5007_v47, %v3417_v62  ;;  %3311 = vmatpush.msra.mxu2 %v3288_v1  ;;  %v3419_v4 = vadd.s32 %v3417_v62, %v3367_v61 }
 0x2ae   : > { %v3389_v13 = vmul.f32 %v7626_v2, %v3384_v38  ;;  %v3392_v57 = vsel %vm3390_vm10, %v3391_v0, 0.0  ;;  %vm3398_vm15 = vmand %vm8045_vm8, %vm8032_vm1  ;;  %v3104_v41 = vadd.f32 %v3072_v26, %v3004_v11  ;;  %v8074_v47 = vperm.slane %v3415_v44, 0 }
 0x2af   : > { %v3397_v25 = vmul.f32 %v7668_v59, %v3392_v57  ;;  %v3400_v33 = vsel %vm3398_vm15, %v3399_v35, 0.0  ;;  %vm3406_vm14 = vmand %vm8045_vm8, %vm8041_vm5  ;;  %v8076_v50 = vperm.slane %v3416_v54, 0  ;;  %v8081_v55 = vperm.slane %v3418_v42, 0 }
 0x2b0   : > { %v3405_v2 = vmul.f32 %v7708_v14, %v3400_v33  ;;  %v3408_v53 = vsel %vm3406_vm14, %v3407_v48, 0.0  ;;  %v8079_v46 = vperm.slane %v3389_v13, 0  ;;  %vm3436_vm0 = vcmp.eq.s32.totalorder %v5376_v27, %v8074_v47 }
 0x2b1   : > { %v3413_v61 = vmul.f32 %v7745_v9, %v3408_v53  ;;  %vm3504_vm1 = vcmp.eq.s32.totalorder %v5376_v27, %v8076_v50  ;;  %v8088_v59 = vperm.slane %v3397_v25, 0  ;;  %vm3604_vm2 = vcmp.eq.s32.totalorder %v5376_v27, %v8081_v55 }
 0x2b2   : > { %v3471_v31 = vsel %vm3436_vm0, %v8079_v46, 0.0  ;;  %v8093_v14 = vperm.slane %v3405_v2, 0  ;;  %v8095_v8 = vperm.slane %v3419_v4, 0  ;;  %vm2952_vm3 = vcmp.eq.s32.totalorder %v5503_v22, %v7883_v52 }
 0x2b3   : > { %v3539_v9 = vsel %vm3504_vm1, %v8088_v59, 0.0  ;;  %v8100_v32 = vperm.slane %v3413_v61, 0  ;;  %vm3452_vm4 = vcmp.eq.s32.totalorder %v5482_v16, %v8074_v47  ;;  %vm3520_vm6 = vcmp.eq.s32.totalorder %v5482_v16, %v8076_v50 }
 0x2b4   : > { %v3571_v60 = vadd.f32 %v3539_v9, %v3471_v31  ;;  %v3639_v35 = vsel %vm3604_vm2, %v8093_v14, 0.0  ;;  %vm3704_vm7 = vcmp.eq.s32.totalorder %v5376_v27, %v8095_v8  ;;  %v3487_v11 = vsel %vm3452_vm4, %v8079_v46, 0.0 }
 0x2b5   : > { %v3739_v7 = vsel %vm3704_vm7, %v8100_v32, 0.0  ;;  %v3555_v28 = vsel %vm3520_vm6, %v8088_v59, 0.0  ;;  %vm3620_vm5 = vcmp.eq.s32.totalorder %v5482_v16, %v8081_v55  ;;  %vm3720_vm8 = vcmp.eq.s32.totalorder %v5482_v16, %v8095_v8 }
 0x2b6   : > { %v3671_v0 = vadd.f32 %v3639_v35, %v3571_v60  ;;  %v3587_v43 = vadd.f32 %v3555_v28, %v3487_v11  ;;  %v3655_v12 = vsel %vm3620_vm5, %v8093_v14, 0.0  ;;  %v3755_v62 = vsel %vm3720_vm8, %v8100_v32, 0.0 }
 0x2b7   : > { %v3172_v1 = vsel %vm3137_vm12, %v7902_v3, 0.0  ;;  %v3272_v48 = vsel %vm3237_vm13, %v7907_v56, 0.0  ;;  %vm3435_vm9 = vcmp.eq.s32.totalorder %v5485_v17, %v8074_v47  ;;  %vm3503_vm11 = vcmp.eq.s32.totalorder %v5485_v17, %v8076_v50 }
 0x2b8   : > { %v3771_v26 = vadd.f32 %v3739_v7, %v3671_v0  ;;  %v3687_v38 = vadd.f32 %v3655_v12, %v3587_v43  ;;  %v3204_v44 = vadd.f32 %v3172_v1, %v3104_v41  ;;  %v3470_v54 = vsel %vm3435_vm9, %v8079_v46, 0.0 }
 0x2b9   : > { %v3538_v42 = vsel %vm3503_vm11, %v8088_v59, 0.0  ;;  %vm3603_vm12 = vcmp.eq.s32.totalorder %v5485_v17, %v8081_v55  ;;  %vm3703_vm10 = vcmp.eq.s32.totalorder %v5485_v17, %v8095_v8  ;;  %vm3451_vm13 = vcmp.eq.s32.totalorder %v5488_v18, %v8074_v47 }
 0x2ba   : > { %3788 = vmatpush.msrb.mxu0 %v3771_v26  ;;  %v3787_v13 = vadd.f32 %v3755_v62, %v3687_v38  ;;  %v3304_v57 = vadd.f32 %v3272_v48, %v3204_v44  ;;  %v3570_v4 = vadd.f32 %v3538_v42, %v3470_v54  ;;  %v3638_v25 = vsel %vm3603_vm12, %v8093_v14, 0.0 }
 0x2bb   : > { %v3738_v41 = vsel %vm3703_vm10, %v8100_v32, 0.0  ;;  %v3486_v33 = vsel %vm3451_vm13, %v8079_v46, 0.0  ;;  %vm3519_vm15 = vcmp.eq.s32.totalorder %v5488_v18, %v8076_v50  ;;  %vm3619_vm14 = vcmp.eq.s32.totalorder %v5488_v18, %v8081_v55 }
 0x2bc   : > { %3808 = vmatpush.msrb.mxu1 %v3787_v13  ;;  %3331 = vmatpush.msra.mxu3 %v3304_v57  ;;  %v3670_v2 = vadd.f32 %v3638_v25, %v3570_v4  ;;  %v3554_v53 = vsel %vm3519_vm15, %v8088_v59, 0.0  ;;  %v3654_v61 = vsel %vm3619_vm14, %v8093_v14, 0.0  ;;  %vm3719_vm0 = vcmp.eq.s32.totalorder %v5488_v18, %v8095_v8 }
 0x2bd   : > { %v3586_v31 = vadd.f32 %v3554_v53, %v3486_v33  ;;  %v3754_v9 = vsel %vm3719_vm0, %v8100_v32, 0.0  ;;  %v2987_v60 = vsel %vm2952_vm3, %v7888_v30, 0.0  ;;  %vm3020_vm1 = vcmp.eq.s32.totalorder %v5503_v22, %v7885_v49 }
 0x2be   : > { %v3770_v35 = vadd.f32 %v3738_v41, %v3670_v2  ;;  %v3055_v11 = vsel %vm3020_vm1, %v7897_v36, 0.0  ;;  %vm3120_vm2 = vcmp.eq.s32.totalorder %v5503_v22, %v7890_v45  ;;  %vm3220_vm4 = vcmp.eq.s32.totalorder %v5503_v22, %v7904_v58 }
 0x2bf   : > { %v3686_v7 = vadd.f32 %v3654_v61, %v3586_v31  ;;  %v3087_v28 = vadd.f32 %v3055_v11, %v2987_v60  ;;  %v3155_v0 = vsel %vm3120_vm2, %v7902_v3, 0.0  ;;  %v3255_v43 = vsel %vm3220_vm4, %v7907_v56, 0.0 }
 0x2c0   : > { %3789 = vmatpush.msrb.mxu0 %v3770_v35  ;;  %vm2968_vm3 = vcmp.eq.s32.totalorder %v5610_v63, %v7883_v52  ;;  %vm3036_vm6 = vcmp.eq.s32.totalorder %v5610_v63, %v7885_v49  ;;  %vm3136_vm7 = vcmp.eq.s32.totalorder %v5610_v63, %v7890_v45  ;;  %vm3236_vm5 = vcmp.eq.s32.totalorder %v5610_v63, %v7904_v58 }
 0x2c1   : > { %v3786_v12 = vadd.f32 %v3754_v9, %v3686_v7  ;;  %v3187_v62 = vadd.f32 %v3155_v0, %v3087_v28  ;;  %v3003_v1 = vsel %vm2968_vm3, %v7888_v30, 0.0  ;;  %v3071_v48 = vsel %vm3036_vm6, %v7897_v36, 0.0 }
 0x2c2   : > { %v3103_v26 = vadd.f32 %v3071_v48, %v3003_v1  ;;  %v3171_v38 = vsel %vm3136_vm7, %v7902_v3, 0.0  ;;  %v3271_v44 = vsel %vm3236_vm5, %v7907_v56, 0.0  ;;  %vm3434_vm8 = vcmp.eq.s32.totalorder %v5491_v19, %v8074_v47 }
 0x2c3   : > { %3809 = vmatpush.msrb.mxu1 %v3786_v12  ;;  %v3287_v54 = vadd.f32 %v3255_v43, %v3187_v62  ;;  %v3469_v42 = vsel %vm3434_vm8, %v8079_v46, 0.0  ;;  %vm3502_vm9 = vcmp.eq.s32.totalorder %v5491_v19, %v8076_v50  ;;  %vm3602_vm11 = vcmp.eq.s32.totalorder %v5491_v19, %v8081_v55 }
 0x2c4   : > { %v3203_v13 = vadd.f32 %v3171_v38, %v3103_v26  ;;  %v3537_v57 = vsel %vm3502_vm9, %v8088_v59, 0.0  ;;  %v3637_v4 = vsel %vm3602_vm11, %v8093_v14, 0.0  ;;  %vm3702_vm12 = vcmp.eq.s32.totalorder %v5491_v19, %v8095_v8 }
 0x2c5   : > { %3312 = vmatpush.msra.mxu2 %v3287_v54  ;;  %v3569_v25 = vadd.f32 %v3537_v57, %v3469_v42  ;;  %v3737_v41 = vsel %vm3702_vm12, %v8100_v32, 0.0  ;;  %vm3450_vm10 = vcmp.eq.s32.totalorder %v5494_v20, %v8074_v47  ;;  %vm3518_vm13 = vcmp.eq.s32.totalorder %v5494_v20, %v8076_v50 }
 0x2c6   : > { %v3303_v33 = vadd.f32 %v3271_v44, %v3203_v13  ;;  %v3485_v2 = vsel %vm3450_vm10, %v8079_v46, 0.0  ;;  %v3553_v53 = vsel %vm3518_vm13, %v8088_v59, 0.0  ;;  %vm3618_vm15 = vcmp.eq.s32.totalorder %v5494_v20, %v8081_v55 }
 0x2c7   : > { %v3669_v61 = vadd.f32 %v3637_v4, %v3569_v25  ;;  %v3585_v31 = vadd.f32 %v3553_v53, %v3485_v2  ;;  %v3653_v9 = vsel %vm3618_vm15, %v8093_v14, 0.0  ;;  %vm3718_vm14 = vcmp.eq.s32.totalorder %v5494_v20, %v8095_v8 }
 0x2c8   : > { %3332 = vmatpush.msra.mxu3 %v3303_v33  ;;  %v3753_v60 = vsel %vm3718_vm14, %v8100_v32, 0.0  ;;  %vm2951_vm0 = vcmp.eq.s32.totalorder %v5613_v23, %v7883_v52  ;;  %vm3019_vm1 = vcmp.eq.s32.totalorder %v5613_v23, %v7885_v49  ;;  %vm3119_vm2 = vcmp.eq.s32.totalorder %v5613_v23, %v7890_v45 }
 0x2c9   : > { %v3769_v35 = vadd.f32 %v3737_v41, %v3669_v61  ;;  %v3685_v11 = vadd.f32 %v3653_v9, %v3585_v31  ;;  %v2986_v7 = vsel %vm2951_vm0, %v7888_v30, 0.0  ;;  %v3054_v28 = vsel %vm3019_vm1, %v7897_v36, 0.0 }
 0x2ca   : > { %v3086_v0 = vadd.f32 %v3054_v28, %v2986_v7  ;;  %v3154_v43 = vsel %vm3119_vm2, %v7902_v3, 0.0  ;;  %vm3219_vm4 = vcmp.eq.s32.totalorder %v5613_v23, %v7904_v58  ;;  %vm2967_vm3 = vcmp.eq.s32.totalorder %v5616_v24, %v7883_v52 }
 0x2cb   : > { %3790 = vmatpush.msrb.mxu0 %v3769_v35  ;;  %v3785_v12 = vadd.f32 %v3753_v60, %v3685_v11  ;;  %v3254_v62 = vsel %vm3219_vm4, %v7907_v56, 0.0  ;;  %v3002_v1 = vsel %vm2967_vm3, %v7888_v30, 0.0  ;;  %vm3035_vm6 = vcmp.eq.s32.totalorder %v5616_v24, %v7885_v49 }
 0x2cc   : > { %v3186_v48 = vadd.f32 %v3154_v43, %v3086_v0  ;;  %v3070_v26 = vsel %vm3035_vm6, %v7897_v36, 0.0  ;;  %vm3135_vm7 = vcmp.eq.s32.totalorder %v5616_v24, %v7890_v45  ;;  %vm3235_vm5 = vcmp.eq.s32.totalorder %v5616_v24, %v7904_v58 }
 0x2cd   : > { %3810 = vmatpush.msrb.mxu1 %v3785_v12  ;;  %v3102_v38 = vadd.f32 %v3070_v26, %v3002_v1  ;;  %v3170_v44 = vsel %vm3135_vm7, %v7902_v3, 0.0  ;;  %v3270_v54 = vsel %vm3235_vm5, %v7907_v56, 0.0  ;;  %vm3433_vm8 = vcmp.eq.s32.totalorder %v5497_v5, %v8074_v47 }
 0x2ce   : > { %v3286_v42 = vadd.f32 %v3254_v62, %v3186_v48  ;;  %v3468_v13 = vsel %vm3433_vm8, %v8079_v46, 0.0  ;;  %vm3501_vm9 = vcmp.eq.s32.totalorder %v5497_v5, %v8076_v50  ;;  %vm3601_vm11 = vcmp.eq.s32.totalorder %v5497_v5, %v8081_v55  ;;  %v9959_v62 = vld [vmem:[#allocation14_spill] sm:$0xff] }
 0x2cf   : > { %v3202_v57 = vadd.f32 %v3170_v44, %v3102_v38  ;;  %v3536_v4 = vsel %vm3501_vm9, %v8088_v59, 0.0  ;;  %v3636_v25 = vsel %vm3601_vm11, %v8093_v14, 0.0  ;;  %vm3701_vm12 = vcmp.eq.s32.totalorder %v5497_v5, %v8095_v8 }
 0x2d0   : > { %3313 = vmatpush.msra.mxu2 %v3286_v42  ;;  %v3568_v41 = vadd.f32 %v3536_v4, %v3468_v13  ;;  %v3736_v33 = vsel %vm3701_vm12, %v8100_v32, 0.0  ;;  %vm3449_vm10 = vcmp.eq.s32.totalorder %v5500_v21, %v8074_v47  ;;  %vm3517_vm13 = vcmp.eq.s32.totalorder %v5500_v21, %v8076_v50 }
 0x2d1   : > { %v3302_v2 = vadd.f32 %v3270_v54, %v3202_v57  ;;  %v3484_v53 = vsel %vm3449_vm10, %v8079_v46, 0.0  ;;  %v3552_v61 = vsel %vm3517_vm13, %v8088_v59, 0.0  ;;  %vm3617_vm15 = vcmp.eq.s32.totalorder %v5500_v21, %v8081_v55 }
 0x2d2   : > { %v3668_v31 = vadd.f32 %v3636_v25, %v3568_v41  ;;  %v3584_v9 = vadd.f32 %v3552_v61, %v3484_v53  ;;  %v3652_v60 = vsel %vm3617_vm15, %v8093_v14, 0.0  ;;  %vm3717_vm14 = vcmp.eq.s32.totalorder %v5500_v21, %v8095_v8 }
 0x2d3   : > { %3333 = vmatpush.msra.mxu3 %v3302_v2  ;;  %v3752_v35 = vsel %vm3717_vm14, %v8100_v32, 0.0  ;;  %vm2950_vm0 = vcmp.eq.s32.totalorder %v5620_v29, %v7883_v52  ;;  %vm3018_vm1 = vcmp.eq.s32.totalorder %v5620_v29, %v7885_v49  ;;  %vm3118_vm2 = vcmp.eq.s32.totalorder %v5620_v29, %v7890_v45 }
 0x2d4   : > { %v3768_v11 = vadd.f32 %v3736_v33, %v3668_v31  ;;  %v3684_v7 = vadd.f32 %v3652_v60, %v3584_v9  ;;  %v2985_v28 = vsel %vm2950_vm0, %v7888_v30, 0.0  ;;  %v3053_v0 = vsel %vm3018_vm1, %v7897_v36, 0.0 }
 0x2d5   : > { %v3085_v43 = vadd.f32 %v3053_v0, %v2985_v28  ;;  %v3153_v12 = vsel %vm3118_vm2, %v7902_v3, 0.0  ;;  %vm3218_vm4 = vcmp.eq.s32.totalorder %v5620_v29, %v7904_v58  ;;  %vm2966_vm3 = vcmp.eq.s32.totalorder %v9959_v62, %v7883_v52  ;;  %v9960_v28 = vld [vmem:[#allocation17_spill] sm:$0xff] }
 0x2d6   : > { %3791 = vmatpush.msrb.mxu0 %v3768_v11  ;;  %v3784_v1 = vadd.f32 %v3752_v35, %v3684_v7  ;;  %v3253_v48 = vsel %vm3218_vm4, %v7907_v56, 0.0  ;;  %v3001_v26 = vsel %vm2966_vm3, %v7888_v30, 0.0  ;;  %vm3034_vm6 = vcmp.eq.s32.totalorder %v9959_v62, %v7885_v49 }
 0x2d7   : > { %v3185_v38 = vadd.f32 %v3153_v12, %v3085_v43  ;;  %v3069_v44 = vsel %vm3034_vm6, %v7897_v36, 0.0  ;;  %vm3134_vm7 = vcmp.eq.s32.totalorder %v9959_v62, %v7890_v45  ;;  %vm3234_vm5 = vcmp.eq.s32.totalorder %v9959_v62, %v7904_v58 }
 0x2d8   : > { %3811 = vmatpush.msrb.mxu1 %v3784_v1  ;;  %v3101_v54 = vadd.f32 %v3069_v44, %v3001_v26  ;;  %v3169_v42 = vsel %vm3134_vm7, %v7902_v3, 0.0  ;;  %v3269_v13 = vsel %vm3234_vm5, %v7907_v56, 0.0  ;;  %vm3432_vm8 = vcmp.eq.s32.totalorder %v5503_v22, %v8074_v47 }
 0x2d9   : > { %v3285_v57 = vadd.f32 %v3253_v48, %v3185_v38  ;;  %v3467_v4 = vsel %vm3432_vm8, %v8079_v46, 0.0  ;;  %vm3500_vm9 = vcmp.eq.s32.totalorder %v5503_v22, %v8076_v50  ;;  %vm3600_vm11 = vcmp.eq.s32.totalorder %v5503_v22, %v8081_v55  ;;  %v9961_v38 = vld [vmem:[#allocation18_spill] sm:$0xff] }
 0x2da   : > { %v3201_v25 = vadd.f32 %v3169_v42, %v3101_v54  ;;  %v3535_v41 = vsel %vm3500_vm9, %v8088_v59, 0.0  ;;  %v3635_v33 = vsel %vm3600_vm11, %v8093_v14, 0.0  ;;  %vm3700_vm12 = vcmp.eq.s32.totalorder %v5503_v22, %v8095_v8 }
 0x2db   : > { %3314 = vmatpush.msra.mxu2 %v3285_v57  ;;  %v3567_v2 = vadd.f32 %v3535_v41, %v3467_v4  ;;  %v3735_v53 = vsel %vm3700_vm12, %v8100_v32, 0.0  ;;  %vm3448_vm10 = vcmp.eq.s32.totalorder %v5610_v63, %v8074_v47  ;;  %vm3516_vm13 = vcmp.eq.s32.totalorder %v5610_v63, %v8076_v50 }
 0x2dc   : > { %v3301_v61 = vadd.f32 %v3269_v13, %v3201_v25  ;;  %v3483_v31 = vsel %vm3448_vm10, %v8079_v46, 0.0  ;;  %v3551_v9 = vsel %vm3516_vm13, %v8088_v59, 0.0  ;;  %vm3616_vm15 = vcmp.eq.s32.totalorder %v5610_v63, %v8081_v55 }
 0x2dd   : > { %v3667_v60 = vadd.f32 %v3635_v33, %v3567_v2  ;;  %v3583_v35 = vadd.f32 %v3551_v9, %v3483_v31  ;;  %v3651_v11 = vsel %vm3616_vm15, %v8093_v14, 0.0  ;;  %vm3716_vm14 = vcmp.eq.s32.totalorder %v5610_v63, %v8095_v8  ;;  %v8321_v33 = vld [vmem:[#allocation1 + $0x6] ss:$9 sm:$0xff] }
 0x2de   : > { %3334 = vmatpush.msra.mxu3 %v3301_v61  ;;  %v3751_v7 = vsel %vm3716_vm14, %v8100_v32, 0.0  ;;  %vm2949_vm0 = vcmp.eq.s32.totalorder %v9960_v28, %v7883_v52  ;;  %vm3017_vm1 = vcmp.eq.s32.totalorder %v9960_v28, %v7885_v49  ;;  %vm3117_vm2 = vcmp.eq.s32.totalorder %v9960_v28, %v7890_v45  ;;  %3834 = vst [vmem:[#allocation1] sm:$0xff] %v7063_v51 }
 0x2df   : > { %v3767_v0 = vadd.f32 %v3735_v53, %v3667_v60  ;;  %v3683_v43 = vadd.f32 %v3651_v11, %v3583_v35  ;;  %v2984_v12 = vsel %vm2949_vm0, %v7888_v30, 0.0  ;;  %v3052_v1 = vsel %vm3017_vm1, %v7897_v36, 0.0 }
 0x2e0   : > { %v3084_v48 = vadd.f32 %v3052_v1, %v2984_v12  ;;  %v3152_v26 = vsel %vm3117_vm2, %v7902_v3, 0.0  ;;  %vm3217_vm4 = vcmp.eq.s32.totalorder %v9960_v28, %v7904_v58  ;;  %vm2965_vm3 = vcmp.eq.s32.totalorder %v9961_v38, %v7883_v52 }
 0x2e1   : > { %3792 = vmatpush.msrb.mxu0 %v3767_v0  ;;  %v3783_v44 = vadd.f32 %v3751_v7, %v3683_v43  ;;  %v3252_v54 = vsel %vm3217_vm4, %v7907_v56, 0.0  ;;  %v3000_v42 = vsel %vm2965_vm3, %v7888_v30, 0.0  ;;  %vm3033_vm6 = vcmp.eq.s32.totalorder %v9961_v38, %v7885_v49 }
 0x2e2   : > { %v3184_v13 = vadd.f32 %v3152_v26, %v3084_v48  ;;  %v3068_v57 = vsel %vm3033_vm6, %v7897_v36, 0.0  ;;  %vm3133_vm7 = vcmp.eq.s32.totalorder %v9961_v38, %v7890_v45  ;;  %vm3233_vm5 = vcmp.eq.s32.totalorder %v9961_v38, %v7904_v58  ;;  %v9962_v48 = vld [vmem:[#allocation19_spill] sm:$0xff] }
 0x2e3   : > { %3812 = vmatpush.msrb.mxu1 %v3783_v44  ;;  %v3100_v4 = vadd.f32 %v3068_v57, %v3000_v42  ;;  %v3168_v25 = vsel %vm3133_vm7, %v7902_v3, 0.0  ;;  %v3268_v41 = vsel %vm3233_vm5, %v7907_v56, 0.0  ;;  %vm3431_vm8 = vcmp.eq.s32.totalorder %v5613_v23, %v8074_v47 }
 0x2e4   : > { %v3284_v2 = vadd.f32 %v3252_v54, %v3184_v13  ;;  %v3466_v53 = vsel %vm3431_vm8, %v8079_v46, 0.0  ;;  %vm3499_vm9 = vcmp.eq.s32.totalorder %v5613_v23, %v8076_v50  ;;  %vm3599_vm11 = vcmp.eq.s32.totalorder %v5613_v23, %v8081_v55 }
 0x2e5   : > { %v3200_v61 = vadd.f32 %v3168_v25, %v3100_v4  ;;  %v3534_v31 = vsel %vm3499_vm9, %v8088_v59, 0.0  ;;  %v3634_v9 = vsel %vm3599_vm11, %v8093_v14, 0.0  ;;  %vm3699_vm12 = vcmp.eq.s32.totalorder %v5613_v23, %v8095_v8  ;;  %v9963_v4 = vld [vmem:[#allocation20_spill] sm:$0xff] }
 0x2e6   : > { %3315 = vmatpush.msra.mxu2 %v3284_v2  ;;  %v3566_v60 = vadd.f32 %v3534_v31, %v3466_v53  ;;  %v3734_v35 = vsel %vm3699_vm12, %v8100_v32, 0.0  ;;  %vm3447_vm10 = vcmp.eq.s32.totalorder %v5616_v24, %v8074_v47  ;;  %vm3515_vm13 = vcmp.eq.s32.totalorder %v5616_v24, %v8076_v50 }
 0x2e7   : > { %v3300_v11 = vadd.f32 %v3268_v41, %v3200_v61  ;;  %v3482_v51 = vsel %vm3447_vm10, %v8079_v46, 0.0  ;;  %v3550_v7 = vsel %vm3515_vm13, %v8088_v59, 0.0  ;;  %vm3615_vm15 = vcmp.eq.s32.totalorder %v5616_v24, %v8081_v55 }
 0x2e8   : > { %v3666_v0 = vadd.f32 %v3634_v9, %v3566_v60  ;;  %v3582_v43 = vadd.f32 %v3550_v7, %v3482_v51  ;;  %v3650_v12 = vsel %vm3615_vm15, %v8093_v14, 0.0  ;;  %vm3715_vm14 = vcmp.eq.s32.totalorder %v5616_v24, %v8095_v8 }
 0x2e9   : > { %3335 = vmatpush.msra.mxu3 %v3300_v11  ;;  %v3750_v1 = vsel %vm3715_vm14, %v8100_v32, 0.0  ;;  %vm2948_vm0 = vcmp.eq.s32.totalorder %v9962_v48, %v7883_v52  ;;  %vm3016_vm1 = vcmp.eq.s32.totalorder %v9962_v48, %v7885_v49  ;;  %vm3116_vm2 = vcmp.eq.s32.totalorder %v9962_v48, %v7890_v45 }
 0x2ea   : > { %v3766_v26 = vadd.f32 %v3734_v35, %v3666_v0  ;;  %v3682_v44 = vadd.f32 %v3650_v12, %v3582_v43  ;;  %v2983_v54 = vsel %vm2948_vm0, %v7888_v30, 0.0  ;;  %v3051_v42 = vsel %vm3016_vm1, %v7897_v36, 0.0 }
 0x2eb   : > { %v3083_v13 = vadd.f32 %v3051_v42, %v2983_v54  ;;  %v3151_v57 = vsel %vm3116_vm2, %v7902_v3, 0.0  ;;  %vm3216_vm4 = vcmp.eq.s32.totalorder %v9962_v48, %v7904_v58  ;;  %vm2964_vm3 = vcmp.eq.s32.totalorder %v9963_v4, %v7883_v52 }
 0x2ec   : > { %3793 = vmatpush.msrb.mxu0 %v3766_v26  ;;  %v3782_v25 = vadd.f32 %v3750_v1, %v3682_v44  ;;  %v3251_v41 = vsel %vm3216_vm4, %v7907_v56, 0.0  ;;  %v2999_v2 = vsel %vm2964_vm3, %v7888_v30, 0.0  ;;  %vm3032_vm6 = vcmp.eq.s32.totalorder %v9963_v4, %v7885_v49 }
 0x2ed   : > { %v3183_v53 = vadd.f32 %v3151_v57, %v3083_v13  ;;  %v3067_v61 = vsel %vm3032_vm6, %v7897_v36, 0.0  ;;  %vm3132_vm7 = vcmp.eq.s32.totalorder %v9963_v4, %v7890_v45  ;;  %vm3232_vm5 = vcmp.eq.s32.totalorder %v9963_v4, %v7904_v58 }
 0x2ee   : > { %3813 = vmatpush.msrb.mxu1 %v3782_v25  ;;  %v3099_v31 = vadd.f32 %v3067_v61, %v2999_v2  ;;  %v3167_v9 = vsel %vm3132_vm7, %v7902_v3, 0.0  ;;  %v3267_v60 = vsel %vm3232_vm5, %v7907_v56, 0.0  ;;  %vm3430_vm8 = vcmp.eq.s32.totalorder %v5620_v29, %v8074_v47  ;;  %v9964_v25 = vld [vmem:[#allocation21_spill] sm:$0xff] }
 0x2ef   : > { %v3283_v35 = vadd.f32 %v3251_v41, %v3183_v53  ;;  %v3465_v11 = vsel %vm3430_vm8, %v8079_v46, 0.0  ;;  %vm3498_vm9 = vcmp.eq.s32.totalorder %v5620_v29, %v8076_v50  ;;  %vm3598_vm11 = vcmp.eq.s32.totalorder %v5620_v29, %v8081_v55 }
 0x2f0   : > { %v3199_v51 = vadd.f32 %v3167_v9, %v3099_v31  ;;  %v3533_v7 = vsel %vm3498_vm9, %v8088_v59, 0.0  ;;  %v3633_v0 = vsel %vm3598_vm11, %v8093_v14, 0.0  ;;  %vm3698_vm12 = vcmp.eq.s32.totalorder %v5620_v29, %v8095_v8 }
 0x2f1   : > { %3316 = vmatpush.msra.mxu2 %v3283_v35  ;;  %v3565_v43 = vadd.f32 %v3533_v7, %v3465_v11  ;;  %v3733_v12 = vsel %vm3698_vm12, %v8100_v32, 0.0  ;;  %vm3446_vm10 = vcmp.eq.s32.totalorder %v9959_v62, %v8074_v47  ;;  %vm3514_vm13 = vcmp.eq.s32.totalorder %v9959_v62, %v8076_v50 }
 0x2f2   : > { %v3299_v1 = vadd.f32 %v3267_v60, %v3199_v51  ;;  %v3481_v26 = vsel %vm3446_vm10, %v8079_v46, 0.0  ;;  %v3549_v44 = vsel %vm3514_vm13, %v8088_v59, 0.0  ;;  %vm3614_vm15 = vcmp.eq.s32.totalorder %v9959_v62, %v8081_v55  ;;  %v9965_v60 = vld [vmem:[#allocation22_spill] sm:$0xff] }
 0x2f3   : > { %v3665_v54 = vadd.f32 %v3633_v0, %v3565_v43  ;;  %v3581_v42 = vadd.f32 %v3549_v44, %v3481_v26  ;;  %v3649_v13 = vsel %vm3614_vm15, %v8093_v14, 0.0  ;;  %vm3714_vm14 = vcmp.eq.s32.totalorder %v9959_v62, %v8095_v8 }
 0x2f4   : > { %3336 = vmatpush.msra.mxu3 %v3299_v1  ;;  %v3749_v57 = vsel %vm3714_vm14, %v8100_v32, 0.0  ;;  %vm2947_vm0 = vcmp.eq.s32.totalorder %v9964_v25, %v7883_v52  ;;  %vm3015_vm1 = vcmp.eq.s32.totalorder %v9964_v25, %v7885_v49  ;;  %vm3115_vm2 = vcmp.eq.s32.totalorder %v9964_v25, %v7890_v45 }
 0x2f5   : > { %v3765_v41 = vadd.f32 %v3733_v12, %v3665_v54  ;;  %v3681_v2 = vadd.f32 %v3649_v13, %v3581_v42  ;;  %v2982_v53 = vsel %vm2947_vm0, %v7888_v30, 0.0  ;;  %v3050_v61 = vsel %vm3015_vm1, %v7897_v36, 0.0 }
 0x2f6   : > { %v3082_v31 = vadd.f32 %v3050_v61, %v2982_v53  ;;  %v3150_v9 = vsel %vm3115_vm2, %v7902_v3, 0.0  ;;  %vm3215_vm4 = vcmp.eq.s32.totalorder %v9964_v25, %v7904_v58  ;;  %vm2963_vm3 = vcmp.eq.s32.totalorder %v9965_v60, %v7883_v52 }
 0x2f7   : > { %3794 = vmatpush.msrb.mxu0 %v3765_v41  ;;  %v3781_v35 = vadd.f32 %v3749_v57, %v3681_v2  ;;  %v3250_v11 = vsel %vm3215_vm4, %v7907_v56, 0.0  ;;  %v2998_v51 = vsel %vm2963_vm3, %v7888_v30, 0.0  ;;  %vm3031_vm6 = vcmp.eq.s32.totalorder %v9965_v60, %v7885_v49  ;;  %v8429_v57 = vld [vmem:[#allocation1 + $0x7] ss:$9 sm:$0xff] }
 0x2f8   : > { %v3182_v7 = vadd.f32 %v3150_v9, %v3082_v31  ;;  %v3066_v0 = vsel %vm3031_vm6, %v7897_v36, 0.0  ;;  %vm3131_vm7 = vcmp.eq.s32.totalorder %v9965_v60, %v7890_v45  ;;  %vm3231_vm5 = vcmp.eq.s32.totalorder %v9965_v60, %v7904_v58  ;;  %3864 = vst [vmem:[#allocation1] sm:$0xff] %v5398_v40 }
 0x2f9   : > { %3814 = vmatpush.msrb.mxu1 %v3781_v35  ;;  %v3098_v43 = vadd.f32 %v3066_v0, %v2998_v51  ;;  %v3166_v12 = vsel %vm3131_vm7, %v7902_v3, 0.0  ;;  %v3266_v1 = vsel %vm3231_vm5, %v7907_v56, 0.0  ;;  %vm3429_vm8 = vcmp.eq.s32.totalorder %v9960_v28, %v8074_v47 }
 0x2fa   : > { %v3282_v26 = vadd.f32 %v3250_v11, %v3182_v7  ;;  %v3464_v44 = vsel %vm3429_vm8, %v8079_v46, 0.0  ;;  %vm3497_vm9 = vcmp.eq.s32.totalorder %v9960_v28, %v8076_v50  ;;  %vm3597_vm11 = vcmp.eq.s32.totalorder %v9960_v28, %v8081_v55  ;;  %v9966_v7 = vld [vmem:[#allocation23_spill] sm:$0xff] }
 0x2fb   : > { %v3198_v54 = vadd.f32 %v3166_v12, %v3098_v43  ;;  %v3532_v42 = vsel %vm3497_vm9, %v8088_v59, 0.0  ;;  %v3632_v13 = vsel %vm3597_vm11, %v8093_v14, 0.0  ;;  %vm3697_vm12 = vcmp.eq.s32.totalorder %v9960_v28, %v8095_v8 }
 0x2fc   : > { %3317 = vmatpush.msra.mxu2 %v3282_v26  ;;  %v3564_v41 = vadd.f32 %v3532_v42, %v3464_v44  ;;  %v3732_v2 = vsel %vm3697_vm12, %v8100_v32, 0.0  ;;  %vm3445_vm10 = vcmp.eq.s32.totalorder %v9961_v38, %v8074_v47  ;;  %vm3513_vm13 = vcmp.eq.s32.totalorder %v9961_v38, %v8076_v50 }
 0x2fd   : > { %v3298_v53 = vadd.f32 %v3266_v1, %v3198_v54  ;;  %v3480_v61 = vsel %vm3445_vm10, %v8079_v46, 0.0  ;;  %v3548_v31 = vsel %vm3513_vm13, %v8088_v59, 0.0  ;;  %vm3613_vm15 = vcmp.eq.s32.totalorder %v9961_v38, %v8081_v55  ;;  %v9967_v54 = vld [vmem:[#allocation24_spill] sm:$0xff] }
 0x2fe   : > { %v3664_v9 = vadd.f32 %v3632_v13, %v3564_v41  ;;  %v3580_v35 = vadd.f32 %v3548_v31, %v3480_v61  ;;  %v3648_v11 = vsel %vm3613_vm15, %v8093_v14, 0.0  ;;  %vm3713_vm14 = vcmp.eq.s32.totalorder %v9961_v38, %v8095_v8 }
 0x2ff   : > { %3337 = vmatpush.msra.mxu3 %v3298_v53  ;;  %v3748_v51 = vsel %vm3713_vm14, %v8100_v32, 0.0  ;;  %vm2946_vm0 = vcmp.eq.s32.totalorder %v9966_v7, %v7883_v52  ;;  %vm3014_vm1 = vcmp.eq.s32.totalorder %v9966_v7, %v7885_v49  ;;  %vm3114_vm2 = vcmp.eq.s32.totalorder %v9966_v7, %v7890_v45 }
 0x300   : > { %v3764_v0 = vadd.f32 %v3732_v2, %v3664_v9  ;;  %v3680_v43 = vadd.f32 %v3648_v11, %v3580_v35  ;;  %v2981_v12 = vsel %vm2946_vm0, %v7888_v30, 0.0  ;;  %v3049_v1 = vsel %vm3014_vm1, %v7897_v36, 0.0 }
 0x301   : > { %v3081_v26 = vadd.f32 %v3049_v1, %v2981_v12  ;;  %v3149_v44 = vsel %vm3114_vm2, %v7902_v3, 0.0  ;;  %vm3214_vm4 = vcmp.eq.s32.totalorder %v9966_v7, %v7904_v58  ;;  %vm2962_vm3 = vcmp.eq.s32.totalorder %v9967_v54, %v7883_v52 }
 0x302   : > { %3795 = vmatpush.msrb.mxu0 %v3764_v0  ;;  %v3780_v42 = vadd.f32 %v3748_v51, %v3680_v43  ;;  %v3249_v13 = vsel %vm3214_vm4, %v7907_v56, 0.0  ;;  %v2997_v41 = vsel %vm2962_vm3, %v7888_v30, 0.0  ;;  %vm3030_vm6 = vcmp.eq.s32.totalorder %v9967_v54, %v7885_v49  ;;  %v8476_v51 = vld [vmem:[#allocation1 + $0x7] ss:$9 sm:$0xff] }
 0x303   : > { %v3181_v2 = vadd.f32 %v3149_v44, %v3081_v26  ;;  %v3065_v53 = vsel %vm3030_vm6, %v7897_v36, 0.0  ;;  %vm3130_vm7 = vcmp.eq.s32.totalorder %v9967_v54, %v7890_v45  ;;  %vm3230_vm5 = vcmp.eq.s32.totalorder %v9967_v54, %v7904_v58  ;;  %3872 = vst [vmem:[#allocation1] sm:$0xff] %v5398_v40 }
 0x304   : > { %3815 = vmatpush.msrb.mxu1 %v3780_v42  ;;  %v3097_v61 = vadd.f32 %v3065_v53, %v2997_v41  ;;  %v3165_v31 = vsel %vm3130_vm7, %v7902_v3, 0.0  ;;  %v3265_v9 = vsel %vm3230_vm5, %v7907_v56, 0.0  ;;  %vm3428_vm8 = vcmp.eq.s32.totalorder %v9962_v48, %v8074_v47 }
 0x305   : > { %v3281_v35 = vadd.f32 %v3249_v13, %v3181_v2  ;;  %v3463_v11 = vsel %vm3428_vm8, %v8079_v46, 0.0  ;;  %vm3496_vm9 = vcmp.eq.s32.totalorder %v9962_v48, %v8076_v50  ;;  %vm3596_vm11 = vcmp.eq.s32.totalorder %v9962_v48, %v8081_v55 }
 0x306   : > { %v3197_v0 = vadd.f32 %v3165_v31, %v3097_v61  ;;  %v3531_v43 = vsel %vm3496_vm9, %v8088_v59, 0.0  ;;  %v3631_v12 = vsel %vm3596_vm11, %v8093_v14, 0.0  ;;  %vm3696_vm12 = vcmp.eq.s32.totalorder %v9962_v48, %v8095_v8  ;;  %v9968_v31 = vld [vmem:[#allocation25_spill] sm:$0xff] }
 0x307   : > { %3318 = vmatpush.msra.mxu2 %v3281_v35  ;;  %v3563_v1 = vadd.f32 %v3531_v43, %v3463_v11  ;;  %v3731_v26 = vsel %vm3696_vm12, %v8100_v32, 0.0  ;;  %vm3444_vm10 = vcmp.eq.s32.totalorder %v9963_v4, %v8074_v47  ;;  %vm3512_vm13 = vcmp.eq.s32.totalorder %v9963_v4, %v8076_v50 }
 0x308   : > { %v3297_v44 = vadd.f32 %v3265_v9, %v3197_v0  ;;  %v3479_v42 = vsel %vm3444_vm10, %v8079_v46, 0.0  ;;  %v3547_v13 = vsel %vm3512_vm13, %v8088_v59, 0.0  ;;  %vm3612_vm15 = vcmp.eq.s32.totalorder %v9963_v4, %v8081_v55 }
 0x309   : > { %v3663_v41 = vadd.f32 %v3631_v12, %v3563_v1  ;;  %v3579_v2 = vadd.f32 %v3547_v13, %v3479_v42  ;;  %v3647_v53 = vsel %vm3612_vm15, %v8093_v14, 0.0  ;;  %vm3712_vm14 = vcmp.eq.s32.totalorder %v9963_v4, %v8095_v8  ;;  %v9969_v1 = vld [vmem:[#allocation26_spill] sm:$0xff] }
 0x30a   : > { %3338 = vmatpush.msra.mxu3 %v3297_v44  ;;  %v3747_v61 = vsel %vm3712_vm14, %v8100_v32, 0.0  ;;  %vm2945_vm0 = vcmp.eq.s32.totalorder %v9968_v31, %v7883_v52  ;;  %vm3013_vm1 = vcmp.eq.s32.totalorder %v9968_v31, %v7885_v49  ;;  %vm3113_vm2 = vcmp.eq.s32.totalorder %v9968_v31, %v7890_v45 }
 0x30b   : > { %v3763_v9 = vadd.f32 %v3731_v26, %v3663_v41  ;;  %v3679_v35 = vadd.f32 %v3647_v53, %v3579_v2  ;;  %v2980_v11 = vsel %vm2945_vm0, %v7888_v30, 0.0  ;;  %v3048_v0 = vsel %vm3013_vm1, %v7897_v36, 0.0  ;;  %v8518_v2 = vld [vmem:[#allocation1 + $0x7] ss:$9 sm:$0xff] }
 0x30c   : > { %v3080_v43 = vadd.f32 %v3048_v0, %v2980_v11  ;;  %v3148_v12 = vsel %vm3113_vm2, %v7902_v3, 0.0  ;;  %vm3213_vm4 = vcmp.eq.s32.totalorder %v9968_v31, %v7904_v58  ;;  %vm2961_vm3 = vcmp.eq.s32.totalorder %v9969_v1, %v7883_v52  ;;  %3880 = vst [vmem:[#allocation1] sm:$0xff] %v5398_v40 }
 0x30d   : > { %3796 = vmatpush.msrb.mxu0 %v3763_v9  ;;  %v3779_v44 = vadd.f32 %v3747_v61, %v3679_v35  ;;  %v3248_v42 = vsel %vm3213_vm4, %v7907_v56, 0.0  ;;  %v2996_v26 = vsel %vm2961_vm3, %v7888_v30, 0.0  ;;  %vm3029_vm6 = vcmp.eq.s32.totalorder %v9969_v1, %v7885_v49 }
 0x30e   : > { %v3180_v13 = vadd.f32 %v3148_v12, %v3080_v43  ;;  %v3064_v41 = vsel %vm3029_vm6, %v7897_v36, 0.0  ;;  %vm3129_vm7 = vcmp.eq.s32.totalorder %v9969_v1, %v7890_v45  ;;  %vm3229_vm5 = vcmp.eq.s32.totalorder %v9969_v1, %v7904_v58 }
 0x30f   : > { %3816 = vmatpush.msrb.mxu1 %v3779_v44  ;;  %v3096_v53 = vadd.f32 %v3064_v41, %v2996_v26  ;;  %v3164_v61 = vsel %vm3129_vm7, %v7902_v3, 0.0  ;;  %v3264_v9 = vsel %vm3229_vm5, %v7907_v56, 0.0  ;;  %vm3427_vm8 = vcmp.eq.s32.totalorder %v9964_v25, %v8074_v47 }
 0x310   : > { %v3280_v35 = vadd.f32 %v3248_v42, %v3180_v13  ;;  %v3462_v11 = vsel %vm3427_vm8, %v8079_v46, 0.0  ;;  %vm3495_vm9 = vcmp.eq.s32.totalorder %v9964_v25, %v8076_v50  ;;  %vm3595_vm11 = vcmp.eq.s32.totalorder %v9964_v25, %v8081_v55 }
 0x311   : > { %v3196_v0 = vadd.f32 %v3164_v61, %v3096_v53  ;;  %v3530_v43 = vsel %vm3495_vm9, %v8088_v59, 0.0  ;;  %v3630_v12 = vsel %vm3595_vm11, %v8093_v14, 0.0  ;;  %vm3695_vm12 = vcmp.eq.s32.totalorder %v9964_v25, %v8095_v8 }
 0x312   : > { %3319 = vmatpush.msra.mxu2 %v3280_v35  ;;  %v3562_v44 = vadd.f32 %v3530_v43, %v3462_v11  ;;  %v3730_v42 = vsel %vm3695_vm12, %v8100_v32, 0.0  ;;  %vm3443_vm10 = vcmp.eq.s32.totalorder %v9965_v60, %v8074_v47  ;;  %vm3511_vm13 = vcmp.eq.s32.totalorder %v9965_v60, %v8076_v50  ;;  %v9970_v43 = vld [vmem:[#allocation27_spill] sm:$0xff] }
 0x313   : > { %v3296_v26 = vadd.f32 %v3264_v9, %v3196_v0  ;;  %v3478_v13 = vsel %vm3443_vm10, %v8079_v46, 0.0  ;;  %v3546_v41 = vsel %vm3511_vm13, %v8088_v59, 0.0  ;;  %vm3611_vm15 = vcmp.eq.s32.totalorder %v9965_v60, %v8081_v55 }
 0x314   : > { %v3662_v53 = vadd.f32 %v3630_v12, %v3562_v44  ;;  %v3578_v61 = vadd.f32 %v3546_v41, %v3478_v13  ;;  %v3646_v35 = vsel %vm3611_vm15, %v8093_v14, 0.0  ;;  %vm3711_vm14 = vcmp.eq.s32.totalorder %v9965_v60, %v8095_v8  ;;  %v8555_v13 = vld [vmem:[#allocation1 + $0x7] ss:$9 sm:$0xff] }
 0x315   : > { %3339 = vmatpush.msra.mxu3 %v3296_v26  ;;  %v3746_v11 = vsel %vm3711_vm14, %v8100_v32, 0.0  ;;  %vm2944_vm0 = vcmp.eq.s32.totalorder %v9970_v43, %v7883_v52  ;;  %vm3012_vm1 = vcmp.eq.s32.totalorder %v9970_v43, %v7885_v49  ;;  %vm3112_vm2 = vcmp.eq.s32.totalorder %v9970_v43, %v7890_v45  ;;  %3888 = vst [vmem:[#allocation1] sm:$0xff] %v5398_v40 }
 0x316   : > { %v3762_v9 = vadd.f32 %v3730_v42, %v3662_v53  ;;  %v3678_v0 = vadd.f32 %v3646_v35, %v3578_v61  ;;  %v2979_v12 = vsel %vm2944_vm0, %v7888_v30, 0.0  ;;  %v3047_v44 = vsel %vm3012_vm1, %v7897_v36, 0.0 }
 0x317   : > { %v3079_v26 = vadd.f32 %v3047_v44, %v2979_v12  ;;  %v3147_v41 = vsel %vm3112_vm2, %v7902_v3, 0.0  ;;  %vm3212_vm4 = vcmp.eq.s32.totalorder %v9970_v43, %v7904_v58  ;;  %vm2960_vm3 = vcmp.eq.s32.totalorder %v9938_v39, %v7883_v52 }
 0x318   : > { %3797 = vmatpush.msrb.mxu0 %v3762_v9  ;;  %v3778_v42 = vadd.f32 %v3746_v11, %v3678_v0  ;;  %v3247_v53 = vsel %vm3212_vm4, %v7907_v56, 0.0  ;;  %v2995_v61 = vsel %vm2960_vm3, %v7888_v30, 0.0  ;;  %vm3028_vm6 = vcmp.eq.s32.totalorder %v9938_v39, %v7885_v49 }
 0x319   : > { %v3179_v35 = vadd.f32 %v3147_v41, %v3079_v26  ;;  %v3063_v12 = vsel %vm3028_vm6, %v7897_v36, 0.0  ;;  %vm3128_vm7 = vcmp.eq.s32.totalorder %v9938_v39, %v7890_v45  ;;  %vm3228_vm5 = vcmp.eq.s32.totalorder %v9938_v39, %v7904_v58 }
 0x31a   : > { %3817 = vmatpush.msrb.mxu1 %v3778_v42  ;;  %v3095_v40 = vadd.f32 %v3063_v12, %v2995_v61  ;;  %v3163_v11 = vsel %vm3128_vm7, %v7902_v3, 0.0  ;;  %v3263_v9 = vsel %vm3228_vm5, %v7907_v56, 0.0  ;;  %vm3426_vm8 = vcmp.eq.s32.totalorder %v9966_v7, %v8074_v47 }
 0x31b   : > { %v3279_v0 = vadd.f32 %v3247_v53, %v3179_v35  ;;  %v3461_v44 = vsel %vm3426_vm8, %v8079_v46, 0.0  ;;  %vm3494_vm9 = vcmp.eq.s32.totalorder %v9966_v7, %v8076_v50  ;;  %vm3594_vm11 = vcmp.eq.s32.totalorder %v9966_v7, %v8081_v55 }
 0x31c   : > { %v3195_v26 = vadd.f32 %v3163_v11, %v3095_v40  ;;  %v3529_v41 = vsel %vm3494_vm9, %v8088_v59, 0.0  ;;  %v3629_v42 = vsel %vm3594_vm11, %v8093_v14, 0.0  ;;  %vm3694_vm12 = vcmp.eq.s32.totalorder %v9966_v7, %v8095_v8 }
 0x31d   : > { %3320 = vmatpush.msra.mxu2 %v3279_v0  ;;  %v3561_v61 = vadd.f32 %v3529_v41, %v3461_v44  ;;  %v3729_v53 = vsel %vm3694_vm12, %v8100_v32, 0.0  ;;  %vm3442_vm10 = vcmp.eq.s32.totalorder %v9967_v54, %v8074_v47  ;;  %vm3510_vm13 = vcmp.eq.s32.totalorder %v9967_v54, %v8076_v50 }
 0x31e   : > { %v3295_v35 = vadd.f32 %v3263_v9, %v3195_v26  ;;  %v3477_v12 = vsel %vm3442_vm10, %v8079_v46, 0.0  ;;  %v3545_v40 = vsel %vm3510_vm13, %v8088_v59, 0.0  ;;  %vm3610_vm15 = vcmp.eq.s32.totalorder %v9967_v54, %v8081_v55 }
 0x31f   : > { %v3661_v11 = vadd.f32 %v3629_v42, %v3561_v61  ;;  %v3577_v7 = vadd.f32 %v3545_v40, %v3477_v12  ;;  %v3645_v0 = vsel %vm3610_vm15, %v8093_v14, 0.0  ;;  %vm3710_vm14 = vcmp.eq.s32.totalorder %v9967_v54, %v8095_v8  ;;  %v9971_v12 = vld [vmem:[#allocation30_spill] sm:$0xff] }
 0x320   : > { %3340 = vmatpush.msra.mxu3 %v3295_v35  ;;  %v3745_v44 = vsel %vm3710_vm14, %v8100_v32, 0.0  ;;  %vm2943_vm0 = vcmp.eq.s32.totalorder %v9939_v10, %v7883_v52  ;;  %vm3011_vm1 = vcmp.eq.s32.totalorder %v9939_v10, %v7885_v49  ;;  %vm3111_vm2 = vcmp.eq.s32.totalorder %v9939_v10, %v7890_v45 }
 0x321   : > { %v3761_v9 = vadd.f32 %v3729_v53, %v3661_v11  ;;  %v3677_v26 = vadd.f32 %v3645_v0, %v3577_v7  ;;  %v2978_v41 = vsel %vm2943_vm0, %v7888_v30, 0.0  ;;  %v3046_v42 = vsel %vm3011_vm1, %v7897_v36, 0.0 }
 0x322   : > { %v3078_v61 = vadd.f32 %v3046_v42, %v2978_v41  ;;  %v3146_v35 = vsel %vm3111_vm2, %v7902_v3, 0.0  ;;  %vm3211_vm4 = vcmp.eq.s32.totalorder %v9939_v10, %v7904_v58  ;;  %vm2959_vm3 = vcmp.eq.s32.totalorder %v9971_v12, %v7883_v52 }
 0x323   : > { %3798 = vmatpush.msrb.mxu0 %v3761_v9  ;;  %v3777_v40 = vadd.f32 %v3745_v44, %v3677_v26  ;;  %v3246_v54 = vsel %vm3211_vm4, %v7907_v56, 0.0  ;;  %v2994_v53 = vsel %vm2959_vm3, %v7888_v30, 0.0  ;;  %vm3027_vm6 = vcmp.eq.s32.totalorder %v9971_v12, %v7885_v49 }
 0x324   : > { %v3178_v7 = vadd.f32 %v3146_v35, %v3078_v61  ;;  %v3062_v11 = vsel %vm3027_vm6, %v7897_v36, 0.0  ;;  %vm3127_vm7 = vcmp.eq.s32.totalorder %v9971_v12, %v7890_v45  ;;  %vm3227_vm5 = vcmp.eq.s32.totalorder %v9971_v12, %v7904_v58 }
 0x325   : > { %3818 = vmatpush.msrb.mxu1 %v3777_v40  ;;  %v3094_v0 = vadd.f32 %v3062_v11, %v2994_v53  ;;  %v3162_v44 = vsel %vm3127_vm7, %v7902_v3, 0.0  ;;  %v3262_v9 = vsel %vm3227_vm5, %v7907_v56, 0.0  ;;  %vm3425_vm8 = vcmp.eq.s32.totalorder %v9968_v31, %v8074_v47 }
 0x326   : > { %v3278_v26 = vadd.f32 %v3246_v54, %v3178_v7  ;;  %v3460_v41 = vsel %vm3425_vm8, %v8079_v46, 0.0  ;;  %vm3493_vm9 = vcmp.eq.s32.totalorder %v9968_v31, %v8076_v50  ;;  %vm3593_vm11 = vcmp.eq.s32.totalorder %v9968_v31, %v8081_v55 }
 0x327   : > { %v3194_v42 = vadd.f32 %v3162_v44, %v3094_v0  ;;  %v3528_v61 = vsel %vm3493_vm9, %v8088_v59, 0.0  ;;  %v3628_v35 = vsel %vm3593_vm11, %v8093_v14, 0.0  ;;  %vm3693_vm12 = vcmp.eq.s32.totalorder %v9968_v31, %v8095_v8 }
 0x328   : > { %3321 = vmatpush.msra.mxu2 %v3278_v26  ;;  %v3560_v40 = vadd.f32 %v3528_v61, %v3460_v41  ;;  %v3728_v54 = vsel %vm3693_vm12, %v8100_v32, 0.0  ;;  %vm3441_vm10 = vcmp.eq.s32.totalorder %v9969_v1, %v8074_v47  ;;  %vm3509_vm13 = vcmp.eq.s32.totalorder %v9969_v1, %v8076_v50 }
 0x329   : > { %v3294_v53 = vadd.f32 %v3262_v9, %v3194_v42  ;;  %v3476_v7 = vsel %vm3441_vm10, %v8079_v46, 0.0  ;;  %v3544_v11 = vsel %vm3509_vm13, %v8088_v59, 0.0  ;;  %vm3609_vm15 = vcmp.eq.s32.totalorder %v9969_v1, %v8081_v55  ;;  %v9972_v9 = vld [vmem:[#allocation32_spill] sm:$0xff] }
 0x32a   : > { %v3660_v0 = vadd.f32 %v3628_v35, %v3560_v40  ;;  %v3576_v44 = vadd.f32 %v3544_v11, %v3476_v7  ;;  %v3644_v26 = vsel %vm3609_vm15, %v8093_v14, 0.0  ;;  %vm3709_vm14 = vcmp.eq.s32.totalorder %v9969_v1, %v8095_v8  ;;  %v8652_v42 = vld [vmem:[#allocation1 + $0x7] ss:$9 sm:$0xff] }
 0x32b   : > { %3341 = vmatpush.msra.mxu3 %v3294_v53  ;;  %v3744_v41 = vsel %vm3709_vm14, %v8100_v32, 0.0  ;;  %vm2942_vm0 = vcmp.eq.s32.totalorder %v9972_v9, %v7883_v52  ;;  %vm3010_vm1 = vcmp.eq.s32.totalorder %v9972_v9, %v7885_v49  ;;  %vm3110_vm2 = vcmp.eq.s32.totalorder %v9972_v9, %v7890_v45  ;;  %v8662_v1 = vld [vmem:[%s5338_s21 + $0x10] sm:$0x3] }
 0x32c   : > { %v3760_v61 = vadd.f32 %v3728_v54, %v3660_v0  ;;  %v3676_v35 = vadd.f32 %v3644_v26, %v3576_v44  ;;  %v2977_v40 = vsel %vm2942_vm0, %v7888_v30, 0.0  ;;  %v3045_v7 = vsel %vm3010_vm1, %v7897_v36, 0.0  ;;  %4310 = vst [vmem:[#allocation1] sm:$0xff] %v8662_v1 }
 0x32d   : > { %v3077_v53 = vadd.f32 %v3045_v7, %v2977_v40  ;;  %v3145_v11 = vsel %vm3110_vm2, %v7902_v3, 0.0  ;;  %vm3210_vm4 = vcmp.eq.s32.totalorder %v9972_v9, %v7904_v58  ;;  %vm2958_vm3 = vcmp.eq.s32.totalorder %v5910_v37, %v7883_v52 }
 0x32e   : > { %3799 = vmatpush.msrb.mxu0 %v3760_v61  ;;  %v3776_v31 = vadd.f32 %v3744_v41, %v3676_v35  ;;  %v3245_v54 = vsel %vm3210_vm4, %v7907_v56, 0.0  ;;  %v2993_v0 = vsel %vm2958_vm3, %v7888_v30, 0.0  ;;  %vm3026_vm6 = vcmp.eq.s32.totalorder %v5910_v37, %v7885_v49 }
 0x32f   : > { %v3177_v44 = vadd.f32 %v3145_v11, %v3077_v53  ;;  %v3061_v26 = vsel %vm3026_vm6, %v7897_v36, 0.0  ;;  %vm3126_vm7 = vcmp.eq.s32.totalorder %v5910_v37, %v7890_v45  ;;  %vm3226_vm5 = vcmp.eq.s32.totalorder %v5910_v37, %v7904_v58 }
 0x330   : > { %3819 = vmatpush.msrb.mxu1 %v3776_v31  ;;  %v3093_v41 = vadd.f32 %v3061_v26, %v2993_v0  ;;  %v3161_v61 = vsel %vm3126_vm7, %v7902_v3, 0.0  ;;  %v3261_v35 = vsel %vm3226_vm5, %v7907_v56, 0.0  ;;  %vm3424_vm8 = vcmp.eq.s32.totalorder %v9970_v43, %v8074_v47 }
 0x331   : > { %v3277_v40 = vadd.f32 %v3245_v54, %v3177_v44  ;;  %v3459_v7 = vsel %vm3424_vm8, %v8079_v46, 0.0  ;;  %vm3492_vm9 = vcmp.eq.s32.totalorder %v9970_v43, %v8076_v50  ;;  %vm3592_vm11 = vcmp.eq.s32.totalorder %v9970_v43, %v8081_v55 }
 0x332   : > { %v3193_v53 = vadd.f32 %v3161_v61, %v3093_v41  ;;  %v3527_v31 = vsel %vm3492_vm9, %v8088_v59, 0.0  ;;  %v3627_v11 = vsel %vm3592_vm11, %v8093_v14, 0.0  ;;  %vm3692_vm12 = vcmp.eq.s32.totalorder %v9970_v43, %v8095_v8 }
 0x333   : > { %3322 = vmatpush.msra.mxu2 %v3277_v40  ;;  %v3559_v0 = vadd.f32 %v3527_v31, %v3459_v7  ;;  %v3727_v54 = vsel %vm3692_vm12, %v8100_v32, 0.0  ;;  %vm3440_vm10 = vcmp.eq.s32.totalorder %v9938_v39, %v8074_v47  ;;  %vm3508_vm13 = vcmp.eq.s32.totalorder %v9938_v39, %v8076_v50 }
 0x334   : > { %v3293_v44 = vadd.f32 %v3261_v35, %v3193_v53  ;;  %v3475_v26 = vsel %vm3440_vm10, %v8079_v46, 0.0  ;;  %v3543_v41 = vsel %vm3508_vm13, %v8088_v59, 0.0  ;;  %vm3608_vm15 = vcmp.eq.s32.totalorder %v9938_v39, %v8081_v55 }
 0x335   : > { %v3659_v61 = vadd.f32 %v3627_v11, %v3559_v0  ;;  %v3575_v43 = vadd.f32 %v3543_v41, %v3475_v26  ;;  %v3643_v40 = vsel %vm3608_vm15, %v8093_v14, 0.0  ;;  %vm3708_vm14 = vcmp.eq.s32.totalorder %v9938_v39, %v8095_v8 }
 0x336   : > { %3342 = vmatpush.msra.mxu3 %v3293_v44  ;;  %v3743_v7 = vsel %vm3708_vm14, %v8100_v32, 0.0  ;;  %vm2941_vm0 = vcmp.eq.s32.totalorder %v5364_v15, %v7883_v52  ;;  %vm3009_vm1 = vcmp.eq.s32.totalorder %v5364_v15, %v7885_v49  ;;  %vm3109_vm2 = vcmp.eq.s32.totalorder %v5364_v15, %v7890_v45 }
 0x337   : > { %v3759_v35 = vadd.f32 %v3727_v54, %v3659_v61  ;;  %v3675_v53 = vadd.f32 %v3643_v40, %v3575_v43  ;;  %v2976_v31 = vsel %vm2941_vm0, %v7888_v30, 0.0  ;;  %v3044_v11 = vsel %vm3009_vm1, %v7897_v36, 0.0 }
 0x338   : > { %v3076_v0 = vadd.f32 %v3044_v11, %v2976_v31  ;;  %v3144_v44 = vsel %vm3109_vm2, %v7902_v3, 0.0  ;;  %vm3209_vm4 = vcmp.eq.s32.totalorder %v5364_v15, %v7904_v58  ;;  %vm2957_vm3 = vcmp.eq.s32.totalorder %v6071_v6, %v7883_v52  ;;  %v8745_v11 = vld [vmem:[%s6879_s13] sm:$0xff] }
 0x339   : > { %3800 = vmatpush.msrb.mxu0 %v3759_v35  ;;  %v3775_v26 = vadd.f32 %v3743_v7, %v3675_v53  ;;  %v3244_v41 = vsel %vm3209_vm4, %v7907_v56, 0.0  ;;  %v2992_v54 = vsel %vm2957_vm3, %v7888_v30, 0.0  ;;  %vm3025_vm6 = vcmp.eq.s32.totalorder %v6071_v6, %v7885_v49 }
 0x33a   : > { %v3176_v43 = vadd.f32 %v3144_v44, %v3076_v0  ;;  %v3060_v61 = vsel %vm3025_vm6, %v7897_v36, 0.0  ;;  %vm3125_vm7 = vcmp.eq.s32.totalorder %v6071_v6, %v7890_v45  ;;  %vm3225_vm5 = vcmp.eq.s32.totalorder %v6071_v6, %v7904_v58 }
 0x33b   : > { %3820 = vmatpush.msrb.mxu1 %v3775_v26  ;;  %v3092_v52 = vadd.f32 %v3060_v61, %v2992_v54  ;;  %v3160_v40 = vsel %vm3125_vm7, %v7902_v3, 0.0  ;;  %v3260_v7 = vsel %vm3225_vm5, %v7907_v56, 0.0  ;;  %vm3423_vm8 = vcmp.eq.s32.totalorder %v9939_v10, %v8074_v47 }
 0x33c   : > { %v3276_v30 = vadd.f32 %v3244_v41, %v3176_v43  ;;  %v3458_v49 = vsel %vm3423_vm8, %v8079_v46, 0.0  ;;  %vm3491_vm9 = vcmp.eq.s32.totalorder %v9939_v10, %v8076_v50  ;;  %vm3591_vm11 = vcmp.eq.s32.totalorder %v9939_v10, %v8081_v55  ;;  %v9973_v43 = vld [vmem:[#allocation31_spill] sm:$0xff] }
 0x33d   : > { %v3192_v45 = vadd.f32 %v3160_v40, %v3092_v52  ;;  %v3526_v36 = vsel %vm3491_vm9, %v8088_v59, 0.0  ;;  %v3626_v3 = vsel %vm3591_vm11, %v8093_v14, 0.0  ;;  %vm3691_vm12 = vcmp.eq.s32.totalorder %v9939_v10, %v8095_v8 }
 0x33e   : > { %3323 = vmatpush.msra.mxu2 %v3276_v30  ;;  %v3558_v58 = vadd.f32 %v3526_v36, %v3458_v49  ;;  %v3726_v56 = vsel %vm3691_vm12, %v8100_v32, 0.0  ;;  %vm3439_vm10 = vcmp.eq.s32.totalorder %v9971_v12, %v8074_v47  ;;  %vm3507_vm13 = vcmp.eq.s32.totalorder %v9971_v12, %v8076_v50  ;;  %v8762_v30 = vld [vmem:[%s6879_s13 + $0x8] sm:$0xff] }
 0x33f   : > { %v3292_v35 = vadd.f32 %v3260_v7, %v3192_v45  ;;  %v3474_v53 = vsel %vm3439_vm10, %v8079_v46, 0.0  ;;  %v3542_v31 = vsel %vm3507_vm13, %v8088_v59, 0.0  ;;  %vm3607_vm15 = vcmp.eq.s32.totalorder %v9971_v12, %v8081_v55  ;;  %3324 = vmatmul.f32.vlgmr.msra.gmra.mxu2 %v8745_v11 }
 0x340   : > { %v3658_v0 = vadd.f32 %v3626_v3, %v3558_v58  ;;  %v3574_v44 = vadd.f32 %v3542_v31, %v3474_v53  ;;  %v3642_v26 = vsel %vm3607_vm15, %v8093_v14, 0.0  ;;  %vm3707_vm14 = vcmp.eq.s32.totalorder %v9971_v12, %v8095_v8 }
 0x341   : > { %3343 = vmatpush.msra.mxu3 %v3292_v35  ;;  %v3742_v41 = vsel %vm3707_vm14, %v8100_v32, 0.0  ;;  %v3833_v54 = vadd.f32 %v8321_v33, %v8010_v34  ;;  %v3838_v61 = vadd.f32 %v8429_v57, %v9973_v43  ;;  %vm3422_vm0 = vcmp.eq.s32.totalorder %v9972_v9, %v8074_v47 }
 0x342   : > { %v3758_v52 = vadd.f32 %v3726_v56, %v3658_v0  ;;  %v3674_v40 = vadd.f32 %v3642_v26, %v3574_v44  ;;  %v3457_v7 = vsel %vm3422_vm0, %v8079_v46, 0.0  ;;  %vm3490_vm1 = vcmp.eq.s32.totalorder %v9972_v9, %v8076_v50  ;;  %3344 = vmatmul.f32.vlgmr.msra.gmra.mxu3 %v8762_v30 }
 0x343   : > { %v3839_v49 = vfloor.f32 %v3833_v54  ;;  %v3840_v45 = vfloor.f32 %v3838_v61  ;;  %v3525_v33 = vsel %vm3490_vm1, %v8088_v59, 0.0  ;;  %vm3590_vm2 = vcmp.eq.s32.totalorder %v9972_v9, %v8081_v55 }
 0x344   : > { %3801 = vmatpush.msrb.mxu0 %v3758_v52  ;;  %v3774_v57 = vadd.f32 %v3742_v41, %v3674_v40  ;;  %v3557_v36 = vadd.f32 %v3525_v33, %v3457_v7  ;;  %v3625_v3 = vsel %vm3590_vm2, %v8093_v14, 0.0  ;;  %vm3690_vm4 = vcmp.eq.s32.totalorder %v9972_v9, %v8095_v8 }
 0x345   : > { %v3841_v58 = vsub.f32 %v3833_v54, %v3839_v49  ;;  %v3842_v56 = vsub.f32 %v3838_v61, %v3840_v45  ;;  %v5009_v35 = vcvt.f32.s32 %v3839_v49  ;;  %v5011_v53 = vcvt.f32.s32 %v3840_v45 }
 0x346   : > { %3821 = vmatpush.msrb.mxu1 %v3774_v57  ;;  %v3657_v31 = vadd.f32 %v3625_v3, %v3557_v36  ;;  %v3725_v0 = vsel %vm3690_vm4, %v8100_v32, 0.0  ;;  %vm3438_vm3 = vcmp.eq.s32.totalorder %v5910_v37, %v8074_v47  ;;  %vm3506_vm6 = vcmp.eq.s32.totalorder %v5910_v37, %v8076_v50 }
 0x347   : > { %v3845_v44 = vadd.s32 1, %v5009_v35  ;;  %v3846_v26 = vadd.s32 1, %v5011_v53  ;;  %vm3847_vm7 = vcmp.ge.s32.totalorder %v5009_v35, 0  ;;  %vm3848_vm5 = vcmp.lt.s32.totalorder %v5009_v35, 16 }
 0x348   : > { %vm8776_vm8 = vmand %vm3847_vm7, %vm3848_vm5  ;;  %vm3853_vm9 = vcmp.ge.s32.totalorder %v5011_v53, 0  ;;  %vm3854_vm11 = vcmp.lt.s32.totalorder %v5011_v53, 16  ;;  %v3860_v54 = vsub.f32 1.0, %v3841_v58  ;;  %v3861_v43 = vsub.f32 1.0, %v3842_v56 }
 0x349   : > { %vm3850_vm12 = vcmp.ge.s32.totalorder %v3845_v44, 0  ;;  %vm3851_vm10 = vcmp.lt.s32.totalorder %v3845_v44, 16  ;;  %vm8780_vm13 = vmand %vm3853_vm9, %vm3854_vm11  ;;  %vm3856_vm15 = vcmp.ge.s32.totalorder %v3846_v26, 0  ;;  %vm3857_vm14 = vcmp.lt.s32.totalorder %v3846_v26, 16 }
 0x34a   : > { %vm8784_vm0 = vmand %vm3850_vm12, %vm3851_vm10  ;;  %v3862_v40 = vmul.f32 %v3861_v43, %v3860_v54  ;;  %v3870_v7 = vmul.f32 %v3860_v54, %v3842_v56  ;;  %v3878_v49 = vmul.f32 %v3861_v43, %v3841_v58  ;;  %v3893_v33 = vmul.u32 16, %v5009_v35 }
 0x34b   : > { %vm8788_vm1 = vmand %vm3856_vm15, %vm3857_vm14  ;;  %v3896_v57 = vmul.u32 16, %v3845_v44  ;;  %v3757_v36 = vadd.f32 %v3725_v0, %v3657_v31  ;;  %v3473_v3 = vsel %vm3438_vm3, %v8079_v46, 0.0  ;;  %v3886_v9 = vmul.f32 %v3842_v56, %v3841_v58 }
 0x34c   : > { %vm3859_vm2 = vmand %vm8776_vm8, %vm8780_vm13  ;;  %v3541_v54 = vsel %vm3506_vm6, %v8088_v59, 0.0  ;;  %vm3606_vm4 = vcmp.eq.s32.totalorder %v5910_v37, %v8081_v55  ;;  %vm3706_vm7 = vcmp.eq.s32.totalorder %v5910_v37, %v8095_v8  ;;  %v3894_v31 = vadd.s32 %v5011_v53, %v3893_v33 }
 0x34d   : > { %v3863_v35 = vsel %vm3859_vm2, %v3862_v40, 0.0  ;;  %vm3869_vm3 = vmand %vm8776_vm8, %vm8788_vm1  ;;  %v3895_v0 = vadd.s32 %v3893_v33, %v3846_v26  ;;  %v3897_v58 = vadd.s32 %v5011_v53, %v3896_v57  ;;  %3802 = vmatpush.msrb.mxu0 %v3757_v36  ;;  %v3898_v43 = vadd.s32 %v3896_v57, %v3846_v26 }
 0x34e   : > { %v3868_v56 = vmul.f32 %v8476_v51, %v3863_v35  ;;  %v3871_v44 = vsel %vm3869_vm3, %v3870_v7, 0.0  ;;  %vm3877_vm6 = vmand %vm8784_vm0, %vm8780_vm13  ;;  %v3573_v12 = vadd.f32 %v3541_v54, %v3473_v3  ;;  %v8822_v53 = vperm.slane %v3894_v31, 0 }
 0x34f   : > { %v3876_v40 = vmul.f32 %v8518_v2, %v3871_v44  ;;  %v3879_v10 = vsel %vm3877_vm6, %v3878_v49, 0.0  ;;  %vm3885_vm5 = vmand %vm8784_vm0, %vm8788_vm1  ;;  %v8824_v41 = vperm.slane %v3895_v0, 0  ;;  %v8829_v33 = vperm.slane %v3897_v58, 0 }
 0x350   : > { %v3884_v51 = vmul.f32 %v8555_v13, %v3879_v10  ;;  %v3887_v61 = vsel %vm3885_vm5, %v3886_v9, 0.0  ;;  %v8827_v7 = vperm.slane %v3868_v56, 0  ;;  %vm3915_vm8 = vcmp.eq.s32.totalorder %v5376_v27, %v8822_v53 }
 0x351   : > { %v3892_v26 = vmul.f32 %v8652_v42, %v3887_v61  ;;  %vm3983_vm9 = vcmp.eq.s32.totalorder %v5376_v27, %v8824_v41  ;;  %v8836_v2 = vperm.slane %v3876_v40, 0  ;;  %vm4083_vm11 = vcmp.eq.s32.totalorder %v5376_v27, %v8829_v33 }
 0x352   : > { %v3950_v52 = vsel %vm3915_vm8, %v8827_v7, 0.0  ;;  %v8841_v10 = vperm.slane %v3884_v51, 0  ;;  %v8843_v13 = vperm.slane %v3898_v43, 0  ;;  %vm3421_vm12 = vcmp.eq.s32.totalorder %v5364_v15, %v8074_v47 }
 0x353   : > { %v4018_v9 = vsel %vm3983_vm9, %v8836_v2, 0.0  ;;  %v8848_v42 = vperm.slane %v3892_v26, 0  ;;  %vm3931_vm10 = vcmp.eq.s32.totalorder %v5482_v16, %v8822_v53  ;;  %vm3999_vm13 = vcmp.eq.s32.totalorder %v5482_v16, %v8824_v41 }
 0x354   : > { %v4050_v49 = vadd.f32 %v4018_v9, %v3950_v52  ;;  %v4118_v45 = vsel %vm4083_vm11, %v8841_v10, 0.0  ;;  %vm4183_vm15 = vcmp.eq.s32.totalorder %v5376_v27, %v8843_v13  ;;  %v3966_v57 = vsel %vm3931_vm10, %v8827_v7, 0.0 }
 0x355   : > { %v4218_v36 = vsel %vm4183_vm15, %v8848_v42, 0.0  ;;  %v4034_v3 = vsel %vm3999_vm13, %v8836_v2, 0.0  ;;  %vm4099_vm14 = vcmp.eq.s32.totalorder %v5482_v16, %v8829_v33  ;;  %vm4199_vm0 = vcmp.eq.s32.totalorder %v5482_v16, %v8843_v13 }
 0x356   : > { %v4150_v54 = vadd.f32 %v4118_v45, %v4050_v49  ;;  %v4066_v35 = vadd.f32 %v4034_v3, %v3966_v57  ;;  %v4134_v31 = vsel %vm4099_vm14, %v8841_v10, 0.0  ;;  %v4234_v0 = vsel %vm4199_vm0, %v8848_v42, 0.0 }
 0x357   : > { %v3641_v58 = vsel %vm3606_vm4, %v8093_v14, 0.0  ;;  %v3741_v56 = vsel %vm3706_vm7, %v8100_v32, 0.0  ;;  %vm3914_vm1 = vcmp.eq.s32.totalorder %v5485_v17, %v8822_v53  ;;  %vm3982_vm2 = vcmp.eq.s32.totalorder %v5485_v17, %v8824_v41 }
 0x358   : > { %v4250_v44 = vadd.f32 %v4218_v36, %v4150_v54  ;;  %v4166_v43 = vadd.f32 %v4134_v31, %v4066_v35  ;;  %v3673_v40 = vadd.f32 %v3641_v58, %v3573_v12  ;;  %v3949_v51 = vsel %vm3914_vm1, %v8827_v7, 0.0 }
 0x359   : > { %v4017_v61 = vsel %vm3982_vm2, %v8836_v2, 0.0  ;;  %vm4082_vm4 = vcmp.eq.s32.totalorder %v5485_v17, %v8829_v33  ;;  %vm4182_vm3 = vcmp.eq.s32.totalorder %v5485_v17, %v8843_v13  ;;  %vm3930_vm7 = vcmp.eq.s32.totalorder %v5488_v18, %v8822_v53 }
 0x35a   : > { %4267 = vmatpush.msrb.mxu2 %v4250_v44  ;;  %v4266_v26 = vadd.f32 %v4234_v0, %v4166_v43  ;;  %v3773_v52 = vadd.f32 %v3741_v56, %v3673_v40  ;;  %v4049_v9 = vadd.f32 %v4017_v61, %v3949_v51  ;;  %v4117_v49 = vsel %vm4082_vm4, %v8841_v10, 0.0 }
 0x35b   : > { %v4217_v12 = vsel %vm4182_vm3, %v8848_v42, 0.0  ;;  %v3965_v45 = vsel %vm3930_vm7, %v8827_v7, 0.0  ;;  %vm3998_vm6 = vcmp.eq.s32.totalorder %v5488_v18, %v8824_v41  ;;  %vm4098_vm5 = vcmp.eq.s32.totalorder %v5488_v18, %v8829_v33 }
 0x35c   : > { %4287 = vmatpush.msrb.mxu3 %v4266_v26  ;;  %3822 = vmatpush.msrb.mxu1 %v3773_v52  ;;  %v4149_v57 = vadd.f32 %v4117_v49, %v4049_v9  ;;  %v4033_v36 = vsel %vm3998_vm6, %v8836_v2, 0.0  ;;  %v4133_v3 = vsel %vm4098_vm5, %v8841_v10, 0.0  ;;  %vm4198_vm8 = vcmp.eq.s32.totalorder %v5488_v18, %v8843_v13 }
 0x35d   : > { %v4065_v54 = vadd.f32 %v4033_v36, %v3965_v45  ;;  %v4233_v35 = vsel %vm4198_vm8, %v8848_v42, 0.0  ;;  %v3456_v31 = vsel %vm3421_vm12, %v8079_v46, 0.0  ;;  %vm3489_vm9 = vcmp.eq.s32.totalorder %v5364_v15, %v8076_v50 }
 0x35e   : > { %v4249_v0 = vadd.f32 %v4217_v12, %v4149_v57  ;;  %v3524_v58 = vsel %vm3489_vm9, %v8088_v59, 0.0  ;;  %vm3589_vm11 = vcmp.eq.s32.totalorder %v5364_v15, %v8081_v55  ;;  %vm3689_vm10 = vcmp.eq.s32.totalorder %v5364_v15, %v8095_v8  ;;  %v4312_v12 = vld [vmem:[#allocation1 + $0x1] ss:$9 sm:$0xff] }
 0x35f   : > { %v4165_v56 = vadd.f32 %v4133_v3, %v4065_v54  ;;  %v3556_v44 = vadd.f32 %v3524_v58, %v3456_v31  ;;  %v3624_v43 = vsel %vm3589_vm11, %v8093_v14, 0.0  ;;  %v3724_v40 = vsel %vm3689_vm10, %v8100_v32, 0.0  ;;  %v9982_v58 = vld [vmem:[#allocation33_spill] sm:$0xff] }
 0x360   : > { %4268 = vmatpush.msrb.mxu2 %v4249_v0  ;;  %vm3437_vm12 = vcmp.eq.s32.totalorder %v6071_v6, %v8074_v47  ;;  %vm3505_vm13 = vcmp.eq.s32.totalorder %v6071_v6, %v8076_v50  ;;  %vm3605_vm15 = vcmp.eq.s32.totalorder %v6071_v6, %v8081_v55  ;;  %vm3705_vm14 = vcmp.eq.s32.totalorder %v6071_v6, %v8095_v8 }
 0x361   : > { %v4265_v51 = vadd.f32 %v4233_v35, %v4165_v56  ;;  %v3656_v61 = vadd.f32 %v3624_v43, %v3556_v44  ;;  %v3472_v26 = vsel %vm3437_vm12, %v8079_v46, 0.0  ;;  %v3540_v52 = vsel %vm3505_vm13, %v8088_v59, 0.0 }
 0x362   : > { %v3572_v9 = vadd.f32 %v3540_v52, %v3472_v26  ;;  %v3640_v49 = vsel %vm3605_vm15, %v8093_v14, 0.0  ;;  %v3740_v47 = vsel %vm3705_vm14, %v8100_v32, 0.0  ;;  %vm3913_vm0 = vcmp.eq.s32.totalorder %v5491_v19, %v8822_v53 }
 0x363   : > { %4288 = vmatpush.msrb.mxu3 %v4265_v51  ;;  %v3756_v50 = vadd.f32 %v3724_v40, %v3656_v61  ;;  %v3948_v55 = vsel %vm3913_vm0, %v8827_v7, 0.0  ;;  %vm3981_vm1 = vcmp.eq.s32.totalorder %v5491_v19, %v8824_v41  ;;  %vm4081_vm2 = vcmp.eq.s32.totalorder %v5491_v19, %v8829_v33 }
 0x364   : > { %v3672_v46 = vadd.f32 %v3640_v49, %v3572_v9  ;;  %v4016_v59 = vsel %vm3981_vm1, %v8836_v2, 0.0  ;;  %v4116_v14 = vsel %vm4081_vm2, %v8841_v10, 0.0  ;;  %vm4181_vm4 = vcmp.eq.s32.totalorder %v5491_v19, %v8843_v13 }
 0x365   : > { %3803 = vmatpush.msrb.mxu0 %v3756_v50  ;;  %v4048_v8 = vadd.f32 %v4016_v59, %v3948_v55  ;;  %v4216_v32 = vsel %vm4181_vm4, %v8848_v42, 0.0  ;;  %vm3929_vm3 = vcmp.eq.s32.totalorder %v5494_v20, %v8822_v53  ;;  %vm3997_vm7 = vcmp.eq.s32.totalorder %v5494_v20, %v8824_v41 }
 0x366   : > { %v3772_v45 = vadd.f32 %v3740_v47, %v3672_v46  ;;  %v3964_v57 = vsel %vm3929_vm3, %v8827_v7, 0.0  ;;  %v4032_v36 = vsel %vm3997_vm7, %v8836_v2, 0.0  ;;  %vm4097_vm6 = vcmp.eq.s32.totalorder %v5494_v20, %v8829_v33  ;;  %3804 = vmatmul.f32.vlgmr.msrb.gmra.mxu0 %v8745_v11 }
 0x367   : > { %v4148_v3 = vadd.f32 %v4116_v14, %v4048_v8  ;;  %v4064_v54 = vadd.f32 %v4032_v36, %v3964_v57  ;;  %v4132_v35 = vsel %vm4097_vm6, %v8841_v10, 0.0  ;;  %vm4197_vm5 = vcmp.eq.s32.totalorder %v5494_v20, %v8843_v13 }
 0x368   : > { %3823 = vmatpush.msrb.mxu1 %v3772_v45  ;;  %v4232_v31 = vsel %vm4197_vm5, %v8848_v42, 0.0  ;;  %v4308_v0 = vadd.f32 %v8010_v34, %v8662_v1  ;;  %v4314_v56 = vadd.f32 %v4312_v12, %v9982_v58  ;;  %vm3912_vm8 = vcmp.eq.s32.totalorder %v5497_v5, %v8822_v53 }
 0x369   : > { %v4248_v44 = vadd.f32 %v4216_v32, %v4148_v3  ;;  %v4164_v11 = vadd.f32 %v4132_v35, %v4064_v54  ;;  %v3947_v43 = vsel %vm3912_vm8, %v8827_v7, 0.0  ;;  %vm3980_vm9 = vcmp.eq.s32.totalorder %v5497_v5, %v8824_v41  ;;  %3824 = vmatmul.f32.vlgmr.msrb.gmra.mxu1 %v8762_v30  ;;  %v455_v3 = vld [vmem:[%s5395_s18 + $0x8] sm:$0x1]  ;;  %s4972_s18 = sshll.u32 %s5184_s28, 1 }
 0x36a   : > { %v4315_v40 = vfloor.f32 %v4308_v0  ;;  %v4316_v51 = vfloor.f32 %v4314_v56  ;;  %v4015_v61 = vsel %vm3980_vm9, %v8836_v2, 0.0  ;;  %vm4080_vm11 = vcmp.eq.s32.totalorder %v5497_v5, %v8829_v33  ;;  %s4820_s19 = sadd.s32 %s5180_s27, %s4972_s18 }
 0x36b   : > { %4269 = vmatpush.msrb.mxu2 %v4248_v44  ;;  %v4264_v34 = vadd.f32 %v4232_v31, %v4164_v11  ;;  %v4047_v1 = vadd.f32 %v4015_v61, %v3947_v43  ;;  %v4115_v26 = vsel %vm4080_vm11, %v8841_v10, 0.0  ;;  %vm4180_vm10 = vcmp.eq.s32.totalorder %v5497_v5, %v8843_v13  ;;  %s4973_s9 = sshll.u32 %s4820_s19, 3  ;;  %s5122_s19 = scalar_lea.hbm %s9772_s7, 32 }
 0x36c   : > { %v4317_v52 = vsub.f32 %v4308_v0, %v4315_v40  ;;  %v4318_v9 = vsub.f32 %v4314_v56, %v4316_v51  ;;  %v5013_v49 = vcvt.f32.s32 %v4315_v40  ;;  %v5015_v47 = vcvt.f32.s32 %v4316_v51  ;;  %s4822_s21 = scalar_lea.hbm %s9772_s7, %s4973_s9 }
 0x36d   : > { %4289 = vmatpush.msrb.mxu3 %v4264_v34  ;;  %v4147_v30 = vadd.f32 %v4115_v26, %v4047_v1  ;;  %v4215_v50 = vsel %vm4180_vm10, %v8848_v42, 0.0  ;;  %vm3928_vm12 = vcmp.eq.s32.totalorder %v5500_v21, %v8822_v53  ;;  %vm3996_vm13 = vcmp.eq.s32.totalorder %v5500_v21, %v8824_v41  ;;  %s4826_s1 = sshll.u32 %s4822_s21, 4  ;;  %s4827_s1 = int_to_ptr.hbm [resolvable:$true] %s4826_s1 }
 0x36e   : > { %v4321_v55 = vadd.s32 1, %v5013_v49  ;;  %v4322_v46 = vadd.s32 1, %v5015_v47  ;;  %vm4323_vm15 = vcmp.ge.s32.totalorder %v5013_v49, 0  ;;  %vm4324_vm14 = vcmp.lt.s32.totalorder %v5013_v49, 16  ;;  %s5116_s23 = sshra.s32 %s4827_s1, 4  ;;  %s5117_s23 = int_to_ptr.hbm [resolvable:$true] %s5116_s23 }
 0x36f   : > { %vm8968_vm0 = vmand %vm4323_vm15, %vm4324_vm14  ;;  %vm4329_vm1 = vcmp.ge.s32.totalorder %v5015_v47, 0  ;;  %vm4330_vm2 = vcmp.lt.s32.totalorder %v5015_v47, 16  ;;  %v4336_v14 = vsub.f32 1.0, %v4317_v52  ;;  %v4337_v8 = vsub.f32 1.0, %v4318_v9  ;;  %s5118_s27 = scalar_lea.hbm %s5117_s23, 8  ;;  %p5123_p6 = scmp.lt.s32.totalorder %s5117_s23, %s9772_s7 }
 0x370   : > { %vm4326_vm4 = vcmp.ge.s32.totalorder %v4321_v55, 0  ;;  %vm4327_vm3 = vcmp.lt.s32.totalorder %v4321_v55, 16  ;;  %vm8972_vm7 = vmand %vm4329_vm1, %vm4330_vm2  ;;  %vm4332_vm6 = vcmp.ge.s32.totalorder %v4322_v46, 0  ;;  %vm4333_vm5 = vcmp.lt.s32.totalorder %v4322_v46, 16  ;;  %p5119_p3 = scmp.ne.s32.totalorder %s5117_s23, %s5118_s27  ;;  %p5124_p7 = scmp.lt.s32.totalorder %s5122_s19, %s5118_s27 }
 0x371   : > { %vm8976_vm8 = vmand %vm4326_vm4, %vm4327_vm3  ;;  %v4338_v45 = vmul.f32 %v4337_v8, %v4336_v14  ;;  %v4342_v57 = vmul.f32 %v4336_v14, %v4318_v9  ;;  %v4346_v36 = vmul.f32 %v4337_v8, %v4317_v52  ;;  %v4353_v35 = vmul.u32 16, %v5013_v49 }
 0x372   : > { %vm8981_vm9 = vmand %vm4332_vm6, %vm4333_vm5  ;;  %v4356_v31 = vmul.u32 16, %v4321_v55  ;;  %v4247_v0 = vadd.f32 %v4215_v50, %v4147_v30  ;;  %v3963_v58 = vsel %vm3928_vm12, %v8827_v7, 0.0  ;;  %v4350_v56 = vmul.f32 %v4318_v9, %v4317_v52  ;;  %p5120_p4 = pnand %p5119_p3, %p5299_p8  ;;  %p5125_p10 = por %p5124_p7, %p5123_p6 }
 0x373   : > { %vm4335_vm11 = vmand %vm8968_vm0, %vm8972_vm7  ;;  %v4031_v44 = vsel %vm3996_vm13, %v8836_v2, 0.0  ;;  %vm4096_vm10 = vcmp.eq.s32.totalorder %v5500_v21, %v8829_v33  ;;  %vm4196_vm15 = vcmp.eq.s32.totalorder %v5500_v21, %v8843_v13  ;;  %v4354_v43 = vadd.s32 %v5015_v47, %v4353_v35 }
 0x374   : > { %v4339_v11 = vsel %vm4335_vm11, %v4338_v45, 0.0  ;;  %vm4341_vm12 = vmand %vm8968_vm0, %vm8981_vm9  ;;  %v4355_v40 = vadd.s32 %v4353_v35, %v4322_v46  ;;  %v4357_v51 = vadd.s32 %v5015_v47, %v4356_v31  ;;  %4270 = vmatpush.msrb.mxu2 %v4247_v0  ;;  %v4358_v1 = vadd.s32 %v4356_v31, %v4322_v46  ;;  %p5121_p5 = pneg %p5120_p4 }
 0x375   : > { %v4340_v61 = vmul.f32 %v4339_v11, %v455_v3  ;;  %v4343_v34 = vsel %vm4341_vm12, %v4342_v57, 0.0  ;;  %vm4345_vm13 = vmand %vm8976_vm8, %vm8972_vm7  ;;  %v4063_v26 = vadd.f32 %v4031_v44, %v3963_v58  ;;  %v9013_v49 = vperm.slane %v4354_v43, 0 }
 0x376   : > { %v4344_v52 = vmul.f32 %v4343_v34, %v455_v3  ;;  %v4347_v9 = vsel %vm4345_vm13, %v4346_v36, 0.0  ;;  %vm4349_vm14 = vmand %vm8976_vm8, %vm8981_vm9  ;;  %v9015_v47 = vperm.slane %v4355_v40, 0  ;;  %v9019_v59 = vperm.slane %v4357_v51, 0  ;;  %p5126_p11 = pnand %p5125_p10, %p5121_p5 }
 0x377   : > { %v4348_v30 = vmul.f32 %v4347_v9, %v455_v3  ;;  %v4351_v50 = vsel %vm4349_vm14, %v4350_v56, 0.0  ;;  %v9017_v55 = vperm.slane %v4340_v61, 0  ;;  %vm4375_vm0 = vcmp.eq.s32.totalorder %v5376_v27, %v9013_v49 }
 0x378   : > { %v4352_v14 = vmul.f32 %v4351_v50, %v455_v3  ;;  %vm4443_vm1 = vcmp.eq.s32.totalorder %v5376_v27, %v9015_v47  ;;  %v9025_v46 = vperm.slane %v4344_v52, 0  ;;  %vm4543_vm2 = vcmp.eq.s32.totalorder %v5376_v27, %v9019_v59 }
 0x379   : > { %v4410_v8 = vsel %vm4375_vm0, %v9017_v55, 0.0  ;;  %v9030_v32 = vperm.slane %v4348_v30, 0  ;;  %v9032_v12 = vperm.slane %v4358_v1, 0  ;;  %vm3911_vm4 = vcmp.eq.s32.totalorder %v5503_v22, %v8822_v53 }
 0x37a   : > { %v4478_v45 = vsel %vm4443_vm1, %v9025_v46, 0.0  ;;  %v9037_v57 = vperm.slane %v4352_v14, 0  ;;  %vm4391_vm3 = vcmp.eq.s32.totalorder %v5482_v16, %v9013_v49  ;;  %vm4459_vm7 = vcmp.eq.s32.totalorder %v5482_v16, %v9015_v47 }
 0x37b   : > { %v4510_v36 = vadd.f32 %v4478_v45, %v4410_v8  ;;  %v4578_v3 = vsel %vm4543_vm2, %v9030_v32, 0.0  ;;  %vm4643_vm6 = vcmp.eq.s32.totalorder %v5376_v27, %v9032_v12  ;;  %v4426_v54 = vsel %vm4391_vm3, %v9017_v55, 0.0 }
 0x37c   : > { %v4678_v35 = vsel %vm4643_vm6, %v9037_v57, 0.0  ;;  %v4494_v31 = vsel %vm4459_vm7, %v9025_v46, 0.0  ;;  %vm4559_vm5 = vcmp.eq.s32.totalorder %v5482_v16, %v9019_v59  ;;  %vm4659_vm8 = vcmp.eq.s32.totalorder %v5482_v16, %v9032_v12 }
 0x37d   : > { %v4610_v0 = vadd.f32 %v4578_v3, %v4510_v36  ;;  %v4526_v58 = vadd.f32 %v4494_v31, %v4426_v54  ;;  %v4594_v56 = vsel %vm4559_vm5, %v9030_v32, 0.0  ;;  %v4694_v44 = vsel %vm4659_vm8, %v9037_v57, 0.0 }
 0x37e   : > { %v4131_v27 = vsel %vm4096_vm10, %v8841_v10, 0.0  ;;  %v4231_v11 = vsel %vm4196_vm15, %v8848_v42, 0.0  ;;  %vm4374_vm9 = vcmp.eq.s32.totalorder %v5485_v17, %v9013_v49  ;;  %vm4442_vm11 = vcmp.eq.s32.totalorder %v5485_v17, %v9015_v47 }
 0x37f   : > { %v4710_v16 = vadd.f32 %v4678_v35, %v4610_v0  ;;  %v4626_v43 = vadd.f32 %v4594_v56, %v4526_v58  ;;  %v4163_v40 = vadd.f32 %v4131_v27, %v4063_v26  ;;  %v4409_v51 = vsel %vm4374_vm9, %v9017_v55, 0.0 }
 0x380   : > { %v4477_v61 = vsel %vm4442_vm11, %v9025_v46, 0.0  ;;  %vm4542_vm10 = vcmp.eq.s32.totalorder %v5485_v17, %v9019_v59  ;;  %vm4642_vm12 = vcmp.eq.s32.totalorder %v5485_v17, %v9032_v12  ;;  %vm4390_vm15 = vcmp.eq.s32.totalorder %v5488_v18, %v9013_v49 }
 0x381   : > { %4727 = vmatpush.msra.mxu0 %v4710_v16  ;;  %v4726_v34 = vadd.f32 %v4694_v44, %v4626_v43  ;;  %v4263_v1 = vadd.f32 %v4231_v11, %v4163_v40  ;;  %v4509_v52 = vadd.f32 %v4477_v61, %v4409_v51  ;;  %v4577_v9 = vsel %vm4542_vm10, %v9030_v32, 0.0 }
 0x382   : > { %v4677_v26 = vsel %vm4642_vm12, %v9037_v57, 0.0  ;;  %v4425_v30 = vsel %vm4390_vm15, %v9017_v55, 0.0  ;;  %vm4458_vm13 = vcmp.eq.s32.totalorder %v5488_v18, %v9015_v47  ;;  %vm4558_vm14 = vcmp.eq.s32.totalorder %v5488_v18, %v9019_v59 }
 0x383   : > { %4747 = vmatpush.msra.mxu1 %v4726_v34  ;;  %4290 = vmatpush.msrb.mxu3 %v4263_v1  ;;  %v4609_v17 = vadd.f32 %v4577_v9, %v4509_v52  ;;  %v4493_v50 = vsel %vm4458_vm13, %v9025_v46, 0.0  ;;  %v4593_v14 = vsel %vm4558_vm14, %v9030_v32, 0.0  ;;  %vm4658_vm0 = vcmp.eq.s32.totalorder %v5488_v18, %v9032_v12 }
 0x384   : > { %v4525_v8 = vadd.f32 %v4493_v50, %v4425_v30  ;;  %v4693_v45 = vsel %vm4658_vm0, %v9037_v57, 0.0  ;;  %v3946_v36 = vsel %vm3911_vm4, %v8827_v7, 0.0  ;;  %vm3979_vm1 = vcmp.eq.s32.totalorder %v5503_v22, %v8824_v41 }
 0x385   : > { %v4709_v3 = vadd.f32 %v4677_v26, %v4609_v17  ;;  %v4014_v54 = vsel %vm3979_vm1, %v8836_v2, 0.0  ;;  %vm4079_vm2 = vcmp.eq.s32.totalorder %v5503_v22, %v8829_v33  ;;  %vm4179_vm3 = vcmp.eq.s32.totalorder %v5503_v22, %v8843_v13 }
 0x386   : > { %v4625_v18 = vadd.f32 %v4593_v14, %v4525_v8  ;;  %v4046_v35 = vadd.f32 %v4014_v54, %v3946_v36  ;;  %v4114_v31 = vsel %vm4079_vm2, %v8841_v10, 0.0  ;;  %v4214_v0 = vsel %vm4179_vm3, %v8848_v42, 0.0 }
 0x387   : > { %4728 = vmatpush.msra.mxu0 %v4709_v3  ;;  %vm3927_vm4 = vcmp.eq.s32.totalorder %v5610_v63, %v8822_v53  ;;  %vm3995_vm7 = vcmp.eq.s32.totalorder %v5610_v63, %v8824_v41  ;;  %vm4095_vm6 = vcmp.eq.s32.totalorder %v5610_v63, %v8829_v33  ;;  %vm4195_vm5 = vcmp.eq.s32.totalorder %v5610_v63, %v8843_v13 }
 0x388   : > { %v4725_v58 = vadd.f32 %v4693_v45, %v4625_v18  ;;  %v4146_v56 = vadd.f32 %v4114_v31, %v4046_v35  ;;  %v3962_v44 = vsel %vm3927_vm4, %v8827_v7, 0.0  ;;  %v4030_v27 = vsel %vm3995_vm7, %v8836_v2, 0.0 }
 0x389   : > { %v4062_v11 = vadd.f32 %v4030_v27, %v3962_v44  ;;  %v4130_v16 = vsel %vm4095_vm6, %v8841_v10, 0.0  ;;  %v4230_v43 = vsel %vm4195_vm5, %v8848_v42, 0.0  ;;  %vm4373_vm8 = vcmp.eq.s32.totalorder %v5491_v19, %v9013_v49 }
 0x38a   : > { %4748 = vmatpush.msra.mxu1 %v4725_v58  ;;  %v4246_v40 = vadd.f32 %v4214_v0, %v4146_v56  ;;  %v4408_v51 = vsel %vm4373_vm8, %v9017_v55, 0.0  ;;  %vm4441_vm9 = vcmp.eq.s32.totalorder %v5491_v19, %v9015_v47  ;;  %vm4541_vm11 = vcmp.eq.s32.totalorder %v5491_v19, %v9019_v59 }
 0x38b   : > { %v4162_v61 = vadd.f32 %v4130_v16, %v4062_v11  ;;  %v4476_v34 = vsel %vm4441_vm9, %v9025_v46, 0.0  ;;  %v4576_v1 = vsel %vm4541_vm11, %v9030_v32, 0.0  ;;  %vm4641_vm10 = vcmp.eq.s32.totalorder %v5491_v19, %v9032_v12 }
 0x38c   : > { %4271 = vmatpush.msrb.mxu2 %v4246_v40  ;;  %v4508_v52 = vadd.f32 %v4476_v34, %v4408_v51  ;;  %v4676_v9 = vsel %vm4641_vm10, %v9037_v57, 0.0  ;;  %vm4389_vm12 = vcmp.eq.s32.totalorder %v5494_v20, %v9013_v49  ;;  %vm4457_vm15 = vcmp.eq.s32.totalorder %v5494_v20, %v9015_v47 }
 0x38d   : > { %v4262_v26 = vadd.f32 %v4230_v43, %v4162_v61  ;;  %v4424_v30 = vsel %vm4389_vm12, %v9017_v55, 0.0  ;;  %v4492_v17 = vsel %vm4457_vm15, %v9025_v46, 0.0  ;;  %vm4557_vm13 = vcmp.eq.s32.totalorder %v5494_v20, %v9019_v59 }
 0x38e   : > { %v4608_v50 = vadd.f32 %v4576_v1, %v4508_v52  ;;  %v4524_v19 = vadd.f32 %v4492_v17, %v4424_v30  ;;  %v4592_v14 = vsel %vm4557_vm13, %v9030_v32, 0.0  ;;  %vm4657_vm14 = vcmp.eq.s32.totalorder %v5494_v20, %v9032_v12 }
 0x38f   : > { %4291 = vmatpush.msrb.mxu3 %v4262_v26  ;;  %v4692_v8 = vsel %vm4657_vm14, %v9037_v57, 0.0  ;;  %vm3910_vm0 = vcmp.eq.s32.totalorder %v5613_v23, %v8822_v53  ;;  %vm3978_vm1 = vcmp.eq.s32.totalorder %v5613_v23, %v8824_v41  ;;  %vm4078_vm2 = vcmp.eq.s32.totalorder %v5613_v23, %v8829_v33 }
 0x390   : > { %v4708_v45 = vadd.f32 %v4676_v9, %v4608_v50  ;;  %v4624_v36 = vadd.f32 %v4592_v14, %v4524_v19  ;;  %v3945_v3 = vsel %vm3910_vm0, %v8827_v7, 0.0  ;;  %v4013_v54 = vsel %vm3978_vm1, %v8836_v2, 0.0 }
 0x391   : > { %v4045_v18 = vadd.f32 %v4013_v54, %v3945_v3  ;;  %v4113_v20 = vsel %vm4078_vm2, %v8841_v10, 0.0  ;;  %vm4178_vm3 = vcmp.eq.s32.totalorder %v5613_v23, %v8843_v13  ;;  %vm3926_vm4 = vcmp.eq.s32.totalorder %v5616_v24, %v8822_v53 }
 0x392   : > { %4729 = vmatpush.msra.mxu0 %v4708_v45  ;;  %v4724_v35 = vadd.f32 %v4692_v8, %v4624_v36  ;;  %v4213_v31 = vsel %vm4178_vm3, %v8848_v42, 0.0  ;;  %v3961_v0 = vsel %vm3926_vm4, %v8827_v7, 0.0  ;;  %vm3994_vm7 = vcmp.eq.s32.totalorder %v5616_v24, %v8824_v41 }
 0x393   : > { %v4145_v58 = vadd.f32 %v4113_v20, %v4045_v18  ;;  %v4029_v56 = vsel %vm3994_vm7, %v8836_v2, 0.0  ;;  %vm4094_vm6 = vcmp.eq.s32.totalorder %v5616_v24, %v8829_v33  ;;  %vm4194_vm5 = vcmp.eq.s32.totalorder %v5616_v24, %v8843_v13 }
 0x394   : > { %4749 = vmatpush.msra.mxu1 %v4724_v35  ;;  %v4061_v44 = vadd.f32 %v4029_v56, %v3961_v0  ;;  %v4129_v27 = vsel %vm4094_vm6, %v8841_v10, 0.0  ;;  %v4229_v11 = vsel %vm4194_vm5, %v8848_v42, 0.0  ;;  %vm4372_vm8 = vcmp.eq.s32.totalorder %v5497_v5, %v9013_v49 }
 0x395   : > { %v4245_v16 = vadd.f32 %v4213_v31, %v4145_v58  ;;  %v4407_v43 = vsel %vm4372_vm8, %v9017_v55, 0.0  ;;  %vm4440_vm9 = vcmp.eq.s32.totalorder %v5497_v5, %v9015_v47  ;;  %vm4540_vm11 = vcmp.eq.s32.totalorder %v5497_v5, %v9019_v59 }
 0x396   : > { %v4161_v40 = vadd.f32 %v4129_v27, %v4061_v44  ;;  %v4475_v51 = vsel %vm4440_vm9, %v9025_v46, 0.0  ;;  %v4575_v61 = vsel %vm4540_vm11, %v9030_v32, 0.0  ;;  %vm4640_vm10 = vcmp.eq.s32.totalorder %v5497_v5, %v9032_v12 }
 0x397   : > { %4272 = vmatpush.msrb.mxu2 %v4245_v16  ;;  %v4507_v34 = vadd.f32 %v4475_v51, %v4407_v43  ;;  %v4675_v1 = vsel %vm4640_vm10, %v9037_v57, 0.0  ;;  %vm4388_vm12 = vcmp.eq.s32.totalorder %v5500_v21, %v9013_v49  ;;  %vm4456_vm15 = vcmp.eq.s32.totalorder %v5500_v21, %v9015_v47 }
 0x398   : > { %v4261_v52 = vadd.f32 %v4229_v11, %v4161_v40  ;;  %v4423_v9 = vsel %vm4388_vm12, %v9017_v55, 0.0  ;;  %v4491_v26 = vsel %vm4456_vm15, %v9025_v46, 0.0  ;;  %vm4556_vm13 = vcmp.eq.s32.totalorder %v5500_v21, %v9019_v59 }
 0x399   : > { %v4607_v30 = vadd.f32 %v4575_v61, %v4507_v34  ;;  %v4523_v5 = vadd.f32 %v4491_v26, %v4423_v9  ;;  %v4591_v17 = vsel %vm4556_vm13, %v9030_v32, 0.0  ;;  %vm4656_vm14 = vcmp.eq.s32.totalorder %v5500_v21, %v9032_v12 }
 0x39a   : > { %4292 = vmatpush.msrb.mxu3 %v4261_v52  ;;  %v4691_v50 = vsel %vm4656_vm14, %v9037_v57, 0.0  ;;  %vm3909_vm0 = vcmp.eq.s32.totalorder %v5620_v29, %v8822_v53  ;;  %vm3977_vm1 = vcmp.eq.s32.totalorder %v5620_v29, %v8824_v41  ;;  %vm4077_vm2 = vcmp.eq.s32.totalorder %v5620_v29, %v8829_v33 }
 0x39b   : > { %v4707_v19 = vadd.f32 %v4675_v1, %v4607_v30  ;;  %v4623_v14 = vadd.f32 %v4591_v17, %v4523_v5  ;;  %v3944_v8 = vsel %vm3909_vm0, %v8827_v7, 0.0  ;;  %v4012_v45 = vsel %vm3977_vm1, %v8836_v2, 0.0 }
 0x39c   : > { %v4044_v36 = vadd.f32 %v4012_v45, %v3944_v8  ;;  %v4112_v21 = vsel %vm4077_vm2, %v8841_v10, 0.0  ;;  %vm4177_vm3 = vcmp.eq.s32.totalorder %v5620_v29, %v8843_v13  ;;  %vm3925_vm4 = vcmp.eq.s32.totalorder %v9959_v62, %v8822_v53 }
 0x39d   : > { %4730 = vmatpush.msra.mxu0 %v4707_v19  ;;  %v4723_v3 = vadd.f32 %v4691_v50, %v4623_v14  ;;  %v4212_v54 = vsel %vm4177_vm3, %v8848_v42, 0.0  ;;  %v3960_v18 = vsel %vm3925_vm4, %v8827_v7, 0.0  ;;  %vm3993_vm7 = vcmp.eq.s32.totalorder %v9959_v62, %v8824_v41 }
 0x39e   : > { %v4144_v20 = vadd.f32 %v4112_v21, %v4044_v36  ;;  %v4028_v35 = vsel %vm3993_vm7, %v8836_v2, 0.0  ;;  %vm4093_vm6 = vcmp.eq.s32.totalorder %v9959_v62, %v8829_v33  ;;  %vm4193_vm5 = vcmp.eq.s32.totalorder %v9959_v62, %v8843_v13 }
 0x39f   : > { %4750 = vmatpush.msra.mxu1 %v4723_v3  ;;  %v4060_v31 = vadd.f32 %v4028_v35, %v3960_v18  ;;  %v4128_v0 = vsel %vm4093_vm6, %v8841_v10, 0.0  ;;  %v4228_v58 = vsel %vm4193_vm5, %v8848_v42, 0.0  ;;  %vm4371_vm8 = vcmp.eq.s32.totalorder %v5503_v22, %v9013_v49 }
 0x3a0   : > { %v4244_v56 = vadd.f32 %v4212_v54, %v4144_v20  ;;  %v4406_v44 = vsel %vm4371_vm8, %v9017_v55, 0.0  ;;  %vm4439_vm9 = vcmp.eq.s32.totalorder %v5503_v22, %v9015_v47  ;;  %vm4539_vm11 = vcmp.eq.s32.totalorder %v5503_v22, %v9019_v59 }
 0x3a1   : > { %v4160_v27 = vadd.f32 %v4128_v0, %v4060_v31  ;;  %v4474_v11 = vsel %vm4439_vm9, %v9025_v46, 0.0  ;;  %v4574_v16 = vsel %vm4539_vm11, %v9030_v32, 0.0  ;;  %vm4639_vm10 = vcmp.eq.s32.totalorder %v5503_v22, %v9032_v12 }
 0x3a2   : > { %4273 = vmatpush.msrb.mxu2 %v4244_v56  ;;  %v4506_v43 = vadd.f32 %v4474_v11, %v4406_v44  ;;  %v4674_v40 = vsel %vm4639_vm10, %v9037_v57, 0.0  ;;  %vm4387_vm12 = vcmp.eq.s32.totalorder %v5610_v63, %v9013_v49  ;;  %vm4455_vm15 = vcmp.eq.s32.totalorder %v5610_v63, %v9015_v47 }
 0x3a3   : > { %v4260_v51 = vadd.f32 %v4228_v58, %v4160_v27  ;;  %v4422_v61 = vsel %vm4387_vm12, %v9017_v55, 0.0  ;;  %v4490_v34 = vsel %vm4455_vm15, %v9025_v46, 0.0  ;;  %vm4555_vm13 = vcmp.eq.s32.totalorder %v5610_v63, %v9019_v59 }
 0x3a4   : > { %v4606_v1 = vadd.f32 %v4574_v16, %v4506_v43  ;;  %v4522_v22 = vadd.f32 %v4490_v34, %v4422_v61  ;;  %v4590_v52 = vsel %vm4555_vm13, %v9030_v32, 0.0  ;;  %vm4655_vm14 = vcmp.eq.s32.totalorder %v5610_v63, %v9032_v12 }
 0x3a5   : > { %4293 = vmatpush.msrb.mxu3 %v4260_v51  ;;  %v4690_v9 = vsel %vm4655_vm14, %v9037_v57, 0.0  ;;  %vm3908_vm0 = vcmp.eq.s32.totalorder %v9960_v28, %v8822_v53  ;;  %vm3976_vm1 = vcmp.eq.s32.totalorder %v9960_v28, %v8824_v41  ;;  %vm4076_vm2 = vcmp.eq.s32.totalorder %v9960_v28, %v8829_v33 }
 0x3a6   : > { %v4706_v26 = vadd.f32 %v4674_v40, %v4606_v1  ;;  %v4622_v30 = vadd.f32 %v4590_v52, %v4522_v22  ;;  %v3943_v5 = vsel %vm3908_vm0, %v8827_v7, 0.0  ;;  %v4011_v17 = vsel %vm3976_vm1, %v8836_v2, 0.0 }
 0x3a7   : > { %v4043_v50 = vadd.f32 %v4011_v17, %v3943_v5  ;;  %v4111_v63 = vsel %vm4076_vm2, %v8841_v10, 0.0  ;;  %vm4176_vm3 = vcmp.eq.s32.totalorder %v9960_v28, %v8843_v13  ;;  %vm3924_vm4 = vcmp.eq.s32.totalorder %v9961_v38, %v8822_v53 }
 0x3a8   : > { %4731 = vmatpush.msra.mxu0 %v4706_v26  ;;  %v4722_v19 = vadd.f32 %v4690_v9, %v4622_v30  ;;  %v4211_v14 = vsel %vm4176_vm3, %v8848_v42, 0.0  ;;  %v3959_v8 = vsel %vm3924_vm4, %v8827_v7, 0.0  ;;  %vm3992_vm7 = vcmp.eq.s32.totalorder %v9961_v38, %v8824_v41 }
 0x3a9   : > { %v4143_v45 = vadd.f32 %v4111_v63, %v4043_v50  ;;  %v4027_v36 = vsel %vm3992_vm7, %v8836_v2, 0.0  ;;  %vm4092_vm6 = vcmp.eq.s32.totalorder %v9961_v38, %v8829_v33  ;;  %vm4192_vm5 = vcmp.eq.s32.totalorder %v9961_v38, %v8843_v13 }
 0x3aa   : > { %4751 = vmatpush.msra.mxu1 %v4722_v19  ;;  %v4059_v21 = vadd.f32 %v4027_v36, %v3959_v8  ;;  %v4127_v3 = vsel %vm4092_vm6, %v8841_v10, 0.0  ;;  %v4227_v54 = vsel %vm4192_vm5, %v8848_v42, 0.0  ;;  %vm4370_vm8 = vcmp.eq.s32.totalorder %v5613_v23, %v9013_v49 }
 0x3ab   : > { %v4243_v18 = vadd.f32 %v4211_v14, %v4143_v45  ;;  %v4405_v20 = vsel %vm4370_vm8, %v9017_v55, 0.0  ;;  %vm4438_vm9 = vcmp.eq.s32.totalorder %v5613_v23, %v9015_v47  ;;  %vm4538_vm11 = vcmp.eq.s32.totalorder %v5613_v23, %v9019_v59 }
 0x3ac   : > { %v4159_v35 = vadd.f32 %v4127_v3, %v4059_v21  ;;  %v4473_v31 = vsel %vm4438_vm9, %v9025_v46, 0.0  ;;  %v4573_v0 = vsel %vm4538_vm11, %v9030_v32, 0.0  ;;  %vm4638_vm10 = vcmp.eq.s32.totalorder %v5613_v23, %v9032_v12 }
 0x3ad   : > { %4274 = vmatpush.msrb.mxu2 %v4243_v18  ;;  %v4505_v58 = vadd.f32 %v4473_v31, %v4405_v20  ;;  %v4673_v56 = vsel %vm4638_vm10, %v9037_v57, 0.0  ;;  %vm4386_vm12 = vcmp.eq.s32.totalorder %v5616_v24, %v9013_v49  ;;  %vm4454_vm15 = vcmp.eq.s32.totalorder %v5616_v24, %v9015_v47 }
 0x3ae   : > { %v4259_v44 = vadd.f32 %v4227_v54, %v4159_v35  ;;  %v4421_v27 = vsel %vm4386_vm12, %v9017_v55, 0.0  ;;  %v4489_v11 = vsel %vm4454_vm15, %v9025_v46, 0.0  ;;  %vm4554_vm13 = vcmp.eq.s32.totalorder %v5616_v24, %v9019_v59 }
 0x3af   : > { %v4605_v16 = vadd.f32 %v4573_v0, %v4505_v58  ;;  %v4521_v23 = vadd.f32 %v4489_v11, %v4421_v27  ;;  %v4589_v43 = vsel %vm4554_vm13, %v9030_v32, 0.0  ;;  %vm4654_vm14 = vcmp.eq.s32.totalorder %v5616_v24, %v9032_v12 }
 0x3b0   : > { %4294 = vmatpush.msrb.mxu3 %v4259_v44  ;;  %v4689_v40 = vsel %vm4654_vm14, %v9037_v57, 0.0  ;;  %vm3907_vm0 = vcmp.eq.s32.totalorder %v9962_v48, %v8822_v53  ;;  %vm3975_vm1 = vcmp.eq.s32.totalorder %v9962_v48, %v8824_v41  ;;  %vm4075_vm2 = vcmp.eq.s32.totalorder %v9962_v48, %v8829_v33 }
 0x3b1   : > { %v4705_v51 = vadd.f32 %v4673_v56, %v4605_v16  ;;  %v4621_v61 = vadd.f32 %v4589_v43, %v4521_v23  ;;  %v3942_v34 = vsel %vm3907_vm0, %v8827_v7, 0.0  ;;  %v4010_v1 = vsel %vm3975_vm1, %v8836_v2, 0.0 }
 0x3b2   : > { %v4042_v22 = vadd.f32 %v4010_v1, %v3942_v34  ;;  %v4110_v24 = vsel %vm4075_vm2, %v8841_v10, 0.0  ;;  %vm4175_vm3 = vcmp.eq.s32.totalorder %v9962_v48, %v8843_v13  ;;  %vm3923_vm4 = vcmp.eq.s32.totalorder %v9963_v4, %v8822_v53 }
 0x3b3   : > { %4732 = vmatpush.msra.mxu0 %v4705_v51  ;;  %v4721_v52 = vadd.f32 %v4689_v40, %v4621_v61  ;;  %v4210_v9 = vsel %vm4175_vm3, %v8848_v42, 0.0  ;;  %v3958_v26 = vsel %vm3923_vm4, %v8827_v7, 0.0  ;;  %vm3991_vm7 = vcmp.eq.s32.totalorder %v9963_v4, %v8824_v41 }
 0x3b4   : > { %v4142_v30 = vadd.f32 %v4110_v24, %v4042_v22  ;;  %v4026_v5 = vsel %vm3991_vm7, %v8836_v2, 0.0  ;;  %vm4091_vm6 = vcmp.eq.s32.totalorder %v9963_v4, %v8829_v33  ;;  %vm4191_vm5 = vcmp.eq.s32.totalorder %v9963_v4, %v8843_v13 }
 0x3b5   : > { %4752 = vmatpush.msra.mxu1 %v4721_v52  ;;  %v4058_v17 = vadd.f32 %v4026_v5, %v3958_v26  ;;  %v4126_v50 = vsel %vm4091_vm6, %v8841_v10, 0.0  ;;  %v4226_v63 = vsel %vm4191_vm5, %v8848_v42, 0.0  ;;  %vm4369_vm8 = vcmp.eq.s32.totalorder %v5620_v29, %v9013_v49 }
 0x3b6   : > { %v4242_v19 = vadd.f32 %v4210_v9, %v4142_v30  ;;  %v4404_v14 = vsel %vm4369_vm8, %v9017_v55, 0.0  ;;  %vm4437_vm9 = vcmp.eq.s32.totalorder %v5620_v29, %v9015_v47  ;;  %vm4537_vm11 = vcmp.eq.s32.totalorder %v5620_v29, %v9019_v59 }
 0x3b7   : > { %v4158_v8 = vadd.f32 %v4126_v50, %v4058_v17  ;;  %v4472_v45 = vsel %vm4437_vm9, %v9025_v46, 0.0  ;;  %v4572_v36 = vsel %vm4537_vm11, %v9030_v32, 0.0  ;;  %vm4637_vm10 = vcmp.eq.s32.totalorder %v5620_v29, %v9032_v12 }
 0x3b8   : > { %4275 = vmatpush.msrb.mxu2 %v4242_v19  ;;  %v4504_v21 = vadd.f32 %v4472_v45, %v4404_v14  ;;  %v4672_v3 = vsel %vm4637_vm10, %v9037_v57, 0.0  ;;  %vm4385_vm12 = vcmp.eq.s32.totalorder %v9959_v62, %v9013_v49  ;;  %vm4453_vm15 = vcmp.eq.s32.totalorder %v9959_v62, %v9015_v47  ;;  %v9991_v45 = vld [vmem:[#allocation23_spill] sm:$0xff] }
 0x3b9   : > { %v4258_v54 = vadd.f32 %v4226_v63, %v4158_v8  ;;  %v4420_v18 = vsel %vm4385_vm12, %v9017_v55, 0.0  ;;  %v4488_v20 = vsel %vm4453_vm15, %v9025_v46, 0.0  ;;  %vm4553_vm13 = vcmp.eq.s32.totalorder %v9959_v62, %v9019_v59 }
 0x3ba   : > { %v4604_v35 = vadd.f32 %v4572_v36, %v4504_v21  ;;  %v4520_v29 = vadd.f32 %v4488_v20, %v4420_v18  ;;  %v4588_v31 = vsel %vm4553_vm13, %v9030_v32, 0.0  ;;  %vm4653_vm14 = vcmp.eq.s32.totalorder %v9959_v62, %v9032_v12  ;;  %v9992_v20 = vld [vmem:[#allocation24_spill] sm:$0xff] }
 0x3bb   : > { %4295 = vmatpush.msrb.mxu3 %v4258_v54  ;;  %v4688_v0 = vsel %vm4653_vm14, %v9037_v57, 0.0  ;;  %vm3906_vm0 = vcmp.eq.s32.totalorder %v9964_v25, %v8822_v53  ;;  %vm3974_vm1 = vcmp.eq.s32.totalorder %v9964_v25, %v8824_v41  ;;  %vm4074_vm2 = vcmp.eq.s32.totalorder %v9964_v25, %v8829_v33 }
 0x3bc   : > { %v4704_v58 = vadd.f32 %v4672_v3, %v4604_v35  ;;  %v4620_v56 = vadd.f32 %v4588_v31, %v4520_v29  ;;  %v3941_v44 = vsel %vm3906_vm0, %v8827_v7, 0.0  ;;  %v4009_v27 = vsel %vm3974_vm1, %v8836_v2, 0.0 }
 0x3bd   : > { %v4041_v11 = vadd.f32 %v4009_v27, %v3941_v44  ;;  %v4109_v62 = vsel %vm4074_vm2, %v8841_v10, 0.0  ;;  %vm4174_vm3 = vcmp.eq.s32.totalorder %v9964_v25, %v8843_v13  ;;  %vm3922_vm4 = vcmp.eq.s32.totalorder %v9965_v60, %v8822_v53 }
 0x3be   : > { %4733 = vmatpush.msra.mxu0 %v4704_v58  ;;  %v4720_v16 = vadd.f32 %v4688_v0, %v4620_v56  ;;  %v4209_v23 = vsel %vm4174_vm3, %v8848_v42, 0.0  ;;  %v3957_v43 = vsel %vm3922_vm4, %v8827_v7, 0.0  ;;  %vm3990_vm7 = vcmp.eq.s32.totalorder %v9965_v60, %v8824_v41 }
 0x3bf   : > { %v4141_v40 = vadd.f32 %v4109_v62, %v4041_v11  ;;  %v4025_v51 = vsel %vm3990_vm7, %v8836_v2, 0.0  ;;  %vm4090_vm6 = vcmp.eq.s32.totalorder %v9965_v60, %v8829_v33  ;;  %vm4190_vm5 = vcmp.eq.s32.totalorder %v9965_v60, %v8843_v13 }
 0x3c0   : > { %4753 = vmatpush.msra.mxu1 %v4720_v16  ;;  %v4057_v61 = vadd.f32 %v4025_v51, %v3957_v43  ;;  %v4125_v34 = vsel %vm4090_vm6, %v8841_v10, 0.0  ;;  %v4225_v1 = vsel %vm4190_vm5, %v8848_v42, 0.0  ;;  %vm4368_vm8 = vcmp.eq.s32.totalorder %v9960_v28, %v9013_v49 }
 0x3c1   : > { %v4241_v22 = vadd.f32 %v4209_v23, %v4141_v40  ;;  %v4403_v24 = vsel %vm4368_vm8, %v9017_v55, 0.0  ;;  %vm4436_vm9 = vcmp.eq.s32.totalorder %v9960_v28, %v9015_v47  ;;  %vm4536_vm11 = vcmp.eq.s32.totalorder %v9960_v28, %v9019_v59 }
 0x3c2   : > { %v4157_v52 = vadd.f32 %v4125_v34, %v4057_v61  ;;  %v4471_v9 = vsel %vm4436_vm9, %v9025_v46, 0.0  ;;  %v4571_v26 = vsel %vm4536_vm11, %v9030_v32, 0.0  ;;  %vm4636_vm10 = vcmp.eq.s32.totalorder %v9960_v28, %v9032_v12 }
 0x3c3   : > { %4276 = vmatpush.msrb.mxu2 %v4241_v22  ;;  %v4503_v30 = vadd.f32 %v4471_v9, %v4403_v24  ;;  %v4671_v5 = vsel %vm4636_vm10, %v9037_v57, 0.0  ;;  %vm4384_vm12 = vcmp.eq.s32.totalorder %v9961_v38, %v9013_v49  ;;  %vm4452_vm15 = vcmp.eq.s32.totalorder %v9961_v38, %v9015_v47  ;;  %v9993_v9 = vld [vmem:[#allocation25_spill] sm:$0xff] }
 0x3c4   : > { %v4257_v17 = vadd.f32 %v4225_v1, %v4157_v52  ;;  %v4419_v50 = vsel %vm4384_vm12, %v9017_v55, 0.0  ;;  %v4487_v63 = vsel %vm4452_vm15, %v9025_v46, 0.0  ;;  %vm4552_vm13 = vcmp.eq.s32.totalorder %v9961_v38, %v9019_v59 }
 0x3c5   : > { %v4603_v19 = vadd.f32 %v4571_v26, %v4503_v30  ;;  %v4519_v28 = vadd.f32 %v4487_v63, %v4419_v50  ;;  %v4587_v14 = vsel %vm4552_vm13, %v9030_v32, 0.0  ;;  %vm4652_vm14 = vcmp.eq.s32.totalorder %v9961_v38, %v9032_v12  ;;  %v9994_v63 = vld [vmem:[#allocation26_spill] sm:$0xff] }
 0x3c6   : > { %4296 = vmatpush.msrb.mxu3 %v4257_v17  ;;  %v4687_v8 = vsel %vm4652_vm14, %v9037_v57, 0.0  ;;  %vm3905_vm0 = vcmp.eq.s32.totalorder %v9991_v45, %v8822_v53  ;;  %vm3973_vm1 = vcmp.eq.s32.totalorder %v9991_v45, %v8824_v41  ;;  %vm4073_vm2 = vcmp.eq.s32.totalorder %v9991_v45, %v8829_v33 }
 0x3c7   : > { %v4703_v36 = vadd.f32 %v4671_v5, %v4603_v19  ;;  %v4619_v21 = vadd.f32 %v4587_v14, %v4519_v28  ;;  %v3940_v3 = vsel %vm3905_vm0, %v8827_v7, 0.0  ;;  %v4008_v54 = vsel %vm3973_vm1, %v8836_v2, 0.0 }
 0x3c8   : > { %v4040_v18 = vadd.f32 %v4008_v54, %v3940_v3  ;;  %v4108_v38 = vsel %vm4073_vm2, %v8841_v10, 0.0  ;;  %vm4173_vm3 = vcmp.eq.s32.totalorder %v9991_v45, %v8843_v13  ;;  %vm3921_vm4 = vcmp.eq.s32.totalorder %v9992_v20, %v8822_v53 }
 0x3c9   : > { %4734 = vmatpush.msra.mxu0 %v4703_v36  ;;  %v4719_v35 = vadd.f32 %v4687_v8, %v4619_v21  ;;  %v4208_v29 = vsel %vm4173_vm3, %v8848_v42, 0.0  ;;  %v3956_v31 = vsel %vm3921_vm4, %v8827_v7, 0.0  ;;  %vm3989_vm7 = vcmp.eq.s32.totalorder %v9992_v20, %v8824_v41 }
 0x3ca   : > { %v4140_v0 = vadd.f32 %v4108_v38, %v4040_v18  ;;  %v4024_v58 = vsel %vm3989_vm7, %v8836_v2, 0.0  ;;  %vm4089_vm6 = vcmp.eq.s32.totalorder %v9992_v20, %v8829_v33  ;;  %vm4189_vm5 = vcmp.eq.s32.totalorder %v9992_v20, %v8843_v13 }
 0x3cb   : > { %4754 = vmatpush.msra.mxu1 %v4719_v35  ;;  %v4056_v56 = vadd.f32 %v4024_v58, %v3956_v31  ;;  %v4124_v44 = vsel %vm4089_vm6, %v8841_v10, 0.0  ;;  %v4224_v27 = vsel %vm4189_vm5, %v8848_v42, 0.0  ;;  %vm4367_vm8 = vcmp.eq.s32.totalorder %v9962_v48, %v9013_v49 }
 0x3cc   : > { %v4240_v11 = vadd.f32 %v4208_v29, %v4140_v0  ;;  %v4402_v62 = vsel %vm4367_vm8, %v9017_v55, 0.0  ;;  %vm4435_vm9 = vcmp.eq.s32.totalorder %v9962_v48, %v9015_v47  ;;  %vm4535_vm11 = vcmp.eq.s32.totalorder %v9962_v48, %v9019_v59 }
 0x3cd   : > { %v4156_v16 = vadd.f32 %v4124_v44, %v4056_v56  ;;  %v4470_v23 = vsel %vm4435_vm9, %v9025_v46, 0.0  ;;  %v4570_v43 = vsel %vm4535_vm11, %v9030_v32, 0.0  ;;  %vm4635_vm10 = vcmp.eq.s32.totalorder %v9962_v48, %v9032_v12 }
 0x3ce   : > { %4277 = vmatpush.msrb.mxu2 %v4240_v11  ;;  %v4502_v40 = vadd.f32 %v4470_v23, %v4402_v62  ;;  %v4670_v51 = vsel %vm4635_vm10, %v9037_v57, 0.0  ;;  %vm4383_vm12 = vcmp.eq.s32.totalorder %v9963_v4, %v9013_v49  ;;  %vm4451_vm15 = vcmp.eq.s32.totalorder %v9963_v4, %v9015_v47  ;;  %v9995_v23 = vld [vmem:[#allocation27_spill] sm:$0xff] }
 0x3cf   : > { %v4256_v61 = vadd.f32 %v4224_v27, %v4156_v16  ;;  %v4418_v34 = vsel %vm4383_vm12, %v9017_v55, 0.0  ;;  %v4486_v1 = vsel %vm4451_vm15, %v9025_v46, 0.0  ;;  %vm4551_vm13 = vcmp.eq.s32.totalorder %v9963_v4, %v9019_v59 }
 0x3d0   : > { %v4602_v22 = vadd.f32 %v4570_v43, %v4502_v40  ;;  %v4518_v48 = vadd.f32 %v4486_v1, %v4418_v34  ;;  %v4586_v24 = vsel %vm4551_vm13, %v9030_v32, 0.0  ;;  %vm4651_vm14 = vcmp.eq.s32.totalorder %v9963_v4, %v9032_v12 }
 0x3d1   : > { %4297 = vmatpush.msrb.mxu3 %v4256_v61  ;;  %v4686_v52 = vsel %vm4651_vm14, %v9037_v57, 0.0  ;;  %vm3904_vm0 = vcmp.eq.s32.totalorder %v9993_v9, %v8822_v53  ;;  %vm3972_vm1 = vcmp.eq.s32.totalorder %v9993_v9, %v8824_v41  ;;  %vm4072_vm2 = vcmp.eq.s32.totalorder %v9993_v9, %v8829_v33 }
 0x3d2   : > { %v4702_v26 = vadd.f32 %v4670_v51, %v4602_v22  ;;  %v4618_v30 = vadd.f32 %v4586_v24, %v4518_v48  ;;  %v3939_v5 = vsel %vm3904_vm0, %v8827_v7, 0.0  ;;  %v4007_v17 = vsel %vm3972_vm1, %v8836_v2, 0.0 }
 0x3d3   : > { %v4039_v50 = vadd.f32 %v4007_v17, %v3939_v5  ;;  %v4107_v4 = vsel %vm4072_vm2, %v8841_v10, 0.0  ;;  %vm4172_vm3 = vcmp.eq.s32.totalorder %v9993_v9, %v8843_v13  ;;  %vm3920_vm4 = vcmp.eq.s32.totalorder %v9994_v63, %v8822_v53 }
 0x3d4   : > { %4735 = vmatpush.msra.mxu0 %v4702_v26  ;;  %v4718_v19 = vadd.f32 %v4686_v52, %v4618_v30  ;;  %v4207_v28 = vsel %vm4172_vm3, %v8848_v42, 0.0  ;;  %v3955_v14 = vsel %vm3920_vm4, %v8827_v7, 0.0  ;;  %vm3988_vm7 = vcmp.eq.s32.totalorder %v9994_v63, %v8824_v41 }
 0x3d5   : > { %v4139_v8 = vadd.f32 %v4107_v4, %v4039_v50  ;;  %v4023_v36 = vsel %vm3988_vm7, %v8836_v2, 0.0  ;;  %vm4088_vm6 = vcmp.eq.s32.totalorder %v9994_v63, %v8829_v33  ;;  %vm4188_vm5 = vcmp.eq.s32.totalorder %v9994_v63, %v8843_v13 }
 0x3d6   : > { %4755 = vmatpush.msra.mxu1 %v4718_v19  ;;  %v4055_v21 = vadd.f32 %v4023_v36, %v3955_v14  ;;  %v4123_v3 = vsel %vm4088_vm6, %v8841_v10, 0.0  ;;  %v4223_v54 = vsel %vm4188_vm5, %v8848_v42, 0.0  ;;  %vm4366_vm8 = vcmp.eq.s32.totalorder %v9964_v25, %v9013_v49 }
 0x3d7   : > { %v4239_v18 = vadd.f32 %v4207_v28, %v4139_v8  ;;  %v4401_v38 = vsel %vm4366_vm8, %v9017_v55, 0.0  ;;  %vm4434_vm9 = vcmp.eq.s32.totalorder %v9964_v25, %v9015_v47  ;;  %vm4534_vm11 = vcmp.eq.s32.totalorder %v9964_v25, %v9019_v59 }
 0x3d8   : > { %v4155_v35 = vadd.f32 %v4123_v3, %v4055_v21  ;;  %v4469_v29 = vsel %vm4434_vm9, %v9025_v46, 0.0  ;;  %v4569_v31 = vsel %vm4534_vm11, %v9030_v32, 0.0  ;;  %vm4634_vm10 = vcmp.eq.s32.totalorder %v9964_v25, %v9032_v12 }
 0x3d9   : > { %4278 = vmatpush.msrb.mxu2 %v4239_v18  ;;  %v4501_v0 = vadd.f32 %v4469_v29, %v4401_v38  ;;  %v4669_v58 = vsel %vm4634_vm10, %v9037_v57, 0.0  ;;  %vm4382_vm12 = vcmp.eq.s32.totalorder %v9965_v60, %v9013_v49  ;;  %vm4450_vm15 = vcmp.eq.s32.totalorder %v9965_v60, %v9015_v47 }
 0x3da   : > { %v4255_v56 = vadd.f32 %v4223_v54, %v4155_v35  ;;  %v4417_v44 = vsel %vm4382_vm12, %v9017_v55, 0.0  ;;  %v4485_v27 = vsel %vm4450_vm15, %v9025_v46, 0.0  ;;  %vm4550_vm13 = vcmp.eq.s32.totalorder %v9965_v60, %v9019_v59  ;;  %v9996_v35 = vld [vmem:[#allocation29_spill] sm:$0xff] }
 0x3db   : > { %v4601_v11 = vadd.f32 %v4569_v31, %v4501_v0  ;;  %v4517_v25 = vadd.f32 %v4485_v27, %v4417_v44  ;;  %v4585_v62 = vsel %vm4550_vm13, %v9030_v32, 0.0  ;;  %vm4650_vm14 = vcmp.eq.s32.totalorder %v9965_v60, %v9032_v12  ;;  %v9997_v44 = vld [vmem:[#allocation30_spill] sm:$0xff] }
 0x3dc   : > { %4298 = vmatpush.msrb.mxu3 %v4255_v56  ;;  %v4685_v16 = vsel %vm4650_vm14, %v9037_v57, 0.0  ;;  %vm3903_vm0 = vcmp.eq.s32.totalorder %v9995_v23, %v8822_v53  ;;  %vm3971_vm1 = vcmp.eq.s32.totalorder %v9995_v23, %v8824_v41  ;;  %vm4071_vm2 = vcmp.eq.s32.totalorder %v9995_v23, %v8829_v33 }
 0x3dd   : > { %v4701_v43 = vadd.f32 %v4669_v58, %v4601_v11  ;;  %v4617_v40 = vadd.f32 %v4585_v62, %v4517_v25  ;;  %v3938_v51 = vsel %vm3903_vm0, %v8827_v7, 0.0  ;;  %v4006_v61 = vsel %vm3971_vm1, %v8836_v2, 0.0 }
 0x3de   : > { %v4038_v34 = vadd.f32 %v4006_v61, %v3938_v51  ;;  %v4106_v60 = vsel %vm4071_vm2, %v8841_v10, 0.0  ;;  %vm4171_vm3 = vcmp.eq.s32.totalorder %v9995_v23, %v8843_v13  ;;  %vm3919_vm4 = vcmp.eq.s32.totalorder %v9938_v39, %v8822_v53 }
 0x3df   : > { %4736 = vmatpush.msra.mxu0 %v4701_v43  ;;  %v4717_v1 = vadd.f32 %v4685_v16, %v4617_v40  ;;  %v4206_v22 = vsel %vm4171_vm3, %v8848_v42, 0.0  ;;  %v3954_v48 = vsel %vm3919_vm4, %v8827_v7, 0.0  ;;  %vm3987_vm7 = vcmp.eq.s32.totalorder %v9938_v39, %v8824_v41 }
 0x3e0   : > { %v4138_v24 = vadd.f32 %v4106_v60, %v4038_v34  ;;  %v4022_v52 = vsel %vm3987_vm7, %v8836_v2, 0.0  ;;  %vm4087_vm6 = vcmp.eq.s32.totalorder %v9938_v39, %v8829_v33  ;;  %vm4187_vm5 = vcmp.eq.s32.totalorder %v9938_v39, %v8843_v13 }
 0x3e1   : > { %4756 = vmatpush.msra.mxu1 %v4717_v1  ;;  %v4054_v26 = vadd.f32 %v4022_v52, %v3954_v48  ;;  %v4122_v30 = vsel %vm4087_vm6, %v8841_v10, 0.0  ;;  %v4222_v5 = vsel %vm4187_vm5, %v8848_v42, 0.0  ;;  %vm4365_vm8 = vcmp.eq.s32.totalorder %v9991_v45, %v9013_v49 }
 0x3e2   : > { %v4238_v17 = vadd.f32 %v4206_v22, %v4138_v24  ;;  %v4400_v50 = vsel %vm4365_vm8, %v9017_v55, 0.0  ;;  %vm4433_vm9 = vcmp.eq.s32.totalorder %v9991_v45, %v9015_v47  ;;  %vm4533_vm11 = vcmp.eq.s32.totalorder %v9991_v45, %v9019_v59 }
 0x3e3   : > { %v4154_v4 = vadd.f32 %v4122_v30, %v4054_v26  ;;  %v4468_v19 = vsel %vm4433_vm9, %v9025_v46, 0.0  ;;  %v4568_v28 = vsel %vm4533_vm11, %v9030_v32, 0.0  ;;  %vm4633_vm10 = vcmp.eq.s32.totalorder %v9991_v45, %v9032_v12 }
 0x3e4   : > { %4279 = vmatpush.msrb.mxu2 %v4238_v17  ;;  %v4500_v14 = vadd.f32 %v4468_v19, %v4400_v50  ;;  %v4668_v8 = vsel %vm4633_vm10, %v9037_v57, 0.0  ;;  %vm4381_vm12 = vcmp.eq.s32.totalorder %v9992_v20, %v9013_v49  ;;  %vm4449_vm15 = vcmp.eq.s32.totalorder %v9992_v20, %v9015_v47 }
 0x3e5   : > { %v4254_v36 = vadd.f32 %v4222_v5, %v4154_v4  ;;  %v4416_v21 = vsel %vm4381_vm12, %v9017_v55, 0.0  ;;  %v4484_v3 = vsel %vm4449_vm15, %v9025_v46, 0.0  ;;  %vm4549_vm13 = vcmp.eq.s32.totalorder %v9992_v20, %v9019_v59  ;;  %v9998_v4 = vld [vmem:[#allocation32_spill] sm:$0xff] }
 0x3e6   : > { %v4600_v54 = vadd.f32 %v4568_v28, %v4500_v14  ;;  %v4516_v45 = vadd.f32 %v4484_v3, %v4416_v21  ;;  %v4584_v18 = vsel %vm4549_vm13, %v9030_v32, 0.0  ;;  %vm4649_vm14 = vcmp.eq.s32.totalorder %v9992_v20, %v9032_v12 }
 0x3e7   : > { %4299 = vmatpush.msrb.mxu3 %v4254_v36  ;;  %v4684_v38 = vsel %vm4649_vm14, %v9037_v57, 0.0  ;;  %vm3902_vm0 = vcmp.eq.s32.totalorder %v9996_v35, %v8822_v53  ;;  %vm3970_vm1 = vcmp.eq.s32.totalorder %v9996_v35, %v8824_v41  ;;  %vm4070_vm2 = vcmp.eq.s32.totalorder %v9996_v35, %v8829_v33 }
 0x3e8   : > { %v4700_v29 = vadd.f32 %v4668_v8, %v4600_v54  ;;  %v4616_v31 = vadd.f32 %v4584_v18, %v4516_v45  ;;  %v3937_v0 = vsel %vm3902_vm0, %v8827_v7, 0.0  ;;  %v4005_v58 = vsel %vm3970_vm1, %v8836_v2, 0.0 }
 0x3e9   : > { %v4037_v56 = vadd.f32 %v4005_v58, %v3937_v0  ;;  %v4105_v20 = vsel %vm4070_vm2, %v8841_v10, 0.0  ;;  %vm4170_vm3 = vcmp.eq.s32.totalorder %v9996_v35, %v8843_v13  ;;  %vm3918_vm4 = vcmp.eq.s32.totalorder %v9997_v44, %v8822_v53 }
 0x3ea   : > { %4737 = vmatpush.msra.mxu0 %v4700_v29  ;;  %v4716_v27 = vadd.f32 %v4684_v38, %v4616_v31  ;;  %v4205_v11 = vsel %vm4170_vm3, %v8848_v42, 0.0  ;;  %v3953_v25 = vsel %vm3918_vm4, %v8827_v7, 0.0  ;;  %vm3986_vm7 = vcmp.eq.s32.totalorder %v9997_v44, %v8824_v41 }
 0x3eb   : > { %v4137_v62 = vadd.f32 %v4105_v20, %v4037_v56  ;;  %v4021_v16 = vsel %vm3986_vm7, %v8836_v2, 0.0  ;;  %vm4086_vm6 = vcmp.eq.s32.totalorder %v9997_v44, %v8829_v33  ;;  %vm4186_vm5 = vcmp.eq.s32.totalorder %v9997_v44, %v8843_v13 }
 0x3ec   : > { %4757 = vmatpush.msra.mxu1 %v4716_v27  ;;  %v4053_v43 = vadd.f32 %v4021_v16, %v3953_v25  ;;  %v4121_v40 = vsel %vm4086_vm6, %v8841_v10, 0.0  ;;  %v4221_v51 = vsel %vm4186_vm5, %v8848_v42, 0.0  ;;  %vm4364_vm8 = vcmp.eq.s32.totalorder %v9993_v9, %v9013_v49 }
 0x3ed   : > { %v4237_v61 = vadd.f32 %v4205_v11, %v4137_v62  ;;  %v4399_v34 = vsel %vm4364_vm8, %v9017_v55, 0.0  ;;  %vm4432_vm9 = vcmp.eq.s32.totalorder %v9993_v9, %v9015_v47  ;;  %vm4532_vm11 = vcmp.eq.s32.totalorder %v9993_v9, %v9019_v59 }
 0x3ee   : > { %v4153_v60 = vadd.f32 %v4121_v40, %v4053_v43  ;;  %v4467_v1 = vsel %vm4432_vm9, %v9025_v46, 0.0  ;;  %v4567_v22 = vsel %vm4532_vm11, %v9030_v32, 0.0  ;;  %vm4632_vm10 = vcmp.eq.s32.totalorder %v9993_v9, %v9032_v12 }
 0x3ef   : > { %4280 = vmatpush.msrb.mxu2 %v4237_v61  ;;  %v4499_v48 = vadd.f32 %v4467_v1, %v4399_v34  ;;  %v4667_v24 = vsel %vm4632_vm10, %v9037_v57, 0.0  ;;  %vm4380_vm12 = vcmp.eq.s32.totalorder %v9994_v63, %v9013_v49  ;;  %vm4448_vm15 = vcmp.eq.s32.totalorder %v9994_v63, %v9015_v47 }
 0x3f0   : > { %v4253_v52 = vadd.f32 %v4221_v51, %v4153_v60  ;;  %v4415_v26 = vsel %vm4380_vm12, %v9017_v55, 0.0  ;;  %v4483_v30 = vsel %vm4448_vm15, %v9025_v46, 0.0  ;;  %vm4548_vm13 = vcmp.eq.s32.totalorder %v9994_v63, %v9019_v59 }
 0x3f1   : > { %v4599_v5 = vadd.f32 %v4567_v22, %v4499_v48  ;;  %v4515_v9 = vadd.f32 %v4483_v30, %v4415_v26  ;;  %v4583_v17 = vsel %vm4548_vm13, %v9030_v32, 0.0  ;;  %vm4648_vm14 = vcmp.eq.s32.totalorder %v9994_v63, %v9032_v12 }
 0x3f2   : > { %4300 = vmatpush.msrb.mxu3 %v4253_v52  ;;  %v4683_v50 = vsel %vm4648_vm14, %v9037_v57, 0.0  ;;  %vm3901_vm0 = vcmp.eq.s32.totalorder %v9998_v4, %v8822_v53  ;;  %vm3969_vm1 = vcmp.eq.s32.totalorder %v9998_v4, %v8824_v41  ;;  %vm4069_vm2 = vcmp.eq.s32.totalorder %v9998_v4, %v8829_v33 }
 0x3f3   : > { %v4699_v19 = vadd.f32 %v4667_v24, %v4599_v5  ;;  %v4615_v28 = vadd.f32 %v4583_v17, %v4515_v9  ;;  %v3936_v14 = vsel %vm3901_vm0, %v8827_v7, 0.0  ;;  %v4004_v8 = vsel %vm3969_vm1, %v8836_v2, 0.0 }
 0x3f4   : > { %v4036_v36 = vadd.f32 %v4004_v8, %v3936_v14  ;;  %v4104_v63 = vsel %vm4069_vm2, %v8841_v10, 0.0  ;;  %vm4169_vm3 = vcmp.eq.s32.totalorder %v9998_v4, %v8843_v13  ;;  %vm3917_vm4 = vcmp.eq.s32.totalorder %v5910_v37, %v8822_v53 }
 0x3f5   : > { %4738 = vmatpush.msra.mxu0 %v4699_v19  ;;  %v4715_v21 = vadd.f32 %v4683_v50, %v4615_v28  ;;  %v4204_v3 = vsel %vm4169_vm3, %v8848_v42, 0.0  ;;  %v3952_v54 = vsel %vm3917_vm4, %v8827_v7, 0.0  ;;  %vm3985_vm7 = vcmp.eq.s32.totalorder %v5910_v37, %v8824_v41 }
 0x3f6   : > { %v4136_v45 = vadd.f32 %v4104_v63, %v4036_v36  ;;  %v4020_v18 = vsel %vm3985_vm7, %v8836_v2, 0.0  ;;  %vm4085_vm6 = vcmp.eq.s32.totalorder %v5910_v37, %v8829_v33  ;;  %vm4185_vm5 = vcmp.eq.s32.totalorder %v5910_v37, %v8843_v13 }
 0x3f7   : > { %4758 = vmatpush.msra.mxu1 %v4715_v21  ;;  %v4052_v38 = vadd.f32 %v4020_v18, %v3952_v54  ;;  %v4120_v29 = vsel %vm4085_vm6, %v8841_v10, 0.0  ;;  %v4220_v31 = vsel %vm4185_vm5, %v8848_v42, 0.0  ;;  %vm4363_vm8 = vcmp.eq.s32.totalorder %v9995_v23, %v9013_v49  ;;  %v5101_v54 = vld [vmem:[%s6879_s13 + $0x8] sm:$0xff] }
 0x3f8   : > { %v4236_v0 = vadd.f32 %v4204_v3, %v4136_v45  ;;  %v4398_v58 = vsel %vm4363_vm8, %v9017_v55, 0.0  ;;  %vm4431_vm9 = vcmp.eq.s32.totalorder %v9995_v23, %v9015_v47  ;;  %vm4531_vm11 = vcmp.eq.s32.totalorder %v9995_v23, %v9019_v59 }
 0x3f9   : > { %v4152_v56 = vadd.f32 %v4120_v29, %v4052_v38  ;;  %v4466_v20 = vsel %vm4431_vm9, %v9025_v46, 0.0  ;;  %v4566_v27 = vsel %vm4531_vm11, %v9030_v32, 0.0  ;;  %vm4631_vm10 = vcmp.eq.s32.totalorder %v9995_v23, %v9032_v12 }
 0x3fa   : > { %4281 = vmatpush.msrb.mxu2 %v4236_v0  ;;  %v4498_v11 = vadd.f32 %v4466_v20, %v4398_v58  ;;  %v4666_v25 = vsel %vm4631_vm10, %v9037_v57, 0.0  ;;  %vm4379_vm12 = vcmp.eq.s32.totalorder %v9938_v39, %v9013_v49  ;;  %vm4447_vm15 = vcmp.eq.s32.totalorder %v9938_v39, %v9015_v47 }
 0x3fb   : > { %v4252_v62 = vadd.f32 %v4220_v31, %v4152_v56  ;;  %v4414_v16 = vsel %vm4379_vm12, %v9017_v55, 0.0  ;;  %v4482_v43 = vsel %vm4447_vm15, %v9025_v46, 0.0  ;;  %vm4547_vm13 = vcmp.eq.s32.totalorder %v9938_v39, %v9019_v59 }
 0x3fc   : > { %v4598_v40 = vadd.f32 %v4566_v27, %v4498_v11  ;;  %v4514_v23 = vadd.f32 %v4482_v43, %v4414_v16  ;;  %v4582_v51 = vsel %vm4547_vm13, %v9030_v32, 0.0  ;;  %vm4647_vm14 = vcmp.eq.s32.totalorder %v9938_v39, %v9032_v12 }
 0x3fd   : > { %4301 = vmatpush.msrb.mxu3 %v4252_v62  ;;  %v4682_v61 = vsel %vm4647_vm14, %v9037_v57, 0.0  ;;  %vm3900_vm0 = vcmp.eq.s32.totalorder %v5364_v15, %v8822_v53  ;;  %vm3968_vm1 = vcmp.eq.s32.totalorder %v5364_v15, %v8824_v41  ;;  %vm4068_vm2 = vcmp.eq.s32.totalorder %v5364_v15, %v8829_v33 }
 0x3fe   : > { %v4698_v34 = vadd.f32 %v4666_v25, %v4598_v40  ;;  %v4614_v60 = vadd.f32 %v4582_v51, %v4514_v23  ;;  %v3935_v1 = vsel %vm3900_vm0, %v8827_v7, 0.0  ;;  %v4003_v22 = vsel %vm3968_vm1, %v8836_v2, 0.0 }
 0x3ff   : > { %v4035_v48 = vadd.f32 %v4003_v22, %v3935_v1  ;;  %v4103_v39 = vsel %vm4068_vm2, %v8841_v10, 0.0  ;;  %vm4168_vm3 = vcmp.eq.s32.totalorder %v5364_v15, %v8843_v13  ;;  %vm3916_vm4 = vcmp.eq.s32.totalorder %v6071_v6, %v8822_v53 }
 0x400   : > { %4739 = vmatpush.msra.mxu0 %v4698_v34  ;;  %v4714_v24 = vadd.f32 %v4682_v61, %v4614_v60  ;;  %v4203_v52 = vsel %vm4168_vm3, %v8848_v42, 0.0  ;;  %v3951_v26 = vsel %vm3916_vm4, %v8827_v7, 0.0  ;;  %vm3984_vm7 = vcmp.eq.s32.totalorder %v6071_v6, %v8824_v41 }
 0x401   : > { %v4135_v30 = vadd.f32 %v4103_v39, %v4035_v48  ;;  %v4019_v5 = vsel %vm3984_vm7, %v8836_v2, 0.0  ;;  %vm4084_vm6 = vcmp.eq.s32.totalorder %v6071_v6, %v8829_v33  ;;  %vm4184_vm5 = vcmp.eq.s32.totalorder %v6071_v6, %v8843_v13  ;;  %v1430_v39 = vpop.f32.mrf.mxu3 }
 0x402   : > { %4759 = vmatpush.msra.mxu1 %v4714_v24  ;;  %v4051_v53 = vadd.f32 %v4019_v5, %v3951_v26  ;;  %v4119_v9 = vsel %vm4084_vm6, %v8841_v10, 0.0  ;;  %v4219_v17 = vsel %vm4184_vm5, %v8848_v42, 0.0  ;;  %vm4362_vm8 = vcmp.eq.s32.totalorder %v9996_v35, %v9013_v49  ;;  %v4778_v5 = vld [vmem:[%s9769_s4] sm:$0xff] }
 0x403   : > { %v4235_v7 = vadd.f32 %v4203_v52, %v4135_v30  ;;  %v4397_v41 = vsel %vm4362_vm8, %v9017_v55, 0.0  ;;  %vm4430_vm9 = vcmp.eq.s32.totalorder %v9996_v35, %v9015_v47  ;;  %vm4530_vm11 = vcmp.eq.s32.totalorder %v9996_v35, %v9019_v59 }
 0x404   : > { %v4151_v33 = vadd.f32 %v4119_v9, %v4051_v53  ;;  %v4465_v2 = vsel %vm4430_vm9, %v9025_v46, 0.0  ;;  %v4565_v10 = vsel %vm4530_vm11, %v9030_v32, 0.0  ;;  %vm4630_vm10 = vcmp.eq.s32.totalorder %v9996_v35, %v9032_v12  ;;  %v5100_v35 = vld [vmem:[%s6879_s13] sm:$0xff] }
 0x405   : > { %4282 = vmatpush.msrb.mxu2 %v4235_v7  ;;  %v4497_v13 = vadd.f32 %v4465_v2, %v4397_v41  ;;  %v4665_v42 = vsel %vm4630_vm10, %v9037_v57, 0.0  ;;  %vm4378_vm12 = vcmp.eq.s32.totalorder %v9997_v44, %v9013_v49  ;;  %vm4446_vm15 = vcmp.eq.s32.totalorder %v9997_v44, %v9015_v47 }
 0x406   : > { %v4251_v50 = vadd.f32 %v4219_v17, %v4151_v33  ;;  %v4413_v19 = vsel %vm4378_vm12, %v9017_v55, 0.0  ;;  %v4481_v28 = vsel %vm4446_vm15, %v9025_v46, 0.0  ;;  %vm4546_vm13 = vcmp.eq.s32.totalorder %v9997_v44, %v9019_v59  ;;  %4283 = vmatmul.f32.vlgmr.msrb.gmra.mxu2 %v5100_v35 }
 0x407   : > { %v4597_v14 = vadd.f32 %v4565_v10, %v4497_v13  ;;  %v4513_v8 = vadd.f32 %v4481_v28, %v4413_v19  ;;  %v4581_v36 = vsel %vm4546_vm13, %v9030_v32, 0.0  ;;  %vm4646_vm14 = vcmp.eq.s32.totalorder %v9997_v44, %v9032_v12 }
 0x408   : > { %4302 = vmatpush.msrb.mxu3 %v4251_v50  ;;  %v4681_v63 = vsel %vm4646_vm14, %v9037_v57, 0.0  ;;  %vm4361_vm0 = vcmp.eq.s32.totalorder %v9998_v4, %v9013_v49  ;;  %vm4429_vm1 = vcmp.eq.s32.totalorder %v9998_v4, %v9015_v47  ;;  %vm4529_vm2 = vcmp.eq.s32.totalorder %v9998_v4, %v9019_v59 }
 0x409   : > { %v4697_v21 = vadd.f32 %v4665_v42, %v4597_v14  ;;  %v4613_v3 = vadd.f32 %v4581_v36, %v4513_v8  ;;  %4303 = vmatmul.f32.vlgmr.msrb.gmra.mxu3 %v5101_v54  ;;  %v4396_v45 = vsel %vm4361_vm0, %v9017_v55, 0.0  ;;  %v4464_v44 = vsel %vm4429_vm1, %v9025_v46, 0.0  ;;  %v2390_v26 = vpop.f32.mrf.mxu3  ;;  %v4768_v8 = vld [vmem:[%s9768_s3] sm:$0xff] }
 0x40a   : > { %v4496_v18 = vadd.f32 %v4464_v44, %v4396_v45  ;;  %v4564_v38 = vsel %vm4529_vm2, %v9030_v32, 0.0  ;;  %vm4629_vm3 = vcmp.eq.s32.totalorder %v9998_v4, %v9032_v12  ;;  %vm4377_vm4 = vcmp.eq.s32.totalorder %v5910_v37, %v9013_v49 }
 0x40b   : > { %4740 = vmatpush.msra.mxu0 %v4697_v21  ;;  %v4713_v29 = vadd.f32 %v4681_v63, %v4613_v3  ;;  %v4664_v31 = vsel %vm4629_vm3, %v9037_v57, 0.0  ;;  %v4412_v0 = vsel %vm4377_vm4, %v9017_v55, 0.0  ;;  %vm4445_vm7 = vcmp.eq.s32.totalorder %v5910_v37, %v9015_v47 }
 0x40c   : > { %v4596_v58 = vadd.f32 %v4564_v38, %v4496_v18  ;;  %v4480_v56 = vsel %vm4445_vm7, %v9025_v46, 0.0  ;;  %vm4545_vm6 = vcmp.eq.s32.totalorder %v5910_v37, %v9019_v59  ;;  %vm4645_vm5 = vcmp.eq.s32.totalorder %v5910_v37, %v9032_v12 }
 0x40d   : > { %4760 = vmatpush.msra.mxu1 %v4713_v29  ;;  %v4512_v4 = vadd.f32 %v4480_v56, %v4412_v0  ;;  %v4580_v20 = vsel %vm4545_vm6, %v9030_v32, 0.0  ;;  %v4680_v27 = vsel %vm4645_vm5, %v9037_v57, 0.0  ;;  %vm4360_vm8 = vcmp.eq.s32.totalorder %v5364_v15, %v9013_v49 }
 0x40e   : > { %v4696_v11 = vadd.f32 %v4664_v31, %v4596_v58  ;;  %v4395_v25 = vsel %vm4360_vm8, %v9017_v55, 0.0  ;;  %vm4428_vm9 = vcmp.eq.s32.totalorder %v5364_v15, %v9015_v47  ;;  %vm4528_vm11 = vcmp.eq.s32.totalorder %v5364_v15, %v9019_v59 }
 0x40f   : > { %v4612_v62 = vadd.f32 %v4580_v20, %v4512_v4  ;;  %v4463_v37 = vsel %vm4428_vm9, %v9025_v46, 0.0  ;;  %v4563_v16 = vsel %vm4528_vm11, %v9030_v32, 0.0  ;;  %vm4628_vm10 = vcmp.eq.s32.totalorder %v5364_v15, %v9032_v12 }
 0x410   : > { %4741 = vmatpush.msra.mxu0 %v4696_v11  ;;  %v4495_v43 = vadd.f32 %v4463_v37, %v4395_v25  ;;  %v4663_v40 = vsel %vm4628_vm10, %v9037_v57, 0.0  ;;  %vm4376_vm12 = vcmp.eq.s32.totalorder %v6071_v6, %v9013_v49  ;;  %vm4444_vm15 = vcmp.eq.s32.totalorder %v6071_v6, %v9015_v47 }
 0x411   : > { %v4712_v23 = vadd.f32 %v4680_v27, %v4612_v62  ;;  %v4411_v51 = vsel %vm4376_vm12, %v9017_v55, 0.0  ;;  %v4479_v61 = vsel %vm4444_vm15, %v9025_v46, 0.0  ;;  %vm4544_vm13 = vcmp.eq.s32.totalorder %v6071_v6, %v9019_v59  ;;  %v929_v55 = vpop.f32.mrf.mxu0  ;;  %v949_v46 = vpop.f32.mrf.mxu1 }
 0x412   : > { %v4595_v34 = vadd.f32 %v4563_v16, %v4495_v43  ;;  %v4511_v15 = vadd.f32 %v4479_v61, %v4411_v51  ;;  %v4579_v60 = vsel %vm4544_vm13, %v9030_v32, 0.0  ;;  %vm4644_vm14 = vcmp.eq.s32.totalorder %v6071_v6, %v9032_v12  ;;  %v1410_v59 = vpop.f32.mrf.mxu2 }
 0x413   : > { %4761 = vmatpush.msra.mxu1 %v4712_v23  ;;  %v4679_v49 = vsel %vm4644_vm14, %v9037_v57, 0.0  ;;  %v3345_v57 = vpop.f32.mrf.mxu3  ;;  %v5198_v53 = vmov 0   ;;  %v950_v14 = vadd.f32 %v949_v46, %v929_v55  ;;  %vm4784_vm0 = vcmask 588800  }
 0x414   : > { %v4695_v1 = vadd.f32 %v4663_v40, %v4595_v34  ;;  %v4611_v47 = vadd.f32 %v4579_v60, %v4511_v15  ;;  %5088 = vset.pattern.permute.xlu0 %v5198_v53 }
 0x415   : > { %4781 = vperm.xlu0 %5088, %v4778_v5  }
 0x416   : > { %4742 = vmatpush.msra.mxu0 %v4695_v1  ;;  %v4711_v22 = vadd.f32 %v4679_v49, %v4611_v47 }
 0x417   : > { %4743 = vmatmul.f32.vlgmr.msra.gmra.mxu0 %v5100_v35  ;;  %v1431_v35 = vadd.f32 %v1430_v39, %v1410_v59 }
 0x418   : > { %4762 = vmatpush.msra.mxu1 %v4711_v22 }
 0x419   : > { %4763 = vmatmul.f32.vlgmr.msra.gmra.mxu1 %v5101_v54  ;;  %v1890_v48 = vpop.f32.mrf.mxu0  ;;  %v1910_v24 = vpop.f32.mrf.mxu1 }
 0x41a   : > { %v2370_v32 = vpop.f32.mrf.mxu2  ;;  %v1911_v28 = vadd.f32 %v1910_v24, %v1890_v48 }
 0x41b   : > { %v2391_v19 = vadd.f32 %v2390_v26, %v2370_v32 }
 0x421   : > { %v2846_v52 = vpop.f32.mrf.mxu0  ;;  %v2866_v6 = vpop.f32.mrf.mxu1 }
 0x422   : > { %v3325_v12 = vpop.f32.mrf.mxu2  ;;  %v2867_v50 = vadd.f32 %v2866_v6, %v2846_v52 }
 0x423   : > { %v3346_v42 = vadd.f32 %v3345_v57, %v3325_v12 }
 0x429   : > { %v3805_v30 = vpop.f32.mrf.mxu0  ;;  %v3825_v9 = vpop.f32.mrf.mxu1 }
 0x42a   : > { %v3826_v13 = vadd.f32 %v3825_v9, %v3805_v30 }
 0x487   : > { %v4782_v36 = vpop.permute.xlu0 %4781 }
 0x489   : > { %v4284_v17 = vpop.f32.mrf.mxu2 }
 0x48c   : > { %v4304_v41 = vpop.f32.mrf.mxu3 }
 0x48d   : > { %v4305_v10 = vadd.f32 %v4304_v41, %v4284_v17 }
 0x494   : > { %v4744_v7 = vpop.f32.mrf.mxu0 }
 0x496   : > { %v4764_v33 = vpop.f32.mrf.mxu1 }
 0x497   : > { %v4765_v2 = vadd.f32 %v4764_v33, %v4744_v7 }
 0x499   : > { %4795 = vmatpush.msra.mxu2 %v4765_v2 }
 0x49b   : > { %4796 = vmatpush.msra.mxu2 %v4305_v10 }
 0x49d   : > { %4797 = vmatpush.msra.mxu2 %v3826_v13 }
 0x49f   : > { %4798 = vmatpush.msra.mxu2 %v3346_v42 }
 0x4a1   : > { %4799 = vmatpush.msra.mxu2 %v2867_v50 }
 0x4a3   : > { %4800 = vmatpush.msra.mxu2 %v2391_v19 }
 0x4a5   : > { %4801 = vmatpush.msra.mxu2 %v1911_v28 }
 0x4a7   : > { %4802 = vmatpush.msra.mxu2 %v1431_v35 }
 0x4a9   : > { %4803 = vmatpush.msra.mxu2 %v950_v14 }
 0x4aa   : > { %4970 = vmatmul.msk.f32.vlgmr.msra.gmra.mxu2 %vm4784_vm0, %v4768_v8 }
 0x52d   : > { %v4805_v63 = vpop.f32.mrf.mxu2 }
 0x52e   : > { %v4806_v21 = vadd.f32 %v4805_v63, %v4782_v36 }
 0x530   : > { %4808 = vst [vmem:[%s437_s12] sm:$0xff] %v4806_v21 }
 0x531   : > { %5129 = shalt.err (!%p5126_p11)
}
 0x532   : > { %5016 = dma.vmem_to_hbm [thread:$0]  (%p5299_p8), %s4825_s0, 128, %s4827_s1, %s4810_s17  }
 0x533 PF: > { %p5022_p12 = scmp.ge.s32.totalorder %s5196_s8, 2  ;;  %s4838_s14 = sand.u32 1, %s5168_s24  }
 0x534   : > { %s4839_s10 = scalar_lea.sflag [#allocation6], %s4838_s14 }
 0x535   : > { %p5019_p13 = pnand %p5022_p12, %p5303_p9 }
 0x537   : > { %p5020_p0 = pneg %p5019_p13 }
 0x539   : > { %5163 = dma.done.wait (%p5020_p0), %s4839_s10, 128  }
 0x53a   : > { %5165 = vsyncadd (%p5020_p0), %s4839_s10, 4294967168  ;;  %s20_s8 = sadd.s32 1, %s5196_s8   ;;  %s9999_s0 = sld [smem:[#allocation8_spill]] }
 0x53b   : > { %p17_p1 = scmp.ge.s32.totalorder %s20_s8, 6   ;;  %s10000_s24 = smov %s5172_s25 }
 0x53c   : > { %s10001_s25 = smov %s5176_s26  ;;  %s10002_s26 = smov %s5311_s20 }
 0x53d   : > { %s10003_s27 = smov %s5188_s29  ;;  %s10004_s28 = smov %s5192_s30 }
 0x53e   : > { %s10005_s29 = smov %s10008_s11  ;;  %19 = sbr.rel (!%p17_p1) target bundleno = 8 (0x8), region = 224 }
 0x540   : > { %s10006_s30 = smov %s9999_s0 }
 0x543   :  { %4845 = vsyncpa [#allocation6], 1 }
 0x544   :  { %4847 = vsyncpa [#allocation6 + $0x1], 1 }

</bundles_post_ra>
